<compile_context>
chip_gen: v5e
topology: v5e:2x2
jax: 0.10.0
libtpu: 0.0.40
codegen_flags: <defaults>
</compile_context>

<pallas_src>
import functools

import jax
import jax.numpy as jnp
from jax.experimental import pallas as pl
from jax.experimental.pallas import tpu as pltpu


# ----------------------------------------------------------------------------
# Fused kernel: conv_up (im2col matmul) + bias + ReLU + SE-attention scale
#               + conv_dn (single im2col matmul) + bias.
# One batch element per grid step; everything stays in VMEM.
# ----------------------------------------------------------------------------
def _refine_fused_kernel(patches_ref, w_up_ref, b_up_ref, w1_ref, w2_ref,
                         w_dn_ref, b_dn_ref, o_ref,
                         y_ref, ypad_ref, cols_ref, *, H, W):
    HW = H * W
    c_mid = y_ref.shape[-1]

    # ---- conv_up: one im2col matmul on the MXU (bf16 in, f32 accum) ---------
    y = jnp.dot(patches_ref[0], w_up_ref[...],
                preferred_element_type=jnp.float32)             # (HW, c_mid)
    y_act = jnp.maximum(y + b_up_ref[...], 0.0)                 # bias + ReLU

    # ---- SE attention: pool from the LIVE value (no scratch re-read) --------
    pooled = jnp.sum(y_act, axis=0, keepdims=True) * (1.0 / float(HW))
    # Stage the activation once as bf16 (breaks the 256 KiB f32 live range;
    # conv_dn consumes bf16 anyway).
    y_ref[...] = y_act.astype(jnp.bfloat16)

    h = jnp.maximum(
        jnp.dot(pooled.astype(jnp.bfloat16), w1_ref[...],
                preferred_element_type=jnp.float32), 0.0)
    s = jax.nn.sigmoid(
        jnp.dot(h.astype(jnp.bfloat16), w2_ref[...],
                preferred_element_type=jnp.float32))            # (1, c_mid) f32

    # ---- zero ONLY the halo border ring (interior is overwritten below) -----
    # (done every step: the grid axis is "parallel", so a program_id==0-only
    #  init would be unsafe on multi-core parts.)
    zrow = jnp.zeros((1, W + 2, c_mid), jnp.bfloat16)
    zcol = jnp.zeros((H + 2, 1, c_mid), jnp.bfloat16)
    ypad_ref[0:1, :, :] = zrow
    ypad_ref[H + 1:H + 2, :, :] = zrow
    ypad_ref[:, 0:1, :] = zcol
    ypad_ref[:, W + 1:W + 2, :] = zcol

    # ---- channel scale in f32, cast ONCE to bf16, write interior ------------
    y_scaled = (y_ref[...].astype(jnp.float32) * s).astype(jnp.bfloat16)
    ypad_ref[1:H + 1, 1:W + 1, :] = y_scaled.reshape(H, W, c_mid)

    # ---- conv_dn: build (HW, 9*c_mid) bf16 im2col once, single K matmul -----
    for ky in range(3):
        for kx in range(3):
            idx = ky * 3 + kx
            cols_ref[:, idx * c_mid:(idx + 1) * c_mid] = (
                ypad_ref[ky:ky + H, kx:kx + W, :].reshape(HW, c_mid))

    out = jnp.dot(cols_ref[...], w_dn_ref[...],
                  preferred_element_type=jnp.float32)           # (HW, c_out_pad)
    o_ref[...] = (out + b_dn_ref[...]).reshape(1, HW, o_ref.shape[-1])


# ----------------------------------------------------------------------------
# Wrapper
# ----------------------------------------------------------------------------
def refine_module_forward(x_nchw, params):
    B, cin, H, W = x_nchw.shape
    c_mid = params["w_up"].shape[-1]            # 256
    c_out = params["w_dn"].shape[-1]
    c_red = params["w1"].shape[-1]              # 16
    HW = H * W
    c_out_pad = ((c_out + 127) // 128) * 128    # lane-dense output stores
    assert HW % 8 == 0, "H*W must be a multiple of 8 for (8,128) tiling"

    # input: NCHW -> NHWC -> im2col (B, H*W, 9*Cin) in bf16.  The input is tiny
    # (Cin=4); this makes conv_up a single K=9*Cin matmul and densifies lanes.
    x = jnp.transpose(x_nchw, (0, 2, 3, 1)).astype(jnp.float32)
    xp = jnp.pad(x, ((0, 0), (1, 1), (1, 1), (0, 0)))
    patches = jnp.concatenate(
        [xp[:, ky:ky + H, kx:kx + W, :] for ky in range(3) for kx in range(3)],
        axis=-1).reshape(B, HW, 9 * cin).astype(jnp.bfloat16)

    w_up = params["w_up"].reshape(9 * cin, c_mid).astype(jnp.bfloat16)
    b_up = params["b_up"].astype(jnp.float32)
    w1 = params["w1"].astype(jnp.bfloat16)
    w2 = params["w2"].astype(jnp.bfloat16)
    # conv_dn weights: (3,3,c_mid,c_out) -> pad c_out to 128 -> (9*c_mid, 128),
    # row order (ky, kx, c) matches the in-kernel im2col column order.
    w_dn = jnp.pad(params["w_dn"].astype(jnp.bfloat16),
                   ((0, 0), (0, 0), (0, 0), (0, c_out_pad - c_out))
                   ).reshape(9 * c_mid, c_out_pad)
    b_dn = jnp.pad(params["b_dn"].astype(jnp.float32),
                   ((0, 0), (0, c_out_pad - c_out)))

    flops = int(B * (2 * HW * 9 * cin * c_mid            # conv_up
                     + 4 * c_mid * c_red                 # SE fc1 + fc2
                     + 2 * HW * 9 * c_mid * c_out_pad    # conv_dn
                     + 6 * HW * c_mid))                  # bias/relu/scale/cast
    bytes_accessed = int(
        2 * (patches.size + w_up.size + w1.size + w2.size + w_dn.size)
        + 4 * (b_up.size + b_dn.size)
        + 4 * B * HW * c_out_pad)

    out = pl.pallas_call(
        functools.partial(_refine_fused_kernel, H=H, W=W),
        out_shape=jax.ShapeDtypeStruct((B, HW, c_out_pad), jnp.float32),
        grid_spec=pltpu.PrefetchScalarGridSpec(
            num_scalar_prefetch=0,
            grid=(B,),
            in_specs=[
                pl.BlockSpec((1, HW, 9 * cin), lambda b: (b, 0, 0)),
                pl.BlockSpec((9 * cin, c_mid), lambda b: (0, 0)),
                pl.BlockSpec((1, c_mid), lambda b: (0, 0)),
                pl.BlockSpec((c_mid, c_red), lambda b: (0, 0)),
                pl.BlockSpec((c_red, c_mid), lambda b: (0, 0)),
                pl.BlockSpec((9 * c_mid, c_out_pad), lambda b: (0, 0)),
                pl.BlockSpec((1, c_out_pad), lambda b: (0, 0)),
            ],
            out_specs=pl.BlockSpec((1, HW, c_out_pad), lambda b: (b, 0, 0)),
            scratch_shapes=[
                pltpu.VMEM((HW, c_mid), jnp.bfloat16),            # y post-ReLU
                pltpu.VMEM((H + 2, W + 2, c_mid), jnp.bfloat16),  # haloed scaled y
                pltpu.VMEM((HW, 9 * c_mid), jnp.bfloat16),        # conv_dn im2col
            ],
        ),
        compiler_params=pltpu.CompilerParams(
            dimension_semantics=("parallel",)),
        cost_estimate=pl.CostEstimate(
            flops=flops, transcendentals=int(B * c_mid),
            bytes_accessed=bytes_accessed),
    )(patches, w_up, b_up, w1, w2, w_dn, b_dn)

    z = out[:, :, :c_out].reshape(B, H, W, c_out)
    return jnp.transpose(z, (0, 3, 1, 2))                 # back to NCHW


# ----------------------------------------------------------------------------
# Pure-JAX f32 reference (for numerical verification)
# ----------------------------------------------------------------------------
def _reference(x_nchw, p):
    x = jnp.transpose(x_nchw, (0, 2, 3, 1)).astype(jnp.float32)

    def conv(x, w, b):
        y = jax.lax.conv_general_dilated(
            x, w, window_strides=(1, 1), padding="SAME",
            dimension_numbers=("NHWC", "HWIO", "NHWC"))
        return y + b.reshape(1, 1, 1, -1)

    y = jax.nn.relu(conv(x, p["w_up"], p["b_up"]))
    g = jnp.mean(y, axis=(1, 2))                           # (B, 256)
    s = jax.nn.sigmoid(jax.nn.relu(g @ p["w1"]) @ p["w2"])
    y = y * s[:, None, None, :]
    z = conv(y, p["w_dn"], p["b_dn"])
    return jnp.transpose(z, (0, 3, 1, 2))


# ----------------------------------------------------------------------------
def make_params(key, channel, out, c_mid=256, reduction=16):
    ks = jax.random.split(key, 6)
    f32 = jnp.float32
    return {
        # conv_up: Conv2d(channel, 256, 3, 1, 1)  -> HWIO
        "w_up": 0.05 * jax.random.normal(ks[0], (3, 3, channel, c_mid), f32),
        "b_up": 0.05 * jax.random.normal(ks[1], (1, c_mid), f32),
        # attn.fc: Linear(256,16,no bias), Linear(16,256,no bias) -> (in,out)
        "w1": 0.05 * jax.random.normal(ks[2], (c_mid, c_mid // reduction), f32),
        "w2": 0.05 * jax.random.normal(ks[3], (c_mid // reduction, c_mid), f32),
        # conv_dn: Conv2d(256, out, 3, 1, 1) -> HWIO
        "w_dn": 0.05 * jax.random.normal(ks[4], (3, 3, c_mid, out), f32),
        "b_dn": 0.05 * jax.random.normal(ks[5], (1, out), f32),
    }


if __name__ == "__main__":
    key = jax.random.PRNGKey(0)
    k_x, k_p = jax.random.split(key)

    B, channel, out_c, H, W = 2, 4, 8, 16, 16
    x = jax.random.normal(k_x, (B, channel, H, W), jnp.float32)   # NCHW
    params = make_params(k_p, channel, out_c)

    z = jax.block_until_ready(refine_module_forward(x, params))
    z_ref = jax.block_until_ready(_reference(x, params))

    assert z.shape == (B, out_c, H, W), z.shape
    # bf16 MXU matmuls / bf16-staged activations vs f32 reference.
    assert jnp.allclose(z, z_ref, rtol=2e-2, atol=2e-2), float(
        jnp.max(jnp.abs(z - z_ref)))
    print("KERNEL_OK")
</pallas_src>

<mosaic_0001>
module attributes {stable_mosaic.version = 11 : i64} {
  func.func @_refine_fused_kernel(%arg0: i32, %arg1: memref<1x256x36xbf16, #tpu.memory_space<vmem>>, %arg2: memref<36x256xbf16, #tpu.memory_space<vmem>>, %arg3: memref<1x256xf32, #tpu.memory_space<vmem>>, %arg4: memref<256x16xbf16, #tpu.memory_space<vmem>>, %arg5: memref<16x256xbf16, #tpu.memory_space<vmem>>, %arg6: memref<2304x128xbf16, #tpu.memory_space<vmem>>, %arg7: memref<1x128xf32, #tpu.memory_space<vmem>>, %arg8: memref<1x256x128xf32, #tpu.memory_space<vmem>>, %arg9: memref<256x256xbf16, #tpu.memory_space<vmem>>, %arg10: memref<18x18x256xbf16, #tpu.memory_space<vmem>>, %arg11: memref<256x2304xbf16, #tpu.memory_space<vmem>>) attributes {dimension_semantics = [#tpu.dimension_semantics<parallel>], iteration_bounds = array<i64: 2>, scalar_prefetch = 0 : i64, scratch_operands = 3 : i64, tpu.core_type = #tpu.core_type<tc>, window_params = [{transform_indices = @transform_0, window_bounds = array<i64: 1, 256, 36>}, {pipeline_mode = #tpu.pipeline_mode<synchronous>, transform_indices = @transform_1, window_bounds = array<i64: 36, 256>}, {pipeline_mode = #tpu.pipeline_mode<synchronous>, transform_indices = @transform_2, window_bounds = array<i64: 1, 256>}, {pipeline_mode = #tpu.pipeline_mode<synchronous>, transform_indices = @transform_3, window_bounds = array<i64: 256, 16>}, {pipeline_mode = #tpu.pipeline_mode<synchronous>, transform_indices = @transform_4, window_bounds = array<i64: 16, 256>}, {pipeline_mode = #tpu.pipeline_mode<synchronous>, transform_indices = @transform_5, window_bounds = array<i64: 2304, 128>}, {pipeline_mode = #tpu.pipeline_mode<synchronous>, transform_indices = @transform_6, window_bounds = array<i64: 1, 128>}, {transform_indices = @transform_7, window_bounds = array<i64: 1, 256, 128>}]} {
    %c0 = arith.constant 0 : index
    %c0_0 = arith.constant 0 : index
    %c0_1 = arith.constant 0 : index
    %0 = vector.load %arg1[%c0, %c0_0, %c0_1] : memref<1x256x36xbf16, #tpu.memory_space<vmem>>, vector<1x256x36xbf16>
    %1 = vector.shape_cast %0 : vector<1x256x36xbf16> to vector<256x36xbf16>
    %c0_2 = arith.constant 0 : index
    %c0_3 = arith.constant 0 : index
    %2 = vector.load %arg2[%c0_2, %c0_3] : memref<36x256xbf16, #tpu.memory_space<vmem>>, vector<36x256xbf16>
    %cst = arith.constant dense<0.000000e+00> : vector<256x256xf32>
    %3 = tpu.matmul %1, %2, %cst {dimension_numbers = #tpu.dot_dimension_numbers<[1], [0], [0], [1], [0, 0, 1, 1], [], []>} : vector<256x36xbf16>, vector<36x256xbf16>, vector<256x256xf32> -> vector<256x256xf32>
    %c0_4 = arith.constant 0 : index
    %c0_5 = arith.constant 0 : index
    %4 = vector.load %arg3[%c0_4, %c0_5] : memref<1x256xf32, #tpu.memory_space<vmem>>, vector<1x256xf32>
    %5 = vector.broadcast %4 : vector<1x256xf32> to vector<256x256xf32>
    %6 = arith.addf %3, %5 : vector<256x256xf32>
    %cst_6 = arith.constant 0.000000e+00 : f32
    %7 = vector.broadcast %cst_6 : f32 to vector<256x256xf32>
    %8 = arith.maximumf %6, %7 : vector<256x256xf32>
    %cst_7 = arith.constant dense<0.000000e+00> : vector<256xf32>
    %9 = vector.multi_reduction <add>, %8, %cst_7 [0] : vector<256x256xf32> to vector<256xf32>
    %10 = vector.shape_cast %9 : vector<256xf32> to vector<1x256xf32>
    %cst_8 = arith.constant 3.906250e-03 : f32
    %11 = vector.broadcast %cst_8 : f32 to vector<1x256xf32>
    %12 = arith.mulf %10, %11 : vector<1x256xf32>
    %13 = arith.truncf %8 : vector<256x256xf32> to vector<256x256xbf16>
    %c0_9 = arith.constant 0 : index
    %c0_10 = arith.constant 0 : index
    %14 = vector.load %arg9[%c0_9, %c0_10] : memref<256x256xbf16, #tpu.memory_space<vmem>>, vector<256x256xbf16>
    tpu.vector_store %arg9[%c0_9, %c0_10], %13 {strides = array<i32>} : memref<256x256xbf16, #tpu.memory_space<vmem>>, vector<256x256xbf16>,
    %15 = arith.truncf %12 : vector<1x256xf32> to vector<1x256xbf16>
    %c0_11 = arith.constant 0 : index
    %c0_12 = arith.constant 0 : index
    %16 = vector.load %arg4[%c0_11, %c0_12] : memref<256x16xbf16, #tpu.memory_space<vmem>>, vector<256x16xbf16>
    %cst_13 = arith.constant dense<0.000000e+00> : vector<1x16xf32>
    %17 = tpu.matmul %15, %16, %cst_13 {dimension_numbers = #tpu.dot_dimension_numbers<[1], [0], [0], [1], [0, 0, 1, 1], [], []>} : vector<1x256xbf16>, vector<256x16xbf16>, vector<1x16xf32> -> vector<1x16xf32>
    %cst_14 = arith.constant 0.000000e+00 : f32
    %18 = vector.broadcast %cst_14 : f32 to vector<1x16xf32>
    %19 = arith.maximumf %17, %18 : vector<1x16xf32>
    %20 = arith.truncf %19 : vector<1x16xf32> to vector<1x16xbf16>
    %c0_15 = arith.constant 0 : index
    %c0_16 = arith.constant 0 : index
    %21 = vector.load %arg5[%c0_15, %c0_16] : memref<16x256xbf16, #tpu.memory_space<vmem>>, vector<16x256xbf16>
    %cst_17 = arith.constant dense<0.000000e+00> : vector<1x256xf32>
    %22 = tpu.matmul %20, %21, %cst_17 {dimension_numbers = #tpu.dot_dimension_numbers<[1], [0], [0], [1], [0, 0, 1, 1], [], []>} : vector<1x16xbf16>, vector<16x256xbf16>, vector<1x256xf32> -> vector<1x256xf32>
    %23 = arith.negf %22 : vector<1x256xf32>
    %24 = math.exp %23 : vector<1x256xf32>
    %cst_18 = arith.constant 1.000000e+00 : f32
    %25 = vector.broadcast %cst_18 : f32 to vector<1x256xf32>
    %26 = arith.addf %25, %24 : vector<1x256xf32>
    %27 = arith.divf %25, %26 : vector<1x256xf32>
    %cst_19 = arith.constant 0.000000e+00 : bf16
    %28 = vector.broadcast %cst_19 : bf16 to vector<1x18x256xbf16>
    %cst_20 = arith.constant 0.000000e+00 : bf16
    %29 = vector.broadcast %cst_20 : bf16 to vector<18x1x256xbf16>
    %c0_21 = arith.constant 0 : index
    %c0_22 = arith.constant 0 : index
    %c0_23 = arith.constant 0 : index
    %30 = vector.load %arg10[%c0_21, %c0_22, %c0_23] : memref<18x18x256xbf16, #tpu.memory_space<vmem>>, vector<1x18x256xbf16>
    tpu.vector_store %arg10[%c0_21, %c0_22, %c0_23], %28 {strides = array<i32>} : memref<18x18x256xbf16, #tpu.memory_space<vmem>>, vector<1x18x256xbf16>,
    %c17 = arith.constant 17 : index
    %c0_24 = arith.constant 0 : index
    %c0_25 = arith.constant 0 : index
    %31 = vector.load %arg10[%c17, %c0_24, %c0_25] : memref<18x18x256xbf16, #tpu.memory_space<vmem>>, vector<1x18x256xbf16>
    tpu.vector_store %arg10[%c17, %c0_24, %c0_25], %28 {strides = array<i32>} : memref<18x18x256xbf16, #tpu.memory_space<vmem>>, vector<1x18x256xbf16>,
    %c0_26 = arith.constant 0 : index
    %c0_27 = arith.constant 0 : index
    %c0_28 = arith.constant 0 : index
    %32 = vector.load %arg10[%c0_26, %c0_27, %c0_28] : memref<18x18x256xbf16, #tpu.memory_space<vmem>>, vector<18x1x256xbf16>
    tpu.vector_store %arg10[%c0_26, %c0_27, %c0_28], %29 {strides = array<i32>} : memref<18x18x256xbf16, #tpu.memory_space<vmem>>, vector<18x1x256xbf16>,
    %c0_29 = arith.constant 0 : index
    %c17_30 = arith.constant 17 : index
    %c0_31 = arith.constant 0 : index
    %33 = vector.load %arg10[%c0_29, %c17_30, %c0_31] : memref<18x18x256xbf16, #tpu.memory_space<vmem>>, vector<18x1x256xbf16>
    tpu.vector_store %arg10[%c0_29, %c17_30, %c0_31], %29 {strides = array<i32>} : memref<18x18x256xbf16, #tpu.memory_space<vmem>>, vector<18x1x256xbf16>,
    %c0_32 = arith.constant 0 : index
    %c0_33 = arith.constant 0 : index
    %34 = vector.load %arg9[%c0_32, %c0_33] : memref<256x256xbf16, #tpu.memory_space<vmem>>, vector<256x256xbf16>
    %35 = arith.extf %34 : vector<256x256xbf16> to vector<256x256xf32>
    %36 = vector.broadcast %27 : vector<1x256xf32> to vector<256x256xf32>
    %37 = arith.mulf %35, %36 : vector<256x256xf32>
    %38 = arith.truncf %37 : vector<256x256xf32> to vector<256x256xbf16>
    %39 = vector.shape_cast %38 : vector<256x256xbf16> to vector<16x16x256xbf16>
    %c1 = arith.constant 1 : index
    %c1_34 = arith.constant 1 : index
    %c0_35 = arith.constant 0 : index
    %40 = vector.load %arg10[%c1, %c1_34, %c0_35] : memref<18x18x256xbf16, #tpu.memory_space<vmem>>, vector<16x16x256xbf16>
    tpu.vector_store %arg10[%c1, %c1_34, %c0_35], %39 {strides = array<i32>} : memref<18x18x256xbf16, #tpu.memory_space<vmem>>, vector<16x16x256xbf16>,
    %c0_36 = arith.constant 0 : index
    %c0_37 = arith.constant 0 : index
    %c0_38 = arith.constant 0 : index
    %41 = vector.load %arg10[%c0_36, %c0_37, %c0_38] : memref<18x18x256xbf16, #tpu.memory_space<vmem>>, vector<16x16x256xbf16>
    %42 = vector.shape_cast %41 : vector<16x16x256xbf16> to vector<256x256xbf16>
    %c0_39 = arith.constant 0 : index
    %c0_40 = arith.constant 0 : index
    %43 = vector.load %arg11[%c0_39, %c0_40] : memref<256x2304xbf16, #tpu.memory_space<vmem>>, vector<256x256xbf16>
    tpu.vector_store %arg11[%c0_39, %c0_40], %42 {strides = array<i32>} : memref<256x2304xbf16, #tpu.memory_space<vmem>>, vector<256x256xbf16>,
    %c0_41 = arith.constant 0 : index
    %c1_42 = arith.constant 1 : index
    %c0_43 = arith.constant 0 : index
    %44 = vector.load %arg10[%c0_41, %c1_42, %c0_43] : memref<18x18x256xbf16, #tpu.memory_space<vmem>>, vector<16x16x256xbf16>
    %45 = vector.shape_cast %44 : vector<16x16x256xbf16> to vector<256x256xbf16>
    %c0_44 = arith.constant 0 : index
    %c256 = arith.constant 256 : index
    %46 = vector.load %arg11[%c0_44, %c256] : memref<256x2304xbf16, #tpu.memory_space<vmem>>, vector<256x256xbf16>
    tpu.vector_store %arg11[%c0_44, %c256], %45 {strides = array<i32>} : memref<256x2304xbf16, #tpu.memory_space<vmem>>, vector<256x256xbf16>,
    %c0_45 = arith.constant 0 : index
    %c2 = arith.constant 2 : index
    %c0_46 = arith.constant 0 : index
    %47 = vector.load %arg10[%c0_45, %c2, %c0_46] : memref<18x18x256xbf16, #tpu.memory_space<vmem>>, vector<16x16x256xbf16>
    %48 = vector.shape_cast %47 : vector<16x16x256xbf16> to vector<256x256xbf16>
    %c0_47 = arith.constant 0 : index
    %c512 = arith.constant 512 : index
    %49 = vector.load %arg11[%c0_47, %c512] : memref<256x2304xbf16, #tpu.memory_space<vmem>>, vector<256x256xbf16>
    tpu.vector_store %arg11[%c0_47, %c512], %48 {strides = array<i32>} : memref<256x2304xbf16, #tpu.memory_space<vmem>>, vector<256x256xbf16>,
    %c1_48 = arith.constant 1 : index
    %c0_49 = arith.constant 0 : index
    %c0_50 = arith.constant 0 : index
    %50 = vector.load %arg10[%c1_48, %c0_49, %c0_50] : memref<18x18x256xbf16, #tpu.memory_space<vmem>>, vector<16x16x256xbf16>
    %51 = vector.shape_cast %50 : vector<16x16x256xbf16> to vector<256x256xbf16>
    %c0_51 = arith.constant 0 : index
    %c768 = arith.constant 768 : index
    %52 = vector.load %arg11[%c0_51, %c768] : memref<256x2304xbf16, #tpu.memory_space<vmem>>, vector<256x256xbf16>
    tpu.vector_store %arg11[%c0_51, %c768], %51 {strides = array<i32>} : memref<256x2304xbf16, #tpu.memory_space<vmem>>, vector<256x256xbf16>,
    %c1_52 = arith.constant 1 : index
    %c1_53 = arith.constant 1 : index
    %c0_54 = arith.constant 0 : index
    %53 = vector.load %arg10[%c1_52, %c1_53, %c0_54] : memref<18x18x256xbf16, #tpu.memory_space<vmem>>, vector<16x16x256xbf16>
    %54 = vector.shape_cast %53 : vector<16x16x256xbf16> to vector<256x256xbf16>
    %c0_55 = arith.constant 0 : index
    %c1024 = arith.constant 1024 : index
    %55 = vector.load %arg11[%c0_55, %c1024] : memref<256x2304xbf16, #tpu.memory_space<vmem>>, vector<256x256xbf16>
    tpu.vector_store %arg11[%c0_55, %c1024], %54 {strides = array<i32>} : memref<256x2304xbf16, #tpu.memory_space<vmem>>, vector<256x256xbf16>,
    %c1_56 = arith.constant 1 : index
    %c2_57 = arith.constant 2 : index
    %c0_58 = arith.constant 0 : index
    %56 = vector.load %arg10[%c1_56, %c2_57, %c0_58] : memref<18x18x256xbf16, #tpu.memory_space<vmem>>, vector<16x16x256xbf16>
    %57 = vector.shape_cast %56 : vector<16x16x256xbf16> to vector<256x256xbf16>
    %c0_59 = arith.constant 0 : index
    %c1280 = arith.constant 1280 : index
    %58 = vector.load %arg11[%c0_59, %c1280] : memref<256x2304xbf16, #tpu.memory_space<vmem>>, vector<256x256xbf16>
    tpu.vector_store %arg11[%c0_59, %c1280], %57 {strides = array<i32>} : memref<256x2304xbf16, #tpu.memory_space<vmem>>, vector<256x256xbf16>,
    %c2_60 = arith.constant 2 : index
    %c0_61 = arith.constant 0 : index
    %c0_62 = arith.constant 0 : index
    %59 = vector.load %arg10[%c2_60, %c0_61, %c0_62] : memref<18x18x256xbf16, #tpu.memory_space<vmem>>, vector<16x16x256xbf16>
    %60 = vector.shape_cast %59 : vector<16x16x256xbf16> to vector<256x256xbf16>
    %c0_63 = arith.constant 0 : index
    %c1536 = arith.constant 1536 : index
    %61 = vector.load %arg11[%c0_63, %c1536] : memref<256x2304xbf16, #tpu.memory_space<vmem>>, vector<256x256xbf16>
    tpu.vector_store %arg11[%c0_63, %c1536], %60 {strides = array<i32>} : memref<256x2304xbf16, #tpu.memory_space<vmem>>, vector<256x256xbf16>,
    %c2_64 = arith.constant 2 : index
    %c1_65 = arith.constant 1 : index
    %c0_66 = arith.constant 0 : index
    %62 = vector.load %arg10[%c2_64, %c1_65, %c0_66] : memref<18x18x256xbf16, #tpu.memory_space<vmem>>, vector<16x16x256xbf16>
    %63 = vector.shape_cast %62 : vector<16x16x256xbf16> to vector<256x256xbf16>
    %c0_67 = arith.constant 0 : index
    %c1792 = arith.constant 1792 : index
    %64 = vector.load %arg11[%c0_67, %c1792] : memref<256x2304xbf16, #tpu.memory_space<vmem>>, vector<256x256xbf16>
    tpu.vector_store %arg11[%c0_67, %c1792], %63 {strides = array<i32>} : memref<256x2304xbf16, #tpu.memory_space<vmem>>, vector<256x256xbf16>,
    %c2_68 = arith.constant 2 : index
    %c2_69 = arith.constant 2 : index
    %c0_70 = arith.constant 0 : index
    %65 = vector.load %arg10[%c2_68, %c2_69, %c0_70] : memref<18x18x256xbf16, #tpu.memory_space<vmem>>, vector<16x16x256xbf16>
    %66 = vector.shape_cast %65 : vector<16x16x256xbf16> to vector<256x256xbf16>
    %c0_71 = arith.constant 0 : index
    %c2048 = arith.constant 2048 : index
    %67 = vector.load %arg11[%c0_71, %c2048] : memref<256x2304xbf16, #tpu.memory_space<vmem>>, vector<256x256xbf16>
    tpu.vector_store %arg11[%c0_71, %c2048], %66 {strides = array<i32>} : memref<256x2304xbf16, #tpu.memory_space<vmem>>, vector<256x256xbf16>,
    %c0_72 = arith.constant 0 : index
    %c0_73 = arith.constant 0 : index
    %68 = vector.load %arg11[%c0_72, %c0_73] : memref<256x2304xbf16, #tpu.memory_space<vmem>>, vector<256x2304xbf16>
    %c0_74 = arith.constant 0 : index
    %c0_75 = arith.constant 0 : index
    %69 = vector.load %arg6[%c0_74, %c0_75] : memref<2304x128xbf16, #tpu.memory_space<vmem>>, vector<2304x128xbf16>
    %cst_76 = arith.constant dense<0.000000e+00> : vector<256x128xf32>
    %70 = tpu.matmul %68, %69, %cst_76 {dimension_numbers = #tpu.dot_dimension_numbers<[1], [0], [0], [1], [0, 0, 1, 1], [], []>} : vector<256x2304xbf16>, vector<2304x128xbf16>, vector<256x128xf32> -> vector<256x128xf32>
    %c0_77 = arith.constant 0 : index
    %c0_78 = arith.constant 0 : index
    %71 = vector.load %arg7[%c0_77, %c0_78] : memref<1x128xf32, #tpu.memory_space<vmem>>, vector<1x128xf32>
    %72 = vector.broadcast %71 : vector<1x128xf32> to vector<256x128xf32>
    %73 = arith.addf %70, %72 : vector<256x128xf32>
    %74 = vector.shape_cast %73 : vector<256x128xf32> to vector<1x256x128xf32>
    %c0_79 = arith.constant 0 : index
    %c0_80 = arith.constant 0 : index
    %c0_81 = arith.constant 0 : index
    %75 = vector.load %arg8[%c0_79, %c0_80, %c0_81] : memref<1x256x128xf32, #tpu.memory_space<vmem>>, vector<1x256x128xf32>
    tpu.vector_store %arg8[%c0_79, %c0_80, %c0_81], %74 {strides = array<i32>} : memref<1x256x128xf32, #tpu.memory_space<vmem>>, vector<1x256x128xf32>,
    return
  }
  func.func @transform_0(%arg0: i32) -> (i32, i32, i32) {
    %c0_i32 = arith.constant 0 : i32
    %c0_i32_0 = arith.constant 0 : i32
    %c0_i32_1 = arith.constant 0 : i32
    return %arg0, %c0_i32, %c0_i32_0 : i32, i32, i32
  }
  func.func @transform_1(%arg0: i32) -> (i32, i32) {
    %c0_i32 = arith.constant 0 : i32
    %c0_i32_0 = arith.constant 0 : i32
    %c0_i32_1 = arith.constant 0 : i32
    return %c0_i32, %c0_i32_0 : i32, i32
  }
  func.func @transform_2(%arg0: i32) -> (i32, i32) {
    %c0_i32 = arith.constant 0 : i32
    %c0_i32_0 = arith.constant 0 : i32
    %c0_i32_1 = arith.constant 0 : i32
    return %c0_i32, %c0_i32_0 : i32, i32
  }
  func.func @transform_3(%arg0: i32) -> (i32, i32) {
    %c0_i32 = arith.constant 0 : i32
    %c0_i32_0 = arith.constant 0 : i32
    %c0_i32_1 = arith.constant 0 : i32
    return %c0_i32, %c0_i32_0 : i32, i32
  }
  func.func @transform_4(%arg0: i32) -> (i32, i32) {
    %c0_i32 = arith.constant 0 : i32
    %c0_i32_0 = arith.constant 0 : i32
    %c0_i32_1 = arith.constant 0 : i32
    return %c0_i32, %c0_i32_0 : i32, i32
  }
  func.func @transform_5(%arg0: i32) -> (i32, i32) {
    %c0_i32 = arith.constant 0 : i32
    %c0_i32_0 = arith.constant 0 : i32
    %c0_i32_1 = arith.constant 0 : i32
    return %c0_i32, %c0_i32_0 : i32, i32
  }
  func.func @transform_6(%arg0: i32) -> (i32, i32) {
    %c0_i32 = arith.constant 0 : i32
    %c0_i32_0 = arith.constant 0 : i32
    %c0_i32_1 = arith.constant 0 : i32
    return %c0_i32, %c0_i32_0 : i32, i32
  }
  func.func @transform_7(%arg0: i32) -> (i32, i32, i32) {
    %c0_i32 = arith.constant 0 : i32
    %c0_i32_0 = arith.constant 0 : i32
    %c0_i32_1 = arith.constant 0 : i32
    return %arg0, %c0_i32, %c0_i32_0 : i32, i32, i32
  }
}

</mosaic_0001>

<bundles_post_ra>
// kernel: tpu_custom_call.1
= control target key start
LH: loop header
LB: loop body
LE: loop exit
PB: predicated region body
PF: predicated region fallthrough
CT: control target
= control target key end

     0   :  { %12 = vsyncpa [#allocation6], 0  ;;  %s14109_s0 = inlined_call_operand.vmem [shape: bf16[2,256,36], index: 0, kind: input, shape index: {}]   ;;  %s14110_s1 = inlined_call_operand.vmem [shape: bf16[36,256], index: 1, kind: input, shape index: {}]   ;;  %s14111_s2 = inlined_call_operand.vmem [shape: f32[1,256], index: 2, kind: input, shape index: {}]   ;;  %s14112_s3 = inlined_call_operand.vmem [shape: bf16[256,16], index: 3, kind: input, shape index: {}]   ;;  %s14113_s4 = inlined_call_operand.vmem [shape: bf16[16,256], index: 4, kind: input, shape index: {}]   ;;  %s14114_s5 = inlined_call_operand.hbm [shape: bf16[2304,128], index: 5, kind: input, shape index: {}]   ;;  %s14115_s6 = inlined_call_operand.vmem [shape: f32[1,128], index: 6, kind: input, shape index: {}]   ;;  %s14116_s7 = inlined_call_operand.hbm [shape: f32[2,256,128], index: 7, kind: output, shape index: {}]  }
   0x1   :  { %13 = vsyncpa [#allocation7], 0 }
   0x2   :  { %15 = vsyncpa [#allocation7 + $0x1], 0  ;;  %s11655_s24 = smov 0   ;;  %s11657_s25 = smov 0  }
   0x3   :  { %s11659_s26 = smov 0   ;;  %s11661_s27 = smov 0  }
   0x4 LB: > { %s11676_s28 = sadd.s32 4294967295, %s11607_s27   ;;  %s8991_s29 = sadd.s32 4294967294, %s11607_s27   ;;  %s11607_s27 = sphi %s11661_s27, %s14238_s27   ;;  %s11603_s26 = sphi %s11659_s26, %s14237_s26   ;;  %s11599_s25 = sphi %s11657_s25, %s14236_s25   ;;  %s11595_s24 = sphi %s11655_s24, %s14235_s24  }
   0x5   : > { %s11680_s30 = sadd.s32 1, %s11607_s27   ;;  %s180_s8 = sadd.s32 1, %s11603_s26 }
   0x6   : > { %s177_s9 = ssub.s32 %s11607_s27, %s11680_s30  ;;  %p190_p0 = scmp.ne.s32.totalorder %s11603_s26, %s11599_s25 }
   0x7   : > { %p178_p1 = scmp.eq.s32.totalorder %s177_s9, 0  ;;  %p191_p2 = scmp.eq.s32.totalorder %s11676_s28, 1 }
   0x8   : > { %p196_p3 = scmp.ne.s32.totalorder %s11599_s25, %s11595_s24  ;;  %p197_p4 = scmp.eq.s32.totalorder %s8991_s29, 1 }
   0x9   : > { %s11691_s10 = scalar_select %p178_p1, %s11603_s26, %s180_s8  }
   0xa   : > { %p11693_p5 = por %p191_p2, %p190_p0  ;;  %p11697_p6 = por %p197_p4, %p196_p3 }
   0xb   : > { %p8992_p7 = scmp.ge.s32.totalorder %s11607_s27, 1  ;;  %p204_p8 = scmp.lt.s32.totalorder %s11607_s27, 3 }
   0xc   : > { %p11455_p9 = scmp.eq.s32.totalorder %s11676_s28, 0  ;;  %s227_s15 = sshll.u32 %s14114_s5, 4  ;;  %s228_s15 = int_to_ptr.hbm [resolvable:$true] %s227_s15 }
   0xd   : > { %p205_p10 = pnand %p8992_p7, %p204_p8  ;;  %s11609_s16 = smov [#allocation5]  }
   0xe   : > { %s229_s17 = sshll.u32 %s11609_s16, 4  ;;  %s11610_s18 = smov 64   ;;  %s230_s17 = int_to_ptr.vmem [resolvable:$true] %s229_s17 }
   0xf   : > { %p11447_p11 = pneg %p205_p10  ;;  %s11611_s19 = smov 4  }
  0x10   : > { %256 = sbr.rel (%p205_p10) target bundleno = 2275 (0x8e3), region = 48 }
  0x11   : > { %p11448_p12 = pnand %p11455_p9, %p11447_p11 }
  0x13   : > { %11450 = dma.hbm_to_vmem [thread:$0]  (!%p11448_p12), %s228_s15, 18432, %s230_s17, [#allocation6], %s11610_s18, %s11610_s18, %s11611_s19  }
  0x15   : > { %11586 = dma.done.wait (%p11455_p9), [#allocation6], 18432  }
  0x16   : > { %11588 = vsyncadd (%p11455_p9), [#allocation6], 4294948864  ;;  %p289_p13 = scmp.lt.s32.totalorder %s11676_s28, 1  ;;  %v331_v0 = vld [vmem:[%s14110_s1 + $0x20] sm:$0x33]  ;;  %vm492_vm0 = vcmask 1041408  }
  0x17   : > { %v431_v1 = vunpack.c.l.b16 %v331_v0  ;;  %v432_v2 = vunpack.c.h.b16 %v331_v0  ;;  %v9074_v3 = vld [vmem:[%s14110_s1 + $0x10] sm:$0xf]  ;;  %v10989_v6 = vld [vmem:[%s14110_s1 + $0x14] sm:$0xf0]  ;;  %v10988_v7 = vld [vmem:[%s14110_s1 + $0x14] sm:$0xf] }
  0x18   : > { %s290_s29 = scalar_select %p289_p13, %s11676_s28, 1  ;;  %v9076_v8 = vld [vmem:[%s14110_s1 + $0x18] sm:$0xf0]  ;;  %v9075_v11 = vor.u32 %v10989_v6, %v9074_v3  ;;  %v9066_v13 = vld [vmem:[%s14110_s1] sm:$0xf]  ;;  %vm443_vm1 = vcmask 293888  }
  0x19   : > { %v437_v4 = vpack.c.b16 %v431_v1, %v431_v1  ;;  %v438_v5 = vpack.c.b16 %v432_v2, %v432_v2  ;;  %v9079_v12 = vor.u32 %v10988_v7, %v9076_v8  ;;  %v10987_v14 = vld [vmem:[%s14110_s1 + $0x4] sm:$0xf0]  ;;  %v10986_v15 = vld [vmem:[%s14110_s1 + $0x4] sm:$0xf]  ;;  %v9068_v16 = vld [vmem:[%s14110_s1 + $0x8] sm:$0xf0] }
  0x1a   : > { %s10969_s19 = sshll.u32 %s290_s29, 7  ;;  %v9067_v17 = vor.u32 %v10987_v14, %v9066_v13  ;;  %v9071_v18 = vor.u32 %v10986_v15, %v9068_v16  ;;  %vm1126_vm2 = vcmask 1040384   ;;  %vm1127_vm3 = vsmask.f32 256  ;;  %v1136_v26 = vld [vmem:[#allocation3 + $0x48] sm:$0x11] }
  0x1b   : > { %v494_v9 = vsel %vm492_vm0, %v437_v4, 0  ;;  %v497_v10 = vsel %vm492_vm0, %v438_v5, 0  ;;  %s11745_s29 = scalar_lea.vmem %s14109_s0, %s10969_s19  ;;  %vm1129_vm4 = vcmask 1044484   ;;  %vm1130_vm5 = vsmask.f32 4352  ;;  %vm1128_vm6 = vmand %vm1126_vm2, %vm1127_vm3  ;;  %v10997_v33 = vld [vmem:[%s14112_s3 + $0x38] sm:$0xff] }
  0x1c   : > { %504 = vmatpush.bf16.msra.mxu0 %v494_v9  ;;  %593 = vmatpush.bf16.msra.mxu1 %v497_v10  ;;  %v10970_v19 = vld [vmem:[%s11745_s29] sm:$0xff]  ;;  %v10971_v20 = vld [vmem:[%s11745_s29 + $0x8] sm:$0xff]  ;;  %v10972_v21 = vld [vmem:[%s11745_s29 + $0x10] sm:$0xff]  ;;  %vm1763_vm8 = vcmask 1043456   ;;  %vm1765_vm9 = vcmask 1047556   ;;  %v14134_v27 = vmov 0 }
  0x1d   : > { %v10973_v22 = vld [vmem:[%s11745_s29 + $0x18] sm:$0xff]  ;;  %v10974_v23 = vld [vmem:[%s11745_s29 + $0x20] sm:$0xff]  ;;  %v10975_v24 = vld [vmem:[%s11745_s29 + $0x28] sm:$0xff]  ;;  %vm1187_vm11 = vsmask.f32 7938  ;;  %v14137_v29 = vmov 0 }
  0x1e   : > { %v10976_v25 = vld [vmem:[%s11745_s29 + $0x30] sm:$0xff]  ;;  %vm1131_vm7 = vmand %vm1129_vm4, %vm1130_vm5  ;;  %vm1189_vm12 = vsmask.f32 7954  ;;  %v10977_v31 = vld [vmem:[%s11745_s29 + $0x38] sm:$0xff]  ;;  %v14140_v32 = vmov 0  ;;  %s286_s22 = sand.u32 1, %s11599_s25  }
  0x1f   : > { %vm11771_vm10 = vmor %vm1131_vm7, %vm1128_vm6  ;;  %v1195_v30 = vld [vmem:[#allocation3 + $0x150] sm:$0x11]  ;;  %v11005_v34 = vld [vmem:[%s14112_s3 + $0x78] sm:$0xff]  ;;  %s8997_s23 = sshll.u32 %s286_s22, 8  ;;  %s11440_s8 = sshll.u32 %s11676_s28, 8 }
  0x20   : > { %505 = vmatpush.bf16.msra.mxu0 %v9075_v11  ;;  %594 = vmatpush.bf16.msra.mxu1 %v9079_v12  ;;  %v14135_v27 = vsel %vm11771_vm10, 4294967295, %v14134_v27  ;;  %v1137_v28 = vsel %vm11771_vm10, 0, %v1136_v26  ;;  %vm1764_vm13 = vmand %vm1763_vm8, %vm1187_vm11  ;;  %v1139_v36 = vld [vmem:[#allocation3 + $0xf8] sm:$0x11]  ;;  %v332_v38 = vld [vmem:[%s14111_s2] sm:$0x3]  ;;  %s8913_s14 = scalar_lea.hbm %s14116_s7, %s11440_s8 }
  0x21   : > { %14136 = vst [vmem:[#allocation11_spill] sm:$0xff] %v14135_v27  ;;  %vm1766_vm14 = vmand %vm1765_vm9, %vm1189_vm12  ;;  %v1140_v37 = vsel %vm11771_vm10, 0, %v1139_v36  ;;  %v11803_v39 = vperm.slane %v332_v38, 0  ;;  %v11805_v40 = vperm.slane %v332_v38, 1  ;;  %v1198_v41 = vld [vmem:[#allocation3 + $0xd0] sm:$0x11] }
  0x22   : > { %1138 = vst [vmem:[#allocation3 + $0x48] sm:$0x11] %v1137_v28  ;;  %vm11777_vm15 = vmor %vm1766_vm14, %vm1764_vm13  ;;  %v10978_v43 = vld [vmem:[%s11745_s29 + $0x40] sm:$0xff]  ;;  %v1142_v51 = vld [vmem:[#allocation3 + $0x130] sm:$0x11]  ;;  %s8916_s16 = sshll.u32 %s8913_s14, 4  ;;  %s8917_s16 = int_to_ptr.hbm [resolvable:$true] %s8916_s16 }
  0x23   : > { %v14138_v29 = vsel %vm11777_vm15, 4294967295, %v14137_v29  ;;  %vm1188_vm0 = vmand %vm1126_vm2, %vm1187_vm11  ;;  %1141 = vst [vmem:[#allocation3 + $0xf8] sm:$0x11] %v1140_v37  ;;  %v1143_v52 = vsel %vm11771_vm10, 0, %v1142_v51  ;;  %v1201_v62 = vld [vmem:[#allocation3 + $0x108] sm:$0x11] }
  0x24   : > { %506 = vmatpush.bf16.msra.mxu0 %v9067_v17  ;;  %595 = vmatpush.bf16.msra.mxu1 %v9071_v18  ;;  %14139 = vst [vmem:[#allocation12_spill] sm:$0xff] %v14138_v29  ;;  %vm1190_vm5 = vmand %vm1129_vm4, %vm1189_vm12  ;;  %v10979_v0 = vld [vmem:[%s11745_s29 + $0x48] sm:$0xff]  ;;  %v10996_v1 = vld [vmem:[%s14112_s3 + $0x30] sm:$0xff]  ;;  %vm1440_vm14 = vsmask.f32 4368  ;;  %s8902_s28 = scalar_lea.sflag [#allocation7], %s286_s22 }
  0x25   : > { %vm11784_vm6 = vmor %vm1190_vm5, %vm1188_vm0  ;;  %1144 = vst [vmem:[#allocation3 + $0x130] sm:$0x11] %v1143_v52  ;;  %v11004_v2 = vld [vmem:[%s14112_s3 + $0x70] sm:$0xff]  ;;  %v1145_v12 = vld [vmem:[#allocation3 + $0x148] sm:$0x11]  ;;  %s11555_s17 = sshra.s32 %s8917_s16, 4  ;;  %s11556_s17 = int_to_ptr.hbm [resolvable:$true] %s11555_s17 }
  0x26   : > { %v14141_v32 = vsel %vm11784_vm6, 4294967295, %v14140_v32  ;;  %v1196_v35 = vsel %vm11784_vm6, 0, %v1195_v30  ;;  %v1199_v42 = vsel %vm11784_vm6, 0, %v1198_v41  ;;  %v1202_v63 = vsel %vm11784_vm6, 0, %v1201_v62  ;;  %v1148_v38 = vld [vmem:[#allocation3 + $0x138] sm:$0x11]  ;;  %vm12492_vm0 = vmor %vm1127_vm3, %vm1440_vm14  ;;  %p11562_p3 = scmp.lt.s32.totalorder %s11556_s17, %s14116_s7 }
  0x27   : > { %9080 = vmatmul.msk.bf16.vlgmr.msra.gmra.mxu0 %vm443_vm1, %v10970_v19  ;;  %9096 = vmatmul.msk.bf16.vlgmr.msra.gmra.mxu1 %vm443_vm1, %v10970_v19  ;;  %14142 = vst [vmem:[#allocation13_spill] sm:$0xff] %v14141_v32  ;;  %v1146_v13 = vsel %vm11771_vm10, 0, %v1145_v12  ;;  %v1149_v41 = vsel %vm11771_vm10, 0, %v1148_v38  ;;  %v1207_v52 = vld [vmem:[#allocation3 + $0x1a8] sm:$0x11]  ;;  %s11557_s18 = scalar_lea.hbm %s11556_s17, 256 }
  0x28   : > { %1197 = vst [vmem:[#allocation3 + $0x150] sm:$0x11] %v1196_v35  ;;  %1011 = vmatpush.bf16.msrb.mxu0 %v10997_v33  ;;  %1024 = vmatpush.bf16.msrb.mxu1 %v11005_v34  ;;  %vm1992_vm3 = vsmask.f32 3328  ;;  %p11558_p0 = scmp.ne.s32.totalorder %s11556_s17, %s11557_s18  ;;  %s11561_s21 = scalar_lea.hbm %s14116_s7, 512 }
  0x29   : > { %1200 = vst [vmem:[#allocation3 + $0xd0] sm:$0x11] %v1199_v42  ;;  %p11563_p4 = scmp.lt.s32.totalorder %s11561_s21, %s11557_s18 }
  0x2a   : > { %1203 = vst [vmem:[#allocation3 + $0x108] sm:$0x11] %v1202_v63  ;;  %p11559_p1 = pnand %p11558_p0, %p11693_p5 }
  0x2b   : > { %1147 = vst [vmem:[#allocation3 + $0x148] sm:$0x11] %v1146_v13  ;;  %p11564_p7 = por %p11563_p4, %p11562_p3 }
  0x2c   : > { %1012 = vmatpush.bf16.msrb.mxu0 %v10996_v1  ;;  %1025 = vmatpush.bf16.msrb.mxu1 %v11004_v2  ;;  %1150 = vst [vmem:[#allocation3 + $0x138] sm:$0x11] %v1149_v41  ;;  %p11560_p2 = pneg %p11559_p1 }
  0x2e   : > { %p11565_p8 = pnand %p11564_p7, %p11560_p2 }
  0x37   : > { %9081 = vmatmul.msk.bf16.gmra.mxu0 %vm443_vm1, %v10971_v20  ;;  %9097 = vmatmul.msk.bf16.gmra.mxu1 %vm443_vm1, %v10971_v20 }
  0x47   : > { %9082 = vmatmul.msk.bf16.gmra.mxu0 %vm443_vm1, %v10972_v21  ;;  %9098 = vmatmul.msk.bf16.gmra.mxu1 %vm443_vm1, %v10972_v21 }
  0x57   : > { %9083 = vmatmul.msk.bf16.gmra.mxu0 %vm443_vm1, %v10973_v22  ;;  %9099 = vmatmul.msk.bf16.gmra.mxu1 %vm443_vm1, %v10973_v22 }
  0x67   : > { %9084 = vmatmul.msk.bf16.gmra.mxu0 %vm443_vm1, %v10974_v23  ;;  %9100 = vmatmul.msk.bf16.gmra.mxu1 %vm443_vm1, %v10974_v23  ;;  %v1204_v23 = vld [vmem:[#allocation3 + $0x180] sm:$0x11] }
  0x77   : > { %9085 = vmatmul.msk.bf16.gmra.mxu0 %vm443_vm1, %v10975_v24  ;;  %9101 = vmatmul.msk.bf16.gmra.mxu1 %vm443_vm1, %v10975_v24  ;;  %v1205_v24 = vsel %vm11784_vm6, 0, %v1204_v23 }
  0x78   : > { %1206 = vst [vmem:[#allocation3 + $0x180] sm:$0x11] %v1205_v24 }
  0x87   : > { %9086 = vmatmul.msk.bf16.gmra.mxu0 %vm443_vm1, %v10976_v25  ;;  %9102 = vmatmul.msk.bf16.gmra.mxu1 %vm443_vm1, %v10976_v25  ;;  %v10980_v25 = vld [vmem:[%s11745_s29 + $0x50] sm:$0xff] }
  0x97   : > { %9087 = vmatmul.msk.bf16.gmra.mxu0 %vm443_vm1, %v10977_v31  ;;  %9103 = vmatmul.msk.bf16.gmra.mxu1 %vm443_vm1, %v10977_v31 }
  0xa4   : > { %v508_v44 = vpop.f32.mrf.mxu0  ;;  %v597_v45 = vpop.f32.mrf.mxu1 }
  0xa5   : > { %v509_v46 = vadd.f32 %v508_v44, %v11803_v39  ;;  %v598_v47 = vadd.f32 %v597_v45, %v11805_v40 }
  0xa7   : > { %v677_v48 = vmax.f32 %v509_v46, 0.0  ;;  %v678_v49 = vmax.f32 %v598_v47, 0.0  ;;  %9088 = vmatmul.msk.bf16.gmra.mxu0 %vm443_vm1, %v10978_v43  ;;  %9104 = vmatmul.msk.bf16.gmra.mxu1 %vm443_vm1, %v10978_v43 }
  0xa9   : > { %v11814_v50 = vpack.c.bf16 %v678_v49, %v677_v48 }
  0xac   : > { %v510_v53 = vpop.f32.mrf.mxu0  ;;  %v599_v54 = vpop.f32.mrf.mxu1 }
  0xad   : > { %v511_v55 = vadd.f32 %v510_v53, %v11803_v39  ;;  %v600_v56 = vadd.f32 %v599_v54, %v11805_v40  ;;  %v1208_v53 = vsel %vm11784_vm6, 0, %v1207_v52  ;;  %v10981_v54 = vld [vmem:[%s11745_s29 + $0x58] sm:$0xff] }
  0xae   : > { %1209 = vst [vmem:[#allocation3 + $0x1a8] sm:$0x11] %v1208_v53 }
  0xaf   : > { %v679_v57 = vmax.f32 %v511_v55, 0.0  ;;  %v680_v58 = vmax.f32 %v600_v56, 0.0  ;;  %v10995_v55 = vld [vmem:[%s14112_s3 + $0x28] sm:$0xff] }
  0xb0   : > { %v11003_v56 = vld [vmem:[%s14112_s3 + $0x68] sm:$0xff]  ;;  %1013 = vmatpush.bf16.msrb.mxu0 %v10995_v55 }
  0xb1   : > { %v741_v59 = vadd.f32 %v679_v57, %v677_v48  ;;  %v778_v60 = vadd.f32 %v680_v58, %v678_v49  ;;  %v11820_v61 = vpack.c.bf16 %v680_v58, %v679_v57  ;;  %1026 = vmatpush.bf16.msrb.mxu1 %v11003_v56 }
  0xb4   : > { %v513_v3 = vpop.f32.mrf.mxu0  ;;  %v602_v4 = vpop.f32.mrf.mxu1 }
  0xb5   : > { %v514_v5 = vadd.f32 %v513_v3, %v11803_v39  ;;  %v603_v6 = vadd.f32 %v602_v4, %v11805_v40  ;;  %v1151_v3 = vld [vmem:[#allocation3 + $0x160] sm:$0x11] }
  0xb6   : > { %v1152_v4 = vsel %vm11771_vm10, 0, %v1151_v3 }
  0xb7   : > { %v681_v7 = vmax.f32 %v514_v5, 0.0  ;;  %v682_v8 = vmax.f32 %v603_v6, 0.0  ;;  %9089 = vmatmul.msk.bf16.gmra.mxu0 %vm443_vm1, %v10979_v0  ;;  %9105 = vmatmul.msk.bf16.gmra.mxu1 %vm443_vm1, %v10979_v0  ;;  %1153 = vst [vmem:[#allocation3 + $0x160] sm:$0x11] %v1152_v4 }
  0xb9   : > { %v742_v9 = vadd.f32 %v741_v59, %v681_v7  ;;  %v779_v10 = vadd.f32 %v778_v60, %v682_v8  ;;  %v11835_v11 = vpack.c.bf16 %v682_v8, %v681_v7 }
  0xbc   : > { %v515_v14 = vpop.f32.mrf.mxu0  ;;  %v604_v15 = vpop.f32.mrf.mxu1 }
  0xbd   : > { %v516_v16 = vadd.f32 %v515_v14, %v11803_v39  ;;  %v605_v17 = vadd.f32 %v604_v15, %v11805_v40  ;;  %v1210_v15 = vld [vmem:[#allocation3] sm:$0x11] }
  0xbf   : > { %v683_v18 = vmax.f32 %v516_v16, 0.0  ;;  %v684_v19 = vmax.f32 %v605_v17, 0.0  ;;  %v1211_v16 = vsel %vm11784_vm6, 0, %v1210_v15  ;;  %v10982_v17 = vld [vmem:[%s11745_s29 + $0x60] sm:$0xff] }
  0xc0   : > { %1212 = vst [vmem:[#allocation3] sm:$0x11] %v1211_v16 }
  0xc1   : > { %v743_v20 = vadd.f32 %v742_v9, %v683_v18  ;;  %v780_v21 = vadd.f32 %v779_v10, %v684_v19  ;;  %v11841_v22 = vpack.c.bf16 %v684_v19, %v683_v18 }
  0xc4   : > { %v518_v26 = vpop.f32.mrf.mxu0  ;;  %v607_v28 = vpop.f32.mrf.mxu1 }
  0xc5   : > { %v519_v30 = vadd.f32 %v518_v26, %v11803_v39  ;;  %v608_v31 = vadd.f32 %v607_v28, %v11805_v40 }
  0xc7   : > { %v685_v33 = vmax.f32 %v519_v30, 0.0  ;;  %v686_v34 = vmax.f32 %v608_v31, 0.0  ;;  %9090 = vmatmul.msk.bf16.gmra.mxu0 %vm443_vm1, %v10980_v25  ;;  %9106 = vmatmul.msk.bf16.gmra.mxu1 %vm443_vm1, %v10980_v25  ;;  %v1154_v30 = vld [vmem:[#allocation3 + $0x68] sm:$0x11] }
  0xc8   : > { %v1155_v31 = vsel %vm11771_vm10, 0, %v1154_v30 }
  0xc9   : > { %v744_v35 = vadd.f32 %v743_v20, %v685_v33  ;;  %v781_v36 = vadd.f32 %v780_v21, %v686_v34  ;;  %v11850_v37 = vpack.c.bf16 %v686_v34, %v685_v33  ;;  %1156 = vst [vmem:[#allocation3 + $0x68] sm:$0x11] %v1155_v31 }
  0xcc   : > { %v520_v42 = vpop.f32.mrf.mxu0  ;;  %v609_v43 = vpop.f32.mrf.mxu1 }
  0xcd   : > { %v521_v44 = vadd.f32 %v520_v42, %v11803_v39  ;;  %v610_v45 = vadd.f32 %v609_v43, %v11805_v40  ;;  %v1213_v43 = vld [vmem:[#allocation3 + $0xc8] sm:$0x11] }
  0xcf   : > { %v687_v46 = vmax.f32 %v521_v44, 0.0  ;;  %v688_v47 = vmax.f32 %v610_v45, 0.0  ;;  %v1214_v44 = vsel %vm11784_vm6, 0, %v1213_v43  ;;  %v10983_v45 = vld [vmem:[%s11745_s29 + $0x68] sm:$0xff] }
  0xd0   : > { %1215 = vst [vmem:[#allocation3 + $0xc8] sm:$0x11] %v1214_v44  ;;  %v10985_v44 = vld [vmem:[%s11745_s29 + $0x78] sm:$0xff] }
  0xd1   : > { %v745_v48 = vadd.f32 %v744_v35, %v687_v46  ;;  %v782_v49 = vadd.f32 %v781_v36, %v688_v47  ;;  %v11856_v51 = vpack.c.bf16 %v688_v47, %v687_v46  ;;  %v10994_v46 = vld [vmem:[%s14112_s3 + $0x20] sm:$0xff] }
  0xd2   : > { %v11002_v47 = vld [vmem:[%s14112_s3 + $0x60] sm:$0xff]  ;;  %1014 = vmatpush.bf16.msrb.mxu0 %v10994_v46  ;;  %v11001_v46 = vld [vmem:[%s14112_s3 + $0x58] sm:$0xff] }
  0xd3   : > { %1027 = vmatpush.bf16.msrb.mxu1 %v11002_v47 }
  0xd4   : > { %v523_v57 = vpop.f32.mrf.mxu0  ;;  %v612_v58 = vpop.f32.mrf.mxu1 }
  0xd5   : > { %v524_v59 = vadd.f32 %v523_v57, %v11803_v39  ;;  %v613_v60 = vadd.f32 %v612_v58, %v11805_v40 }
  0xd7   : > { %v689_v62 = vmax.f32 %v524_v59, 0.0  ;;  %v690_v63 = vmax.f32 %v613_v60, 0.0  ;;  %9091 = vmatmul.msk.bf16.gmra.mxu0 %vm443_vm1, %v10981_v54  ;;  %9107 = vmatmul.msk.bf16.gmra.mxu1 %vm443_vm1, %v10981_v54 }
  0xd8   : > { %1028 = vmatpush.bf16.msrb.mxu1 %v11001_v46  ;;  %v10992_v46 = vld [vmem:[%s14112_s3 + $0x10] sm:$0xff] }
  0xd9   : > { %v746_v0 = vadd.f32 %v745_v48, %v689_v62  ;;  %v783_v1 = vadd.f32 %v782_v49, %v690_v63  ;;  %v11871_v2 = vpack.c.bf16 %v690_v63, %v689_v62  ;;  %v1157_v62 = vld [vmem:[#allocation3 + $0x118] sm:$0x11] }
  0xda   : > { %v1158_v63 = vsel %vm11771_vm10, 0, %v1157_v62  ;;  %v1163_v62 = vld [vmem:[#allocation3 + $0xa0] sm:$0x11] }
  0xdb   : > { %1159 = vst [vmem:[#allocation3 + $0x118] sm:$0x11] %v1158_v63  ;;  %v1164_v63 = vsel %vm11771_vm10, 0, %v1163_v62 }
  0xdc   : > { %v525_v5 = vpop.f32.mrf.mxu0  ;;  %v614_v6 = vpop.f32.mrf.mxu1  ;;  %1165 = vst [vmem:[#allocation3 + $0xa0] sm:$0x11] %v1164_v63 }
  0xdd   : > { %v526_v7 = vadd.f32 %v525_v5, %v11803_v39  ;;  %v615_v8 = vadd.f32 %v614_v6, %v11805_v40 }
  0xdf   : > { %v691_v9 = vmax.f32 %v526_v7, 0.0  ;;  %v692_v10 = vmax.f32 %v615_v8, 0.0  ;;  %v1216_v8 = vld [vmem:[#allocation3 + $0x40] sm:$0x11] }
  0xe1   : > { %v747_v12 = vadd.f32 %v746_v0, %v691_v9  ;;  %v784_v13 = vadd.f32 %v783_v1, %v692_v10  ;;  %v11877_v14 = vpack.c.bf16 %v692_v10, %v691_v9  ;;  %v1217_v9 = vsel %vm11784_vm6, 0, %v1216_v8  ;;  %v10984_v10 = vld [vmem:[%s11745_s29 + $0x70] sm:$0xff]  ;;  %s13963_s29 = scalar_lea.vmem [#allocation8], %s8997_s23 }
  0xe2   : > { %1218 = vst [vmem:[#allocation3 + $0x40] sm:$0x11] %v1217_v9  ;;  %v1222_v9 = vld [vmem:[#allocation3 + $0x50] sm:$0x11]  ;;  %s8914_s15 = sshll.u32 %s13963_s29, 4  ;;  %s8915_s15 = int_to_ptr.vmem [resolvable:$true] %s8914_s15 }
  0xe4   : > { %v528_v18 = vpop.f32.mrf.mxu0  ;;  %v617_v19 = vpop.f32.mrf.mxu1 }
  0xe5   : > { %v529_v20 = vadd.f32 %v528_v18, %v11803_v39  ;;  %v618_v21 = vadd.f32 %v617_v19, %v11805_v40 }
  0xe7   : > { %v693_v23 = vmax.f32 %v529_v20, 0.0  ;;  %v694_v24 = vmax.f32 %v618_v21, 0.0  ;;  %9092 = vmatmul.msk.bf16.gmra.mxu0 %vm443_vm1, %v10982_v17  ;;  %9108 = vmatmul.msk.bf16.gmra.mxu1 %vm443_vm1, %v10982_v17 }
  0xe9   : > { %v748_v25 = vadd.f32 %v747_v12, %v693_v23  ;;  %v785_v26 = vadd.f32 %v784_v13, %v694_v24  ;;  %v11886_v28 = vpack.c.bf16 %v694_v24, %v693_v23 }
  0xec   : > { %v530_v33 = vpop.f32.mrf.mxu0  ;;  %v619_v34 = vpop.f32.mrf.mxu1 }
  0xed   : > { %v531_v35 = vadd.f32 %v530_v33, %v11803_v39  ;;  %v620_v36 = vadd.f32 %v619_v34, %v11805_v40 }
  0xef   : > { %v695_v38 = vmax.f32 %v531_v35, 0.0  ;;  %v696_v41 = vmax.f32 %v620_v36, 0.0 }
  0xf1   : > { %v11892_v42 = vpack.c.bf16 %v696_v41, %v695_v38  ;;  %v749_v54 = vadd.f32 %v748_v25, %v695_v38  ;;  %v786_v55 = vadd.f32 %v785_v26, %v696_v41  ;;  %v1160_v25 = vld [vmem:[#allocation3 + $0x90] sm:$0x11]  ;;  %v1219_v41 = vld [vmem:[#allocation3 + $0x188] sm:$0x11] }
  0xf2   : > { %v1161_v26 = vsel %vm11771_vm10, 0, %v1160_v25  ;;  %v1220_v43 = vsel %vm11784_vm6, 0, %v1219_v41 }
  0xf3   : > { %1162 = vst [vmem:[#allocation3 + $0x90] sm:$0x11] %v1161_v26  ;;  %v1166_v26 = vld [vmem:[#allocation3 + $0x110] sm:$0x11] }
  0xf4   : > { %v533_v48 = vpop.f32.mrf.mxu0  ;;  %v622_v49 = vpop.f32.mrf.mxu1  ;;  %1221 = vst [vmem:[#allocation3 + $0x188] sm:$0x11] %v1220_v43 }
  0xf5   : > { %v534_v52 = vadd.f32 %v533_v48, %v11803_v39  ;;  %v623_v53 = vadd.f32 %v622_v49, %v11805_v40 }
  0xf7   : > { %v697_v56 = vmax.f32 %v534_v52, 0.0  ;;  %v698_v57 = vmax.f32 %v623_v53, 0.0  ;;  %9093 = vmatmul.msk.bf16.gmra.mxu0 %vm443_vm1, %v10983_v45  ;;  %9109 = vmatmul.msk.bf16.gmra.mxu1 %vm443_vm1, %v10983_v45  ;;  %v10993_v45 = vld [vmem:[%s14112_s3 + $0x18] sm:$0xff] }
  0xf8   : > { %1015 = vmatpush.bf16.msrb.mxu0 %v10993_v45 }
  0xf9   : > { %v750_v58 = vadd.f32 %v749_v54, %v697_v56  ;;  %v787_v59 = vadd.f32 %v786_v55, %v698_v57  ;;  %v11907_v60 = vpack.c.bf16 %v698_v57, %v697_v56 }
  0xfc   : > { %v535_v0 = vpop.f32.mrf.mxu0  ;;  %v624_v1 = vpop.f32.mrf.mxu1  ;;  %1016 = vmatpush.bf16.msrb.mxu0 %v10992_v46 }
  0xfd   : > { %v536_v3 = vadd.f32 %v535_v0, %v11803_v39  ;;  %v625_v4 = vadd.f32 %v624_v1, %v11805_v40 }
  0xff   : > { %v699_v5 = vmax.f32 %v536_v3, 0.0  ;;  %v700_v6 = vmax.f32 %v625_v4, 0.0 }
 0x101   : > { %v11913_v7 = vpack.c.bf16 %v700_v6, %v699_v5  ;;  %v751_v17 = vadd.f32 %v750_v58, %v699_v5  ;;  %v788_v18 = vadd.f32 %v787_v59, %v700_v6 }
 0x104   : > { %v538_v12 = vpop.f32.mrf.mxu0  ;;  %v627_v13 = vpop.f32.mrf.mxu1 }
 0x105   : > { %v539_v15 = vadd.f32 %v538_v12, %v11803_v39  ;;  %v628_v16 = vadd.f32 %v627_v13, %v11805_v40 }
 0x107   : > { %v701_v19 = vmax.f32 %v539_v15, 0.0  ;;  %v702_v20 = vmax.f32 %v628_v16, 0.0  ;;  %9094 = vmatmul.msk.bf16.gmra.mxu0 %vm443_vm1, %v10984_v10  ;;  %9110 = vmatmul.msk.bf16.gmra.mxu1 %vm443_vm1, %v10984_v10  ;;  %v1223_v10 = vsel %vm11784_vm6, 0, %v1222_v9 }
 0x108   : > { %1224 = vst [vmem:[#allocation3 + $0x50] sm:$0x11] %v1223_v10 }
 0x109   : > { %v752_v21 = vadd.f32 %v751_v17, %v701_v19  ;;  %v789_v23 = vadd.f32 %v788_v18, %v702_v20  ;;  %v11922_v24 = vpack.c.bf16 %v702_v20, %v701_v19 }
 0x10c   : > { %v540_v30 = vpop.f32.mrf.mxu0  ;;  %v629_v31 = vpop.f32.mrf.mxu1 }
 0x10d   : > { %v541_v33 = vadd.f32 %v540_v30, %v11803_v39  ;;  %v630_v34 = vadd.f32 %v629_v31, %v11805_v40  ;;  %v1167_v30 = vsel %vm11771_vm10, 0, %v1166_v26 }
 0x10e   : > { %1168 = vst [vmem:[#allocation3 + $0x110] sm:$0x11] %v1167_v30 }
 0x10f   : > { %v703_v35 = vmax.f32 %v541_v33, 0.0  ;;  %v704_v36 = vmax.f32 %v630_v34, 0.0 }
 0x111   : > { %v11928_v38 = vpack.c.bf16 %v704_v36, %v703_v35  ;;  %v753_v53 = vadd.f32 %v752_v21, %v703_v35  ;;  %v790_v54 = vadd.f32 %v789_v23, %v704_v36 }
 0x114   : > { %v543_v47 = vpop.f32.mrf.mxu0  ;;  %v632_v48 = vpop.f32.mrf.mxu1 }
 0x115   : > { %v544_v49 = vadd.f32 %v543_v47, %v11803_v39  ;;  %v633_v52 = vadd.f32 %v632_v48, %v11805_v40  ;;  %v11000_v47 = vld [vmem:[%s14112_s3 + $0x50] sm:$0xff] }
 0x116   : > { %1029 = vmatpush.bf16.msrb.mxu1 %v11000_v47 }
 0x117   : > { %v705_v55 = vmax.f32 %v544_v49, 0.0  ;;  %v706_v56 = vmax.f32 %v633_v52, 0.0  ;;  %9095 = vmatmul.msk.bf16.gmra.mxu0 %vm443_vm1, %v10985_v44  ;;  %9111 = vmatmul.msk.bf16.gmra.mxu1 %vm443_vm1, %v10985_v44  ;;  %v1225_v44 = vld [vmem:[#allocation3 + $0x78] sm:$0x11]  ;;  %vm1051_vm1 = vcmask 130048  }
 0x118   : > { %v1226_v45 = vsel %vm11784_vm6, 0, %v1225_v44 }
 0x119   : > { %v754_v57 = vadd.f32 %v753_v53, %v705_v55  ;;  %v791_v58 = vadd.f32 %v790_v54, %v706_v56  ;;  %v11943_v59 = vpack.c.bf16 %v706_v56, %v705_v55  ;;  %1227 = vst [vmem:[#allocation3 + $0x78] sm:$0x11] %v1226_v45 }
 0x11c   : > { %v545_v0 = vpop.f32.mrf.mxu0  ;;  %v634_v1 = vpop.f32.mrf.mxu1 }
 0x11d   : > { %v546_v3 = vadd.f32 %v545_v0, %v11803_v39  ;;  %v635_v4 = vadd.f32 %v634_v1, %v11805_v40  ;;  %v1169_v0 = vld [vmem:[#allocation3 + $0x20] sm:$0x11] }
 0x11e   : > { %v1170_v1 = vsel %vm11771_vm10, 0, %v1169_v0 }
 0x11f   : > { %v707_v5 = vmax.f32 %v546_v3, 0.0  ;;  %v708_v6 = vmax.f32 %v635_v4, 0.0  ;;  %1171 = vst [vmem:[#allocation3 + $0x20] sm:$0x11] %v1170_v1 }
 0x121   : > { %v11949_v8 = vpack.c.bf16 %v708_v6, %v707_v5  ;;  %v755_v17 = vadd.f32 %v754_v57, %v707_v5  ;;  %v792_v18 = vadd.f32 %v791_v58, %v708_v6 }
 0x124   : > { %v548_v12 = vpop.f32.mrf.mxu0  ;;  %v637_v13 = vpop.f32.mrf.mxu1 }
 0x125   : > { %v549_v15 = vadd.f32 %v548_v12, %v11803_v39  ;;  %v638_v16 = vadd.f32 %v637_v13, %v11805_v40  ;;  %v1228_v13 = vld [vmem:[#allocation3 + $0x168] sm:$0x11] }
 0x127   : > { %v709_v19 = vmax.f32 %v549_v15, 0.0  ;;  %v710_v20 = vmax.f32 %v638_v16, 0.0  ;;  %v1229_v15 = vsel %vm11784_vm6, 0, %v1228_v13 }
 0x128   : > { %1230 = vst [vmem:[#allocation3 + $0x168] sm:$0x11] %v1229_v15 }
 0x129   : > { %v756_v21 = vadd.f32 %v755_v17, %v709_v19  ;;  %v793_v23 = vadd.f32 %v792_v18, %v710_v20  ;;  %v11955_v25 = vpack.c.bf16 %v710_v20, %v709_v19 }
 0x12c   : > { %v550_v31 = vpop.f32.mrf.mxu0  ;;  %v639_v33 = vpop.f32.mrf.mxu1 }
 0x12d   : > { %v551_v34 = vadd.f32 %v550_v31, %v11803_v39  ;;  %v640_v35 = vadd.f32 %v639_v33, %v11805_v40 }
 0x12f   : > { %v711_v36 = vmax.f32 %v551_v34, 0.0  ;;  %v712_v41 = vmax.f32 %v640_v35, 0.0  ;;  %v1172_v34 = vld [vmem:[#allocation3 + $0x38] sm:$0x11] }
 0x130   : > { %v1173_v35 = vsel %vm11771_vm10, 0, %v1172_v34 }
 0x131   : > { %v11961_v43 = vpack.c.bf16 %v712_v41, %v711_v36  ;;  %v757_v54 = vadd.f32 %v756_v21, %v711_v36  ;;  %v794_v55 = vadd.f32 %v793_v23, %v712_v41  ;;  %1174 = vst [vmem:[#allocation3 + $0x38] sm:$0x11] %v1173_v35 }
 0x134   : > { %v553_v48 = vpop.f32.mrf.mxu0  ;;  %v642_v49 = vpop.f32.mrf.mxu1 }
 0x135   : > { %v554_v52 = vadd.f32 %v553_v48, %v11803_v39  ;;  %v643_v53 = vadd.f32 %v642_v49, %v11805_v40  ;;  %v1231_v49 = vld [vmem:[#allocation3 + $0xe0] sm:$0x11] }
 0x137   : > { %v713_v56 = vmax.f32 %v554_v52, 0.0  ;;  %v714_v57 = vmax.f32 %v643_v53, 0.0  ;;  %v1232_v52 = vsel %vm11784_vm6, 0, %v1231_v49  ;;  %v10991_v53 = vld [vmem:[%s14112_s3 + $0x8] sm:$0xff] }
 0x138   : > { %1233 = vst [vmem:[#allocation3 + $0xe0] sm:$0x11] %v1232_v52  ;;  %1017 = vmatpush.bf16.msrb.mxu0 %v10991_v53 }
 0x139   : > { %v758_v58 = vadd.f32 %v757_v54, %v713_v56  ;;  %v795_v62 = vadd.f32 %v794_v55, %v714_v57  ;;  %v11973_v63 = vpack.c.bf16 %v714_v57, %v713_v56  ;;  %v10999_v54 = vld [vmem:[%s14112_s3 + $0x48] sm:$0xff] }
 0x13a   : > { %1030 = vmatpush.bf16.msrb.mxu1 %v10999_v54 }
 0x13c   : > { %v555_v3 = vpop.f32.mrf.mxu0  ;;  %v644_v4 = vpop.f32.mrf.mxu1 }
 0x13d   : > { %v556_v5 = vadd.f32 %v555_v3, %v11803_v39  ;;  %v645_v6 = vadd.f32 %v644_v4, %v11805_v40  ;;  %v1175_v3 = vld [vmem:[#allocation3 + $0xf0] sm:$0x11] }
 0x13e   : > { %v1176_v4 = vsel %vm11771_vm10, 0, %v1175_v3 }
 0x13f   : > { %v715_v9 = vmax.f32 %v556_v5, 0.0  ;;  %v716_v10 = vmax.f32 %v645_v6, 0.0  ;;  %1177 = vst [vmem:[#allocation3 + $0xf0] sm:$0x11] %v1176_v4  ;;  %v1237_v4 = vld [vmem:[#allocation3 + $0x58] sm:$0x11] }
 0x141   : > { %v11979_v12 = vpack.c.bf16 %v716_v10, %v715_v9  ;;  %v759_v20 = vadd.f32 %v758_v58, %v715_v9  ;;  %v796_v21 = vadd.f32 %v795_v62, %v716_v10 }
 0x144   : > { %v558_v16 = vpop.f32.mrf.mxu0  ;;  %v647_v17 = vpop.f32.mrf.mxu1 }
 0x145   : > { %v559_v18 = vadd.f32 %v558_v16, %v11803_v39  ;;  %v648_v19 = vadd.f32 %v647_v17, %v11805_v40  ;;  %v1234_v17 = vld [vmem:[#allocation3 + $0x158] sm:$0x11] }
 0x147   : > { %v717_v23 = vmax.f32 %v559_v18, 0.0  ;;  %v718_v26 = vmax.f32 %v648_v19, 0.0  ;;  %v1235_v18 = vsel %vm11784_vm6, 0, %v1234_v17  ;;  %v10998_v17 = vld [vmem:[%s14112_s3 + $0x40] sm:$0xff] }
 0x148   : > { %1236 = vst [vmem:[#allocation3 + $0x158] sm:$0x11] %v1235_v18  ;;  %1031 = vmatpush.bf16.msrb.mxu1 %v10998_v17 }
 0x149   : > { %v11985_v30 = vadd.f32 %v759_v20, %v717_v23  ;;  %v11987_v31 = vadd.f32 %v796_v21, %v718_v26  ;;  %v11989_v33 = vpack.c.bf16 %v718_v26, %v717_v23 }
 0x14c   : > { %v560_v36 = vpop.f32.mrf.mxu0  ;;  %v649_v41 = vpop.f32.mrf.mxu1 }
 0x14d   : > { %v11994_v44 = vadd.f32 %v560_v36, %v11803_v39  ;;  %v11997_v45 = vadd.f32 %v649_v41, %v11805_v40  ;;  %v1178_v36 = vld [vmem:[#allocation3 + $0x170] sm:$0x11] }
 0x14e   : > { %v1179_v41 = vsel %vm11771_vm10, 0, %v1178_v36 }
 0x14f   : > { %v719_v46 = vmax.f32 %v11994_v44, 0.0  ;;  %v14121_v47 = vmax.f32 %v11997_v45, 0.0  ;;  %1180 = vst [vmem:[#allocation3 + $0x170] sm:$0x11] %v1179_v41 }
 0x151   : > { %v12005_v48 = vpack.c.bf16 %v14121_v47, %v719_v46 }
 0x154   : > { %v563_v55 = vpop.f32.mrf.mxu0  ;;  %v652_v56 = vpop.f32.mrf.mxu1 }
 0x155   : > { %v12016_v57 = vadd.f32 %v563_v55, %v11803_v39  ;;  %v12019_v58 = vadd.f32 %v652_v56, %v11805_v40 }
 0x157   : > { %v14120_v62 = vmax.f32 %v12016_v57, 0.0  ;;  %v14119_v0 = vmax.f32 %v12019_v58, 0.0  ;;  %v14146_v27 = vmax.f32 %v12019_v58, 0.0 }
 0x159   : > { %v12027_v1 = vpack.c.bf16 %v14119_v0, %v14120_v62 }
 0x15c   : > { %v565_v5 = vpop.f32.mrf.mxu0  ;;  %v654_v6 = vpop.f32.mrf.mxu1 }
 0x15d   : > { %v12032_v9 = vadd.f32 %v565_v5, %v11803_v39  ;;  %v12035_v10 = vadd.f32 %v654_v6, %v11805_v40  ;;  %v1238_v5 = vsel %vm11784_vm6, 0, %v1237_v4  ;;  %v10990_v6 = vld [vmem:[%s14112_s3] sm:$0xff] }
 0x15e   : > { %1239 = vst [vmem:[#allocation3 + $0x58] sm:$0x11] %v1238_v5  ;;  %1018 = vmatpush.bf16.msrb.mxu0 %v10990_v6 }
 0x15f   : > { %v14118_v13 = vmax.f32 %v12032_v9, 0.0  ;;  %v14117_v15 = vmax.f32 %v12035_v10, 0.0  ;;  %v14147_v44 = vmax.f32 %v12032_v9, 0.0 }
 0x161   : > { %v12043_v16 = vpack.c.bf16 %v14117_v15, %v14118_v13 }
 0x164   : > { %v568_v19 = vpop.f32.mrf.mxu0  ;;  %v657_v20 = vpop.f32.mrf.mxu1 }
 0x165   : > { %v12048_v21 = vadd.f32 %v568_v19, %v11803_v39  ;;  %v12051_v23 = vadd.f32 %v657_v20, %v11805_v40 }
 0x167   : > { %v725_v26 = vmax.f32 %v12048_v21, 0.0  ;;  %v726_v34 = vmax.f32 %v12051_v23, 0.0 }
 0x169   : > { %v12055_v35 = vpack.c.bf16 %v726_v34, %v725_v26 }
 0x16c   : > { %v570_v49 = vpop.f32.mrf.mxu0  ;;  %v659_v52 = vpop.f32.mrf.mxu1 }
 0x16d   : > { %v571_v53 = vadd.f32 %v570_v49, %v11803_v39  ;;  %v660_v54 = vadd.f32 %v659_v52, %v11805_v40  ;;  %v1181_v49 = vld [vmem:[#allocation3 + $0x98] sm:$0x11] }
 0x16e   : > { %v1182_v52 = vsel %vm11771_vm10, 0, %v1181_v49 }
 0x16f   : > { %v727_v55 = vmax.f32 %v571_v53, 0.0  ;;  %v728_v56 = vmax.f32 %v660_v54, 0.0  ;;  %1183 = vst [vmem:[#allocation3 + $0x98] sm:$0x11] %v1182_v52  ;;  %v1240_v52 = vld [vmem:[#allocation3 + $0x140] sm:$0x11] }
 0x171   : > { %v12061_v3 = vpack.c.bf16 %v728_v56, %v727_v55 }
 0x174   : > { %v573_v18 = vpop.f32.mrf.mxu0  ;;  %v662_v19 = vpop.f32.mrf.mxu1 }
 0x175   : > { %v574_v20 = vadd.f32 %v573_v18, %v11803_v39  ;;  %v663_v21 = vadd.f32 %v662_v19, %v11805_v40 }
 0x177   : > { %v729_v23 = vmax.f32 %v574_v20, 0.0  ;;  %v730_v36 = vmax.f32 %v663_v21, 0.0 }
 0x179   : > { %v12073_v41 = vpack.c.bf16 %v730_v36, %v729_v23 }
 0x17c   : > { %v575_v53 = vpop.f32.mrf.mxu0  ;;  %v664_v54 = vpop.f32.mrf.mxu1 }
 0x17d   : > { %v576_v4 = vadd.f32 %v575_v53, %v11803_v39  ;;  %v665_v5 = vadd.f32 %v664_v54, %v11805_v40  ;;  %v1241_v53 = vsel %vm11784_vm6, 0, %v1240_v52  ;;  %v761_v54 = vadd.f32 %v11985_v30, %v719_v46 }
 0x17e   : > { %1242 = vst [vmem:[#allocation3 + $0x140] sm:$0x11] %v1241_v53 }
 0x17f   : > { %v731_v18 = vmax.f32 %v576_v4, 0.0  ;;  %v732_v15 = vmax.f32 %v665_v5, 0.0  ;;  %v14144_v4 = vmax.f32 %v11997_v45, 0.0  ;;  %v14148_v45 = vmax.f32 %v12035_v10, 0.0 }
 0x181   : > { %v12079_v19 = vpack.c.bf16 %v732_v15, %v731_v18  ;;  %v798_v5 = vadd.f32 %v11987_v31, %v14144_v4 }
 0x183   : > { %v799_v32 = vadd.f32 %v798_v5, %v14146_v27 }
 0x184   : > { %v578_v6 = vpop.f32.mrf.mxu0  ;;  %v667_v17 = vpop.f32.mrf.mxu1 }
 0x185   : > { %v579_v20 = vadd.f32 %v578_v6, %v11803_v39  ;;  %v668_v21 = vadd.f32 %v667_v17, %v11805_v40  ;;  %v800_v46 = vadd.f32 %v799_v32, %v14148_v45 }
 0x187   : > { %v733_v13 = vmax.f32 %v579_v20, 0.0  ;;  %v734_v0 = vmax.f32 %v668_v21, 0.0  ;;  %v14145_v20 = vmax.f32 %v12016_v57, 0.0  ;;  %v801_v4 = vadd.f32 %v800_v46, %v726_v34 }
 0x189   : > { %v12083_v49 = vpack.c.bf16 %v734_v0, %v733_v13  ;;  %v762_v21 = vadd.f32 %v761_v54, %v14145_v20  ;;  %v802_v57 = vadd.f32 %v801_v4, %v728_v56 }
 0x18b   : > { %14143 = vst [vmem:[#allocation14_spill] sm:$0xff] %v12083_v49  ;;  %v763_v30 = vadd.f32 %v762_v21, %v14147_v44  ;;  %v803_v5 = vadd.f32 %v802_v57, %v730_v36 }
 0x18c   : > { %v580_v62 = vpop.f32.mrf.mxu0  ;;  %v669_v47 = vpop.f32.mrf.mxu1 }
 0x18d   : > { %v581_v6 = vadd.f32 %v580_v62, %v11803_v39  ;;  %v670_v17 = vadd.f32 %v669_v47, %v11805_v40  ;;  %v764_v62 = vadd.f32 %v763_v30, %v725_v26  ;;  %v804_v20 = vadd.f32 %v803_v5, %v732_v15 }
 0x18f   : > { %v735_v52 = vmax.f32 %v581_v6, 0.0  ;;  %v736_v29 = vmax.f32 %v670_v17, 0.0  ;;  %v765_v49 = vadd.f32 %v764_v62, %v727_v55  ;;  %v805_v21 = vadd.f32 %v804_v20, %v734_v0  ;;  %v11006_v20 = vld [vmem:[%s14113_s4 + $0x4] sm:$0xf] }
 0x191   : > { %v12103_v31 = vpack.c.bf16 %v736_v29, %v735_v52  ;;  %v766_v58 = vadd.f32 %v765_v49, %v729_v23  ;;  %v806_v30 = vadd.f32 %v805_v21, %v736_v29  ;;  %v9180_v21 = vld [vmem:[%s14113_s4 + $0x8] sm:$0xf0] }
 0x193   : > { %v767_v17 = vadd.f32 %v766_v58, %v731_v18 }
 0x194   : > { %v583_v47 = vpop.f32.mrf.mxu0  ;;  %v672_v53 = vpop.f32.mrf.mxu1 }
 0x195   : > { %v584_v54 = vadd.f32 %v583_v47, %v11803_v39  ;;  %v673_v27 = vadd.f32 %v672_v53, %v11805_v40  ;;  %v768_v32 = vadd.f32 %v767_v17, %v733_v13  ;;  %v11007_v17 = vld [vmem:[%s14113_s4 + $0x4] sm:$0xf0] }
 0x197   : > { %v737_v6 = vmax.f32 %v584_v54, 0.0  ;;  %v738_v9 = vmax.f32 %v673_v27, 0.0  ;;  %v769_v44 = vadd.f32 %v768_v32, %v735_v52 }
 0x199   : > { %v12107_v10 = vpack.c.bf16 %v738_v9, %v737_v6  ;;  %v770_v45 = vadd.f32 %v769_v44, %v737_v6  ;;  %v807_v46 = vadd.f32 %v806_v30, %v738_v9  ;;  %v9178_v9 = vld [vmem:[%s14113_s4] sm:$0xf] }
 0x19a   : > { %v9179_v32 = vor.u32 %v11007_v17, %v9178_v9  ;;  %v1288_v9 = vunpack.c.l.bf16 %v11856_v51  ;;  %v1326_v17 = vunpack.c.l.bf16 %v12055_v35 }
 0x19c   : > { %v585_v26 = vpop.f32.mrf.mxu0  ;;  %v674_v34 = vpop.f32.mrf.mxu1  ;;  %1062 = vmatpush.bf16.msra.mxu2 %v9179_v32 }
 0x19d   : > { %v586_v55 = vadd.f32 %v585_v26, %v11803_v39  ;;  %v675_v56 = vadd.f32 %v674_v34, %v11805_v40  ;;  %v9183_v26 = vor.u32 %v11006_v20, %v9180_v21  ;;  %v1290_v20 = vunpack.c.l.bf16 %v11871_v2 }
 0x19e   : > { %v1292_v21 = vunpack.c.l.bf16 %v11877_v14 }
 0x19f   : > { %v739_v23 = vmax.f32 %v586_v55, 0.0  ;;  %v740_v36 = vmax.f32 %v675_v56, 0.0  ;;  %1075 = vmatpush.bf16.msra.mxu3 %v9183_v26 }
 0x1a1   : > { %v771_v49 = vadd.f32 %v770_v45, %v739_v23  ;;  %v808_v62 = vadd.f32 %v807_v46, %v740_v36  ;;  %v12111_v18 = vpack.c.bf16 %v740_v36, %v739_v23 }
 0x1a3   : > { %v772_v15 = vrot.slane %v771_v49, 4  ;;  %v809_v4 = vrot.slane %v808_v62, 4 }
 0x1a5   : > { %v773_v13 = vadd.f32 %v772_v15, %v771_v49  ;;  %v810_v0 = vadd.f32 %v809_v4, %v808_v62 }
 0x1a7   : > { %v774_v47 = vrot.slane %v773_v13, 2  ;;  %v811_v53 = vrot.slane %v810_v0, 2 }
 0x1a9   : > { %v775_v52 = vadd.f32 %v774_v47, %v773_v13  ;;  %v812_v29 = vadd.f32 %v811_v53, %v810_v0  ;;  %v1278_v53 = vunpack.c.l.bf16 %v11814_v50 }
 0x1ab   : > { %v776_v57 = vrot.slane %v775_v52, 1  ;;  %v813_v39 = vrot.slane %v812_v29, 1 }
 0x1ad   : > { %v777_v54 = vadd.f32 %v776_v57, %v775_v52  ;;  %v814_v40 = vadd.f32 %v813_v39, %v812_v29  ;;  %v1280_v57 = vunpack.c.l.bf16 %v11820_v61 }
 0x1af   : > { %v815_v27 = vmul.f32 0.00390625, %v777_v54  ;;  %v816_v58 = vmul.f32 0.00390625, %v814_v40  ;;  %v1282_v54 = vunpack.c.l.bf16 %v11835_v11 }
 0x1b1   : > { %v881_v5 = vpack.c.bf16 %v815_v27, %v815_v27  ;;  %v882_v6 = vpack.c.bf16 %v816_v58, %v816_v58  ;;  %v1284_v27 = vunpack.c.l.bf16 %v11841_v22 }
 0x1b3   : > { %1019 = vmatmul.bf16.vlgmr.msrb.gmra.mxu0 %v881_v5  ;;  %1032 = vmatmul.bf16.vlgmr.msrb.gmra.mxu1 %v882_v6  ;;  %v1286_v5 = vunpack.c.l.bf16 %v11850_v37 }
 0x230   : > { %v1020_v34 = vpop.f32.mrf.mxu0  ;;  %v1033_v44 = vpop.f32.mrf.mxu1 }
 0x231   : > { %v1034_v30 = vadd.f32 %v1033_v44, %v1020_v34  ;;  %v1294_v34 = vunpack.c.l.bf16 %v11886_v28 }
 0x233   : > { %v1037_v55 = vmax.f32 %v1034_v30, 0.0  ;;  %v1296_v30 = vunpack.c.l.bf16 %v11892_v42 }
 0x235   : > { %v1038_v56 = vpack.c.bf16 %v1037_v55, %v1037_v55 }
 0x237   : > { %9184 = vmatmul.msk.bf16.vlgmr.msra.gmra.mxu2 %vm1051_vm1, %v1038_v56  ;;  %9185 = vmatmul.msk.bf16.vlgmr.msra.gmra.mxu3 %vm1051_vm1, %v1038_v56  ;;  %v1298_v56 = vunpack.c.l.bf16 %v11907_v60  ;;  %vm2539_vm1 = vcmask 1042432  }
 0x238   : > { %v1022_v45 = vpop.f32.mrf.mxu0  ;;  %v1035_v46 = vpop.f32.mrf.mxu1 }
 0x239   : > { %v1300_v46 = vunpack.c.l.bf16 %v11913_v7 }
 0x2ba   : > { %v1064_v23 = vpop.f32.mrf.mxu2  ;;  %v1077_v36 = vpop.f32.mrf.mxu3 }
 0x2bb   : > { %v9186_v49 = vmul.f32 -1.442695, %v1064_v23  ;;  %v9187_v62 = vmul.f32 -1.442695, %v1077_v36 }
 0x2bd   : > { %11497 = vpow2.f32 %v9186_v49  ;;  %v1302_v49 = vunpack.c.l.bf16 %v11922_v24 }
 0x2be   : > { %11499 = vpow2.f32 %v9187_v62 }
 0x2c2   : > { %v1066_v15 = vpop.f32.mrf.mxu2  ;;  %v1079_v4 = vpop.f32.mrf.mxu3 }
 0x2c3   : > { %v11498_v13 = vpop.eup %11497  ;;  %v1322_v4 = vunpack.c.l.bf16 %v12027_v1  ;;  %v1337_v15 = vunpack.c.h.bf16 %v12103_v31 }
 0x2c4   : > { %v11500_v0 = vpop.eup %11499  ;;  %v12125_v47 = vadd.f32 1.0, %v11498_v13 }
 0x2c5   : > { %v12129_v29 = vadd.f32 1.0, %v11500_v0 }
 0x2c6   : > { %11501 = vrcp.f32 %v12125_v47  ;;  %v1100_v39 = vand.u32 2147483648, %v12125_v47  ;;  %v1098_v32 = vand.u32 2147483647, %v12125_v47  ;;  %vm1094_vm7 = vweird.f32 %v12125_v47 }
 0x2c7   : > { %11503 = vrcp.f32 %v12129_v29  ;;  %v1115_v40 = vand.u32 2147483648, %v12129_v29  ;;  %vm1109_vm9 = vweird.f32 %v12129_v29 }
 0x2c8   : > { %vm1099_vm11 = vcmp.eq.f32.partialorder %v1098_v32, 8.507059e+37  ;;  %v1328_v32 = vunpack.c.l.bf16 %v12061_v3 }
 0x2cc   : > { %v11502_v36 = vpop.eup %11501 }
 0x2cd   : > { %v11504_v13 = vpop.eup %11503  ;;  %v1090_v44 = vmul.f32 %v11502_v36, %v12125_v47  ;;  %vm1095_vm2 = vweird.f32 %v11502_v36  ;;  %v1330_v47 = vunpack.c.l.bf16 %v12073_v41 }
 0x2ce   : > { %v1105_v62 = vmul.f32 %v11504_v13, %v12129_v29  ;;  %vm1110_vm4 = vweird.f32 %v11504_v13  ;;  %vm1096_vm8 = vmor %vm1094_vm7, %vm1095_vm2  ;;  %vm2540_vm2 = vcmask 1046532  }
 0x2cf   : > { %v1091_v58 = vsub.f32 1.0, %v1090_v44  ;;  %vm12184_vm12 = vmor %vm1109_vm9, %vm1110_vm4  ;;  %v1332_v44 = vunpack.c.l.bf16 %v12079_v19 }
 0x2d0   : > { %v1106_v23 = vsub.f32 1.0, %v1105_v62  ;;  %v1101_v62 = vor.u32 1.1754944e-38, %v1100_v39  ;;  %vm13040_vm4 = vmor %vm2539_vm1, %vm2540_vm2 }
 0x2d1   : > { %v1092_v26 = vmul.f32 %v11502_v36, %v1091_v58  ;;  %v1113_v58 = vand.u32 2147483647, %v12129_v29 }
 0x2d2   : > { %v1107_v45 = vmul.f32 %v11504_v13, %v1106_v23 }
 0x2d3   : > { %v1093_v55 = vadd.f32 %v11502_v36, %v1092_v26  ;;  %v1324_v26 = vunpack.c.l.bf16 %v12043_v16  ;;  %vm1114_vm13 = vcmp.eq.f32.partialorder %v1113_v58, 8.507059e+37  ;;  %v1339_v58 = vunpack.c.h.bf16 %v12107_v10 }
 0x2d4   : > { %v1108_v52 = vadd.f32 %v11504_v13, %v1107_v45 }
 0x2d5   : > { %v1097_v23 = vsel %vm1096_vm8, %v11502_v36, %v1093_v55  ;;  %v1116_v55 = vor.u32 1.1754944e-38, %v1115_v40  ;;  %v1336_v40 = vunpack.c.l.bf16 %v12103_v31  ;;  %v1340_v36 = vunpack.c.l.bf16 %v12111_v18 }
 0x2d6   : > { %v1102_v39 = vsel %vm1099_vm11, %v1101_v62, %v1097_v23  ;;  %v1112_v45 = vsel %vm12184_vm12, %v11504_v13, %v1108_v52  ;;  %v14151_v23 = vld [vmem:[#allocation14_spill] sm:$0xff]  ;;  %v1341_v62 = vunpack.c.h.bf16 %v12111_v18 }
 0x2d7   : > { %v1342_v0 = vperm.slane %v1102_v39, 0  ;;  %v1117_v52 = vsel %vm1114_vm13, %v1116_v55, %v1112_v45  ;;  %v1334_v29 = vunpack.c.l.bf16 %v14151_v23  ;;  %v1335_v6 = vunpack.c.h.bf16 %v14151_v23 }
 0x2d8   : > { %v1338_v39 = vunpack.c.l.bf16 %v12107_v10  ;;  %v12217_v23 = vperm.slane %v1117_v52, 0  ;;  %v14156_v52 = vunpack.c.l.bf16 %v11928_v38 }
 0x2d9   : > { %v12211_v45 = vmul.f32 %v1342_v0, %v1278_v53  ;;  %v12215_v55 = vmul.f32 %v1342_v0, %v1280_v57  ;;  %v12221_v31 = vmul.f32 %v1342_v0, %v1282_v54  ;;  %v12225_v10 = vmul.f32 %v1342_v0, %v1284_v27 }
 0x2da   : > { %v12229_v18 = vmul.f32 %v1342_v0, %v1286_v5  ;;  %v12233_v53 = vmul.f32 %v1342_v0, %v1288_v9  ;;  %v12237_v57 = vmul.f32 %v1342_v0, %v1290_v20  ;;  %v12241_v54 = vmul.f32 %v1342_v0, %v1292_v21 }
 0x2db   : > { %v12245_v27 = vmul.f32 %v1342_v0, %v1294_v34  ;;  %v12249_v5 = vmul.f32 %v1342_v0, %v1296_v30  ;;  %v12253_v9 = vmul.f32 %v1342_v0, %v1298_v56  ;;  %v12257_v20 = vmul.f32 %v1342_v0, %v1300_v46 }
 0x2dc   : > { %v12261_v21 = vmul.f32 %v1342_v0, %v1302_v49  ;;  %v12265_v34 = vmul.f32 %v1342_v0, %v14156_v52  ;;  %v12267_v13 = vmul.f32 %v1342_v0, %v1334_v29  ;;  %v12269_v30 = vmul.f32 %v1342_v0, %v1336_v40 }
 0x2dd   : > { %14152 = vst [vmem:[#allocation14_spill] sm:$0xff] %v12249_v5  ;;  %v12271_v5 = vmul.f32 %v1342_v0, %v1338_v39  ;;  %v12273_v56 = vmul.f32 %v1342_v0, %v1340_v36  ;;  %v14164_v29 = vunpack.c.l.bf16 %v11961_v43  ;;  %v14166_v39 = vunpack.c.l.bf16 %v11973_v63 }
 0x2de   : > { %14153 = vst [vmem:[#allocation15_spill] sm:$0xff] %v12253_v9  ;;  %v14158_v9 = vunpack.c.l.bf16 %v11943_v59 }
 0x2df   : > { %14154 = vst [vmem:[#allocation16_spill] sm:$0xff] %v12257_v20  ;;  %v14160_v20 = vunpack.c.l.bf16 %v11949_v8  ;;  %v12289_v40 = vmul.f32 %v1342_v0, %v14164_v29  ;;  %v12293_v36 = vmul.f32 %v1342_v0, %v14166_v39  ;;  %v12309_v29 = vmul.f32 %v1342_v0, %v1324_v26 }
 0x2e0   : > { %14155 = vst [vmem:[#allocation17_spill] sm:$0xff] %v12261_v21  ;;  %v12277_v46 = vmul.f32 %v1342_v0, %v14158_v9  ;;  %v14162_v21 = vunpack.c.l.bf16 %v11955_v25  ;;  %v12313_v39 = vmul.f32 %v1342_v0, %v1328_v32 }
 0x2e1   : > { %14157 = vst [vmem:[#allocation18_spill] sm:$0xff] %v12273_v56  ;;  %v12281_v49 = vmul.f32 %v1342_v0, %v14160_v20  ;;  %v14168_v56 = vunpack.c.l.bf16 %v11979_v12 }
 0x2e2   : > { %14159 = vst [vmem:[#allocation19_spill] sm:$0xff] %v12277_v46  ;;  %v12285_v52 = vmul.f32 %v1342_v0, %v14162_v21  ;;  %v14170_v46 = vunpack.c.l.bf16 %v11989_v33 }
 0x2e3   : > { %14161 = vst [vmem:[#allocation20_spill] sm:$0xff] %v12281_v49  ;;  %v12297_v9 = vmul.f32 %v1342_v0, %v14168_v56  ;;  %v14172_v49 = vunpack.c.l.bf16 %v12005_v48  ;;  %v12317_v56 = vmul.f32 %v1342_v0, %v1332_v44 }
 0x2e4   : > { %14163 = vst [vmem:[#allocation21_spill] sm:$0xff] %v12285_v52  ;;  %v12301_v20 = vmul.f32 %v1342_v0, %v14170_v46  ;;  %v12307_v52 = vmul.f32 %v1342_v0, %v1322_v4  ;;  %v14175_v4 = vunpack.c.h.bf16 %v11835_v11  ;;  %v14180_v11 = vunpack.c.h.bf16 %v11877_v14 }
 0x2e5   : > { %14165 = vst [vmem:[#allocation22_spill] sm:$0xff] %v12289_v40  ;;  %v12305_v21 = vmul.f32 %v1342_v0, %v14172_v49  ;;  %v12311_v40 = vmul.f32 %v1342_v0, %v1326_v17  ;;  %v14176_v17 = vunpack.c.h.bf16 %v11841_v22  ;;  %v14181_v22 = vunpack.c.h.bf16 %v11886_v28 }
 0x2e6   : > { %14167 = vst [vmem:[#allocation23_spill] sm:$0xff] %v12293_v36  ;;  %v12315_v36 = vmul.f32 %v1342_v0, %v1330_v47  ;;  %v1349_v26 = vmul.f32 %v12217_v23, %v14175_v4  ;;  %v14177_v47 = vunpack.c.h.bf16 %v11850_v37  ;;  %v14182_v37 = vunpack.c.h.bf16 %v11892_v42 }
 0x2e7   : > { %14169 = vst [vmem:[#allocation24_spill] sm:$0xff] %v12297_v9  ;;  %v14173_v9 = vunpack.c.h.bf16 %v11814_v50  ;;  %v1351_v32 = vmul.f32 %v12217_v23, %v14176_v17  ;;  %v14178_v50 = vunpack.c.h.bf16 %v11856_v51  ;;  %v1361_v4 = vmul.f32 %v12217_v23, %v14181_v22 }
 0x2e8   : > { %14171 = vst [vmem:[#allocation25_spill] sm:$0xff] %v12301_v20  ;;  %v14174_v20 = vunpack.c.h.bf16 %v11820_v61  ;;  %v1353_v0 = vmul.f32 %v12217_v23, %v14177_v47  ;;  %v14179_v61 = vunpack.c.h.bf16 %v11871_v2  ;;  %v1363_v17 = vmul.f32 %v12217_v23, %v14182_v37 }
 0x2e9   : > { %v1345_v46 = vmul.f32 %v12217_v23, %v14173_v9  ;;  %v1355_v44 = vmul.f32 %v12217_v23, %v14178_v50  ;;  %v14183_v51 = vunpack.c.h.bf16 %v11907_v60  ;;  %v14184_v2 = vunpack.c.h.bf16 %v11913_v7 }
 0x2ea   : > { %v1347_v49 = vmul.f32 %v12217_v23, %v14174_v20  ;;  %v1357_v9 = vmul.f32 %v12217_v23, %v14179_v61  ;;  %v1359_v20 = vmul.f32 %v12217_v23, %v14180_v11  ;;  %v14185_v14 = vunpack.c.h.bf16 %v11922_v24 }
 0x2eb   : > { %v1365_v47 = vmul.f32 %v12217_v23, %v14183_v51  ;;  %v1367_v50 = vmul.f32 %v12217_v23, %v14184_v2  ;;  %v14186_v28 = vunpack.c.h.bf16 %v11928_v38  ;;  %v1401_v42 = vmul.f32 %v12217_v23, %v1335_v6 }
 0x2ec   : > { %v1369_v61 = vmul.f32 %v12217_v23, %v14185_v14  ;;  %v1403_v22 = vmul.f32 %v12217_v23, %v1337_v15  ;;  %v1405_v60 = vmul.f32 %v12217_v23, %v1339_v58  ;;  %v1407_v37 = vmul.f32 %v12217_v23, %v1341_v62 }
 0x2ed   : > { %v1371_v11 = vmul.f32 %v12217_v23, %v14186_v28  ;;  %v14187_v7 = vunpack.c.h.bf16 %v11943_v59  ;;  %v14188_v24 = vunpack.c.h.bf16 %v11949_v8  ;;  %v14189_v38 = vunpack.c.h.bf16 %v11955_v25 }
 0x2ee   : > { %v14190_v6 = vunpack.c.h.bf16 %v11961_v43  ;;  %v14191_v58 = vunpack.c.h.bf16 %v11973_v63  ;;  %v14192_v59 = vunpack.c.h.bf16 %v11979_v12  ;;  %v14193_v8 = vunpack.c.h.bf16 %v11989_v33 }
 0x2ef   : > { %v1373_v51 = vmul.f32 %v12217_v23, %v14187_v7  ;;  %v1375_v2 = vmul.f32 %v12217_v23, %v14188_v24  ;;  %v1377_v14 = vmul.f32 %v12217_v23, %v14189_v38  ;;  %v14194_v25 = vunpack.c.h.bf16 %v12005_v48 }
 0x2f0   : > { %v1379_v15 = vmul.f32 %v12217_v23, %v14190_v6  ;;  %v1381_v62 = vmul.f32 %v12217_v23, %v14191_v58  ;;  %v1383_v28 = vmul.f32 %v12217_v23, %v14192_v59  ;;  %v1385_v7 = vmul.f32 %v12217_v23, %v14193_v8 }
 0x2f1   : > { %v12389_v24 = vmul.f32 %v12217_v23, %v14194_v25  ;;  %v14195_v43 = vunpack.c.h.bf16 %v12027_v1  ;;  %v14196_v63 = vunpack.c.h.bf16 %v12043_v16  ;;  %v14197_v6 = vunpack.c.h.bf16 %v12055_v35 }
 0x2f2   : > { %v14198_v48 = vunpack.c.h.bf16 %v12061_v3  ;;  %v14199_v1 = vunpack.c.h.bf16 %v12073_v41  ;;  %v14200_v16 = vunpack.c.h.bf16 %v12079_v19  ;;  %v12422_v35 = vpack.c.bf16 %v1345_v46, %v12211_v45  ;;  %v11303_v46 = vld [vmem:[#allocation5 + $0x38] sm:$0xff] }
 0x2f3   : > { %v12394_v38 = vmul.f32 %v12217_v23, %v14195_v43  ;;  %v12399_v12 = vmul.f32 %v12217_v23, %v14196_v63  ;;  %v12404_v33 = vmul.f32 %v12217_v23, %v14197_v6  ;;  %v1409_v25 = vpack.c.bf16 %v1347_v49, %v12215_v55  ;;  %v14201_v55 = vld [vmem:[#allocation14_spill] sm:$0xff]  ;;  %7267 = vmatpush.bf16.msrb.mxu2 %v11303_v46  ;;  %v14212_v46 = vld [vmem:[#allocation23_spill] sm:$0xff] }
 0x2f4   : > { %v12409_v58 = vmul.f32 %v12217_v23, %v14198_v48  ;;  %v12414_v59 = vmul.f32 %v12217_v23, %v14199_v1  ;;  %v12419_v8 = vmul.f32 %v12217_v23, %v14200_v16  ;;  %v12426_v3 = vpack.c.bf16 %v1349_v26, %v12221_v31 }
 0x2f5   : > { %v1411_v43 = vpack.c.bf16 %v1351_v32, %v12225_v10  ;;  %v12430_v41 = vpack.c.bf16 %v1353_v0, %v12229_v18  ;;  %v12433_v63 = vpack.c.bf16 %v1355_v44, %v12233_v53  ;;  %v12436_v19 = vpack.c.bf16 %v1357_v9, %v12237_v57  ;;  %v14202_v10 = vld [vmem:[#allocation15_spill] sm:$0xff]  ;;  %v14203_v18 = vld [vmem:[#allocation16_spill] sm:$0xff]  ;;  %v14204_v53 = vld [vmem:[#allocation17_spill] sm:$0xff] }
 0x2f6   : > { %v12439_v23 = vpack.c.bf16 %v1359_v20, %v12241_v54  ;;  %v12442_v45 = vpack.c.bf16 %v1361_v4, %v12245_v27  ;;  %v12445_v31 = vpack.c.bf16 %v1363_v17, %v14201_v55  ;;  %v12448_v49 = vpack.c.bf16 %v1365_v47, %v14202_v10  ;;  %v14205_v44 = vld [vmem:[#allocation18_spill] sm:$0xff]  ;;  %v14206_v4 = vld [vmem:[#allocation19_spill] sm:$0xff]  ;;  %v14207_v47 = vld [vmem:[#allocation20_spill] sm:$0xff] }
 0x2f7   : > { %v12451_v26 = vpack.c.bf16 %v1367_v50, %v14203_v18  ;;  %v12454_v32 = vpack.c.bf16 %v1369_v61, %v14204_v53  ;;  %v12457_v57 = vpack.c.bf16 %v1371_v11, %v12265_v34  ;;  %v12460_v54 = vpack.c.bf16 %v1401_v42, %v12267_v13  ;;  %v11311_v20 = vld [vmem:[#allocation5 + $0x78] sm:$0xff]  ;;  %v14208_v61 = vld [vmem:[#allocation21_spill] sm:$0xff] }
 0x2f8   : > { %v12463_v27 = vpack.c.bf16 %v1403_v22, %v12269_v30  ;;  %v12466_v0 = vpack.c.bf16 %v1405_v60, %v12271_v5  ;;  %v12469_v9 = vpack.c.bf16 %v1407_v37, %v14205_v44  ;;  %v12472_v17 = vpack.c.bf16 %v1373_v51, %v14206_v4  ;;  %v14209_v11 = vld [vmem:[#allocation22_spill] sm:$0xff]  ;;  %7356 = vmatpush.bf16.msrb.mxu3 %v11311_v20  ;;  %v11302_v60 = vld [vmem:[#allocation5 + $0x30] sm:$0xff] }
 0x2f9   : > { %v12475_v34 = vpack.c.bf16 %v1375_v2, %v14207_v47  ;;  %v1443_v13 = vshrl.u32 %v12422_v35, 16  ;;  %v1451_v50 = vshrl.u32 %v1409_v25, 16  ;;  %v12479_v30 = vpack.c.bf16 %v1377_v14, %v14208_v61  ;;  %7268 = vmatpush.bf16.msrb.mxu2 %v11302_v60  ;;  %v11310_v55 = vld [vmem:[#allocation5 + $0x70] sm:$0xff]  ;;  %v11309_v60 = vld [vmem:[#allocation5 + $0x68] sm:$0xff] }
 0x2fa   : > { %v12482_v5 = vpack.c.bf16 %v1379_v15, %v14209_v11  ;;  %v1460_v42 = vshrl.u32 %v12426_v3, 16  ;;  %v1468_v22 = vshrl.u32 %v1411_v43, 16  ;;  %v1454_v2 = vshll.u32 %v1409_v25, 16  ;;  %v14213_v25 = vld [vmem:[#allocation24_spill] sm:$0xff]  ;;  %v14214_v20 = vld [vmem:[#allocation25_spill] sm:$0xff] }
 0x2fb   : > { %v12485_v37 = vrot.slane %v1443_v13, 7  ;;  %v12487_v51 = vrot.slane %v1451_v50, 7  ;;  %v1477_v6 = vshrl.u32 %v12430_v41, 16  ;;  %v1471_v1 = vshll.u32 %v1411_v43, 16  ;;  %v11301_v50 = vld [vmem:[#allocation5 + $0x28] sm:$0xff] }
 0x2fc   : > { %v12496_v15 = vrot.slane %v1460_v42, 7  ;;  %v12498_v48 = vrot.slane %v1468_v22, 7  ;;  %v1485_v16 = vshrl.u32 %v12433_v63, 16  ;;  %v12502_v10 = vpack.c.bf16 %v1381_v62, %v14212_v46  ;;  %7357 = vmatpush.bf16.msrb.mxu3 %v11310_v55 }
 0x2fd   : > { %v12505_v18 = vpack.c.bf16 %v1383_v28, %v14213_v25  ;;  %v1449_v53 = vrot.slane %v12485_v37, 4  ;;  %v1456_v44 = vor.u32 %v1454_v2, %v12487_v51  ;;  %v12510_v4 = vpack.c.bf16 %v1385_v7, %v14214_v20  ;;  %7269 = vmatpush.bf16.msrb.mxu2 %v11301_v50  ;;  %v11319_v2 = vld [vmem:[#allocation5 + $0xb8] sm:$0xff]  ;;  %v11318_v20 = vld [vmem:[#allocation5 + $0xb0] sm:$0xff] }
 0x2fe   : > { %v1466_v47 = vrot.slane %v12496_v15, 4  ;;  %v1473_v43 = vor.u32 %v1471_v1, %v12498_v48  ;;  %v1488_v13 = vshll.u32 %v12433_v63, 16  ;;  %v12519_v28 = vrot.slane %v1477_v6, 7  ;;  %7445 = vmatpush.bf16.msra.mxu0 %v11319_v2 }
 0x2ff   : > { %v12517_v62 = vsel %vm12492_vm0, %v1449_v53, %v1456_v44  ;;  %v12521_v61 = vrot.slane %v1485_v16, 7  ;;  %v1494_v11 = vshrl.u32 %v12436_v19, 16  ;;  %v12526_v7 = vpack.c.bf16 %v12389_v24, %v12305_v21 }
 0x300   : > { %v12530_v42 = vpack.c.bf16 %v12394_v38, %v12307_v52  ;;  %v12534_v63 = vsel %vm12492_vm0, %v1466_v47, %v1473_v43  ;;  %v1502_v22 = vshrl.u32 %v12439_v23, 16  ;;  %1771 = vst [vmem:[#allocation3 + $0x70] sm:$0xff] %v12517_v62  ;;  %v12540_v6 = vpack.c.bf16 %v12399_v12, %v12309_v29  ;;  %7358 = vmatpush.bf16.msrb.mxu3 %v11309_v60  ;;  %v11300_v29 = vld [vmem:[#allocation5 + $0x20] sm:$0xff]  ;;  %v11327_v12 = vld [vmem:[#allocation5 + $0xf8] sm:$0xff]  ;;  %v11326_v60 = vld [vmem:[#allocation5 + $0xf0] sm:$0xff] }
 0x301   : > { %v12544_v21 = vpack.c.bf16 %v12404_v33, %v12311_v40  ;;  %v1483_v52 = vrot.slane %v12519_v28, 4  ;;  %v1490_v24 = vor.u32 %v1488_v13, %v12521_v61  ;;  %1778 = vst [vmem:[#allocation3 + $0xe8] sm:$0xff] %v12534_v63  ;;  %v12549_v38 = vrot.slane %v1494_v11, 7  ;;  %7270 = vmatpush.bf16.msrb.mxu2 %v11300_v29  ;;  %7534 = vmatpush.bf16.msra.mxu1 %v11327_v12  ;;  %v11317_v12 = vld [vmem:[#allocation5 + $0xa8] sm:$0xff] }
 0x302   : > { %v12551_v1 = vrot.slane %v1502_v22, 7  ;;  %v1505_v16 = vshll.u32 %v12439_v23, 16  ;;  %v1511_v55 = vshrl.u32 %v12442_v45, 16  ;;  %v12557_v40 = vpack.c.bf16 %v12409_v58, %v12313_v39  ;;  %1915 = vst [vmem:[#allocation4 + $0xd8] sm:$0xff] %v12517_v62  ;;  %v11308_v58 = vld [vmem:[#allocation5 + $0x60] sm:$0xff]  ;;  %7446 = vmatpush.bf16.msra.mxu0 %v11318_v20  ;;  %v11299_v22 = vld [vmem:[#allocation5 + $0x18] sm:$0xff] }
 0x303   : > { %v12561_v33 = vsel %vm12492_vm0, %v1483_v52, %v1490_v24  ;;  %v1519_v46 = vshrl.u32 %v12445_v31, 16  ;;  %v1528_v25 = vshrl.u32 %v12448_v49, 16  ;;  %v12568_v23 = vpack.c.bf16 %v12414_v59, %v12315_v36  ;;  %1917 = vst [vmem:[#allocation4 + $0x168] sm:$0xff] %v12534_v63 }
 0x304   : > { %v1446_v53 = vshll.u32 %v12422_v35, 16  ;;  %v1500_v44 = vrot.slane %v12549_v38, 4  ;;  %v1507_v39 = vor.u32 %v1505_v16, %v12551_v1  ;;  %1785 = vst [vmem:[#allocation3 + $0x80] sm:$0xff] %v12561_v33  ;;  %v12574_v47 = vrot.slane %v1511_v55, 7  ;;  %7359 = vmatpush.bf16.msrb.mxu3 %v11308_v58 }
 0x305   : > { %v12576_v43 = vrot.slane %v1519_v46, 7  ;;  %v1522_v13 = vshll.u32 %v12445_v31, 16  ;;  %v12579_v36 = vrot.slane %v1528_v25, 7  ;;  %v1463_v59 = vshll.u32 %v12426_v3, 16  ;;  %1919 = vst [vmem:[#allocation4 + $0x1f8] sm:$0xff] %v12561_v33  ;;  %7271 = vmatpush.bf16.msrb.mxu2 %v11299_v22  ;;  %7535 = vmatpush.bf16.msra.mxu1 %v11326_v60 }
 0x306   : > { %v12585_v35 = vsel %vm12492_vm0, %v1500_v44, %v1507_v39  ;;  %v1536_v50 = vshrl.u32 %v12451_v26, 16  ;;  %v1545_v11 = vshrl.u32 %v12454_v32, 16  ;;  %v1480_v31 = vshll.u32 %v12430_v41, 16  ;;  %v11307_v41 = vld [vmem:[#allocation5 + $0x58] sm:$0xff]  ;;  %7447 = vmatpush.bf16.msra.mxu0 %v11317_v12  ;;  %v1796_v44 = vld [vmem:[#allocation3 + $0x138] sm:$0xff] }
 0x307   : > { %v1517_v2 = vrot.slane %v12574_v47, 4  ;;  %v1524_v3 = vor.u32 %v1522_v13, %v12576_v43  ;;  %v1539_v52 = vshll.u32 %v12451_v26, 16  ;;  %1792 = vst [vmem:[#allocation3 + $0x18] sm:$0xff] %v12585_v35  ;;  %v12597_v24 = vpack.c.bf16 %v12419_v8, %v12317_v56 }
 0x308   : > { %v1534_v16 = vrot.slane %v12579_v36, 4  ;;  %v12600_v55 = vrot.slane %v1536_v50, 7  ;;  %v12602_v29 = vrot.slane %v1545_v11, 7  ;;  %1921 = vst [vmem:[#allocation4 + $0x288] sm:$0xff] %v12585_v35  ;;  %v12606_v26 = vor.u32 %v1446_v53, %v12485_v37  ;;  %7360 = vmatpush.bf16.msrb.mxu3 %v11307_v41  ;;  %v11298_v37 = vld [vmem:[#allocation5 + $0x10] sm:$0xff]  ;;  %v11325_v53 = vld [vmem:[#allocation5 + $0xe8] sm:$0xff] }
 0x309   : > { %v1458_v46 = vrot.slane %v12487_v51, 4  ;;  %v12611_v56 = vsel %vm12492_vm0, %v1517_v2, %v1524_v3  ;;  %v1553_v8 = vshrl.u32 %v12457_v57, 16  ;;  %v12615_v25 = vor.u32 %v1463_v59, %v12496_v15  ;;  %7272 = vmatpush.bf16.msrb.mxu2 %v11298_v37  ;;  %7536 = vmatpush.bf16.msra.mxu1 %v11325_v53  ;;  %v11306_v2 = vld [vmem:[#allocation5 + $0x50] sm:$0xff]  ;;  %v11316_v3 = vld [vmem:[#allocation5 + $0xa0] sm:$0xff] }
 0x30a   : > { %v1541_v39 = vor.u32 %v1539_v52, %v12600_v55  ;;  %v1562_v58 = vshrl.u32 %v12472_v17, 16  ;;  %1799 = vst [vmem:[#allocation3 + $0x100] sm:$0xff] %v12611_v56  ;;  %v1551_v20 = vrot.slane %v12602_v29, 4  ;;  %v1556_v50 = vshll.u32 %v12457_v57, 16  ;;  %7448 = vmatpush.bf16.msra.mxu0 %v11316_v3  ;;  %v11324_v37 = vld [vmem:[#allocation5 + $0xe0] sm:$0xff]  ;;  %v11315_v3 = vld [vmem:[#allocation5 + $0x98] sm:$0xff] }
 0x30b   : > { %v12622_v13 = vrot.slane %v1553_v8, 7  ;;  %v1570_v15 = vshrl.u32 %v12475_v34, 16  ;;  %1923 = vst [vmem:[#allocation4 + $0x318] sm:$0xff] %v12611_v56  ;;  %v1497_v59 = vshll.u32 %v12436_v19, 16  ;;  %v1579_v60 = vshrl.u32 %v12479_v30, 16  ;;  %v1789_v57 = vld [vmem:[#allocation3 + $0x148] sm:$0xff] }
 0x30c   : > { %v12630_v11 = vsel %vm12492_vm0, %v1534_v16, %v1541_v39  ;;  %v12632_v22 = vrot.slane %v1562_v58, 7  ;;  %v1573_v19 = vshll.u32 %v12475_v34, 16  ;;  %v12642_v16 = vor.u32 %v1480_v31, %v12519_v28  ;;  %7361 = vmatpush.bf16.msrb.mxu3 %v11306_v2  ;;  %v11297_v58 = vld [vmem:[#allocation5 + $0x8] sm:$0xff] }
 0x30d   : > { %14215 = vst [vmem:[#allocation14_spill] sm:$0xff] %v12630_v11  ;;  %v1558_v52 = vor.u32 %v1556_v50, %v12622_v13  ;;  %v12637_v41 = vrot.slane %v1570_v15, 7  ;;  %v12645_v8 = vrot.slane %v1579_v60, 7  ;;  %v1587_v39 = vshrl.u32 %v12482_v5, 16  ;;  %7273 = vmatpush.bf16.msrb.mxu2 %v11297_v58  ;;  %7537 = vmatpush.bf16.msra.mxu1 %v11324_v37  ;;  %v11296_v37 = vld [vmem:[#allocation5] sm:$0xff] }
 0x30e   : > { %1806 = vst [vmem:[#allocation3 + $0x198] sm:$0xff] %v12630_v11  ;;  %v1568_v12 = vrot.slane %v12632_v22, 4  ;;  %v1514_v53 = vshll.u32 %v12442_v45, 16  ;;  %v1590_v31 = vshll.u32 %v12482_v5, 16  ;;  %v12655_v50 = vor.u32 %v1497_v59, %v12549_v38  ;;  %v11305_v45 = vld [vmem:[#allocation5 + $0x48] sm:$0xff]  ;;  %7449 = vmatpush.bf16.msra.mxu0 %v11315_v3  ;;  %v11314_v3 = vld [vmem:[#allocation5 + $0x90] sm:$0xff] }
 0x30f   : > { %1925 = vst [vmem:[#allocation4 + $0x3a8] sm:$0xff] %v12630_v11  ;;  %v1559_v34 = vsel %vm12492_vm0, %v1551_v20, %v1558_v52  ;;  %v1575_v28 = vor.u32 %v1573_v19, %v12637_v41  ;;  %v1585_v15 = vrot.slane %v12645_v8, 4  ;;  %v12658_v60 = vrot.slane %v1587_v39, 7  ;;  %v1803_v11 = vld [vmem:[#allocation3 + $0x160] sm:$0xff] }
 0x310   : > { %v1596_v2 = vshrl.u32 %v12502_v10, 16  ;;  %1813 = vst [vmem:[#allocation3 + $0x8] sm:$0xff] %v1559_v34  ;;  %v1531_v52 = vshll.u32 %v12448_v49, 16  ;;  %v1604_v38 = vshrl.u32 %v12505_v18, 16  ;;  %v12667_v59 = vor.u32 %v1514_v53, %v12574_v47  ;;  %7362 = vmatpush.bf16.msrb.mxu3 %v11305_v45  ;;  %v11323_v34 = vld [vmem:[#allocation5 + $0xd8] sm:$0xff]  ;;  %v11304_v45 = vld [vmem:[#allocation5 + $0x40] sm:$0xff] }
 0x311   : > { %v1576_v5 = vsel %vm12492_vm0, %v1568_v12, %v1575_v28  ;;  %v1592_v19 = vor.u32 %v1590_v31, %v12658_v60  ;;  %v1613_v58 = vshrl.u32 %v12510_v4, 16  ;;  %v1607_v12 = vshll.u32 %v12505_v18, 16  ;;  %7274 = vmatpush.bf16.msrb.mxu2 %v11296_v37  ;;  %7538 = vmatpush.bf16.msra.mxu1 %v11323_v34 }
 0x312   : > { %v1598_v39 = vrot.slane %v1596_v2, 7  ;;  %1820 = vst [vmem:[#allocation3 + $0xa8] sm:$0xff] %v1576_v5  ;;  %v12672_v20 = vrot.slane %v1604_v38, 7  ;;  %v1621_v28 = vshrl.u32 %v12526_v7, 16  ;;  %v12677_v47 = vor.u32 %v1531_v52, %v12579_v36  ;;  %7450 = vmatpush.bf16.msra.mxu0 %v11314_v3 }
 0x313   : > { %v1593_v53 = vsel %vm12492_vm0, %v1585_v15, %v1592_v19  ;;  %v1615_v2 = vrot.slane %v1613_v58, 7  ;;  %v1624_v18 = vshll.u32 %v12526_v7, 16  ;;  %v1630_v49 = vshrl.u32 %v12530_v42, 16 }
 0x314   : > { %v1602_v31 = vrot.slane %v1598_v39, 4  ;;  %v1609_v5 = vor.u32 %v1607_v12, %v12672_v20  ;;  %v12682_v38 = vrot.slane %v1621_v28, 7  ;;  %1827 = vst [vmem:[#allocation3 + $0xd8] sm:$0xff] %v1593_v53  ;;  %v1548_v52 = vshll.u32 %v12454_v32, 16  ;;  %7363 = vmatpush.bf16.msrb.mxu3 %v11304_v45 }
 0x315   : > { %v1619_v15 = vrot.slane %v1615_v2, 4  ;;  %v1638_v19 = vshrl.u32 %v12540_v6, 16  ;;  %v1565_v58 = vshll.u32 %v12472_v17, 16  ;;  %v1632_v7 = vrot.slane %v1630_v49, 7 }
 0x316   : > { %v1610_v37 = vsel %vm12492_vm0, %v1602_v31, %v1609_v5  ;;  %v1626_v34 = vor.u32 %v1624_v18, %v12682_v38  ;;  %v1582_v12 = vshll.u32 %v12479_v30, 16  ;;  %v1641_v53 = vshll.u32 %v12540_v6, 16 }
 0x317   : > { %v12694_v28 = vrot.slane %v1638_v19, 7  ;;  %v1647_v32 = vshrl.u32 %v12544_v21, 16  ;;  %1834 = vst [vmem:[#allocation3 + $0xc0] sm:$0xff] %v1610_v37  ;;  %v12699_v45 = vor.u32 %v1548_v52, %v12602_v29  ;;  %v1636_v3 = vrot.slane %v1632_v7, 4 }
 0x318   : > { %v1627_v17 = vsel %vm12492_vm0, %v1619_v15, %v1626_v34  ;;  %v1655_v31 = vshrl.u32 %v12557_v40, 16  ;;  %v12705_v49 = vor.u32 %v1565_v58, %v12632_v22  ;;  %v12708_v30 = vor.u32 %v1582_v12, %v12645_v8 }
 0x319   : > { %v1643_v6 = vor.u32 %v1641_v53, %v12694_v28  ;;  %v1649_v5 = vrot.slane %v1647_v32, 7  ;;  %1841 = vst [vmem:[#allocation3 + $0x30] sm:$0xff] %v1627_v17  ;;  %v1658_v29 = vshll.u32 %v12557_v40, 16  ;;  %v1664_v52 = vshrl.u32 %v12568_v23, 16  ;;  %v1772_v17 = vld [vmem:[#allocation3 + $0x150] sm:$0x11] }
 0x31a   : > { %v12711_v18 = vrot.slane %v1655_v31, 7  ;;  %v1672_v15 = vshrl.u32 %v12597_v24, 16  ;;  %v1599_v19 = vshll.u32 %v12502_v10, 16  ;;  %v1616_v22 = vshll.u32 %v12510_v4, 16 }
 0x31b   : > { %v1644_v8 = vsel %vm12492_vm0, %v1636_v3, %v1643_v6  ;;  %v1653_v58 = vrot.slane %v1649_v5, 4  ;;  %v1666_v34 = vrot.slane %v1664_v52, 7  ;;  %v1675_v53 = vshll.u32 %v12597_v24, 16  ;;  %v1768_v52 = vld [vmem:[#allocation3 + $0x48] sm:$0xff] }
 0x31c   : > { %v1660_v37 = vor.u32 %v1658_v29, %v12711_v18  ;;  %v12721_v12 = vrot.slane %v1672_v15, 7  ;;  %1848 = vst [vmem:[#allocation3 + $0x1a0] sm:$0xff] %v1644_v8  ;;  %v12724_v40 = vor.u32 %v1599_v19, %v1598_v39  ;;  %v12726_v32 = vor.u32 %v1616_v22, %v1615_v2  ;;  %v1775_v19 = vld [vmem:[#allocation3 + $0xf8] sm:$0xff]  ;;  %v1779_v22 = vld [vmem:[#allocation3 + $0xd0] sm:$0x11] }
 0x31d   : > { %v1681_v10 = vshrl.u32 %v12460_v54, 16  ;;  %v1689_v4 = vshrl.u32 %v12463_v27, 16  ;;  %v1633_v3 = vshll.u32 %v12530_v42, 16  ;;  %v1670_v6 = vrot.slane %v1666_v34, 4  ;;  %v1782_v8 = vld [vmem:[#allocation3 + $0x130] sm:$0xff] }
 0x31e   : > { %v1661_v31 = vsel %vm12492_vm0, %v1653_v58, %v1660_v37  ;;  %v1677_v29 = vor.u32 %v1675_v53, %v12721_v12  ;;  %v1692_v39 = vshll.u32 %v12463_v27, 16  ;;  %v1698_v2 = vshrl.u32 %v12466_v0, 16 }
 0x31f   : > { %v1683_v24 = vrot.slane %v1681_v10, 7  ;;  %v12734_v15 = vrot.slane %v1689_v4, 7  ;;  %1855 = vst [vmem:[#allocation3 + $0x120] sm:$0xff] %v1661_v31  ;;  %v12738_v36 = vor.u32 %v1633_v3, %v1632_v7  ;;  %v1650_v42 = vshll.u32 %v12544_v21, 16  ;;  %v1786_v31 = vld [vmem:[#allocation3 + $0x108] sm:$0x11] }
 0x320   : > { %v1678_v58 = vsel %vm12492_vm0, %v1670_v6, %v1677_v29  ;;  %v1706_v37 = vshrl.u32 %v12469_v9, 16  ;;  %v1667_v53 = vshll.u32 %v12568_v23, 16  ;;  %v1709_v4 = vshll.u32 %v12469_v9, 16 }
 0x321   : > { %v1687_v10 = vrot.slane %v1683_v24, 4  ;;  %v1694_v27 = vor.u32 %v1692_v39, %v12734_v15  ;;  %1862 = vst [vmem:[#allocation3 + $0xb8] sm:$0xff] %v1678_v58  ;;  %v1700_v7 = vrot.slane %v1698_v2, 7  ;;  %v12752_v6 = vsel %vm11777_vm15, %v12606_v26, %v1768_v52  ;;  %v1793_v39 = vld [vmem:[#allocation3 + $0x180] sm:$0x11]  ;;  %v1817_v52 = vld [vmem:[#allocation3 + $0x118] sm:$0xff] }
 0x322   : > { %v12747_v3 = vrot.slane %v1706_v37, 7  ;;  %v1773_v29 = vsel %vm11771_vm10, %v1458_v46, %v1772_v17  ;;  %1770 = vst [vmem:[#allocation3 + $0x48] sm:$0xff] %v12752_v6  ;;  %v12766_v2 = vsel %vm11777_vm15, %v12615_v25, %v1775_v19  ;;  %v14218_v26 = vrot.slane %v12498_v48, 4  ;;  %v1810_v17 = vld [vmem:[#allocation3 + $0x68] sm:$0xff]  ;;  %v1824_v19 = vld [vmem:[#allocation3 + $0x90] sm:$0xff]  ;;  %v12781_v48 = vld [vmem:[#allocation3 + $0xa0] sm:$0xff] }
 0x323   : > { %v12760_v9 = vsel %vm12492_vm0, %v1687_v10, %v1694_v27  ;;  %v12775_v46 = vsel %vm11777_vm15, %v12642_v16, %v1782_v8  ;;  %v12777_v58 = vor.u32 %v1650_v42, %v1649_v5  ;;  %v1684_v37 = vshll.u32 %v12460_v54, 16  ;;  %1774 = vst [vmem:[#allocation3 + $0x150] sm:$0x11] %v1773_v29  ;;  %v1800_v42 = vld [vmem:[#allocation3 + $0x1a8] sm:$0x11]  ;;  %v1838_v27 = vld [vmem:[#allocation3 + $0x110] sm:$0xff] }
 0x324   : > { %v1780_v51 = vsel %vm11771_vm10, %v14218_v26, %v1779_v22  ;;  %v1704_v10 = vrot.slane %v1700_v7, 4  ;;  %v1711_v25 = vor.u32 %v1709_v4, %v12747_v3  ;;  %v1701_v22 = vshll.u32 %v12466_v0, 16  ;;  %1777 = vst [vmem:[#allocation3 + $0xf8] sm:$0xff] %v12766_v2  ;;  %v12799_v0 = vld [vmem:[#allocation3 + $0x20] sm:$0xff] }
 0x325   : > { %v14219_v16 = vrot.slane %v12521_v61, 4  ;;  %v12792_v54 = vsel %vm11777_vm15, %v12655_v50, %v1789_v57  ;;  %v12797_v5 = vsel %vm11777_vm15, %v12667_v59, %v1796_v44  ;;  %v12801_v4 = vor.u32 %v1667_v53, %v1666_v34  ;;  %1781 = vst [vmem:[#allocation3 + $0xd0] sm:$0x11] %v1780_v51  ;;  %v12814_v44 = vld [vmem:[#allocation3 + $0x38] sm:$0xff]  ;;  %v12816_v50 = vld [vmem:[#allocation3 + $0xf0] sm:$0xff] }
 0x326   : > { %v12803_v61 = vor.u32 %v1684_v37, %v1683_v24  ;;  %v12812_v57 = vsel %vm11777_vm15, %v12677_v47, %v1803_v11  ;;  %v12818_v59 = vor.u32 %v1701_v22, %v1700_v7  ;;  %1784 = vst [vmem:[#allocation3 + $0x130] sm:$0xff] %v12775_v46  ;;  %v14220_v34 = vrot.slane %v12551_v1, 4  ;;  %v1807_v47 = vld [vmem:[#allocation3] sm:$0x11]  ;;  %v12831_v53 = vld [vmem:[#allocation3 + $0x170] sm:$0xff]  ;;  %v12833_v7 = vld [vmem:[#allocation3 + $0x98] sm:$0xff] }
 0x327   : > { %v1787_v8 = vsel %vm11771_vm10, %v14219_v16, %v1786_v31  ;;  %v12807_v31 = vsel %vm12492_vm0, %v1704_v10, %v1711_v25  ;;  %v1811_v24 = vsel %vm11777_vm15, %v12699_v45, %v1810_v17  ;;  %v1818_v11 = vsel %vm11777_vm15, %v12705_v49, %v1817_v52  ;;  %1791 = vst [vmem:[#allocation3 + $0x148] sm:$0xff] %v12792_v54  ;;  %v1814_v51 = vld [vmem:[#allocation3 + $0xc8] sm:$0x11] }
 0x328   : > { %v1794_v14 = vsel %vm11771_vm10, %v14220_v34, %v1793_v39  ;;  %1788 = vst [vmem:[#allocation3 + $0x108] sm:$0x11] %v1787_v8  ;;  %v1825_v1 = vsel %vm11777_vm15, %v12708_v30, %v1824_v19  ;;  %v1832_v29 = vsel %vm11777_vm15, %v12724_v40, %v12781_v48  ;;  %v1560_v45 = vrot.slane %v12622_v13, 4  ;;  %v1828_v37 = vld [vmem:[#allocation3 + $0x188] sm:$0x11]  ;;  %v11322_v34 = vld [vmem:[#allocation5 + $0xd0] sm:$0xff] }
 0x329   : > { %v14221_v49 = vrot.slane %v12576_v43, 4  ;;  %v1839_v26 = vsel %vm11777_vm15, %v12726_v32, %v1838_v27  ;;  %v1846_v30 = vsel %vm11777_vm15, %v12738_v36, %v12799_v0  ;;  %1795 = vst [vmem:[#allocation3 + $0x180] sm:$0x11] %v1794_v14  ;;  %v1853_v13 = vsel %vm11777_vm15, %v12777_v58, %v12814_v44  ;;  %v1821_v58 = vld [vmem:[#allocation3 + $0x40] sm:$0x11]  ;;  %7539 = vmatpush.bf16.msra.mxu1 %v11322_v34 }
 0x32a   : > { %v1860_v43 = vsel %vm11777_vm15, %v12801_v4, %v12816_v50  ;;  %v1577_v40 = vrot.slane %v12637_v41, 4  ;;  %1798 = vst [vmem:[#allocation3 + $0x138] sm:$0xff] %v12797_v5  ;;  %v14222_v32 = vrot.slane %v12600_v55, 4  ;;  %v1867_v17 = vsel %vm11777_vm15, %v12803_v61, %v12831_v53  ;;  %v1835_v19 = vld [vmem:[#allocation3 + $0x50] sm:$0x11] }
 0x32b   : > { %v1801_v39 = vsel %vm11771_vm10, %v14221_v49, %v1800_v42  ;;  %v1874_v52 = vsel %vm11777_vm15, %v12818_v59, %v12833_v7  ;;  %v1594_v41 = vrot.slane %v12658_v60, 4  ;;  %1805 = vst [vmem:[#allocation3 + $0x160] sm:$0xff] %v12812_v57  ;;  %v1815_v55 = vsel %vm11771_vm10, %v1560_v45, %v1814_v51  ;;  %v1842_v48 = vld [vmem:[#allocation3 + $0x78] sm:$0x11]  ;;  %v1849_v16 = vld [vmem:[#allocation3 + $0x168] sm:$0x11] }
 0x32c   : > { %v1808_v36 = vsel %vm11771_vm10, %v14222_v32, %v1807_v47  ;;  %1802 = vst [vmem:[#allocation3 + $0x1a8] sm:$0x11] %v1801_v39  ;;  %v1611_v10 = vrot.slane %v12672_v20, 4  ;;  %v1822_v25 = vsel %vm11771_vm10, %v1577_v40, %v1821_v58  ;;  %v1628_v21 = vrot.slane %v12682_v38, 4  ;;  %v1856_v42 = vld [vmem:[#allocation3 + $0xe0] sm:$0x11] }
 0x32d   : > { %1809 = vst [vmem:[#allocation3] sm:$0x11] %v1808_v36  ;;  %v1829_v60 = vsel %vm11771_vm10, %v1594_v41, %v1828_v37  ;;  %v1645_v22 = vrot.slane %v12694_v28, 4  ;;  %v1662_v8 = vrot.slane %v12711_v18, 4  ;;  %v1679_v27 = vrot.slane %v12721_v12, 4  ;;  %v11320_v53 = vld [vmem:[#allocation5 + $0xc0] sm:$0xff] }
 0x32e   : > { %1812 = vst [vmem:[#allocation3 + $0x68] sm:$0xff] %v1811_v24  ;;  %v1836_v20 = vsel %vm11771_vm10, %v1611_v10, %v1835_v19  ;;  %v1843_v38 = vsel %vm11771_vm10, %v1628_v21, %v1842_v48  ;;  %v1863_v0 = vld [vmem:[#allocation3 + $0x158] sm:$0x11]  ;;  %v1696_v18 = vrot.slane %v12734_v15, 4  ;;  %v1713_v12 = vrot.slane %v12747_v3, 4  ;;  %v11312_v3 = vld [vmem:[#allocation5 + $0x80] sm:$0xff] }
 0x32f   : > { %1816 = vst [vmem:[#allocation3 + $0xc8] sm:$0x11] %v1815_v55  ;;  %v1850_v28 = vsel %vm11771_vm10, %v1645_v22, %v1849_v16  ;;  %v1857_v4 = vsel %vm11771_vm10, %v1662_v8, %v1856_v42  ;;  %v1870_v61 = vld [vmem:[#allocation3 + $0x58] sm:$0x11]  ;;  %v1864_v44 = vsel %vm11771_vm10, %v1679_v27, %v1863_v0  ;;  %v1877_v50 = vld [vmem:[#allocation3 + $0x140] sm:$0x11] }
 0x330   : > { %1819 = vst [vmem:[#allocation3 + $0x118] sm:$0xff] %v1818_v11  ;;  %v1871_v59 = vsel %vm11771_vm10, %v1696_v18, %v1870_v61  ;;  %v11313_v15 = vld [vmem:[#allocation5 + $0x88] sm:$0xff]  ;;  %v1878_v14 = vsel %vm11771_vm10, %v1713_v12, %v1877_v50  ;;  %v11335_v11 = vld [vmem:[#allocation5 + $0x138] sm:$0xff]  ;;  %v11612_v47 = vmov 0   ;;  %v2844_v7 = vshrl.u32 %v12517_v62, 16 }
 0x331   : > { %1823 = vst [vmem:[#allocation3 + $0x40] sm:$0x11] %v1822_v25  ;;  %v11321_v24 = vld [vmem:[#allocation5 + $0xc8] sm:$0xff]  ;;  %7451 = vmatpush.bf16.msra.mxu0 %v11313_v15  ;;  %7623 = vmatpush.bf16.msra.mxu2 %v11335_v11  ;;  %v12914_v45 = vrot.slane %v11612_v47, 5  ;;  %v2011_v49 = vrot.slane %v11612_v47, 4  ;;  %v2029_v51 = vshll.u32 %v12517_v62, 16 }
 0x332   : > { %1826 = vst [vmem:[#allocation3 + $0x90] sm:$0xff] %v1825_v1  ;;  %7540 = vmatpush.bf16.msra.mxu1 %v11321_v24  ;;  %v1949_v32 = vld [vmem:[#allocation3 + $0x150] sm:$0x11]  ;;  %v12922_v36 = vrot.slane %v2844_v7, 4  ;;  %vm1993_vm15 = vsmask.f32 7440 }
 0x333   : > { %1830 = vst [vmem:[#allocation3 + $0x188] sm:$0x11] %v1829_v60  ;;  %v2031_v58 = vrot.slane %v2029_v51, 5  ;;  %v2039_v41 = vshll.u32 %v1949_v32, 16  ;;  %v2053_v62 = vshll.u32 %v12534_v63, 16  ;;  %v2012_v22 = vor.u32 %v2011_v49, %v12914_v45  ;;  %vm12934_vm5 = vmor %vm1992_vm3, %vm1993_vm15 }
 0x334   : > { %1833 = vst [vmem:[#allocation3 + $0xa0] sm:$0xff] %v1832_v29  ;;  %v3677_v29 = vshrl.u32 %v12534_v63, 16  ;;  %v2081_v51 = vshrl.u32 %v12561_v33, 16 }
 0x335   : > { %1837 = vst [vmem:[#allocation3 + $0x50] sm:$0x11] %v1836_v20  ;;  %7452 = vmatpush.bf16.msra.mxu0 %v11312_v3  ;;  %v2036_v10 = vor.u32 %v12922_v36, %v2031_v58  ;;  %v2041_v25 = vrot.slane %v2039_v41, 5  ;;  %v2055_v60 = vrot.slane %v2053_v62, 5  ;;  %v2013_v50 = vrot.slane %v2012_v22, 4 }
 0x336   : > { %1840 = vst [vmem:[#allocation3 + $0x110] sm:$0xff] %v1839_v26  ;;  %7541 = vmatpush.bf16.msra.mxu1 %v11320_v53  ;;  %v2020_v26 = vshrl.u32 %v12752_v6, 16  ;;  %v12928_v19 = vrot.slane %v3677_v29, 4  ;;  %v2077_v29 = vshll.u32 %v12561_v33, 16  ;;  %v2083_v33 = vrot.slane %v2081_v51, 4 }
 0x337   : > { %1844 = vst [vmem:[#allocation3 + $0x78] sm:$0x11] %v1843_v38  ;;  %v2037_v16 = vrot.slane %v2036_v10, 4  ;;  %v1958_v10 = vld [vmem:[#allocation3 + $0x180] sm:$0x11] }
 0x338   : > { %1847 = vst [vmem:[#allocation3 + $0x20] sm:$0xff] %v1846_v30  ;;  %v2023_v30 = vshll.u32 %v12752_v6, 16  ;;  %v2060_v0 = vor.u32 %v12928_v19, %v2055_v60  ;;  %v3635_v23 = vld [vmem:[#allocation3 + $0x40] sm:$0x11] }
 0x339   : > { %1851 = vst [vmem:[#allocation3 + $0x168] sm:$0x11] %v1850_v28  ;;  %v2042_v27 = vsel %vm12934_vm5, %v2037_v16, %v2041_v25  ;;  %v1952_v28 = vld [vmem:[#allocation3 + $0xd0] sm:$0x11]  ;;  %v2095_v25 = vshll.u32 %v12792_v54, 16  ;;  %v2116_v16 = vshrl.u32 %v12797_v5, 16 }
 0x33a   : > { %1854 = vst [vmem:[#allocation3 + $0x38] sm:$0xff] %v1853_v13  ;;  %v2044_v13 = vshrl.u32 %v12766_v2, 16  ;;  %v2063_v34 = vshll.u32 %v1952_v28, 16 }
 0x33b   : > { %1858 = vst [vmem:[#allocation3 + $0xe0] sm:$0x11] %v1857_v4  ;;  %v2068_v4 = vshrl.u32 %v12775_v46, 16  ;;  %v2097_v28 = vrot.slane %v2095_v25, 5 }
 0x33c   : > { %1861 = vst [vmem:[#allocation3 + $0xf0] sm:$0xff] %v1860_v43  ;;  %v2046_v55 = vrot.slane %v2044_v13, 4  ;;  %v2065_v53 = vrot.slane %v2063_v34, 5 }
 0x33d   : > { %1865 = vst [vmem:[#allocation3 + $0x158] sm:$0x11] %v1864_v44 }
 0x33e   : > { %1868 = vst [vmem:[#allocation3 + $0x170] sm:$0xff] %v1867_v17  ;;  %v2022_v17 = vrot.slane %v2020_v26, 4 }
 0x33f   : > { %1869 = vst [vmem:[#allocation3 + $0x178] sm:$0xff] %v12760_v9  ;;  %v11343_v9 = vld [vmem:[#allocation5 + $0x178] sm:$0xff] }
 0x340   : > { %1872 = vst [vmem:[#allocation3 + $0x58] sm:$0x11] %v1871_v59  ;;  %7712 = vmatpush.bf16.msra.mxu3 %v11343_v9  ;;  %v1955_v9 = vld [vmem:[#allocation3 + $0x108] sm:$0x11] }
 0x341   : > { %1875 = vst [vmem:[#allocation3 + $0x98] sm:$0xff] %v1874_v52  ;;  %v2025_v52 = vrot.slane %v2023_v30, 5  ;;  %v2087_v13 = vshll.u32 %v1955_v9, 16  ;;  %v2129_v9 = vshrl.u32 %v12611_v56, 16 }
 0x342   : > { %1876 = vst [vmem:[#allocation3 + $0x128] sm:$0xff] %v12807_v31 }
 0x343   : > { %1879 = vst [vmem:[#allocation3 + $0x140] sm:$0x11] %v1878_v14  ;;  %v2026_v37 = vor.u32 %v2025_v52, %v2022_v17  ;;  %v2079_v52 = vrot.slane %v2077_v29, 5  ;;  %v2131_v51 = vrot.slane %v2129_v9, 4 }
 0x344   : > { %1119 = vst [vmem:[#allocation3 + $0x28] sm:$0xff] %v11612_v47 }
 0x345   : > { %1120 = vst [vmem:[#allocation3 + $0x88] sm:$0xff] %v11612_v47  ;;  %v2027_v20 = vrot.slane %v2026_v37, 4  ;;  %v2089_v37 = vrot.slane %v2087_v13, 5  ;;  %v1964_v13 = vld [vmem:[#allocation3] sm:$0x11] }
 0x346   : > { %1913 = vst [vmem:[#allocation4 + $0x48] sm:$0xff] %v11612_v47 }
 0x347   : > { %1121 = vst [vmem:[#allocation3 + $0x10] sm:$0x11] %v11612_v47  ;;  %v2032_v42 = vsel %vm12934_vm5, %v2027_v20, %v2031_v58  ;;  %v11334_v58 = vld [vmem:[#allocation5 + $0x130] sm:$0xff]  ;;  %v2111_v20 = vshll.u32 %v1958_v10, 16 }
 0x348   : > { %1123 = vst [vmem:[#allocation3 + $0x60] sm:$0xff] %v11612_v47  ;;  %7624 = vmatpush.bf16.msra.mxu2 %v11334_v58 }
 0x349   : > { %1125 = vst [vmem:[#allocation3 + $0x190] sm:$0x11] %v11612_v47  ;;  %v2061_v47 = vrot.slane %v2060_v0, 4 }
 0x34a   : > { %1914 = vst [vmem:[#allocation4 + $0x90] sm:$0xff] %v12752_v6  ;;  %v2047_v6 = vshll.u32 %v12766_v2, 16 }
 0x34b   : > { %v1133_v1 = vld [vmem:[#allocation3 + $0x28] sm:$0x11]  ;;  %1916 = vst [vmem:[#allocation4 + $0x120] sm:$0xff] %v12766_v2  ;;  %v2066_v30 = vsel %vm12934_vm5, %v2061_v47, %v2065_v53  ;;  %v2119_v47 = vshll.u32 %v12797_v5, 16  ;;  %v2125_v53 = vshll.u32 %v12611_v56, 16 }
 0x34c   : > { %v1134_v31 = vsel %vm11771_vm10, 0, %v1133_v1  ;;  %1918 = vst [vmem:[#allocation4 + $0x1b0] sm:$0xff] %v12775_v46  ;;  %v2049_v21 = vrot.slane %v2047_v6, 5  ;;  %v2070_v1 = vrot.slane %v2068_v4, 4  ;;  %v11342_v6 = vld [vmem:[#allocation5 + $0x170] sm:$0xff] }
 0x34d   : > { %1135 = vst [vmem:[#allocation3 + $0x28] sm:$0x11] %v1134_v31  ;;  %v11017_v15 = vld [vmem:[#allocation4 + $0x44] sm:$0xf0]  ;;  %v9240_v14 = vld [vmem:[#allocation4 + $0x48] sm:$0xf0]  ;;  %7713 = vmatpush.bf16.msra.mxu3 %v11342_v6 }
 0x34e   : > { %v1192_v39 = vld [vmem:[#allocation3 + $0x10] sm:$0x11]  ;;  %1920 = vst [vmem:[#allocation4 + $0x240] sm:$0xff] %v12792_v54  ;;  %v2050_v38 = vor.u32 %v2049_v21, %v2046_v55  ;;  %v2071_v31 = vshll.u32 %v12775_v46, 16  ;;  %v2092_v55 = vshrl.u32 %v12792_v54, 16  ;;  %v2101_v21 = vshll.u32 %v12585_v35, 16 }
 0x34f   : > { %v1193_v40 = vsel %vm11784_vm6, 0, %v1192_v39  ;;  %2413 = vst [vmem:[#allocation4 + $0x98] sm:$0xff] %v2032_v42  ;;  %v2159_v6 = vshll.u32 %v1964_v13, 16  ;;  %v1970_v13 = vld [vmem:[#allocation3 + $0x40] sm:$0x11] }
 0x350   : > { %1194 = vst [vmem:[#allocation3 + $0x10] sm:$0x11] %v1193_v40  ;;  %v2051_v12 = vrot.slane %v2050_v38, 4  ;;  %v2073_v46 = vrot.slane %v2071_v31, 5  ;;  %v2094_v22 = vrot.slane %v2092_v55, 4  ;;  %v2103_v0 = vrot.slane %v2101_v21, 5 }
 0x351   : > { %2414 = vst [vmem:[#allocation4 + $0xe0] sm:$0xff] %v2042_v27  ;;  %v11026_v34 = vld [vmem:[#allocation4 + $0x94] sm:$0xf] }
 0x352   : > { %v2056_v11 = vsel %vm12934_vm5, %v2051_v12, %v2055_v60  ;;  %2416 = vst [vmem:[#allocation4 + $0x170] sm:$0xff] %v2066_v30  ;;  %v2074_v41 = vor.u32 %v2073_v46, %v2070_v1  ;;  %v2105_v60 = vshrl.u32 %v12585_v35, 16  ;;  %v9310_v12 = vld [vmem:[#allocation4 + $0x90] sm:$0xf] }
 0x353   : > { %2415 = vst [vmem:[#allocation4 + $0x128] sm:$0xff] %v2056_v11  ;;  %v2118_v11 = vrot.slane %v2116_v16, 4 }
 0x354   : > { %v1880_v48 = vld [vmem:[#allocation3 + $0x28] sm:$0xff]  ;;  %1922 = vst [vmem:[#allocation4 + $0x2d0] sm:$0xff] %v12797_v5  ;;  %v2075_v62 = vrot.slane %v2074_v41, 4  ;;  %v2140_v5 = vshrl.u32 %v12812_v57, 16 }
 0x355   : > { %1912 = vst [vmem:[#allocation4] sm:$0xff] %v1880_v48  ;;  %v1996_v2 = vshrl.u32 %v1880_v48, 16  ;;  %v1999_v8 = vshll.u32 %v1880_v48, 16 }
 0x356   : > { %1924 = vst [vmem:[#allocation4 + $0x360] sm:$0xff] %v12812_v57  ;;  %v2080_v48 = vsel %vm12934_vm5, %v2075_v62, %v2079_v52  ;;  %v2142_v55 = vrot.slane %v2140_v5, 4  ;;  %v9318_v16 = vld [vmem:[#allocation4 + $0x98] sm:$0xf] }
 0x357   : > { %v1946_v18 = vld [vmem:[#allocation3 + $0x10] sm:$0x11]  ;;  %v1998_v61 = vrot.slane %v1996_v2, 4  ;;  %v2001_v44 = vrot.slane %v1999_v8, 5  ;;  %v12965_v2 = vld [vmem:[#allocation3 + $0x68] sm:$0xff]  ;;  %2417 = vst [vmem:[#allocation4 + $0x1b8] sm:$0xff] %v2080_v48 }
 0x358   : > { %v2015_v59 = vshll.u32 %v1946_v18, 16  ;;  %v11035_v18 = vld [vmem:[#allocation4 + $0xd4] sm:$0xf0]  ;;  %1926 = vst [vmem:[#allocation4 + $0x3f0] sm:$0xff] %v12965_v2 }
 0x359   : > { %v2002_v24 = vor.u32 %v2001_v44, %v1998_v61  ;;  %v2107_v44 = vrot.slane %v2105_v60, 4  ;;  %v9320_v60 = vld [vmem:[#allocation4 + $0xe0] sm:$0xf0] }
 0x35a   : > { %v2017_v3 = vrot.slane %v2015_v59, 5  ;;  %v2098_v59 = vor.u32 %v2097_v28, %v2094_v22  ;;  %v2164_v22 = vshrl.u32 %v12965_v2, 16  ;;  %v11027_v28 = vld [vmem:[#allocation4 + $0x9c] sm:$0xf] }
 0x35b   : > { %v2003_v7 = vrot.slane %v2002_v24, 4  ;;  %v1961_v24 = vld [vmem:[#allocation3 + $0x1a8] sm:$0x11] }
 0x35c   : > { %v9238_v49 = vld [vmem:[#allocation4] sm:$0xf]  ;;  %v11008_v39 = vld [vmem:[#allocation4 + $0x4] sm:$0xf]  ;;  %v2018_v26 = vsel %vm12934_vm5, %v2013_v50, %v2017_v3  ;;  %v9312_v50 = vld [vmem:[#allocation4 + $0xd8] sm:$0xf0] }
 0x35d   : > { %v9239_v40 = vor.u32 %v11017_v15, %v9238_v49  ;;  %v9243_v32 = vor.u32 %v11008_v39, %v9240_v14  ;;  %v2008_v17 = vsel %vm12934_vm5, %v2003_v7, %v12914_v45  ;;  %2412 = vst [vmem:[#allocation4 + $0x50] sm:$0xff] %v2018_v26  ;;  %v2084_v45 = vor.u32 %v2083_v33, %v2079_v52  ;;  %v1896_v33 = vld [vmem:[#allocation3 + $0x118] sm:$0xff] }
 0x35e   : > { %2411 = vst [vmem:[#allocation4 + $0x8] sm:$0xff] %v2008_v17  ;;  %v2108_v15 = vor.u32 %v2107_v44, %v2103_v0  ;;  %v2113_v14 = vrot.slane %v2111_v20, 5  ;;  %v2099_v3 = vrot.slane %v2098_v59, 4  ;;  %v9311_v7 = vor.u32 %v11035_v18, %v9310_v12  ;;  %v14226_v17 = vld [vmem:[#allocation14_spill] sm:$0xff] }
 0x35f   : > { %7275 = vmatmul.bf16.vlgmr.msrb.gmra.mxu2 %v9239_v40  ;;  %7364 = vmatmul.bf16.vlgmr.msrb.gmra.mxu3 %v9243_v32  ;;  %v2085_v42 = vrot.slane %v2084_v45, 4  ;;  %v2135_v31 = vshll.u32 %v1961_v24, 16  ;;  %v9315_v29 = vor.u32 %v11026_v34, %v9312_v50  ;;  %v2121_v39 = vrot.slane %v2119_v47, 5  ;;  %v1895_v40 = vld [vmem:[#allocation3 + $0x8] sm:$0xff]  ;;  %v11036_v45 = vld [vmem:[#allocation4 + $0xdc] sm:$0xf0] }
 0x360   : > { %v2109_v1 = vrot.slane %v2108_v15, 4  ;;  %v2104_v49 = vsel %vm12934_vm5, %v2099_v3, %v2103_v0  ;;  %v2127_v26 = vrot.slane %v2125_v53, 5  ;;  %v2143_v32 = vshll.u32 %v12812_v57, 16  ;;  %1927 = vst [vmem:[#allocation4 + $0x438] sm:$0xff] %v1895_v40  ;;  %v1967_v12 = vld [vmem:[#allocation3 + $0xc8] sm:$0x11] }
 0x361   : > { %v2090_v61 = vsel %vm12934_vm5, %v2085_v42, %v2089_v37  ;;  %2419 = vst [vmem:[#allocation4 + $0x248] sm:$0xff] %v2104_v49  ;;  %v2122_v56 = vor.u32 %v2121_v39, %v2118_v11  ;;  %v2149_v46 = vshll.u32 %v14226_v17, 16  ;;  %v2153_v52 = vshrl.u32 %v14226_v17, 16  ;;  %v1898_v3 = vld [vmem:[#allocation3 + $0x90] sm:$0xff]  ;;  %v11053_v53 = vld [vmem:[#allocation4 + $0x164] sm:$0xf0] }
 0x362   : > { %2418 = vst [vmem:[#allocation4 + $0x200] sm:$0xff] %v2090_v61  ;;  %v2114_v30 = vsel %vm12934_vm5, %v2109_v1, %v2113_v14  ;;  %v2132_v58 = vor.u32 %v2131_v51, %v2127_v26  ;;  %v2137_v41 = vrot.slane %v2135_v31, 5  ;;  %v2145_v37 = vrot.slane %v2143_v32, 5  ;;  %v9382_v47 = vld [vmem:[#allocation4 + $0x120] sm:$0xf]  ;;  %v1899_v39 = vld [vmem:[#allocation3 + $0xd8] sm:$0xff] }
 0x363   : > { %2420 = vst [vmem:[#allocation4 + $0x290] sm:$0xff] %v2114_v30  ;;  %v2123_v62 = vrot.slane %v2122_v56, 4  ;;  %v2151_v25 = vrot.slane %v2149_v46, 5  ;;  %v2155_v21 = vrot.slane %v2153_v52, 4  ;;  %v2167_v20 = vshll.u32 %v12965_v2, 16  ;;  %v12997_v52 = vld [vmem:[#allocation3 + $0xc0] sm:$0xff] }
 0x364   : > { %v11018_v8 = vld [vmem:[#allocation4 + $0x4c] sm:$0xf0]  ;;  %v9248_v38 = vld [vmem:[#allocation4 + $0x50] sm:$0xf0]  ;;  %v2133_v10 = vrot.slane %v2132_v58, 4  ;;  %v2146_v48 = vor.u32 %v2145_v37, %v2142_v55  ;;  %1928 = vst [vmem:[#allocation4 + $0x480] sm:$0xff] %v1896_v33  ;;  %v9323_v18 = vor.u32 %v11027_v28, %v9320_v60  ;;  %v9383_v56 = vor.u32 %v11053_v53, %v9382_v47 }
 0x365   : > { %v9246_v54 = vld [vmem:[#allocation4 + $0x8] sm:$0xf]  ;;  %v11009_v27 = vld [vmem:[#allocation4 + $0xc] sm:$0xf]  ;;  %v2128_v57 = vsel %vm12934_vm5, %v2123_v62, %v2127_v26  ;;  %v2161_v42 = vrot.slane %v2159_v6, 5  ;;  %v2166_v44 = vrot.slane %v2164_v22, 4 }
 0x366   : > { %v9247_v35 = vor.u32 %v11018_v8, %v9246_v54  ;;  %v9251_v4 = vor.u32 %v11009_v27, %v9248_v38  ;;  %v2138_v8 = vsel %vm12934_vm5, %v2133_v10, %v2137_v41  ;;  %2421 = vst [vmem:[#allocation4 + $0x2d8] sm:$0xff] %v2128_v57  ;;  %v2156_v38 = vor.u32 %v2155_v21, %v2151_v25  ;;  %v1897_v27 = vld [vmem:[#allocation3 + $0xa8] sm:$0xff]  ;;  %v11044_v31 = vld [vmem:[#allocation4 + $0x124] sm:$0xf]  ;;  %v11333_v6 = vld [vmem:[#allocation5 + $0x128] sm:$0xff] }
 0x367   : > { %v2173_v54 = vshll.u32 %v1895_v40, 16  ;;  %2422 = vst [vmem:[#allocation4 + $0x320] sm:$0xff] %v2138_v8  ;;  %v2147_v0 = vrot.slane %v2146_v48, 4  ;;  %v2169_v50 = vrot.slane %v2167_v20, 5  ;;  %v2183_v24 = vshll.u32 %v1967_v12, 16  ;;  %v12999_v55 = vld [vmem:[#allocation3 + $0x110] sm:$0xff]  ;;  %7625 = vmatpush.bf16.msra.mxu2 %v11333_v6 }
 0x368   : > { %7453 = vmatmul.bf16.vlgmr.msra.gmra.mxu0 %v9247_v35  ;;  %7542 = vmatmul.bf16.vlgmr.msra.gmra.mxu1 %v9251_v4  ;;  %v2177_v35 = vshrl.u32 %v1895_v40, 16  ;;  %v9319_v4 = vor.u32 %v11036_v45, %v9318_v16  ;;  %v2157_v61 = vrot.slane %v2156_v38, 4  ;;  %1929 = vst [vmem:[#allocation4 + $0x4c8] sm:$0xff] %v1897_v27  ;;  %v2188_v11 = vshrl.u32 %v1896_v33, 16  ;;  %v12993_v40 = vld [vmem:[#allocation3 + $0xa0] sm:$0xff] }
 0x369   : > { %v2152_v2 = vsel %vm12934_vm5, %v2147_v0, %v2151_v25  ;;  %v2175_v34 = vrot.slane %v2173_v54, 5  ;;  %v2170_v15 = vor.u32 %v2169_v50, %v2166_v44  ;;  %v2191_v1 = vshll.u32 %v1896_v33, 16  ;;  %1930 = vst [vmem:[#allocation4 + $0x510] sm:$0xff] %v1898_v3  ;;  %v11341_v33 = vld [vmem:[#allocation5 + $0x168] sm:$0xff]  ;;  %v11054_v48 = vld [vmem:[#allocation4 + $0x16c] sm:$0xf0] }
 0x36a   : > { %v2162_v59 = vsel %vm12934_vm5, %v2157_v61, %v2161_v42  ;;  %2423 = vst [vmem:[#allocation4 + $0x368] sm:$0xff] %v2152_v2  ;;  %v2179_v14 = vrot.slane %v2177_v35, 4  ;;  %v2190_v49 = vrot.slane %v2188_v11, 4  ;;  %v2185_v51 = vrot.slane %v2183_v24, 5  ;;  %7714 = vmatpush.bf16.msra.mxu3 %v11341_v33  ;;  %v1973_v16 = vld [vmem:[#allocation3 + $0x188] sm:$0x11] }
 0x36b   : > { %2424 = vst [vmem:[#allocation4 + $0x3b0] sm:$0xff] %v2162_v59  ;;  %v2171_v9 = vrot.slane %v2170_v15, 4  ;;  %v2193_v5 = vrot.slane %v2191_v1, 5  ;;  %v2197_v46 = vshll.u32 %v1897_v27, 16  ;;  %v2201_v41 = vshrl.u32 %v1897_v27, 16  ;;  %v1903_v27 = vld [vmem:[#allocation3 + $0x30] sm:$0xff] }
 0x36c   : > { %1931 = vst [vmem:[#allocation4 + $0x558] sm:$0xff] %v1899_v39  ;;  %v2207_v37 = vshll.u32 %v1970_v13, 16  ;;  %v2212_v25 = vshrl.u32 %v1898_v3, 16  ;;  %v2215_v21 = vshll.u32 %v1898_v3, 16  ;;  %v2221_v60 = vshll.u32 %v1899_v39, 16 }
 0x36d   : > { %v2176_v26 = vsel %vm12934_vm5, %v2171_v9, %v2175_v34  ;;  %v2194_v58 = vor.u32 %v2193_v5, %v2190_v49  ;;  %v2199_v62 = vrot.slane %v2197_v46, 5  ;;  %1932 = vst [vmem:[#allocation4 + $0x5a0] sm:$0xff] %v12993_v40  ;;  %v2203_v10 = vrot.slane %v2201_v41, 4  ;;  %v9392_v42 = vld [vmem:[#allocation4 + $0x170] sm:$0xf0] }
 0x36e   : > { %2425 = vst [vmem:[#allocation4 + $0x3f8] sm:$0xff] %v2176_v26  ;;  %v2225_v57 = vshrl.u32 %v1899_v39, 16  ;;  %v2214_v8 = vrot.slane %v2212_v25, 4  ;;  %v2217_v38 = vrot.slane %v2215_v21, 5  ;;  %v2223_v54 = vrot.slane %v2221_v60, 5  ;;  %v1904_v9 = vld [vmem:[#allocation3 + $0x20] sm:$0xff] }
 0x36f   : > { %7280 = vmatmul.bf16.gmra.mxu2 %v9311_v7  ;;  %7369 = vmatmul.bf16.gmra.mxu3 %v9315_v29  ;;  %v2180_v7 = vor.u32 %v2179_v14, %v2175_v34  ;;  %v9384_v29 = vld [vmem:[#allocation4 + $0x168] sm:$0xf0]  ;;  %v2195_v45 = vrot.slane %v2194_v58, 4  ;;  %1933 = vst [vmem:[#allocation4 + $0x5e8] sm:$0xff] %v12997_v52  ;;  %v2204_v20 = vor.u32 %v2203_v10, %v2199_v62  ;;  %v2209_v0 = vrot.slane %v2207_v37, 5  ;;  %v1905_v58 = vld [vmem:[#allocation3 + $0x1a0] sm:$0xff] }
 0x370   : > { %v9387_v32 = vor.u32 %v11044_v31, %v9384_v29  ;;  %1934 = vst [vmem:[#allocation4 + $0x630] sm:$0xff] %v12999_v55  ;;  %v2218_v35 = vor.u32 %v2217_v38, %v2214_v8  ;;  %v11045_v61 = vld [vmem:[#allocation4 + $0x12c] sm:$0xf]  ;;  %v2231_v44 = vshll.u32 %v1973_v16, 16  ;;  %v2236_v2 = vshrl.u32 %v12993_v40, 16 }
 0x371   : > { %v2181_v30 = vrot.slane %v2180_v7, 4  ;;  %v2200_v22 = vsel %vm12934_vm5, %v2195_v45, %v2199_v62  ;;  %v2205_v28 = vrot.slane %v2204_v20, 4  ;;  %v9395_v50 = vor.u32 %v11045_v61, %v9392_v42  ;;  %1935 = vst [vmem:[#allocation4 + $0x678] sm:$0xff] %v1903_v27  ;;  %v9454_v14 = vld [vmem:[#allocation4 + $0x1b0] sm:$0xf]  ;;  %v1906_v38 = vld [vmem:[#allocation3 + $0x38] sm:$0xff] }
 0x372   : > { %2427 = vst [vmem:[#allocation4 + $0x488] sm:$0xff] %v2200_v22  ;;  %v2219_v34 = vrot.slane %v2218_v35, 4  ;;  %v11071_v24 = vld [vmem:[#allocation4 + $0x1f4] sm:$0xf0]  ;;  %v1976_v3 = vld [vmem:[#allocation3 + $0x50] sm:$0x11] }
 0x373   : > { %v2186_v17 = vsel %vm12934_vm5, %v2181_v30, %v2185_v51  ;;  %v2210_v59 = vsel %vm12934_vm5, %v2205_v28, %v2209_v0  ;;  %v2238_v47 = vrot.slane %v2236_v2, 4  ;;  %v2239_v53 = vshll.u32 %v12993_v40, 16  ;;  %v11062_v49 = vld [vmem:[#allocation4 + $0x1b4] sm:$0xf]  ;;  %v9456_v39 = vld [vmem:[#allocation4 + $0x1f8] sm:$0xf0] }
 0x374   : > { %2426 = vst [vmem:[#allocation4 + $0x440] sm:$0xff] %v2186_v17  ;;  %v2224_v11 = vsel %vm12934_vm5, %v2219_v34, %v2223_v54  ;;  %v2233_v1 = vrot.slane %v2231_v44, 5  ;;  %v2245_v31 = vshll.u32 %v12997_v52, 16  ;;  %v2249_v29 = vshrl.u32 %v12997_v52, 16  ;;  %v1979_v33 = vld [vmem:[#allocation3 + $0x78] sm:$0x11] }
 0x375   : > { %2428 = vst [vmem:[#allocation4 + $0x4d0] sm:$0xff] %v2210_v59  ;;  %v2241_v26 = vrot.slane %v2239_v53, 5  ;;  %v2260_v30 = vshrl.u32 %v12999_v55, 16  ;;  %v2263_v17 = vshll.u32 %v12999_v55, 16  ;;  %v2269_v46 = vshll.u32 %v1903_v27, 16 }
 0x376   : > { %2429 = vst [vmem:[#allocation4 + $0x518] sm:$0xff] %v2224_v11  ;;  %v2247_v13 = vrot.slane %v2245_v31, 5  ;;  %v2251_v5 = vrot.slane %v2249_v29, 4  ;;  %v9455_v52 = vor.u32 %v11071_v24, %v9454_v14  ;;  %v9459_v41 = vor.u32 %v11062_v49, %v9456_v39  ;;  %v11072_v42 = vld [vmem:[#allocation4 + $0x1fc] sm:$0xf0] }
 0x377   : > { %1936 = vst [vmem:[#allocation4 + $0x6c0] sm:$0xff] %v1904_v9  ;;  %v2242_v40 = vor.u32 %v2241_v26, %v2238_v47  ;;  %v2273_v62 = vshrl.u32 %v1903_v27, 16  ;;  %v2265_v45 = vrot.slane %v2263_v17, 5  ;;  %v2271_v21 = vrot.slane %v2269_v46, 5  ;;  %v9462_v28 = vld [vmem:[#allocation4 + $0x1b8] sm:$0xf] }
 0x378   : > { %7458 = vmatmul.bf16.gmra.mxu0 %v9319_v4  ;;  %7547 = vmatmul.bf16.gmra.mxu1 %v9323_v18  ;;  %v2227_v4 = vrot.slane %v2225_v57, 4  ;;  %v9390_v18 = vld [vmem:[#allocation4 + $0x128] sm:$0xf]  ;;  %v2252_v6 = vor.u32 %v2251_v5, %v2247_v13  ;;  %1937 = vst [vmem:[#allocation4 + $0x708] sm:$0xff] %v1905_v58  ;;  %v2284_v20 = vshrl.u32 %v1904_v9, 16  ;;  %v2287_v16 = vshll.u32 %v1904_v9, 16 }
 0x379   : > { %v9391_v12 = vor.u32 %v11054_v48, %v9390_v18  ;;  %v2243_v37 = vrot.slane %v2242_v40, 4  ;;  %v2275_v55 = vrot.slane %v2273_v62, 4  ;;  %v2279_v48 = vshll.u32 %v1979_v33, 16  ;;  %v9464_v0 = vld [vmem:[#allocation4 + $0x200] sm:$0xf0]  ;;  %v1907_v18 = vld [vmem:[#allocation3 + $0x120] sm:$0xff] }
 0x37a   : > { %v2228_v15 = vor.u32 %v2227_v4, %v2223_v54  ;;  %v2253_v10 = vrot.slane %v2252_v6, 4  ;;  %v2293_v8 = vshll.u32 %v1905_v58, 16  ;;  %v2286_v35 = vrot.slane %v2284_v20, 4  ;;  %1938 = vst [vmem:[#allocation4 + $0x750] sm:$0xff] %v1906_v38  ;;  %v11089_v29 = vld [vmem:[#allocation4 + $0x284] sm:$0xf0] }
 0x37b   : > { %v2248_v60 = vsel %vm12934_vm5, %v2243_v37, %v2247_v13  ;;  %v2276_v27 = vor.u32 %v2275_v55, %v2271_v21  ;;  %v2289_v4 = vrot.slane %v2287_v16, 5  ;;  %v2281_v2 = vrot.slane %v2279_v48, 5  ;;  %1939 = vst [vmem:[#allocation4 + $0x798] sm:$0xff] %v1907_v18  ;;  %v11080_v49 = vld [vmem:[#allocation4 + $0x244] sm:$0xf] }
 0x37c   : > { %v2229_v7 = vrot.slane %v2228_v15, 4  ;;  %2431 = vst [vmem:[#allocation4 + $0x5a8] sm:$0xff] %v2248_v60  ;;  %v2295_v34 = vrot.slane %v2293_v8, 5  ;;  %v2297_v15 = vshrl.u32 %v1905_v58, 16  ;;  %v9463_v14 = vor.u32 %v11072_v42, %v9462_v28  ;;  %v9528_v13 = vld [vmem:[#allocation4 + $0x288] sm:$0xf0] }
 0x37d   : > { %v2277_v44 = vrot.slane %v2276_v27, 4  ;;  %v2290_v59 = vor.u32 %v2289_v4, %v2286_v35  ;;  %v2321_v5 = vshrl.u32 %v1907_v18, 16  ;;  %v9531_v33 = vor.u32 %v11080_v49, %v9528_v13  ;;  %v11332_v60 = vld [vmem:[#allocation5 + $0x120] sm:$0xff]  ;;  %v1911_v28 = vld [vmem:[#allocation3 + $0x178] sm:$0xff] }
 0x37e   : > { %v2234_v51 = vsel %vm12934_vm5, %v2229_v7, %v2233_v1  ;;  %v2299_v53 = vrot.slane %v2297_v15, 4  ;;  %v9526_v7 = vld [vmem:[#allocation4 + $0x240] sm:$0xf]  ;;  %v1985_v1 = vld [vmem:[#allocation3 + $0xe0] sm:$0x11]  ;;  %7626 = vmatpush.bf16.msra.mxu2 %v11332_v60  ;;  %1943 = vst [vmem:[#allocation4 + $0x8b8] sm:$0xff] %v1911_v28 }
 0x37f   : > { %7285 = vmatmul.bf16.gmra.mxu2 %v9383_v56  ;;  %7374 = vmatmul.bf16.gmra.mxu3 %v9387_v32  ;;  %v2255_v56 = vshll.u32 %v1976_v3, 16  ;;  %2430 = vst [vmem:[#allocation4 + $0x560] sm:$0xff] %v2234_v51  ;;  %v2262_v32 = vrot.slane %v2260_v30, 4  ;;  %v2282_v11 = vsel %vm12934_vm5, %v2277_v44, %v2281_v2  ;;  %v2308_v3 = vshrl.u32 %v1906_v38, 16  ;;  %v9536_v44 = vld [vmem:[#allocation4 + $0x290] sm:$0xf0] }
 0x380   : > { %2434 = vst [vmem:[#allocation4 + $0x680] sm:$0xff] %v2282_v11  ;;  %v2291_v47 = vrot.slane %v2290_v59, 4  ;;  %v2300_v26 = vor.u32 %v2299_v53, %v2295_v34  ;;  %v2311_v30 = vshll.u32 %v1906_v38, 16  ;;  %v2317_v51 = vshll.u32 %v1907_v18, 16  ;;  %v2718_v15 = vld [vmem:[#allocation3 + $0x48] sm:$0xff] }
 0x381   : > { %v2257_v25 = vrot.slane %v2255_v56, 5  ;;  %v2266_v57 = vor.u32 %v2265_v45, %v2262_v32  ;;  %v2310_v31 = vrot.slane %v2308_v3, 4  ;;  %v1908_v56 = vld [vmem:[#allocation3 + $0xf0] sm:$0xff]  ;;  %v2327_v46 = vshll.u32 %v1985_v1, 16  ;;  %v9598_v1 = vld [vmem:[#allocation4 + $0x2d0] sm:$0xf] }
 0x382   : > { %v2296_v39 = vsel %vm12934_vm5, %v2291_v47, %v2295_v34  ;;  %v2301_v40 = vrot.slane %v2300_v26, 4  ;;  %v2313_v17 = vrot.slane %v2311_v30, 5  ;;  %v2319_v58 = vrot.slane %v2317_v51, 5  ;;  %1940 = vst [vmem:[#allocation4 + $0x7e0] sm:$0xff] %v1908_v56  ;;  %v1910_v45 = vld [vmem:[#allocation3 + $0x170] sm:$0xff] }
 0x383   : > { %v2258_v22 = vsel %vm12934_vm5, %v2253_v10, %v2257_v25  ;;  %v2267_v54 = vrot.slane %v2266_v57, 4  ;;  %2435 = vst [vmem:[#allocation4 + $0x6c8] sm:$0xff] %v2296_v39  ;;  %v9527_v6 = vor.u32 %v11089_v29, %v9526_v7  ;;  %v1988_v25 = vld [vmem:[#allocation3 + $0x158] sm:$0x11]  ;;  %v11340_v57 = vld [vmem:[#allocation5 + $0x160] sm:$0xff]  ;;  %v2329_v48 = vrot.slane %v2327_v46, 5 }
 0x384   : > { %2432 = vst [vmem:[#allocation4 + $0x5f0] sm:$0xff] %v2258_v22  ;;  %v2314_v37 = vor.u32 %v2313_v17, %v2310_v31  ;;  %v2335_v22 = vshll.u32 %v1908_v56, 16  ;;  %7715 = vmatpush.bf16.msra.mxu3 %v11340_v57  ;;  %v2351_v27 = vshll.u32 %v1988_v25, 16  ;;  %v2356_v18 = vshrl.u32 %v1910_v45, 16  ;;  %v11107_v31 = vld [vmem:[#allocation4 + $0x314] sm:$0xf0] }
 0x385   : > { %v2272_v61 = vsel %vm12934_vm5, %v2267_v54, %v2271_v21  ;;  %v2332_v21 = vshrl.u32 %v1908_v56, 16  ;;  %1942 = vst [vmem:[#allocation4 + $0x870] sm:$0xff] %v1910_v45  ;;  %v2365_v34 = vshll.u32 %v1911_v28, 16  ;;  %v1991_v49 = vld [vmem:[#allocation3 + $0x58] sm:$0x11]  ;;  %v2719_v56 = vld [vmem:[#allocation3 + $0x70] sm:$0xff] }
 0x386   : > { %2433 = vst [vmem:[#allocation4 + $0x638] sm:$0xff] %v2272_v61  ;;  %v2315_v55 = vrot.slane %v2314_v37, 4  ;;  %v2337_v54 = vrot.slane %v2335_v22, 5  ;;  %v11090_v61 = vld [vmem:[#allocation4 + $0x28c] sm:$0xf0]  ;;  %v2358_v59 = vrot.slane %v2356_v18, 4 }
 0x387   : > { %v2334_v16 = vrot.slane %v2332_v21, 4  ;;  %v2353_v7 = vrot.slane %v2351_v27, 5  ;;  %2750 = vst [vmem:[#allocation4 + $0x18] sm:$0xff] %v2718_v15  ;;  %v11098_v26 = vld [vmem:[#allocation4 + $0x2d4] sm:$0xf]  ;;  %v2367_v13 = vrot.slane %v2365_v34, 5 }
 0x388   : > { %7463 = vmatmul.bf16.gmra.mxu0 %v9391_v12  ;;  %7552 = vmatmul.bf16.gmra.mxu1 %v9395_v50  ;;  %v1982_v12 = vld [vmem:[#allocation3 + $0x168] sm:$0x11]  ;;  %v2320_v42 = vsel %vm12934_vm5, %v2315_v55, %v2319_v58  ;;  %v2375_v46 = vshll.u32 %v1991_v49, 16  ;;  %2751 = vst [vmem:[#allocation4 + $0x60] sm:$0xff] %v2719_v56  ;;  %v2551_v21 = vrot.slane %v2719_v56, 5  ;;  %v2725_v34 = vld [vmem:[#allocation3 + $0x18] sm:$0xff] }
 0x389   : > { %v11063_v50 = vld [vmem:[#allocation4 + $0x1bc] sm:$0xf]  ;;  %v2303_v9 = vshll.u32 %v1982_v12, 16  ;;  %2437 = vst [vmem:[#allocation4 + $0x758] sm:$0xff] %v2320_v42  ;;  %v2338_v2 = vor.u32 %v2337_v54, %v2334_v16  ;;  %v2359_v12 = vshll.u32 %v1910_v45, 16  ;;  %v2723_v54 = vld [vmem:[#allocation3 + $0x80] sm:$0xff] }
 0x38a   : > { %v9467_v24 = vor.u32 %v11063_v50, %v9464_v0  ;;  %v9600_v30 = vld [vmem:[#allocation4 + $0x318] sm:$0xf0]  ;;  %v2448_v45 = vld [vmem:[#allocation3 + $0x150] sm:$0x11]  ;;  %v2377_v22 = vrot.slane %v2375_v46, 5  ;;  %2755 = vst [vmem:[#allocation4 + $0x180] sm:$0xff] %v2723_v54 }
 0x38b   : > { %v2305_v32 = vrot.slane %v2303_v9, 5  ;;  %v2339_v11 = vrot.slane %v2338_v2, 4  ;;  %v2361_v3 = vrot.slane %v2359_v12, 5  ;;  %v9603_v25 = vor.u32 %v11098_v26, %v9600_v30  ;;  %v2451_v60 = vld [vmem:[#allocation3 + $0xd0] sm:$0x11]  ;;  %v2727_v30 = vld [vmem:[#allocation3 + $0x100] sm:$0xff] }
 0x38c   : > { %v2565_v2 = vrot.slane %v2723_v54, 5  ;;  %v2455_v12 = vld [vmem:[#allocation3 + $0x148] sm:$0xee]  ;;  %v2458_v49 = vld [vmem:[#allocation3 + $0x138] sm:$0xee]  ;;  %2757 = vst [vmem:[#allocation4 + $0x210] sm:$0xff] %v2725_v34 }
 0x38d   : > { %v2306_v62 = vsel %vm12934_vm5, %v2301_v40, %v2305_v32  ;;  %v2362_v39 = vor.u32 %v2361_v3, %v2358_v59  ;;  %v2446_v32 = vld [vmem:[#allocation3 + $0x48] sm:$0xee]  ;;  %v9608_v59 = vld [vmem:[#allocation4 + $0x320] sm:$0xf0]  ;;  %v11125_v26 = vld [vmem:[#allocation4 + $0x3a4] sm:$0xf0] }
 0x38e   : > { %2436 = vst [vmem:[#allocation4 + $0x710] sm:$0xff] %v2306_v62  ;;  %v11099_v3 = vld [vmem:[#allocation4 + $0x2dc] sm:$0xf] }
 0x38f   : > { %7290 = vmatmul.bf16.gmra.mxu2 %v9455_v52  ;;  %7379 = vmatmul.bf16.gmra.mxu3 %v9459_v41  ;;  %v2323_v52 = vrot.slane %v2321_v5, 4  ;;  %v1909_v41 = vld [vmem:[#allocation3 + $0xb8] sm:$0xff]  ;;  %v2369_v5 = vshrl.u32 %v1911_v28, 16  ;;  %v2363_v40 = vrot.slane %v2362_v39, 4  ;;  %v9670_v39 = vld [vmem:[#allocation4 + $0x360] sm:$0xf] }
 0x390   : > { %1941 = vst [vmem:[#allocation4 + $0x828] sm:$0xff] %v1909_v41  ;;  %v2341_v8 = vshll.u32 %v1909_v41, 16  ;;  %v2345_v38 = vshrl.u32 %v1909_v41, 16  ;;  %v2449_v41 = vld [vmem:[#allocation3 + $0xf8] sm:$0xee] }
 0x391   : > { %v2324_v10 = vor.u32 %v2323_v52, %v2319_v58  ;;  %v2371_v17 = vrot.slane %v2369_v5, 4  ;;  %v2720_v58 = vld [vmem:[#allocation3 + $0xf8] sm:$0xff]  ;;  %v2721_v52 = vld [vmem:[#allocation3 + $0xe8] sm:$0xff]  ;;  %v9190_v57 = vrot.slane %v2449_v41, 9  ;;  %v2461_v41 = vld [vmem:[#allocation3 + $0x160] sm:$0xee] }
 0x392   : > { %v2343_v35 = vrot.slane %v2341_v8, 5  ;;  %v2347_v4 = vrot.slane %v2345_v38, 4  ;;  %2752 = vst [vmem:[#allocation4 + $0xa8] sm:$0xff] %v2720_v58  ;;  %v2558_v55 = vrot.slane %v2721_v52, 5  ;;  %v2553_v8 = vrot.slane %v2551_v21, 4  ;;  %v2726_v58 = vld [vmem:[#allocation3 + $0x138] sm:$0xff] }
 0x393   : > { %v2325_v20 = vrot.slane %v2324_v10, 4  ;;  %v2372_v62 = vor.u32 %v2371_v17, %v2367_v13  ;;  %v9189_v10 = vrot.slane %v2446_v32, 9  ;;  %2753 = vst [vmem:[#allocation4 + $0xf0] sm:$0xff] %v2721_v52  ;;  %v2554_v38 = vrot.slane %v2448_v45, 5  ;;  %v2460_v32 = vld [vmem:[#allocation3 + $0x1a8] sm:$0x11] }
 0x394   : > { %v2348_v50 = vor.u32 %v2347_v4, %v2343_v35  ;;  %v2344_v29 = vsel %vm12934_vm5, %v2339_v11, %v2343_v35  ;;  %v2560_v42 = vrot.slane %v2558_v55, 4  ;;  %v2559_v28 = vsel %vm13040_vm4, %v9190_v57, %v2558_v55  ;;  %v2454_v4 = vld [vmem:[#allocation3 + $0x108] sm:$0x11]  ;;  %2758 = vst [vmem:[#allocation4 + $0x258] sm:$0xff] %v2726_v58  ;;  %v2728_v57 = vld [vmem:[#allocation3 + $0x160] sm:$0xff] }
 0x395   : > { %v2330_v0 = vsel %vm12934_vm5, %v2325_v20, %v2329_v48  ;;  %2439 = vst [vmem:[#allocation4 + $0x7e8] sm:$0xff] %v2344_v29  ;;  %v2373_v48 = vrot.slane %v2372_v62, 4  ;;  %v2452_v20 = vld [vmem:[#allocation3 + $0x130] sm:$0xee]  ;;  %v2552_v16 = vsel %vm13040_vm4, %v9189_v10, %v2551_v21  ;;  %v2555_v35 = vsel %vm13040_vm4, %v2553_v8, %v2554_v38  ;;  %v9606_v11 = vld [vmem:[#allocation4 + $0x2d8] sm:$0xf] }
 0x396   : > { %2438 = vst [vmem:[#allocation4 + $0x7a0] sm:$0xff] %v2330_v0  ;;  %v2349_v9 = vrot.slane %v2348_v50, 4  ;;  %v2561_v0 = vrot.slane %v2451_v60, 5  ;;  %v9191_v18 = vrot.slane %v2452_v20, 9  ;;  %v11108_v50 = vld [vmem:[#allocation4 + $0x31c] sm:$0xf0] }
 0x397   : > { %v2378_v27 = vsel %vm12934_vm5, %v2373_v48, %v2377_v22  ;;  %2688 = vst [vmem:[#allocation4 + $0xa0] sm:$0xff] %v2552_v16  ;;  %v2724_v29 = vld [vmem:[#allocation3 + $0x148] sm:$0xff]  ;;  %v9193_v17 = vrot.slane %v2458_v49, 9  ;;  %v2579_v52 = vrot.slane %v2727_v30, 5  ;;  %v9194_v21 = vrot.slane %v2461_v41, 9  ;;  %v2735_v49 = vld [vmem:[#allocation3 + $0xd8] sm:$0xff] }
 0x398   : > { %7468 = vmatmul.bf16.gmra.mxu0 %v9463_v14  ;;  %7557 = vmatmul.bf16.gmra.mxu1 %v9467_v24  ;;  %v9534_v14 = vld [vmem:[#allocation4 + $0x248] sm:$0xf]  ;;  %v11081_v24 = vld [vmem:[#allocation4 + $0x24c] sm:$0xf]  ;;  %v2354_v51 = vsel %vm12934_vm5, %v2349_v9, %v2353_v7  ;;  %2442 = vst [vmem:[#allocation4 + $0x8c0] sm:$0xff] %v2378_v27  ;;  %v2566_v15 = vsel %vm13040_vm4, %v9191_v18, %v2565_v2  ;;  %v2731_v8 = vld [vmem:[#allocation3 + $0x8] sm:$0xff] }
 0x399   : > { %v9535_v47 = vor.u32 %v11090_v61, %v9534_v14  ;;  %v9539_v53 = vor.u32 %v11081_v24, %v9536_v44  ;;  %2440 = vst [vmem:[#allocation4 + $0x830] sm:$0xff] %v2354_v51  ;;  %v2562_v61 = vsel %vm13040_vm4, %v2560_v42, %v2561_v0  ;;  %v2722_v44 = vld [vmem:[#allocation3 + $0x130] sm:$0xff]  ;;  %v2567_v14 = vrot.slane %v2565_v2, 4  ;;  %v2463_v55 = vld [vmem:[#allocation3] sm:$0x11]  ;;  %v2730_v27 = vld [vmem:[#allocation3 + $0x68] sm:$0xff] }
 0x39a   : > { %2689 = vst [vmem:[#allocation4 + $0xe8] sm:$0xff] %v2555_v35  ;;  %v2568_v24 = vrot.slane %v2454_v4, 5  ;;  %v9611_v9 = vor.u32 %v11099_v3, %v9608_v59  ;;  %v11116_v51 = vld [vmem:[#allocation4 + $0x364] sm:$0xf]  ;;  %v2580_v45 = vsel %vm13040_vm4, %v9193_v17, %v2579_v52  ;;  %v2581_v10 = vrot.slane %v2579_v52, 4  ;;  %v2732_v59 = vld [vmem:[#allocation3 + $0x118] sm:$0xff] }
 0x39b   : > { %2690 = vst [vmem:[#allocation4 + $0x130] sm:$0xff] %v2559_v28  ;;  %v2589_v16 = vrot.slane %v2463_v55, 5  ;;  %v11126_v38 = vld [vmem:[#allocation4 + $0x3ac] sm:$0xf0]  ;;  %v9680_v42 = vld [vmem:[#allocation4 + $0x3b0] sm:$0xf0] }
 0x39c   : > { %2691 = vst [vmem:[#allocation4 + $0x178] sm:$0xff] %v2562_v61  ;;  %v2569_v7 = vsel %vm13040_vm4, %v2567_v14, %v2568_v24  ;;  %v9678_v28 = vld [vmem:[#allocation4 + $0x368] sm:$0xf]  ;;  %v11117_v0 = vld [vmem:[#allocation4 + $0x36c] sm:$0xf]  ;;  %v2593_v35 = vrot.slane %v2731_v8, 5 }
 0x39d   : > { %2754 = vst [vmem:[#allocation4 + $0x138] sm:$0xff] %v2722_v44  ;;  %v9679_v4 = vor.u32 %v11126_v38, %v9678_v28  ;;  %v9683_v18 = vor.u32 %v11117_v0, %v9680_v42  ;;  %v11331_v61 = vld [vmem:[#allocation5 + $0x118] sm:$0xff]  ;;  %v9742_v2 = vld [vmem:[#allocation4 + $0x3f0] sm:$0xf]  ;;  %v2475_v38 = vld [vmem:[#allocation3 + $0x50] sm:$0x11] }
 0x39e   : > { %2692 = vst [vmem:[#allocation4 + $0x1c0] sm:$0xff] %v2566_v15  ;;  %v2733_v44 = vld [vmem:[#allocation3 + $0xa8] sm:$0xff]  ;;  %7627 = vmatpush.bf16.msra.mxu2 %v11331_v61  ;;  %v2595_v24 = vrot.slane %v2593_v35, 4  ;;  %v2737_v58 = vld [vmem:[#allocation3 + $0xc0] sm:$0xff]  ;;  %v11152_v42 = vld [vmem:[#allocation4 + $0x484] sm:$0xf] }
 0x39f   : > { %7295 = vmatmul.bf16.gmra.mxu2 %v9527_v6  ;;  %7384 = vmatmul.bf16.gmra.mxu3 %v9531_v33  ;;  %v2368_v6 = vsel %vm12934_vm5, %v2363_v40, %v2367_v13  ;;  %v9599_v33 = vor.u32 %v11107_v31, %v9598_v1  ;;  %v2457_v1 = vld [vmem:[#allocation3 + $0x180] sm:$0x11]  ;;  %v2572_v31 = vrot.slane %v2725_v34, 5  ;;  %2693 = vst [vmem:[#allocation4 + $0x208] sm:$0xff] %v2569_v7  ;;  %v9672_v40 = vld [vmem:[#allocation4 + $0x3a8] sm:$0xf0] }
 0x3a0   : > { %2441 = vst [vmem:[#allocation4 + $0x878] sm:$0xff] %v2368_v6  ;;  %v2575_v56 = vrot.slane %v2457_v1, 5  ;;  %v9671_v6 = vor.u32 %v11125_v26, %v9670_v39  ;;  %v9675_v62 = vor.u32 %v11116_v51, %v9672_v40  ;;  %v11143_v34 = vld [vmem:[#allocation4 + $0x434] sm:$0xf0]  ;;  %v2734_v7 = vld [vmem:[#allocation3 + $0x90] sm:$0xff]  ;;  %v2607_v26 = vrot.slane %v2735_v49, 5 }
 0x3a1   : > { %v2574_v5 = vrot.slane %v2572_v31, 4  ;;  %2756 = vst [vmem:[#allocation4 + $0x1c8] sm:$0xff] %v2724_v29  ;;  %v11339_v15 = vld [vmem:[#allocation5 + $0x158] sm:$0xff]  ;;  %v9743_v1 = vor.u32 %v11143_v34, %v9742_v2  ;;  %v2469_v51 = vld [vmem:[#allocation3 + $0x40] sm:$0x11] }
 0x3a2   : > { %2759 = vst [vmem:[#allocation4 + $0x2a0] sm:$0xff] %v2727_v30  ;;  %v2466_v3 = vld [vmem:[#allocation3 + $0xc8] sm:$0x11]  ;;  %7716 = vmatpush.bf16.msra.mxu3 %v11339_v15  ;;  %v2467_v30 = vld [vmem:[#allocation3 + $0x118] sm:$0xee]  ;;  %v2740_v61 = vld [vmem:[#allocation3 + $0x20] sm:$0xff] }
 0x3a3   : > { %v2576_v46 = vsel %vm13040_vm4, %v2574_v5, %v2575_v56  ;;  %2696 = vst [vmem:[#allocation4 + $0x2e0] sm:$0xff] %v2580_v45  ;;  %v9196_v5 = vrot.slane %v2467_v30, 9  ;;  %v2603_v56 = vrot.slane %v2469_v51, 5  ;;  %v2470_v40 = vld [vmem:[#allocation3 + $0x90] sm:$0xee] }
 0x3a4   : > { %2695 = vst [vmem:[#allocation4 + $0x298] sm:$0xff] %v2576_v46  ;;  %v2472_v17 = vld [vmem:[#allocation3 + $0x188] sm:$0x11]  ;;  %v9197_v46 = vrot.slane %v2470_v40, 9  ;;  %v11144_v45 = vld [vmem:[#allocation4 + $0x43c] sm:$0xf0] }
 0x3a5   : > { %2760 = vst [vmem:[#allocation4 + $0x2e8] sm:$0xff] %v2728_v57  ;;  %v9750_v52 = vld [vmem:[#allocation4 + $0x3f8] sm:$0xf]  ;;  %v11135_v41 = vld [vmem:[#allocation4 + $0x3fc] sm:$0xf] }
 0x3a6   : > { %2762 = vst [vmem:[#allocation4 + $0x378] sm:$0xff] %v2730_v27  ;;  %v9751_v57 = vor.u32 %v11144_v45, %v9750_v52  ;;  %v2617_v27 = vrot.slane %v2475_v38, 5  ;;  %v11161_v0 = vld [vmem:[#allocation4 + $0x4c4] sm:$0xf0]  ;;  %v13089_v2 = vld [vmem:[%s14115_s6] ss:$0 sm:$0xff] }
 0x3a7   : > { %2763 = vst [vmem:[#allocation4 + $0x3c0] sm:$0xff] %v2731_v8  ;;  %v9814_v8 = vld [vmem:[#allocation4 + $0x480] sm:$0xf]  ;;  %v9822_v51 = vld [vmem:[#allocation4 + $0x488] sm:$0xf] }
 0x3a8   : > { %7473 = vmatmul.bf16.gmra.mxu0 %v9535_v47  ;;  %7562 = vmatmul.bf16.gmra.mxu1 %v9539_v53  ;;  %v9192_v47 = vrot.slane %v2455_v12, 9  ;;  %v9607_v53 = vor.u32 %v11108_v50, %v9606_v11  ;;  %v11134_v12 = vld [vmem:[#allocation4 + $0x3f4] sm:$0xf]  ;;  %v2464_v50 = vld [vmem:[#allocation3 + $0x68] sm:$0xee]  ;;  %2764 = vst [vmem:[#allocation4 + $0x408] sm:$0xff] %v2732_v59 }
 0x3a9   : > { %v9195_v14 = vrot.slane %v2464_v50, 9  ;;  %v9744_v11 = vld [vmem:[#allocation4 + $0x438] sm:$0xf0]  ;;  %2765 = vst [vmem:[#allocation4 + $0x450] sm:$0xff] %v2733_v44  ;;  %v2476_v15 = vld [vmem:[#allocation3 + $0x110] sm:$0xee] }
 0x3aa   : > { %v2573_v13 = vsel %vm13040_vm4, %v9192_v47, %v2572_v31  ;;  %v2600_v47 = vrot.slane %v2733_v44, 5  ;;  %v9747_v31 = vor.u32 %v11134_v12, %v9744_v11  ;;  %2766 = vst [vmem:[#allocation4 + $0x498] sm:$0xff] %v2734_v7  ;;  %v2741_v44 = vld [vmem:[#allocation3 + $0x1a0] sm:$0xff]  ;;  %v9815_v12 = vor.u32 %v11161_v0, %v9814_v8  ;;  %v2745_v52 = vld [vmem:[#allocation3 + $0xb8] sm:$0xff]  ;;  %v2485_v8 = vld [vmem:[#allocation3 + $0xf0] sm:$0xee] }
 0x3ab   : > { %2694 = vst [vmem:[#allocation4 + $0x250] sm:$0xff] %v2573_v13  ;;  %v2736_v13 = vld [vmem:[#allocation3 + $0xa0] sm:$0xff]  ;;  %v2628_v34 = vrot.slane %v2741_v44, 5  ;;  %v9199_v11 = vrot.slane %v2476_v15, 9  ;;  %v2487_v38 = vld [vmem:[#allocation3 + $0x158] sm:$0x11] }
 0x3ac   : > { %v2602_v39 = vrot.slane %v2600_v47, 4  ;;  %2767 = vst [vmem:[#allocation4 + $0x4e0] sm:$0xff] %v2735_v49 }
 0x3ad   : > { %2768 = vst [vmem:[#allocation4 + $0x528] sm:$0xff] %v2736_v13  ;;  %v2630_v7 = vrot.slane %v2628_v34, 4  ;;  %v11153_v13 = vld [vmem:[#allocation4 + $0x48c] sm:$0xf] }
 0x3ae   : > { %2769 = vst [vmem:[#allocation4 + $0x570] sm:$0xff] %v2737_v58 }
 0x3af   : > { %7300 = vmatmul.bf16.gmra.mxu2 %v9599_v33  ;;  %7389 = vmatmul.bf16.gmra.mxu3 %v9603_v25  ;;  %v2729_v33 = vld [vmem:[#allocation3 + $0x198] sm:$0xff]  ;;  %v2582_v25 = vrot.slane %v2460_v32, 5  ;;  %v2609_v32 = vrot.slane %v2607_v26, 4  ;;  %2772 = vst [vmem:[#allocation4 + $0x648] sm:$0xff] %v2740_v61 }
 0x3b0   : > { %v2586_v48 = vrot.slane %v2729_v33, 5  ;;  %2761 = vst [vmem:[#allocation4 + $0x330] sm:$0xff] %v2729_v33  ;;  %v2604_v33 = vsel %vm13040_vm4, %v2602_v39, %v2603_v56 }
 0x3b1   : > { %v2583_v60 = vsel %vm13040_vm4, %v2581_v10, %v2582_v25  ;;  %v9752_v10 = vld [vmem:[#allocation4 + $0x440] sm:$0xf0]  ;;  %v2608_v25 = vsel %vm13040_vm4, %v9197_v46, %v2607_v26  ;;  %2703 = vst [vmem:[#allocation4 + $0x4d8] sm:$0xff] %v2604_v33 }
 0x3b2   : > { %2697 = vst [vmem:[#allocation4 + $0x328] sm:$0xff] %v2583_v60  ;;  %v2587_v22 = vsel %vm13040_vm4, %v9194_v21, %v2586_v48  ;;  %v2588_v20 = vrot.slane %v2586_v48, 4  ;;  %v2614_v21 = vrot.slane %v2737_v58, 5  ;;  %v9755_v55 = vor.u32 %v11135_v41, %v9752_v10  ;;  %v2739_v48 = vld [vmem:[#allocation3 + $0x30] sm:$0xff] }
 0x3b3   : > { %2698 = vst [vmem:[#allocation4 + $0x370] sm:$0xff] %v2587_v22  ;;  %v2473_v22 = vld [vmem:[#allocation3 + $0xa0] sm:$0xee]  ;;  %v2621_v28 = vrot.slane %v2739_v48, 5  ;;  %v2744_v10 = vld [vmem:[#allocation3 + $0xf0] sm:$0xff] }
 0x3b4   : > { %v2590_v54 = vsel %vm13040_vm4, %v2588_v20, %v2589_v16  ;;  %2704 = vst [vmem:[#allocation4 + $0x520] sm:$0xff] %v2608_v25  ;;  %v2616_v20 = vrot.slane %v2614_v21, 4  ;;  %v2738_v16 = vld [vmem:[#allocation3 + $0x110] sm:$0xff] }
 0x3b5   : > { %2699 = vst [vmem:[#allocation4 + $0x3b8] sm:$0xff] %v2590_v54  ;;  %v9198_v54 = vrot.slane %v2473_v22, 9  ;;  %v2623_v59 = vrot.slane %v2621_v28, 4  ;;  %v2622_v49 = vsel %vm13040_vm4, %v9199_v11, %v2621_v28  ;;  %v9888_v28 = vld [vmem:[#allocation4 + $0x558] sm:$0xf0]  ;;  %v2746_v11 = vld [vmem:[#allocation3 + $0x170] sm:$0xff] }
 0x3b6   : > { %2770 = vst [vmem:[#allocation4 + $0x5b8] sm:$0xff] %v2738_v16 }
 0x3b7   : > { %2771 = vst [vmem:[#allocation4 + $0x600] sm:$0xff] %v2739_v48  ;;  %v2484_v48 = vld [vmem:[#allocation3 + $0xe0] sm:$0x11] }
 0x3b8   : > { %7478 = vmatmul.bf16.gmra.mxu0 %v9607_v53  ;;  %7567 = vmatmul.bf16.gmra.mxu1 %v9611_v9  ;;  %v2594_v53 = vsel %vm13040_vm4, %v9195_v14, %v2593_v35  ;;  %v2596_v9 = vrot.slane %v2466_v3, 5  ;;  %v9816_v35 = vld [vmem:[#allocation4 + $0x4c8] sm:$0xf0]  ;;  %2773 = vst [vmem:[#allocation4 + $0x690] sm:$0xff] %v2741_v44  ;;  %v2638_v0 = vrot.slane %v2484_v48, 5 }
 0x3b9   : > { %2700 = vst [vmem:[#allocation4 + $0x400] sm:$0xff] %v2594_v53  ;;  %v9819_v50 = vor.u32 %v11152_v42, %v9816_v35  ;;  %v2478_v14 = vld [vmem:[#allocation3 + $0x78] sm:$0x11]  ;;  %v2481_v53 = vld [vmem:[#allocation3 + $0x168] sm:$0x11] }
 0x3ba   : > { %v2597_v29 = vsel %vm13040_vm4, %v2595_v24, %v2596_v9  ;;  %v2742_v24 = vld [vmem:[#allocation3 + $0x38] sm:$0xff]  ;;  %v2624_v3 = vrot.slane %v2478_v14, 5  ;;  %v2631_v56 = vrot.slane %v2481_v53, 5  ;;  %2708 = vst [vmem:[#allocation4 + $0x640] sm:$0xff] %v2622_v49  ;;  %v2488_v53 = vld [vmem:[#allocation3 + $0x170] sm:$0xee] }
 0x3bb   : > { %2701 = vst [vmem:[#allocation4 + $0x448] sm:$0xff] %v2597_v29  ;;  %v11338_v29 = vld [vmem:[#allocation5 + $0x150] sm:$0xff]  ;;  %v2782_v49 = vld [vmem:[#allocation3 + $0x48] sm:$0xff] }
 0x3bc   : > { %2774 = vst [vmem:[#allocation4 + $0x6d8] sm:$0xff] %v2742_v24  ;;  %v2625_v39 = vsel %vm13040_vm4, %v2623_v59, %v2624_v3  ;;  %7717 = vmatpush.bf16.msra.mxu3 %v11338_v29  ;;  %v2632_v46 = vsel %vm13040_vm4, %v2630_v7, %v2631_v56  ;;  %v2748_v29 = vld [vmem:[#allocation3 + $0x98] sm:$0xff] }
 0x3bd   : > { %2709 = vst [vmem:[#allocation4 + $0x688] sm:$0xff] %v2625_v39 }
 0x3be   : > { %2711 = vst [vmem:[#allocation4 + $0x718] sm:$0xff] %v2632_v46  ;;  %v2834_v46 = vshll.u32 %v2782_v49, 16 }
 0x3bf   : > { %7305 = vmatmul.bf16.gmra.mxu2 %v9671_v6  ;;  %7394 = vmatmul.bf16.gmra.mxu3 %v9675_v62  ;;  %v2601_v6 = vsel %vm13040_vm4, %v9196_v5, %v2600_v47  ;;  %v2610_v62 = vrot.slane %v2472_v17, 5  ;;  %v2479_v47 = vld [vmem:[#allocation3 + $0x20] sm:$0xee]  ;;  %2776 = vst [vmem:[#allocation4 + $0x768] sm:$0xff] %v2744_v10 }
 0x3c0   : > { %2702 = vst [vmem:[#allocation4 + $0x490] sm:$0xff] %v2601_v6  ;;  %v9200_v9 = vrot.slane %v2479_v47, 9  ;;  %v9824_v17 = vld [vmem:[#allocation4 + $0x4d0] sm:$0xf0]  ;;  %v2747_v47 = vld [vmem:[#allocation3 + $0x178] sm:$0xff] }
 0x3c1   : > { %v2611_v60 = vsel %vm13040_vm4, %v2609_v32, %v2610_v62  ;;  %v11162_v32 = vld [vmem:[#allocation4 + $0x4cc] sm:$0xf0]  ;;  %v9827_v45 = vor.u32 %v11153_v13, %v9824_v17  ;;  %2777 = vst [vmem:[#allocation4 + $0x7b0] sm:$0xff] %v2745_v52  ;;  %v2831_v17 = vshrl.u32 %v2782_v49, 16  ;;  %v2786_v49 = vld [vmem:[#allocation3 + $0xe8] sm:$0xff] }
 0x3c2   : > { %2705 = vst [vmem:[#allocation4 + $0x568] sm:$0xff] %v2611_v60  ;;  %v2629_v5 = vsel %vm13040_vm4, %v9200_v9, %v2628_v34  ;;  %v9823_v62 = vor.u32 %v11162_v32, %v9822_v51  ;;  %v2642_v60 = vrot.slane %v2745_v52, 5  ;;  %v2490_v9 = vld [vmem:[#allocation3 + $0x58] sm:$0x11]  ;;  %v2749_v32 = vld [vmem:[#allocation3 + $0x128] sm:$0xff] }
 0x3c3   : > { %2710 = vst [vmem:[#allocation4 + $0x6d0] sm:$0xff] %v2629_v5  ;;  %v2652_v13 = vrot.slane %v2490_v9, 5  ;;  %v11180_v52 = vld [vmem:[#allocation4 + $0x55c] sm:$0xf0] }
 0x3c4   : > { %v2644_v61 = vrot.slane %v2642_v60, 4  ;;  %2778 = vst [vmem:[#allocation4 + $0x7f8] sm:$0xff] %v2746_v11 }
 0x3c5   : > { %2779 = vst [vmem:[#allocation4 + $0x840] sm:$0xff] %v2747_v47 }
 0x3c6   : > { %2780 = vst [vmem:[#allocation4 + $0x888] sm:$0xff] %v2748_v29 }
 0x3c7   : > { %2781 = vst [vmem:[#allocation4 + $0x8d0] sm:$0xff] %v2749_v32  ;;  %v11198_v32 = vld [vmem:[#allocation4 + $0x5ec] sm:$0xf0] }
 0x3c8   : > { %7483 = vmatmul.bf16.gmra.mxu0 %v9679_v4  ;;  %7572 = vmatmul.bf16.gmra.mxu1 %v9683_v18  ;;  %v2615_v4 = vsel %vm13040_vm4, %v9198_v54, %v2614_v21  ;;  %v2618_v18 = vsel %vm13040_vm4, %v2616_v20, %v2617_v27  ;;  %v2482_v21 = vld [vmem:[#allocation3 + $0x38] sm:$0xee]  ;;  %v11179_v27 = vld [vmem:[#allocation4 + $0x554] sm:$0xf0] }
 0x3c9   : > { %2706 = vst [vmem:[#allocation4 + $0x5b0] sm:$0xff] %v2615_v4  ;;  %v9201_v16 = vrot.slane %v2482_v21, 9 }
 0x3ca   : > { %2707 = vst [vmem:[#allocation4 + $0x5f8] sm:$0xff] %v2618_v18  ;;  %v9202_v18 = vrot.slane %v2485_v8, 9 }
 0x3cc   : > { %v2643_v24 = vsel %vm13040_vm4, %v9202_v18, %v2642_v60  ;;  %v2784_v60 = vld [vmem:[#allocation3 + $0x150] sm:$0x11] }
 0x3cd   : > { %2714 = vst [vmem:[#allocation4 + $0x7f0] sm:$0xff] %v2643_v24  ;;  %v3279_v18 = vld [vmem:[#allocation3 + $0x70] sm:$0xff] }
 0x3ce   : > { %v3280_v24 = vld [vmem:[#allocation3 + $0x150] sm:$0x11] }
 0x3cf   : > { %7310 = vmatmul.bf16.gmra.mxu2 %v9743_v1  ;;  %7399 = vmatmul.bf16.gmra.mxu3 %v9747_v31  ;;  %v2743_v1 = vld [vmem:[#allocation3 + $0x120] sm:$0xff]  ;;  %v3379_v29 = vrot.slane %v3280_v24, 5 }
 0x3d0   : > { %v11330_v31 = vld [vmem:[#allocation5 + $0x110] sm:$0xff]  ;;  %2775 = vst [vmem:[#allocation4 + $0x720] sm:$0xff] %v2743_v1  ;;  %v2635_v58 = vrot.slane %v2743_v1, 5  ;;  %v9203_v1 = vrot.slane %v2488_v53, 9 }
 0x3d1   : > { %7628 = vmatpush.bf16.msra.mxu2 %v11330_v31  ;;  %v2649_v31 = vrot.slane %v2747_v47, 5 }
 0x3d2   : > { %v2637_v22 = vrot.slane %v2635_v58, 4  ;;  %v2636_v4 = vsel %vm13040_vm4, %v9201_v16, %v2635_v58 }
 0x3d3   : > { %2712 = vst [vmem:[#allocation4 + $0x760] sm:$0xff] %v2636_v4  ;;  %v2651_v51 = vrot.slane %v2649_v31, 4 }
 0x3d4   : > { %v2639_v44 = vsel %vm13040_vm4, %v2637_v22, %v2638_v0  ;;  %v11197_v0 = vld [vmem:[#allocation4 + $0x5e4] sm:$0xf0] }
 0x3d5   : > { %2713 = vst [vmem:[#allocation4 + $0x7a8] sm:$0xff] %v2639_v44 }
 0x3d8   : > { %7488 = vmatmul.bf16.gmra.mxu0 %v9751_v57  ;;  %7577 = vmatmul.bf16.gmra.mxu1 %v9755_v55  ;;  %v9886_v57 = vld [vmem:[#allocation4 + $0x510] sm:$0xf]  ;;  %v11170_v55 = vld [vmem:[#allocation4 + $0x514] sm:$0xf] }
 0x3d9   : > { %v9887_v15 = vor.u32 %v11179_v27, %v9886_v57  ;;  %v9891_v14 = vor.u32 %v11170_v55, %v9888_v28  ;;  %v2836_v57 = vrot.slane %v2834_v46, 5  ;;  %v2850_v27 = vshll.u32 %v2784_v60, 16 }
 0x3da   : > { %v2868_v46 = vshrl.u32 %v2786_v49, 16 }
 0x3df   : > { %7315 = vmatmul.bf16.gmra.mxu2 %v9815_v12  ;;  %7404 = vmatmul.bf16.gmra.mxu3 %v9819_v50  ;;  %v2645_v12 = vrot.slane %v2487_v38, 5  ;;  %v3278_v38 = vld [vmem:[#allocation3 + $0x48] sm:$0xee] }
 0x3e1   : > { %v2646_v3 = vsel %vm13040_vm4, %v2644_v61, %v2645_v12  ;;  %v9960_v12 = vld [vmem:[#allocation4 + $0x5e8] sm:$0xf0] }
 0x3e2   : > { %v7276_v26 = vpop.f32.mrf.mxu2  ;;  %v7365_v30 = vpop.f32.mrf.mxu3  ;;  %2715 = vst [vmem:[#allocation4 + $0x838] sm:$0xff] %v2646_v3  ;;  %v3376_v3 = vrot.slane %v3279_v18, 5 }
 0x3e3   : > { %v7277_v40 = vadd.f32 %v13089_v2, %v7276_v26  ;;  %v9894_v26 = vld [vmem:[#allocation4 + $0x518] sm:$0xf] }
 0x3e4   : > { %v9895_v55 = vor.u32 %v11180_v52, %v9894_v26  ;;  %v2787_v26 = vld [vmem:[#allocation3 + $0xd0] sm:$0x11] }
 0x3e5   : > { %v7366_v41 = vadd.f32 %v7365_v30, %v7277_v40  ;;  %v7454_v6 = vpop.f32.mrf.mxu0  ;;  %v7543_v33 = vpop.f32.mrf.mxu1  ;;  %v2650_v30 = vsel %vm13040_vm4, %v9203_v1, %v2649_v31  ;;  %v11171_v40 = vld [vmem:[#allocation4 + $0x51c] sm:$0xf]  ;;  %v13126_v31 = vld [vmem:[#allocation4 + $0x5a8] sm:$0xf] }
 0x3e6   : > { %2716 = vst [vmem:[#allocation4 + $0x880] sm:$0xff] %v2650_v30 }
 0x3e7   : > { %v7455_v25 = vadd.f32 %v7454_v6, %v7366_v41  ;;  %v9896_v41 = vld [vmem:[#allocation4 + $0x560] sm:$0xf0]  ;;  %v2653_v6 = vsel %vm13040_vm4, %v2651_v51, %v2652_v13  ;;  %v3378_v51 = vrot.slane %v3376_v3, 4 }
 0x3e8   : > { %7493 = vmatmul.bf16.gmra.mxu0 %v9823_v62  ;;  %7582 = vmatmul.bf16.gmra.mxu1 %v9827_v45  ;;  %2717 = vst [vmem:[#allocation4 + $0x8c8] sm:$0xff] %v2653_v6  ;;  %v2833_v45 = vrot.slane %v2831_v17, 4  ;;  %v9899_v48 = vor.u32 %v11171_v40, %v9896_v41  ;;  %v2864_v17 = vshll.u32 %v2786_v49, 16 }
 0x3e9   : > { %v13100_v20 = vadd.f32 %v7543_v33, %v7455_v25  ;;  %v11505_v33 = vld [vmem:[#allocation3 + $0x70] sm:$0xff]  ;;  %v3380_v52 = vsel %vm13040_vm4, %v3378_v51, %v3379_v29 }
 0x3ea   : > { %v7278_v42 = vpop.f32.mrf.mxu2  ;;  %v7367_v54 = vpop.f32.mrf.mxu3  ;;  %v2840_v62 = vshll.u32 %v11505_v33, 16  ;;  %v2837_v8 = vor.u32 %v2836_v57, %v2833_v45  ;;  %v3283_v33 = vld [vmem:[#allocation3 + $0xd0] sm:$0x11]  ;;  %v13132_v45 = vld [vmem:[#allocation3 + $0x80] sm:$0xff]  ;;  %3519 = vst [vmem:[#allocation4 + $0x70] sm:$0xff] %v3380_v52  ;;  %v2866_v60 = vrot.slane %v2864_v17, 5 }
 0x3eb   : > { %v7279_v35 = vadd.f32 %v13089_v2, %v7278_v42  ;;  %v9958_v42 = vld [vmem:[#allocation4 + $0x5a0] sm:$0xf]  ;;  %v2870_v57 = vrot.slane %v2868_v46, 4  ;;  %v2888_v18 = vshll.u32 %v13132_v45, 16  ;;  %v2892_v51 = vshrl.u32 %v13132_v45, 16 }
 0x3ec   : > { %v2842_v22 = vrot.slane %v2840_v62, 5  ;;  %v2838_v4 = vrot.slane %v2837_v8, 4  ;;  %v11189_v8 = vld [vmem:[#allocation4 + $0x5ac] sm:$0xf] }
 0x3ed   : > { %v7368_v50 = vadd.f32 %v7367_v54, %v7279_v35  ;;  %v7456_v59 = vpop.f32.mrf.mxu0  ;;  %v7545_v34 = vpop.f32.mrf.mxu1  ;;  %v11188_v35 = vld [vmem:[#allocation4 + $0x5a4] sm:$0xf]  ;;  %v2894_v52 = vrot.slane %v2892_v51, 4 }
 0x3ee   : > { %v2847_v54 = vor.u32 %v2842_v22, %v12922_v36  ;;  %v2785_v36 = vld [vmem:[#allocation3 + $0xf8] sm:$0xff]  ;;  %v9963_v1 = vor.u32 %v11188_v35, %v9960_v12  ;;  %v2871_v35 = vor.u32 %v2870_v57, %v2866_v60  ;;  %v10040_v51 = vld [vmem:[#allocation4 + $0x680] sm:$0xf0] }
 0x3ef   : > { %v7457_v7 = vadd.f32 %v7456_v59, %v7368_v50  ;;  %7320 = vmatmul.bf16.gmra.mxu2 %v9887_v15  ;;  %7409 = vmatmul.bf16.gmra.mxu3 %v9891_v14  ;;  %v2852_v59 = vrot.slane %v2850_v27, 5  ;;  %v2843_v14 = vsel %vm12934_vm5, %v2838_v4, %v2842_v22  ;;  %v2855_v13 = vshrl.u32 %v2785_v36, 16 }
 0x3f0   : > { %v2848_v50 = vrot.slane %v2847_v54, 4  ;;  %3246 = vst [vmem:[#allocation4 + $0x20] sm:$0xff] %v2843_v14  ;;  %v3383_v54 = vrot.slane %v2786_v49, 5 }
 0x3f1   : > { %v13111_v39 = vadd.f32 %v7545_v34, %v7457_v7  ;;  %v9204_v34 = vrot.slane %v3278_v38, 9  ;;  %v9959_v7 = vor.u32 %v11197_v0, %v9958_v42  ;;  %v2857_v41 = vrot.slane %v2855_v13, 4  ;;  %v9968_v38 = vld [vmem:[#allocation4 + $0x5f0] sm:$0xf0]  ;;  %v3284_v13 = vld [vmem:[#allocation3 + $0x130] sm:$0xee] }
 0x3f2   : > { %v7281_v5 = vpop.f32.mrf.mxu2  ;;  %v7370_v56 = vpop.f32.mrf.mxu3  ;;  %v2853_v11 = vsel %vm12934_vm5, %v2848_v50, %v2852_v59  ;;  %v3385_v59 = vrot.slane %v3383_v54, 4 }
 0x3f3   : > { %v7282_v58 = vadd.f32 %v13089_v2, %v7281_v5  ;;  %3247 = vst [vmem:[#allocation4 + $0x68] sm:$0xff] %v2853_v11  ;;  %v3377_v30 = vsel %vm13040_vm4, %v9204_v34, %v3376_v3  ;;  %v2858_v5 = vshll.u32 %v2785_v36, 16  ;;  %v3386_v34 = vrot.slane %v3283_v33, 5 }
 0x3f4   : > { %3518 = vst [vmem:[#allocation4 + $0x28] sm:$0xff] %v3377_v30  ;;  %v9971_v36 = vor.u32 %v11189_v8, %v9968_v38  ;;  %v2872_v11 = vrot.slane %v2871_v35, 4  ;;  %v2890_v30 = vrot.slane %v2888_v18, 5 }
 0x3f5   : > { %v7371_v10 = vadd.f32 %v7370_v56, %v7282_v58  ;;  %v7459_v25 = vpop.f32.mrf.mxu0  ;;  %v7548_v21 = vpop.f32.mrf.mxu1  ;;  %v3281_v56 = vld [vmem:[#allocation3 + $0xf8] sm:$0xee]  ;;  %v2788_v58 = vld [vmem:[#allocation3 + $0x130] sm:$0xff]  ;;  %v2860_v6 = vrot.slane %v2858_v5, 5 }
 0x3f6   : > { %v9205_v62 = vrot.slane %v3281_v56, 9  ;;  %v2879_v27 = vshrl.u32 %v2788_v58, 16  ;;  %v2882_v4 = vshll.u32 %v2788_v58, 16 }
 0x3f7   : > { %v7460_v16 = vadd.f32 %v7459_v25, %v7371_v10  ;;  %v11329_v25 = vld [vmem:[#allocation5 + $0x108] sm:$0xff]  ;;  %v2861_v42 = vor.u32 %v2860_v6, %v2857_v41 }
 0x3f8   : > { %7498 = vmatmul.bf16.gmra.mxu0 %v9895_v55  ;;  %7587 = vmatmul.bf16.gmra.mxu1 %v9899_v48  ;;  %v2874_v55 = vshll.u32 %v2787_v26, 16  ;;  %v3384_v50 = vsel %vm13040_vm4, %v9205_v62, %v3383_v54  ;;  %v2884_v29 = vrot.slane %v2882_v4, 5 }
 0x3f9   : > { %v13119_v28 = vadd.f32 %v7548_v21, %v7460_v16  ;;  %v11337_v21 = vld [vmem:[#allocation5 + $0x148] sm:$0xff]  ;;  %v9967_v16 = vor.u32 %v11198_v32, %v13126_v31  ;;  %7629 = vmatpush.bf16.msra.mxu2 %v11329_v25  ;;  %v2862_v12 = vrot.slane %v2861_v42, 4  ;;  %3520 = vst [vmem:[#allocation4 + $0xb8] sm:$0xff] %v3384_v50  ;;  %v2881_v31 = vrot.slane %v2879_v27, 4  ;;  %v2791_v32 = vld [vmem:[#allocation3 + $0x148] sm:$0xff] }
 0x3fa   : > { %v7283_v61 = vpop.f32.mrf.mxu2  ;;  %v7372_v44 = vpop.f32.mrf.mxu3  ;;  %7718 = vmatpush.bf16.msra.mxu3 %v11337_v21  ;;  %v2876_v3 = vrot.slane %v2874_v55, 5  ;;  %v9206_v25 = vrot.slane %v3284_v13, 9  ;;  %v3390_v21 = vrot.slane %v13132_v45, 5  ;;  %v2895_v55 = vor.u32 %v2894_v52, %v2890_v30 }
 0x3fb   : > { %v7284_v15 = vadd.f32 %v13089_v2, %v7283_v61  ;;  %v13139_v61 = vld [vmem:[#allocation4 + $0x630] sm:$0xf]  ;;  %v2885_v5 = vor.u32 %v2884_v29, %v2881_v31  ;;  %v2906_v42 = vshll.u32 %v2791_v32, 16 }
 0x3fc   : > { %v2877_v26 = vsel %vm12934_vm5, %v2872_v11, %v2876_v3  ;;  %v3391_v8 = vsel %vm13040_vm4, %v9206_v25, %v3390_v21  ;;  %v3392_v38 = vrot.slane %v3390_v21, 4  ;;  %v2896_v35 = vrot.slane %v2895_v55, 4  ;;  %v10038_v3 = vld [vmem:[#allocation4 + $0x638] sm:$0xf]  ;;  %v11233_v21 = vld [vmem:[#allocation4 + $0x704] sm:$0xf0] }
 0x3fd   : > { %v7373_v47 = vadd.f32 %v7372_v44, %v7284_v15  ;;  %v7461_v53 = vpop.f32.mrf.mxu0  ;;  %v7550_v9 = vpop.f32.mrf.mxu1  ;;  %v13141_v44 = vld [vmem:[#allocation4 + $0x634] sm:$0xf]  ;;  %3249 = vst [vmem:[#allocation4 + $0xf8] sm:$0xff] %v2877_v26  ;;  %v2886_v33 = vrot.slane %v2885_v5, 4 }
 0x3fe   : > { %3522 = vst [vmem:[#allocation4 + $0x148] sm:$0xff] %v3391_v8  ;;  %v3290_v8 = vld [vmem:[#allocation3 + $0x138] sm:$0xee] }
 0x3ff   : > { %v7462_v40 = vadd.f32 %v7461_v53, %v7373_v47  ;;  %7325 = vmatmul.bf16.gmra.mxu2 %v9959_v7  ;;  %7414 = vmatmul.bf16.gmra.mxu3 %v9963_v1  ;;  %v2790_v47 = vld [vmem:[#allocation3 + $0x108] sm:$0x11]  ;;  %v2867_v7 = vsel %vm12934_vm5, %v2862_v12, %v2866_v60  ;;  %v3387_v1 = vsel %vm13040_vm4, %v3385_v59, %v3386_v34  ;;  %v2792_v60 = vld [vmem:[#allocation3 + $0x18] sm:$0xff]  ;;  %v3287_v59 = vld [vmem:[#allocation3 + $0x148] sm:$0xee] }
 0x400   : > { %v11215_v53 = vld [vmem:[#allocation4 + $0x674] sm:$0xf0]  ;;  %3248 = vst [vmem:[#allocation4 + $0xb0] sm:$0xff] %v2867_v7  ;;  %v2898_v56 = vshll.u32 %v2790_v47, 16  ;;  %v2912_v4 = vshll.u32 %v2792_v60, 16  ;;  %v9207_v29 = vrot.slane %v3287_v59, 9 }
 0x401   : > { %v13134_v10 = vadd.f32 %v7550_v9, %v7462_v40  ;;  %v10032_v9 = vld [vmem:[#allocation4 + $0x678] sm:$0xf0]  ;;  %v10031_v46 = vor.u32 %v11215_v53, %v13139_v61  ;;  %3521 = vst [vmem:[#allocation4 + $0x100] sm:$0xff] %v3387_v1  ;;  %v2793_v61 = vld [vmem:[#allocation3 + $0x180] sm:$0x11] }
 0x402   : > { %v7286_v48 = vpop.f32.mrf.mxu2  ;;  %v7375_v22 = vpop.f32.mrf.mxu3  ;;  %v3286_v40 = vld [vmem:[#allocation3 + $0x108] sm:$0x11]  ;;  %v10035_v58 = vor.u32 %v13141_v44, %v10032_v9  ;;  %v2900_v62 = vrot.slane %v2898_v56, 5  ;;  %v2908_v44 = vrot.slane %v2906_v42, 5  ;;  %v2922_v47 = vshll.u32 %v2793_v61, 16 }
 0x403   : > { %v7287_v0 = vadd.f32 %v13089_v2, %v7286_v48  ;;  %v3393_v48 = vrot.slane %v3286_v40, 5  ;;  %v11216_v7 = vld [vmem:[#allocation4 + $0x67c] sm:$0xf0] }
 0x404   : > { %v2901_v50 = vsel %vm12934_vm5, %v2896_v35, %v2900_v62  ;;  %v2795_v62 = vld [vmem:[#allocation3 + $0x100] sm:$0xff] }
 0x405   : > { %v7376_v15 = vadd.f32 %v7375_v22, %v7287_v0  ;;  %v7464_v14 = vpop.f32.mrf.mxu0  ;;  %v7553_v24 = vpop.f32.mrf.mxu1  ;;  %v2903_v22 = vshrl.u32 %v2791_v32, 16  ;;  %v3394_v18 = vsel %vm13040_vm4, %v3392_v38, %v3393_v48  ;;  %3251 = vst [vmem:[#allocation4 + $0x188] sm:$0xff] %v2901_v50  ;;  %v11224_v38 = vld [vmem:[#allocation4 + $0x6c4] sm:$0xf]  ;;  %v10104_v50 = vld [vmem:[#allocation4 + $0x708] sm:$0xf0] }
 0x406   : > { %3523 = vst [vmem:[#allocation4 + $0x190] sm:$0xff] %v3394_v18  ;;  %v2797_v18 = vld [vmem:[#allocation3 + $0x160] sm:$0xff] }
 0x407   : > { %v7465_v49 = vadd.f32 %v7464_v14, %v7376_v15  ;;  %v2905_v45 = vrot.slane %v2903_v22, 4  ;;  %v2914_v15 = vrot.slane %v2912_v4, 5  ;;  %v2916_v14 = vshrl.u32 %v2792_v60, 16  ;;  %v3292_v4 = vld [vmem:[#allocation3 + $0x1a8] sm:$0x11] }
 0x408   : > { %7503 = vmatmul.bf16.gmra.mxu0 %v9967_v16  ;;  %7592 = vmatmul.bf16.gmra.mxu1 %v9971_v36  ;;  %v2891_v16 = vsel %vm12934_vm5, %v2886_v33, %v2890_v30  ;;  %v2794_v36 = vld [vmem:[#allocation3 + $0x138] sm:$0xff]  ;;  %v11207_v30 = vld [vmem:[#allocation4 + $0x63c] sm:$0xf]  ;;  %v10102_v33 = vld [vmem:[#allocation4 + $0x6c0] sm:$0xf] }
 0x409   : > { %v13152_v17 = vadd.f32 %v7553_v24, %v7465_v49  ;;  %3250 = vst [vmem:[#allocation4 + $0x140] sm:$0xff] %v2891_v16  ;;  %v2909_v34 = vor.u32 %v2908_v44, %v2905_v45  ;;  %v3289_v24 = vld [vmem:[#allocation3 + $0x180] sm:$0x11]  ;;  %v2918_v31 = vrot.slane %v2916_v14, 4  ;;  %v3397_v49 = vrot.slane %v2792_v60, 5 }
 0x40a   : > { %v7288_v41 = vpop.f32.mrf.mxu2  ;;  %v7377_v6 = vpop.f32.mrf.mxu3  ;;  %v3400_v13 = vrot.slane %v3289_v24, 5  ;;  %v2927_v5 = vshrl.u32 %v2794_v36, 16  ;;  %v10043_v25 = vor.u32 %v11207_v30, %v10040_v51  ;;  %v2930_v16 = vshll.u32 %v2794_v36, 16 }
 0x40b   : > { %v7289_v57 = vadd.f32 %v13089_v2, %v7288_v41  ;;  %v2910_v1 = vrot.slane %v2909_v34, 4  ;;  %v2919_v40 = vor.u32 %v2918_v31, %v2914_v15  ;;  %v3398_v32 = vsel %vm13040_vm4, %v9207_v29, %v3397_v49 }
 0x40c   : > { %3524 = vst [vmem:[#allocation4 + $0x1d8] sm:$0xff] %v3398_v32  ;;  %v2929_v22 = vrot.slane %v2927_v5, 4  ;;  %v2932_v35 = vrot.slane %v2930_v16, 5  ;;  %v2940_v45 = vshrl.u32 %v2795_v62, 16  ;;  %v9208_v34 = vrot.slane %v3290_v8, 9 }
 0x40d   : > { %v7378_v54 = vadd.f32 %v7377_v6, %v7289_v57  ;;  %v7466_v27 = vpop.f32.mrf.mxu0  ;;  %v7555_v0 = vpop.f32.mrf.mxu1  ;;  %v2915_v56 = vsel %vm12934_vm5, %v2910_v1, %v2914_v15  ;;  %v10039_v6 = vor.u32 %v11216_v7, %v10038_v3  ;;  %v2920_v60 = vrot.slane %v2919_v40, 4 }
 0x40e   : > { %3252 = vst [vmem:[#allocation4 + $0x1d0] sm:$0xff] %v2915_v56  ;;  %v2924_v57 = vrot.slane %v2922_v47, 5  ;;  %v3404_v15 = vrot.slane %v2795_v62, 5  ;;  %v2933_v24 = vor.u32 %v2932_v35, %v2929_v22  ;;  %v2942_v36 = vrot.slane %v2940_v45, 4  ;;  %v13180_v47 = vld [vmem:[#allocation3 + $0x88] sm:$0xff] }
 0x40f   : > { %v7467_v12 = vadd.f32 %v7466_v27, %v7378_v54  ;;  %7330 = vmatmul.bf16.gmra.mxu2 %v10031_v46  ;;  %7419 = vmatmul.bf16.gmra.mxu3 %v10035_v58  ;;  %v3399_v46 = vrot.slane %v3397_v49, 4  ;;  %v2796_v54 = vld [vmem:[#allocation3 + $0x1a8] sm:$0x11]  ;;  %v2936_v27 = vshll.u32 %v2795_v62, 16  ;;  %3614 = vst [vmem:[#allocation4 + $0x8e8] sm:$0xff] %v13180_v47  ;;  %v3407_v7 = vrot.slane %v3292_v4, 5 }
 0x410   : > { %v2925_v42 = vsel %vm12934_vm5, %v2920_v60, %v2924_v57  ;;  %v2946_v3 = vshll.u32 %v2796_v54, 16  ;;  %v2951_v1 = vshrl.u32 %v2797_v18, 16  ;;  %v2934_v30 = vrot.slane %v2933_v24, 4  ;;  %v11328_v57 = vld [vmem:[#allocation5 + $0x100] sm:$0xff]  ;;  %v2799_v22 = vld [vmem:[#allocation3] sm:$0x11] }
 0x411   : > { %v13166_v11 = vadd.f32 %v7555_v0, %v7467_v12  ;;  %v3401_v55 = vsel %vm13040_vm4, %v3399_v46, %v3400_v13  ;;  %3253 = vst [vmem:[#allocation4 + $0x218] sm:$0xff] %v2925_v42  ;;  %v10103_v12 = vor.u32 %v11233_v21, %v10102_v33  ;;  %v2938_v59 = vrot.slane %v2936_v27, 5  ;;  %v10110_v13 = vld [vmem:[#allocation4 + $0x6c8] sm:$0xf]  ;;  %v11234_v46 = vld [vmem:[#allocation4 + $0x70c] sm:$0xf0]  ;;  %7630 = vmatpush.bf16.msra.mxu2 %v11328_v57 }
 0x412   : > { %v7291_v53 = vpop.f32.mrf.mxu2  ;;  %v7380_v9 = vpop.f32.mrf.mxu3  ;;  %3525 = vst [vmem:[#allocation4 + $0x220] sm:$0xff] %v3401_v55  ;;  %v2953_v56 = vrot.slane %v2951_v1, 4  ;;  %v2954_v40 = vshll.u32 %v2797_v18, 16  ;;  %v10112_v33 = vld [vmem:[#allocation4 + $0x710] sm:$0xf0]  ;;  %v11336_v55 = vld [vmem:[#allocation5 + $0x140] sm:$0xff]  ;;  %v10111_v45 = vor.u32 %v11234_v46, %v10110_v13 }
 0x413   : > { %v7292_v26 = vadd.f32 %v13089_v2, %v7291_v53  ;;  %v3405_v53 = vsel %vm13040_vm4, %v9208_v34, %v3404_v15  ;;  %v2943_v51 = vor.u32 %v2942_v36, %v2938_v59  ;;  %v2939_v62 = vsel %vm12934_vm5, %v2934_v30, %v2938_v59  ;;  %v3293_v21 = vld [vmem:[#allocation3 + $0x160] sm:$0xee]  ;;  %v3295_v27 = vld [vmem:[#allocation3] sm:$0x11]  ;;  %7719 = vmatpush.bf16.msra.mxu3 %v11336_v55  ;;  %v2801_v34 = vld [vmem:[#allocation3 + $0x8] sm:$0xff] }
 0x414   : > { %3526 = vst [vmem:[#allocation4 + $0x268] sm:$0xff] %v3405_v53  ;;  %v9209_v4 = vrot.slane %v3293_v21, 9  ;;  %v2970_v59 = vshll.u32 %v2799_v22, 16  ;;  %v3414_v53 = vrot.slane %v3295_v27, 5  ;;  %v11242_v13 = vld [vmem:[#allocation4 + $0x754] sm:$0xf] }
 0x415   : > { %v7381_v58 = vadd.f32 %v7380_v9, %v7292_v26  ;;  %v7469_v52 = vpop.f32.mrf.mxu0  ;;  %v7558_v41 = vpop.f32.mrf.mxu1  ;;  %v3406_v9 = vrot.slane %v3404_v15, 4  ;;  %v10107_v26 = vor.u32 %v11224_v38, %v10104_v50  ;;  %3254 = vst [vmem:[#allocation4 + $0x260] sm:$0xff] %v2939_v62  ;;  %v3296_v46 = vld [vmem:[#allocation3 + $0x68] sm:$0xee]  ;;  %v2988_v55 = vshrl.u32 %v2801_v34, 16 }
 0x416   : > { %v9210_v27 = vrot.slane %v3296_v46, 9 }
 0x417   : > { %v7470_v48 = vadd.f32 %v7469_v52, %v7381_v58  ;;  %v3408_v5 = vsel %vm13040_vm4, %v3406_v9, %v3407_v7  ;;  %v11225_v58 = vld [vmem:[#allocation4 + $0x6cc] sm:$0xf]  ;;  %v2944_v52 = vrot.slane %v2943_v51, 4  ;;  %v2984_v51 = vshll.u32 %v2801_v34, 16 }
 0x418   : > { %7508 = vmatmul.bf16.gmra.mxu0 %v10039_v6  ;;  %7597 = vmatmul.bf16.gmra.mxu1 %v10043_v25  ;;  %v2798_v6 = vld [vmem:[#allocation3 + $0x198] sm:$0xff]  ;;  %3527 = vst [vmem:[#allocation4 + $0x2b0] sm:$0xff] %v3408_v5  ;;  %v2956_v25 = vrot.slane %v2954_v40, 5  ;;  %v10176_v5 = vld [vmem:[#allocation4 + $0x798] sm:$0xf0] }
 0x419   : > { %v13177_v0 = vadd.f32 %v7558_v41, %v7470_v48  ;;  %v2948_v41 = vrot.slane %v2946_v3, 5  ;;  %v2960_v42 = vshll.u32 %v2798_v6, 16  ;;  %v2964_v54 = vshrl.u32 %v2798_v6, 16  ;;  %v2802_v40 = vld [vmem:[#allocation3 + $0xc8] sm:$0x11] }
 0x41a   : > { %v7293_v61 = vpop.f32.mrf.mxu2  ;;  %v7382_v44 = vpop.f32.mrf.mxu3  ;;  %v2957_v38 = vor.u32 %v2956_v25, %v2953_v56  ;;  %v3411_v18 = vrot.slane %v2798_v6, 5  ;;  %v2986_v57 = vrot.slane %v2984_v51, 5  ;;  %v11252_v51 = vld [vmem:[#allocation4 + $0x79c] sm:$0xf0] }
 0x41b   : > { %v7294_v14 = vadd.f32 %v13089_v2, %v7293_v61  ;;  %v2949_v48 = vsel %vm12934_vm5, %v2944_v52, %v2948_v41  ;;  %v2800_v61 = vld [vmem:[#allocation3 + $0x68] sm:$0xff]  ;;  %v2962_v50 = vrot.slane %v2960_v42, 5  ;;  %v2966_v36 = vrot.slane %v2964_v54, 4 }
 0x41c   : > { %3255 = vst [vmem:[#allocation4 + $0x2a8] sm:$0xff] %v2949_v48  ;;  %v3412_v3 = vsel %vm13040_vm4, %v9209_v4, %v3411_v18  ;;  %v3413_v7 = vrot.slane %v3411_v18, 4  ;;  %v2975_v1 = vshrl.u32 %v2800_v61, 16  ;;  %v11351_v52 = vld [vmem:[#allocation5 + $0x1b8] sm:$0xff]  ;;  %v2990_v54 = vrot.slane %v2988_v55, 4  ;;  %v11357_v55 = vld [vmem:[#allocation5 + $0x1e8] sm:$0xff] }
 0x41d   : > { %v7383_v31 = vadd.f32 %v7382_v44, %v7294_v14  ;;  %v7471_v29 = vpop.f32.mrf.mxu0  ;;  %v7560_v49 = vpop.f32.mrf.mxu1  ;;  %v10115_v44 = vor.u32 %v11225_v58, %v10112_v33  ;;  %3528 = vst [vmem:[#allocation4 + $0x2f8] sm:$0xff] %v3412_v3  ;;  %v2967_v30 = vor.u32 %v2966_v36, %v2962_v50  ;;  %v11359_v41 = vld [vmem:[#allocation5 + $0x1f8] sm:$0xff]  ;;  %v2972_v33 = vrot.slane %v2970_v59, 5  ;;  %7801 = vmatpush.bf16.msrb.mxu0 %v11351_v52 }
 0x41e   : > { %v3415_v56 = vsel %vm13040_vm4, %v3413_v7, %v3414_v53  ;;  %v3298_v48 = vld [vmem:[#allocation3 + $0xc8] sm:$0x11]  ;;  %7890 = vmatpush.bf16.msrb.mxu1 %v11359_v41 }
 0x41f   : > { %v7472_v32 = vadd.f32 %v7471_v29, %v7383_v31  ;;  %7335 = vmatmul.bf16.gmra.mxu2 %v10103_v12  ;;  %7424 = vmatmul.bf16.gmra.mxu3 %v10107_v26  ;;  %v2958_v12 = vrot.slane %v2957_v38, 4  ;;  %v2978_v31 = vshll.u32 %v2800_v61, 16  ;;  %v11251_v26 = vld [vmem:[#allocation4 + $0x794] sm:$0xf0]  ;;  %v2968_v6 = vrot.slane %v2967_v30, 4  ;;  %3529 = vst [vmem:[#allocation4 + $0x340] sm:$0xff] %v3415_v56 }
 0x420   : > { %v2994_v38 = vshll.u32 %v2802_v40, 16  ;;  %v13205_v4 = vld [vmem:[#allocation3 + $0xa8] sm:$0xff]  ;;  %v3421_v59 = vrot.slane %v3298_v48, 5  ;;  %v11358_v56 = vld [vmem:[#allocation5 + $0x1f0] sm:$0xff] }
 0x421   : > { %v13189_v60 = vadd.f32 %v7560_v49, %v7472_v32  ;;  %v2963_v9 = vsel %vm12934_vm5, %v2958_v12, %v2962_v50  ;;  %v10174_v49 = vld [vmem:[#allocation4 + $0x750] sm:$0xf]  ;;  %v2977_v32 = vrot.slane %v2975_v1, 4  ;;  %v2980_v21 = vrot.slane %v2978_v31, 5  ;;  %v10182_v7 = vld [vmem:[#allocation4 + $0x758] sm:$0xf] }
 0x422   : > { %v7296_v16 = vpop.f32.mrf.mxu2  ;;  %v7385_v8 = vpop.f32.mrf.mxu3  ;;  %3256 = vst [vmem:[#allocation4 + $0x2f0] sm:$0xff] %v2963_v9  ;;  %v10179_v12 = vor.u32 %v11242_v13, %v10176_v5  ;;  %v2996_v50 = vrot.slane %v2994_v38, 5  ;;  %v3008_v9 = vshll.u32 %v13205_v4, 16  ;;  %v11243_v13 = vld [vmem:[#allocation4 + $0x75c] sm:$0xf]  ;;  %v11350_v5 = vld [vmem:[#allocation5 + $0x1b0] sm:$0xff]  ;;  %7891 = vmatpush.bf16.msrb.mxu1 %v11358_v56 }
 0x423   : > { %v7297_v35 = vadd.f32 %v13089_v2, %v7296_v16  ;;  %v10175_v16 = vor.u32 %v11251_v26, %v10174_v49  ;;  %v2981_v42 = vor.u32 %v2980_v21, %v2977_v32  ;;  %v2805_v49 = vld [vmem:[#allocation3 + $0x40] sm:$0x11]  ;;  %v3012_v26 = vshrl.u32 %v13205_v4, 16  ;;  %v10184_v21 = vld [vmem:[#allocation4 + $0x7a0] sm:$0xf0]  ;;  %7802 = vmatpush.bf16.msrb.mxu0 %v11350_v5 }
 0x424   : > { %v3018_v48 = vshll.u32 %v2805_v49, 16  ;;  %v13234_v56 = vld [vmem:[%s14115_s6] ss:$0 sm:$0xff] }
 0x425   : > { %v7386_v15 = vadd.f32 %v7385_v8, %v7297_v35  ;;  %v7474_v14 = vpop.f32.mrf.mxu0  ;;  %v7563_v24 = vpop.f32.mrf.mxu1  ;;  %v2973_v8 = vsel %vm12934_vm5, %v2968_v6, %v2972_v33  ;;  %v3418_v35 = vrot.slane %v2801_v34, 5  ;;  %v3010_v6 = vrot.slane %v3008_v9, 5  ;;  %v11260_v9 = vld [vmem:[#allocation4 + $0x7e4] sm:$0xf] }
 0x426   : > { %3257 = vst [vmem:[#allocation4 + $0x338] sm:$0xff] %v2973_v8  ;;  %v3014_v33 = vrot.slane %v3012_v26, 4  ;;  %v3301_v8 = vld [vmem:[#allocation3 + $0x40] sm:$0x11]  ;;  %7892 = vmatpush.bf16.msrb.mxu1 %v11357_v55 }
 0x427   : > { %v7475_v29 = vadd.f32 %v7474_v14, %v7386_v15  ;;  %v2982_v15 = vrot.slane %v2981_v42, 4  ;;  %v2991_v14 = vor.u32 %v2990_v54, %v2986_v57  ;;  %v3420_v36 = vrot.slane %v3418_v35, 4 }
 0x428   : > { %7513 = vmatmul.bf16.gmra.mxu0 %v10111_v45  ;;  %7602 = vmatmul.bf16.gmra.mxu1 %v10115_v44  ;;  %v2803_v45 = vld [vmem:[#allocation3 + $0x118] sm:$0xff] }
 0x429   : > { %v13200_v58 = vadd.f32 %v7563_v24, %v7475_v29  ;;  %v3419_v24 = vsel %vm13040_vm4, %v9210_v27, %v3418_v35  ;;  %v2999_v34 = vshrl.u32 %v2803_v45, 16  ;;  %v3002_v53 = vshll.u32 %v2803_v45, 16 }
 0x42a   : > { %v7298_v62 = vpop.f32.mrf.mxu2  ;;  %v7387_v25 = vpop.f32.mrf.mxu3  ;;  %3530 = vst [vmem:[#allocation4 + $0x388] sm:$0xff] %v3419_v24  ;;  %v2987_v1 = vsel %vm12934_vm5, %v2982_v15, %v2986_v57  ;;  %v2992_v31 = vrot.slane %v2991_v14, 4  ;;  %v3422_v29 = vsel %vm13040_vm4, %v3420_v36, %v3421_v59  ;;  %v11349_v57 = vld [vmem:[#allocation5 + $0x1a8] sm:$0xff]  ;;  %v10183_v27 = vor.u32 %v11252_v51, %v10182_v7  ;;  %v10246_v36 = vld [vmem:[#allocation4 + $0x7e0] sm:$0xf] }
 0x42b   : > { %v7299_v22 = vadd.f32 %v13089_v2, %v7298_v62  ;;  %3258 = vst [vmem:[#allocation4 + $0x380] sm:$0xff] %v2987_v1  ;;  %v3001_v40 = vrot.slane %v2999_v34, 4  ;;  %v3004_v41 = vrot.slane %v3002_v53, 5  ;;  %v3299_v62 = vld [vmem:[#allocation3 + $0x118] sm:$0xee]  ;;  %v3425_v45 = vrot.slane %v13205_v4, 5  ;;  %7803 = vmatpush.bf16.msrb.mxu0 %v11349_v57 }
 0x42c   : > { %v2997_v52 = vsel %vm12934_vm5, %v2992_v31, %v2996_v50  ;;  %3531 = vst [vmem:[#allocation4 + $0x3d0] sm:$0xff] %v3422_v29  ;;  %v9211_v35 = vrot.slane %v3299_v62, 9  ;;  %v3428_v14 = vrot.slane %v3301_v8, 5  ;;  %v2807_v24 = vld [vmem:[#allocation3 + $0xd8] sm:$0xff]  ;;  %v11348_v7 = vld [vmem:[#allocation5 + $0x1a0] sm:$0xff] }
 0x42d   : > { %v7388_v18 = vadd.f32 %v7387_v25, %v7299_v22  ;;  %v7476_v61 = vpop.f32.mrf.mxu0  ;;  %v7565_v44 = vpop.f32.mrf.mxu1  ;;  %3259 = vst [vmem:[#allocation4 + $0x3c8] sm:$0xff] %v2997_v52  ;;  %v3005_v22 = vor.u32 %v3004_v41, %v3001_v40  ;;  %v3427_v15 = vrot.slane %v3425_v45, 4  ;;  %v11356_v1 = vld [vmem:[#allocation5 + $0x1e0] sm:$0xff]  ;;  %v11269_v51 = vld [vmem:[#allocation4 + $0x824] sm:$0xf0]  ;;  %v3032_v5 = vshll.u32 %v2807_v24, 16 }
 0x42e   : > { %v3426_v59 = vsel %vm13040_vm4, %v9211_v35, %v3425_v45  ;;  %7893 = vmatpush.bf16.msrb.mxu1 %v11356_v1  ;;  %v11355_v52 = vld [vmem:[#allocation5 + $0x1d8] sm:$0xff]  ;;  %v3036_v55 = vshrl.u32 %v2807_v24, 16  ;;  %v3432_v8 = vrot.slane %v2807_v24, 5  ;;  %v13241_v35 = vld [vmem:[#allocation3 + $0xa0] sm:$0xff]  ;;  %v2544_v24 = vrot.slane %v13180_v47, 5 }
 0x42f   : > { %v7477_v3 = vadd.f32 %v7476_v61, %v7388_v18  ;;  %7340 = vmatmul.bf16.gmra.mxu2 %v10175_v16  ;;  %7429 = vmatmul.bf16.gmra.mxu3 %v10179_v12  ;;  %v3015_v16 = vor.u32 %v3014_v33, %v3010_v6  ;;  %v2806_v18 = vld [vmem:[#allocation3 + $0x90] sm:$0xff]  ;;  %v10187_v61 = vor.u32 %v11243_v13, %v10184_v21  ;;  %v3020_v12 = vrot.slane %v3018_v48, 5  ;;  %v10248_v13 = vld [vmem:[#allocation4 + $0x828] sm:$0xf0]  ;;  %v11270_v45 = vld [vmem:[#allocation4 + $0x82c] sm:$0xf0] }
 0x430   : > { %3532 = vst [vmem:[#allocation4 + $0x418] sm:$0xff] %v3426_v59  ;;  %v3023_v34 = vshrl.u32 %v2806_v18, 16  ;;  %v3429_v31 = vsel %vm13040_vm4, %v3427_v15, %v3428_v14  ;;  %v3026_v29 = vshll.u32 %v2806_v18, 16  ;;  %7804 = vmatpush.bf16.msrb.mxu0 %v11348_v7  ;;  %v10247_v21 = vor.u32 %v11269_v51, %v10246_v36  ;;  %v11346_v59 = vld [vmem:[#allocation5 + $0x190] sm:$0xff]  ;;  %v2443_v14 = vld [vmem:[#allocation3 + $0x28] sm:$0xee] }
 0x431   : > { %v13215_v30 = vadd.f32 %v7565_v44, %v7477_v3  ;;  %v3016_v44 = vrot.slane %v3015_v16, 4  ;;  %3533 = vst [vmem:[#allocation4 + $0x460] sm:$0xff] %v3429_v31  ;;  %v10251_v57 = vor.u32 %v11260_v9, %v10248_v13  ;;  %v11354_v15 = vld [vmem:[#allocation5 + $0x1d0] sm:$0xff]  ;;  %v11367_v9 = vld [vmem:[#allocation5 + $0x238] sm:$0xff]  ;;  %v3047_v31 = vshrl.u32 %v13241_v35, 16 }
 0x432   : > { %v7301_v32 = vpop.f32.mrf.mxu2  ;;  %v7390_v46 = vpop.f32.mrf.mxu3  ;;  %v3025_v41 = vrot.slane %v3023_v34, 4  ;;  %7894 = vmatpush.bf16.msrb.mxu1 %v11355_v52  ;;  %v9188_v34 = vrot.slane %v2443_v14, 9  ;;  %v11375_v13 = vld [vmem:[#allocation5 + $0x278] sm:$0xff]  ;;  %7979 = vmatpush.bf16.msrb.mxu2 %v11367_v9 }
 0x433   : > { %v7302_v25 = vadd.f32 %v13089_v2, %v7301_v32  ;;  %v3006_v2 = vrot.slane %v3005_v22, 4  ;;  %v3021_v3 = vsel %vm12934_vm5, %v3016_v44, %v3020_v12  ;;  %v3302_v32 = vld [vmem:[#allocation3 + $0x90] sm:$0xee]  ;;  %v13237_v22 = vrot.slane %v3032_v5, 5  ;;  %8068 = vmatpush.bf16.msrb.mxu3 %v11375_v13 }
 0x434   : > { %3261 = vst [vmem:[#allocation4 + $0x458] sm:$0xff] %v3021_v3  ;;  %v9212_v16 = vrot.slane %v3302_v32, 9  ;;  %v3434_v44 = vrot.slane %v3432_v8, 4  ;;  %v2445_v3 = vld [vmem:[#allocation3 + $0x10] sm:$0x11] }
 0x435   : > { %v7391_v38 = vadd.f32 %v7390_v46, %v7302_v25  ;;  %v7479_v42 = vpop.f32.mrf.mxu0  ;;  %v7568_v54 = vpop.f32.mrf.mxu1  ;;  %v3011_v4 = vsel %vm12934_vm5, %v3006_v2, %v3010_v6  ;;  %v11347_v46 = vld [vmem:[#allocation5 + $0x198] sm:$0xff]  ;;  %v3028_v6 = vrot.slane %v3026_v29, 5  ;;  %v2547_v51 = vrot.slane %v2445_v3, 5 }
 0x436   : > { %3260 = vst [vmem:[#allocation4 + $0x410] sm:$0xff] %v3011_v4  ;;  %7805 = vmatpush.bf16.msrb.mxu0 %v11347_v46  ;;  %v3433_v2 = vsel %vm13040_vm4, %v9212_v16, %v3432_v8  ;;  %7895 = vmatpush.bf16.msrb.mxu1 %v11354_v15  ;;  %v2810_v46 = vld [vmem:[#allocation3 + $0xc0] sm:$0xff]  ;;  %v10320_v8 = vld [vmem:[#allocation4 + $0x8b8] sm:$0xf0]  ;;  %v2812_v15 = vld [vmem:[#allocation3 + $0x110] sm:$0xff] }
 0x437   : > { %v7480_v50 = vadd.f32 %v7479_v42, %v7391_v38  ;;  %v3029_v48 = vor.u32 %v3028_v6, %v3025_v41  ;;  %v13239_v42 = vld [vmem:[#allocation4 + $0x7e8] sm:$0xf]  ;;  %3534 = vst [vmem:[#allocation4 + $0x4a8] sm:$0xff] %v3433_v2  ;;  %v3305_v2 = vld [vmem:[#allocation3 + $0xa0] sm:$0xee]  ;;  %v3071_v13 = vshrl.u32 %v2812_v15, 16 }
 0x438   : > { %7518 = vmatmul.bf16.gmra.mxu0 %v10183_v27  ;;  %7607 = vmatmul.bf16.gmra.mxu1 %v10187_v61  ;;  %v3038_v27 = vrot.slane %v3036_v55, 4  ;;  %v3304_v61 = vld [vmem:[#allocation3 + $0x188] sm:$0x11]  ;;  %v10255_v47 = vor.u32 %v11270_v45, %v13239_v42  ;;  %v11353_v55 = vld [vmem:[#allocation5 + $0x1c8] sm:$0xff]  ;;  %v3050_v45 = vshll.u32 %v13241_v35, 16 }
 0x439   : > { %v13227_v53 = vadd.f32 %v7568_v54, %v7480_v50  ;;  %v2808_v54 = vld [vmem:[#allocation3 + $0x188] sm:$0x11]  ;;  %v3030_v18 = vrot.slane %v3029_v48, 4  ;;  %v11261_v50 = vld [vmem:[#allocation4 + $0x7ec] sm:$0xf]  ;;  %v3435_v5 = vrot.slane %v3304_v61, 5 }
 0x43a   : > { %v7303_v49 = vpop.f32.mrf.mxu2  ;;  %v7392_v26 = vpop.f32.mrf.mxu3  ;;  %v3039_v7 = vor.u32 %v3038_v27, %v13237_v22  ;;  %v3042_v1 = vshll.u32 %v2808_v54, 16  ;;  %7806 = vmatpush.bf16.msrb.mxu0 %v11346_v59  ;;  %v3049_v54 = vrot.slane %v3047_v31, 4  ;;  %v3060_v61 = vshrl.u32 %v2810_v46, 16  ;;  %7896 = vmatpush.bf16.msrb.mxu1 %v11353_v55 }
 0x43b   : > { %v7304_v40 = vadd.f32 %v13234_v56, %v7303_v49  ;;  %v10256_v49 = vld [vmem:[#allocation4 + $0x830] sm:$0xf0]  ;;  %v3035_v32 = vsel %vm12934_vm5, %v3030_v18, %v13237_v22  ;;  %v3436_v48 = vsel %vm13040_vm4, %v3434_v44, %v3435_v5  ;;  %v2811_v22 = vld [vmem:[#allocation3 + $0x50] sm:$0x11]  ;;  %v3056_v18 = vshll.u32 %v2810_v46, 16 }
 0x43c   : > { %v10259_v16 = vor.u32 %v11261_v50, %v10256_v49  ;;  %v3044_v42 = vrot.slane %v3042_v1, 5  ;;  %3262 = vst [vmem:[#allocation4 + $0x4a0] sm:$0xff] %v3035_v32  ;;  %v3066_v44 = vshll.u32 %v2811_v22, 16  ;;  %v3307_v50 = vld [vmem:[#allocation3 + $0x50] sm:$0x11]  ;;  %v3052_v35 = vrot.slane %v3050_v45, 5 }
 0x43d   : > { %v7393_v33 = vadd.f32 %v7392_v26, %v7304_v40  ;;  %v7481_v62 = vpop.f32.mrf.mxu0  ;;  %v7570_v25 = vpop.f32.mrf.mxu1  ;;  %v2546_v26 = vrot.slane %v2544_v24, 4  ;;  %v2545_v40 = vsel %vm13040_vm4, %v9188_v34, %v2544_v24  ;;  %3535 = vst [vmem:[#allocation4 + $0x4f0] sm:$0xff] %v3436_v48  ;;  %v11344_v24 = vld [vmem:[#allocation5 + $0x180] sm:$0xff]  ;;  %v3062_v3 = vrot.slane %v3060_v61, 4  ;;  %v3310_v45 = vld [vmem:[#allocation3 + $0x78] sm:$0x11] }
 0x43e   : > { %2686 = vst [vmem:[#allocation4 + $0x10] sm:$0xff] %v2545_v40  ;;  %v9213_v31 = vrot.slane %v3305_v2, 9  ;;  %v3442_v40 = vrot.slane %v3307_v50, 5  ;;  %v3074_v32 = vshll.u32 %v2812_v15, 16 }
 0x43f   : > { %v7482_v38 = vadd.f32 %v7481_v62, %v7393_v33  ;;  %7345 = vmatmul.bf16.gmra.mxu2 %v10247_v21  ;;  %7434 = vmatmul.bf16.gmra.mxu3 %v10251_v57  ;;  %v13257_v33 = vld [vmem:[#allocation4 + $0x870] sm:$0xf]  ;;  %v13259_v62 = vld [vmem:[#allocation4 + $0x8b4] sm:$0xf0]  ;;  %v2548_v21 = vsel %vm13040_vm4, %v2546_v26, %v2547_v51  ;;  %v11345_v57 = vld [vmem:[#allocation5 + $0x188] sm:$0xff]  ;;  %v3053_v26 = vor.u32 %v3052_v35, %v3049_v54 }
 0x440   : > { %2687 = vst [vmem:[#allocation4 + $0x58] sm:$0xff] %v2548_v21  ;;  %7807 = vmatpush.bf16.msrb.mxu0 %v11345_v57  ;;  %v2813_v21 = vld [vmem:[#allocation3 + $0x30] sm:$0xff]  ;;  %v3073_v57 = vrot.slane %v3071_v13, 4  ;;  %v10326_v54 = vld [vmem:[#allocation4 + $0x878] sm:$0xf] }
 0x441   : > { %v13245_v12 = vadd.f32 %v7570_v25, %v7482_v38  ;;  %v13261_v25 = vld [vmem:[#allocation4 + $0x874] sm:$0xf]  ;;  %v3040_v38 = vrot.slane %v3039_v7, 4  ;;  %v10319_v7 = vor.u32 %v13259_v62, %v13257_v33  ;;  %v3054_v33 = vrot.slane %v3053_v26, 4  ;;  %v10328_v35 = vld [vmem:[#allocation4 + $0x8c0] sm:$0xf0] }
 0x442   : > { %v7306_v36 = vpop.f32.mrf.mxu2  ;;  %v7395_v4 = vpop.f32.mrf.mxu3  ;;  %v10323_v1 = vor.u32 %v13261_v25, %v10320_v8  ;;  %v3068_v25 = vrot.slane %v3066_v44, 5  ;;  %v2814_v8 = vld [vmem:[#allocation3 + $0x78] sm:$0x11]  ;;  %v11279_v44 = vld [vmem:[#allocation4 + $0x87c] sm:$0xf]  ;;  %v3084_v15 = vshrl.u32 %v2813_v21, 16 }
 0x443   : > { %v7307_v29 = vadd.f32 %v13234_v56, %v7306_v36  ;;  %v3045_v59 = vsel %vm12934_vm5, %v3040_v38, %v3044_v42  ;;  %v11352_v36 = vld [vmem:[#allocation5 + $0x1c0] sm:$0xff]  ;;  %v3076_v38 = vrot.slane %v3074_v32, 5 }
 0x444   : > { %3263 = vst [vmem:[#allocation4 + $0x4e8] sm:$0xff] %v3045_v59  ;;  %7808 = vmatpush.bf16.msrb.mxu0 %v11344_v24  ;;  %7897 = vmatpush.bf16.msrb.mxu1 %v11352_v36  ;;  %v11288_v59 = vld [vmem:[#allocation4 + $0x8bc] sm:$0xf0] }
 0x445   : > { %v7396_v52 = vadd.f32 %v7395_v4, %v7307_v29  ;;  %v7484_v41 = vpop.f32.mrf.mxu0  ;;  %v7573_v6 = vpop.f32.mrf.mxu1  ;;  %v3058_v4 = vrot.slane %v3056_v18, 5  ;;  %v3439_v29 = vrot.slane %v2810_v46, 5  ;;  %v2815_v18 = vld [vmem:[#allocation3 + $0x20] sm:$0xff]  ;;  %v3077_v50 = vor.u32 %v3076_v38, %v3073_v57  ;;  %v2817_v38 = vld [vmem:[#allocation3 + $0x168] sm:$0x11] }
 0x446   : > { %v9254_v32 = vld [vmem:[#allocation4 + $0x10] sm:$0xf] }
 0x447   : > { %v7485_v27 = vadd.f32 %v7484_v41, %v7396_v52  ;;  %v3063_v51 = vor.u32 %v3062_v3, %v3058_v4  ;;  %v3440_v5 = vsel %vm13040_vm4, %v9213_v31, %v3439_v29  ;;  %v3059_v48 = vsel %vm12934_vm5, %v3054_v33, %v3058_v4  ;;  %v2816_v33 = vld [vmem:[#allocation3 + $0x1a0] sm:$0xff] }
 0x448   : > { %7523 = vmatmul.bf16.gmra.mxu0 %v10255_v47  ;;  %7612 = vmatmul.bf16.gmra.mxu1 %v10259_v16  ;;  %v3441_v47 = vrot.slane %v3439_v29, 4  ;;  %3536 = vst [vmem:[#allocation4 + $0x538] sm:$0xff] %v3440_v5  ;;  %v3308_v16 = vld [vmem:[#allocation3 + $0x110] sm:$0xee]  ;;  %v3090_v3 = vshll.u32 %v2814_v8, 16  ;;  %v3095_v31 = vshrl.u32 %v2815_v18, 16 }
 0x449   : > { %v13270_v14 = vadd.f32 %v7573_v6, %v7485_v27  ;;  %v3064_v62 = vrot.slane %v3063_v51, 4  ;;  %3264 = vst [vmem:[#allocation4 + $0x530] sm:$0xff] %v3059_v48  ;;  %v3080_v27 = vshll.u32 %v2813_v21, 16  ;;  %v9214_v24 = vrot.slane %v3308_v16, 9 }
 0x44a   : > { %v7308_v34 = vpop.f32.mrf.mxu2  ;;  %v7397_v9 = vpop.f32.mrf.mxu3  ;;  %v3443_v46 = vsel %vm13040_vm4, %v3441_v47, %v3442_v40  ;;  %v3098_v5 = vshll.u32 %v2815_v18, 16  ;;  %v10327_v47 = vor.u32 %v11288_v59, %v10326_v54  ;;  %v10331_v40 = vor.u32 %v11279_v44, %v10328_v35  ;;  %v2818_v35 = vld [vmem:[#allocation3 + $0x38] sm:$0xff] }
 0x44b   : > { %v7309_v49 = vadd.f32 %v13234_v56, %v7308_v34  ;;  %v3069_v22 = vsel %vm12934_vm5, %v3064_v62, %v3068_v25  ;;  %3537 = vst [vmem:[#allocation4 + $0x580] sm:$0xff] %v3443_v46  ;;  %v3082_v4 = vrot.slane %v3080_v27, 5  ;;  %v3446_v34 = vrot.slane %v2813_v21, 5  ;;  %v11010_v25 = vld [vmem:[#allocation4 + $0x14] sm:$0xf] }
 0x44c   : > { %3265 = vst [vmem:[#allocation4 + $0x578] sm:$0xff] %v3069_v22  ;;  %v9256_v46 = vld [vmem:[#allocation4 + $0x58] sm:$0xf0]  ;;  %v3097_v57 = vrot.slane %v3095_v31, 4  ;;  %v3092_v48 = vrot.slane %v3090_v3, 5  ;;  %v3100_v54 = vrot.slane %v3098_v5, 5 }
 0x44d   : > { %v7398_v52 = vadd.f32 %v7397_v9, %v7309_v49  ;;  %v7486_v41 = vpop.f32.mrf.mxu0  ;;  %v7575_v6 = vpop.f32.mrf.mxu1  ;;  %v3078_v9 = vrot.slane %v3077_v50, 4  ;;  %v3447_v51 = vsel %vm13040_vm4, %v9214_v24, %v3446_v34  ;;  %v3448_v13 = vrot.slane %v3446_v34, 4  ;;  %v3311_v22 = vld [vmem:[#allocation3 + $0x20] sm:$0xee]  ;;  %v3313_v27 = vld [vmem:[#allocation3 + $0x168] sm:$0x11] }
 0x44e   : > { %3538 = vst [vmem:[#allocation4 + $0x5c8] sm:$0xff] %v3447_v51  ;;  %v3104_v59 = vshll.u32 %v2816_v33, 16  ;;  %v3108_v44 = vshrl.u32 %v2816_v33, 16  ;;  %v9215_v24 = vrot.slane %v3311_v22, 9  ;;  %v3114_v34 = vshll.u32 %v2817_v38, 16 }
 0x44f   : > { %v7487_v55 = vadd.f32 %v7486_v41, %v7398_v52  ;;  %7350 = vmatmul.bf16.gmra.mxu2 %v10319_v7  ;;  %7439 = vmatmul.bf16.gmra.mxu3 %v10323_v1  ;;  %v3086_v7 = vrot.slane %v3084_v15, 4  ;;  %v3449_v1 = vrot.slane %v3310_v45, 5  ;;  %v11019_v52 = vld [vmem:[#allocation4 + $0x54] sm:$0xf0]  ;;  %v3083_v41 = vsel %vm12934_vm5, %v3078_v9, %v3082_v4 }
 0x450   : > { %3266 = vst [vmem:[#allocation4 + $0x5c0] sm:$0xff] %v3083_v41  ;;  %v9255_v8 = vor.u32 %v11019_v52, %v9254_v32  ;;  %v3101_v15 = vor.u32 %v3100_v54, %v3097_v57  ;;  %v3110_v3 = vrot.slane %v3108_v44, 4  ;;  %v3456_v9 = vrot.slane %v3313_v27, 5  ;;  %v2820_v52 = vld [vmem:[#allocation3 + $0xe0] sm:$0x11] }
 0x451   : > { %v13284_v42 = vadd.f32 %v7575_v6, %v7487_v55  ;;  %v3087_v6 = vor.u32 %v3086_v7, %v3082_v4  ;;  %v3450_v21 = vsel %vm13040_vm4, %v3448_v13, %v3449_v1  ;;  %v3106_v4 = vrot.slane %v3104_v59, 5  ;;  %v2819_v13 = vld [vmem:[#allocation3 + $0x120] sm:$0xff] }
 0x452   : > { %v7311_v61 = vpop.f32.mrf.mxu2  ;;  %v7400_v2 = vpop.f32.mrf.mxu3  ;;  %3539 = vst [vmem:[#allocation4 + $0x610] sm:$0xff] %v3450_v21  ;;  %v3119_v5 = vshrl.u32 %v2818_v35, 16  ;;  %v3122_v41 = vshll.u32 %v2818_v35, 16  ;;  %v13304_v21 = vld [vmem:[#allocation3 + $0xf8] sm:$0xff]  ;;  %v3132_v38 = vshrl.u32 %v2819_v13, 16 }
 0x453   : > { %v7312_v36 = vadd.f32 %v13234_v56, %v7311_v61  ;;  %v3088_v55 = vrot.slane %v3087_v6, 4  ;;  %v9259_v61 = vor.u32 %v11010_v25, %v9256_v46  ;;  %v3111_v51 = vor.u32 %v3110_v3, %v3106_v4  ;;  %v3314_v6 = vld [vmem:[#allocation3 + $0x38] sm:$0xee]  ;;  %v3316_v44 = vld [vmem:[#allocation3 + $0xe0] sm:$0x11]  ;;  %3583 = vst [vmem:[#allocation4 + $0x30] sm:$0xff] %v13304_v21 }
 0x454   : > { %v3116_v25 = vrot.slane %v3114_v34, 5  ;;  %v3121_v46 = vrot.slane %v3119_v5, 4  ;;  %v3124_v22 = vrot.slane %v3122_v41, 5  ;;  %v3138_v3 = vshll.u32 %v2820_v52, 16 }
 0x455   : > { %v7401_v29 = vadd.f32 %v7400_v2, %v7312_v36  ;;  %v7489_v49 = vpop.f32.mrf.mxu0  ;;  %v7578_v26 = vpop.f32.mrf.mxu1  ;;  %v3093_v2 = vsel %vm12934_vm5, %v3088_v55, %v3092_v48  ;;  %v3453_v36 = vrot.slane %v2816_v33, 5  ;;  %v9262_v33 = vld [vmem:[#allocation4 + $0x18] sm:$0xf]  ;;  %v11366_v55 = vld [vmem:[#allocation5 + $0x230] sm:$0xff]  ;;  %v3463_v5 = vrot.slane %v3316_v44, 5 }
 0x456   : > { %3267 = vst [vmem:[#allocation4 + $0x608] sm:$0xff] %v3093_v2  ;;  %v11374_v48 = vld [vmem:[#allocation5 + $0x270] sm:$0xff]  ;;  %7980 = vmatpush.bf16.msrb.mxu2 %v11366_v55 }
 0x457   : > { %v7490_v62 = vadd.f32 %v7489_v49, %v7401_v29  ;;  %v3102_v29 = vrot.slane %v3101_v15, 4  ;;  %v3454_v49 = vsel %vm13040_vm4, %v9215_v24, %v3453_v36  ;;  %8069 = vmatpush.bf16.msrb.mxu3 %v11374_v48  ;;  %v2821_v15 = vld [vmem:[#allocation3 + $0xf0] sm:$0xff]  ;;  %v3552_v24 = vld [vmem:[#allocation3 + $0xe8] sm:$0xff]  ;;  %v9328_v48 = vld [vmem:[#allocation4 + $0xe8] sm:$0xf0] }
 0x458   : > { %7528 = vmatmul.bf16.gmra.mxu0 %v10327_v47  ;;  %7617 = vmatmul.bf16.gmra.mxu1 %v10331_v40  ;;  %3540 = vst [vmem:[#allocation4 + $0x658] sm:$0xff] %v3454_v49  ;;  %v2822_v49 = vld [vmem:[#allocation3 + $0xb8] sm:$0xff]  ;;  %v3146_v52 = vshll.u32 %v2821_v15, 16 }
 0x459   : > { %v13293_v16 = vadd.f32 %v7578_v26, %v7490_v62  ;;  %v3455_v26 = vrot.slane %v3453_v36, 4  ;;  %v3107_v40 = vsel %vm12934_vm5, %v3102_v29, %v3106_v4  ;;  %v3112_v62 = vrot.slane %v3111_v51, 4  ;;  %3584 = vst [vmem:[#allocation4 + $0x78] sm:$0xff] %v3552_v24 }
 0x45a   : > { %v7313_v45 = vpop.f32.mrf.mxu2  ;;  %v7402_v18 = vpop.f32.mrf.mxu3  ;;  %3268 = vst [vmem:[#allocation4 + $0x650] sm:$0xff] %v3107_v40  ;;  %v3125_v36 = vor.u32 %v3124_v22, %v3121_v46  ;;  %v3134_v4 = vrot.slane %v3132_v38, 4  ;;  %v3460_v29 = vrot.slane %v2819_v13, 5  ;;  %v3152_v46 = vshll.u32 %v2822_v49, 16 }
 0x45b   : > { %v7314_v50 = vadd.f32 %v13234_v56, %v7313_v45  ;;  %v3457_v32 = vsel %vm13040_vm4, %v3455_v26, %v3456_v9  ;;  %v11020_v45 = vld [vmem:[#allocation4 + $0x5c] sm:$0xf0]  ;;  %v3117_v2 = vsel %vm12934_vm5, %v3112_v62, %v3116_v25  ;;  %v11037_v62 = vld [vmem:[#allocation4 + $0xe4] sm:$0xf0]  ;;  %v3140_v25 = vrot.slane %v3138_v3, 5 }
 0x45c   : > { %3541 = vst [vmem:[#allocation4 + $0x6a0] sm:$0xff] %v3457_v32  ;;  %v3126_v26 = vrot.slane %v3125_v36, 4  ;;  %v3462_v41 = vrot.slane %v3460_v29, 4  ;;  %v3148_v44 = vrot.slane %v3146_v52, 5  ;;  %v3154_v36 = vrot.slane %v3152_v46, 5  ;;  %v13323_v3 = vld [vmem:[#allocation3 + $0x130] sm:$0xff] }
 0x45d   : > { %v7403_v7 = vadd.f32 %v7402_v18, %v7314_v50  ;;  %v7491_v1 = vpop.f32.mrf.mxu0  ;;  %v7580_v31 = vpop.f32.mrf.mxu1  ;;  %v11011_v18 = vld [vmem:[#allocation4 + $0x1c] sm:$0xf]  ;;  %3269 = vst [vmem:[#allocation4 + $0x698] sm:$0xff] %v3117_v2  ;;  %v9216_v50 = vrot.slane %v3314_v6, 9  ;;  %v9326_v6 = vld [vmem:[#allocation4 + $0xa0] sm:$0xf] }
 0x45e   : > { %v3464_v22 = vsel %vm13040_vm4, %v3462_v41, %v3463_v5  ;;  %3585 = vst [vmem:[#allocation4 + $0xc0] sm:$0xff] %v13323_v3  ;;  %v9334_v41 = vld [vmem:[#allocation4 + $0xa8] sm:$0xf] }
 0x45f   : > { %v7492_v47 = vadd.f32 %v7491_v1, %v7403_v7  ;;  %7631 = vmatmul.bf16.vlgmr.msra.gmra.mxu2 %v9255_v8  ;;  %7720 = vmatmul.bf16.vlgmr.msra.gmra.mxu3 %v9259_v61  ;;  %v3128_v8 = vshll.u32 %v2819_v13, 16  ;;  %v9264_v61 = vld [vmem:[#allocation4 + $0x60] sm:$0xf0]  ;;  %v9263_v1 = vor.u32 %v11020_v45, %v9262_v33  ;;  %v3461_v32 = vsel %vm13040_vm4, %v9216_v50, %v3460_v29  ;;  %v3319_v50 = vld [vmem:[#allocation3 + $0x158] sm:$0x11] }
 0x460   : > { %3542 = vst [vmem:[#allocation4 + $0x6e8] sm:$0xff] %v3461_v32  ;;  %v3467_v29 = vrot.slane %v2822_v49, 5 }
 0x461   : > { %v13306_v57 = vadd.f32 %v7580_v31, %v7492_v47  ;;  %v3130_v35 = vrot.slane %v3128_v8, 5  ;;  %v9267_v31 = vor.u32 %v11011_v18, %v9264_v61  ;;  %v3143_v47 = vshrl.u32 %v2821_v15, 16  ;;  %v3317_v8 = vld [vmem:[#allocation3 + $0xf0] sm:$0xee]  ;;  %3543 = vst [vmem:[#allocation4 + $0x730] sm:$0xff] %v3464_v22 }
 0x462   : > { %v7316_v54 = vpop.f32.mrf.mxu2  ;;  %v7405_v27 = vpop.f32.mrf.mxu3  ;;  %v2823_v18 = vld [vmem:[#allocation3 + $0x158] sm:$0x11]  ;;  %v2824_v15 = vld [vmem:[#allocation3 + $0x170] sm:$0xff] }
 0x463   : > { %v7317_v59 = vadd.f32 %v13234_v56, %v7316_v54  ;;  %v3135_v51 = vor.u32 %v3134_v4, %v3130_v35  ;;  %v3131_v33 = vsel %vm12934_vm5, %v3126_v26, %v3130_v35  ;;  %v3145_v61 = vrot.slane %v3143_v47, 4 }
 0x464   : > { %3270 = vst [vmem:[#allocation4 + $0x6e0] sm:$0xff] %v3131_v33  ;;  %v3156_v35 = vshrl.u32 %v2822_v49, 16  ;;  %v9217_v4 = vrot.slane %v3317_v8, 9  ;;  %v3167_v5 = vshrl.u32 %v2824_v15, 16  ;;  %v3170_v47 = vshll.u32 %v2824_v15, 16 }
 0x465   : > { %v7406_v34 = vadd.f32 %v7405_v27, %v7317_v59  ;;  %v7494_v9 = vpop.f32.mrf.mxu0  ;;  %v7583_v7 = vpop.f32.mrf.mxu1  ;;  %v3136_v13 = vrot.slane %v3135_v51, 4  ;;  %v11028_v27 = vld [vmem:[#allocation4 + $0xa4] sm:$0xf]  ;;  %v9327_v59 = vor.u32 %v11037_v62, %v9326_v6  ;;  %v3470_v51 = vrot.slane %v3319_v50, 5  ;;  %v11038_v33 = vld [vmem:[#allocation4 + $0xec] sm:$0xf0] }
 0x466   : > { %v9331_v24 = vor.u32 %v11028_v27, %v9328_v48  ;;  %v3158_v26 = vrot.slane %v3156_v35, 4  ;;  %v3468_v6 = vsel %vm13040_vm4, %v9217_v4, %v3467_v29  ;;  %v3469_v62 = vrot.slane %v3467_v29, 4  ;;  %v9336_v48 = vld [vmem:[#allocation4 + $0xf0] sm:$0xf0]  ;;  %v13337_v27 = vld [vmem:[#allocation3 + $0x148] sm:$0xff] }
 0x467   : > { %v7495_v40 = vadd.f32 %v7494_v9, %v7406_v34  ;;  %v3141_v45 = vsel %vm12934_vm5, %v3136_v13, %v3140_v25  ;;  %v11029_v13 = vld [vmem:[#allocation4 + $0xac] sm:$0xf]  ;;  %3544 = vst [vmem:[#allocation4 + $0x778] sm:$0xff] %v3468_v6  ;;  %v3169_v25 = vrot.slane %v3167_v5, 4  ;;  %v9335_v50 = vor.u32 %v11038_v33, %v9334_v41 }
 0x468   : > { %7809 = vmatmul.bf16.vlgmr.msrb.gmra.mxu0 %v9263_v1  ;;  %7898 = vmatmul.bf16.vlgmr.msrb.gmra.mxu1 %v9267_v31  ;;  %3271 = vst [vmem:[#allocation4 + $0x728] sm:$0xff] %v3141_v45  ;;  %v3149_v1 = vor.u32 %v3148_v44, %v3145_v61  ;;  %v3162_v31 = vshll.u32 %v2823_v18, 16  ;;  %v3159_v49 = vor.u32 %v3158_v26, %v3154_v36  ;;  %v2826_v15 = vld [vmem:[#allocation3 + $0x58] sm:$0x11] }
 0x469   : > { %v13316_v55 = vadd.f32 %v7583_v7, %v7495_v40  ;;  %v13325_v40 = vld [vmem:[#allocation3 + $0x80] sm:$0xff]  ;;  %v3471_v8 = vsel %vm13040_vm4, %v3469_v62, %v3470_v51  ;;  %v9339_v35 = vor.u32 %v11029_v13, %v9336_v48  ;;  %3587 = vst [vmem:[#allocation4 + $0x150] sm:$0xff] %v13337_v27 }
 0x46a   : > { %v7318_v38 = vpop.f32.mrf.mxu2  ;;  %v7407_v54 = vpop.f32.mrf.mxu3  ;;  %v3150_v52 = vrot.slane %v3149_v1, 4  ;;  %3586 = vst [vmem:[#allocation4 + $0x108] sm:$0xff] %v13325_v40  ;;  %v3160_v61 = vrot.slane %v3159_v49, 4 }
 0x46b   : > { %v7319_v2 = vadd.f32 %v13234_v56, %v7318_v38  ;;  %v2825_v38 = vld [vmem:[#allocation3 + $0x178] sm:$0xff]  ;;  %3545 = vst [vmem:[#allocation4 + $0x7c0] sm:$0xff] %v3471_v8 }
 0x46c   : > { %v3155_v22 = vsel %vm12934_vm5, %v3150_v52, %v3154_v36  ;;  %v3322_v36 = vld [vmem:[#allocation3 + $0x58] sm:$0x11]  ;;  %v3474_v5 = vrot.slane %v2825_v38, 5  ;;  %v3186_v52 = vshll.u32 %v2826_v15, 16 }
 0x46d   : > { %v7408_v34 = vadd.f32 %v7407_v54, %v7319_v2  ;;  %v7496_v9 = vpop.f32.mrf.mxu0  ;;  %v7585_v7 = vpop.f32.mrf.mxu1  ;;  %v3172_v54 = vrot.slane %v3170_v47, 5  ;;  %v3164_v2 = vrot.slane %v3162_v31, 5  ;;  %3272 = vst [vmem:[#allocation4 + $0x770] sm:$0xff] %v3155_v22  ;;  %v2828_v47 = vld [vmem:[#allocation3 + $0x128] sm:$0xff]  ;;  %v3477_v6 = vrot.slane %v3322_v36, 5 }
 0x46e   : > { %v3476_v13 = vrot.slane %v3474_v5, 4  ;;  %v3200_v8 = vshll.u32 %v2828_v47, 16  ;;  %v3188_v15 = vrot.slane %v3186_v52, 5 }
 0x46f   : > { %v7497_v32 = vadd.f32 %v7496_v9, %v7408_v34  ;;  %7636 = vmatmul.bf16.gmra.mxu2 %v9327_v59  ;;  %7725 = vmatmul.bf16.gmra.mxu3 %v9331_v24  ;;  %v3320_v59 = vld [vmem:[#allocation3 + $0x170] sm:$0xee]  ;;  %v3173_v24 = vor.u32 %v3172_v54, %v3169_v25  ;;  %v3165_v4 = vsel %vm12934_vm5, %v3160_v61, %v3164_v2  ;;  %v3176_v34 = vshll.u32 %v2825_v38, 16 }
 0x470   : > { %v3180_v9 = vshrl.u32 %v2825_v38, 16  ;;  %3273 = vst [vmem:[#allocation4 + $0x7b8] sm:$0xff] %v3165_v4  ;;  %v9218_v51 = vrot.slane %v3320_v59, 9  ;;  %v13347_v38 = vld [vmem:[#allocation3 + $0x18] sm:$0xff]  ;;  %v3478_v61 = vsel %vm13040_vm4, %v3476_v13, %v3477_v6  ;;  %v3325_v6 = vld [vmem:[#allocation3 + $0x140] sm:$0x11] }
 0x471   : > { %v13330_v46 = vadd.f32 %v7585_v7, %v7497_v32  ;;  %v2827_v7 = vld [vmem:[#allocation3 + $0x98] sm:$0xff]  ;;  %v3174_v26 = vrot.slane %v3173_v24, 4  ;;  %v3178_v32 = vrot.slane %v3176_v34, 5  ;;  %3547 = vst [vmem:[#allocation4 + $0x850] sm:$0xff] %v3478_v61  ;;  %v2829_v24 = vld [vmem:[#allocation3 + $0x140] sm:$0x11] }
 0x472   : > { %v7321_v45 = vpop.f32.mrf.mxu2  ;;  %v7410_v18 = vpop.f32.mrf.mxu3  ;;  %v3182_v41 = vrot.slane %v3180_v9, 4  ;;  %v3475_v33 = vsel %vm13040_vm4, %v9218_v51, %v3474_v5  ;;  %v3191_v49 = vshrl.u32 %v2827_v7, 16  ;;  %v3194_v22 = vshll.u32 %v2827_v7, 16  ;;  %v3323_v4 = vld [vmem:[#allocation3 + $0x98] sm:$0xee]  ;;  %3588 = vst [vmem:[#allocation4 + $0x198] sm:$0xff] %v13347_v38 }
 0x473   : > { %v7322_v44 = vadd.f32 %v13234_v56, %v7321_v45  ;;  %v3179_v25 = vsel %vm12934_vm5, %v3174_v26, %v3178_v32  ;;  %3546 = vst [vmem:[#allocation4 + $0x808] sm:$0xff] %v3475_v33  ;;  %v11055_v45 = vld [vmem:[#allocation4 + $0x174] sm:$0xf0]  ;;  %v13355_v34 = vld [vmem:[#allocation3 + $0x138] sm:$0xff]  ;;  %v9398_v9 = vld [vmem:[#allocation4 + $0x130] sm:$0xf] }
 0x474   : > { %v3183_v48 = vor.u32 %v3182_v41, %v3178_v32  ;;  %3274 = vst [vmem:[#allocation4 + $0x800] sm:$0xff] %v3179_v25  ;;  %v3193_v2 = vrot.slane %v3191_v49, 4  ;;  %v11046_v7 = vld [vmem:[#allocation4 + $0x134] sm:$0xf]  ;;  %v9399_v32 = vor.u32 %v11055_v45, %v9398_v9  ;;  %v3210_v33 = vshll.u32 %v2829_v24, 16 }
 0x475   : > { %v7411_v1 = vadd.f32 %v7410_v18, %v7322_v44  ;;  %v7499_v31 = vpop.f32.mrf.mxu0  ;;  %v7588_v29 = vpop.f32.mrf.mxu1  ;;  %v9400_v18 = vld [vmem:[#allocation4 + $0x178] sm:$0xf0]  ;;  %v9219_v13 = vrot.slane %v3323_v4, 9  ;;  %v3481_v49 = vrot.slane %v2828_v47, 5  ;;  %3589 = vst [vmem:[#allocation4 + $0x1e0] sm:$0xff] %v13355_v34  ;;  %v3664_v24 = vshrl.u32 %v13304_v21, 16 }
 0x476   : > { %v9403_v41 = vor.u32 %v11046_v7, %v9400_v18  ;;  %v9408_v4 = vld [vmem:[#allocation4 + $0x180] sm:$0xf0]  ;;  %v3212_v7 = vrot.slane %v3210_v33, 5 }
 0x477   : > { %v7500_v62 = vadd.f32 %v7499_v31, %v7411_v1  ;;  %v3202_v31 = vrot.slane %v3200_v8, 5  ;;  %v11047_v8 = vld [vmem:[#allocation4 + $0x13c] sm:$0xf]  ;;  %v3482_v45 = vsel %vm13040_vm4, %v9219_v13, %v3481_v49  ;;  %v3483_v18 = vrot.slane %v3481_v49, 4 }
 0x478   : > { %7814 = vmatmul.bf16.gmra.mxu0 %v9335_v50  ;;  %7903 = vmatmul.bf16.gmra.mxu1 %v9339_v35  ;;  %v3184_v50 = vrot.slane %v3183_v48, 4  ;;  %v3196_v35 = vrot.slane %v3194_v22, 5  ;;  %v9406_v22 = vld [vmem:[#allocation4 + $0x138] sm:$0xf]  ;;  %3548 = vst [vmem:[#allocation4 + $0x898] sm:$0xff] %v3482_v45 }
 0x479   : > { %v13349_v54 = vadd.f32 %v7588_v29, %v7500_v62  ;;  %v3204_v29 = vshrl.u32 %v2828_v47, 16 }
 0x47a   : > { %v7323_v59 = vpop.f32.mrf.mxu2  ;;  %v7412_v44 = vpop.f32.mrf.mxu3  ;;  %v3189_v1 = vsel %vm12934_vm5, %v3184_v50, %v3188_v15  ;;  %v3197_v52 = vor.u32 %v3196_v35, %v3193_v2  ;;  %v11365_v50 = vld [vmem:[#allocation5 + $0x228] sm:$0xff] }
 0x47b   : > { %v7324_v36 = vadd.f32 %v13234_v56, %v7323_v59  ;;  %3275 = vst [vmem:[#allocation4 + $0x848] sm:$0xff] %v3189_v1  ;;  %v3206_v62 = vrot.slane %v3204_v29, 4  ;;  %v3484_v59 = vrot.slane %v3325_v6, 5  ;;  %v11373_v15 = vld [vmem:[#allocation5 + $0x268] sm:$0xff]  ;;  %v3667_v29 = vshll.u32 %v13304_v21, 16  ;;  %7981 = vmatpush.bf16.msrb.mxu2 %v11365_v50 }
 0x47c   : > { %v3198_v48 = vrot.slane %v3197_v52, 4  ;;  %8070 = vmatpush.bf16.msrb.mxu3 %v11373_v15 }
 0x47d   : > { %v7413_v26 = vadd.f32 %v7412_v44, %v7324_v36  ;;  %v7501_v51 = vpop.f32.mrf.mxu0  ;;  %v7590_v5 = vpop.f32.mrf.mxu1  ;;  %v3207_v61 = vor.u32 %v3206_v62, %v3202_v31  ;;  %v11056_v44 = vld [vmem:[#allocation4 + $0x17c] sm:$0xf0]  ;;  %v3485_v1 = vsel %vm13040_vm4, %v3483_v18, %v3484_v59  ;;  %v3669_v6 = vrot.slane %v3667_v29, 5  ;;  %v13375_v62 = vld [vmem:[#allocation3 + $0x160] sm:$0xff] }
 0x47e   : > { %v3203_v47 = vsel %vm12934_vm5, %v3198_v48, %v3202_v31  ;;  %3549 = vst [vmem:[#allocation4 + $0x8e0] sm:$0xff] %v3485_v1  ;;  %v3617_v31 = vld [vmem:[#allocation3 + $0xd0] sm:$0x11]  ;;  %v9407_v49 = vor.u32 %v11056_v44, %v9406_v22  ;;  %v3688_v18 = vshrl.u32 %v13323_v3, 16  ;;  %v3691_v59 = vshll.u32 %v13323_v3, 16 }
 0x47f   : > { %v7502_v25 = vadd.f32 %v7501_v51, %v7413_v26  ;;  %7641 = vmatmul.bf16.gmra.mxu2 %v9399_v32  ;;  %7730 = vmatmul.bf16.gmra.mxu3 %v9403_v41  ;;  %v3208_v9 = vrot.slane %v3207_v61, 4  ;;  %3276 = vst [vmem:[#allocation4 + $0x890] sm:$0xff] %v3203_v47  ;;  %v3666_v51 = vrot.slane %v3664_v24, 4  ;;  %v13371_v41 = vld [vmem:[#allocation3 + $0x100] sm:$0xff]  ;;  %v3683_v45 = vshll.u32 %v3617_v31, 16  ;;  %v13388_v31 = vld [vmem:[#allocation3 + $0x198] sm:$0xff] }
 0x480   : > { %3590 = vst [vmem:[#allocation4 + $0x228] sm:$0xff] %v13371_v41  ;;  %v3697_v47 = vshll.u32 %v13325_v40, 16  ;;  %v3701_v44 = vshrl.u32 %v13325_v40, 16  ;;  %v3620_v1 = vld [vmem:[#allocation3 + $0x108] sm:$0x11]  ;;  %v3693_v29 = vrot.slane %v3691_v59, 5 }
 0x481   : > { %v13362_v2 = vadd.f32 %v7590_v5, %v7502_v25  ;;  %v11508_v5 = vld [vmem:[#allocation3 + $0xe8] sm:$0xff]  ;;  %v3213_v52 = vsel %vm12934_vm5, %v3208_v9, %v3212_v7  ;;  %v9411_v25 = vor.u32 %v11047_v8, %v9408_v4  ;;  %v3670_v61 = vor.u32 %v3669_v6, %v3666_v51  ;;  %3591 = vst [vmem:[#allocation4 + $0x270] sm:$0xff] %v13375_v62 }
 0x482   : > { %v7326_v36 = vpop.f32.mrf.mxu2  ;;  %v7415_v35 = vpop.f32.mrf.mxu3  ;;  %v3673_v32 = vshll.u32 %v11508_v5, 16  ;;  %3277 = vst [vmem:[#allocation4 + $0x8d8] sm:$0xff] %v3213_v52  ;;  %v3685_v8 = vrot.slane %v3683_v45, 5  ;;  %v3690_v4 = vrot.slane %v3688_v18, 4  ;;  %v9470_v5 = vld [vmem:[#allocation4 + $0x1c0] sm:$0xf] }
 0x483   : > { %v7327_v26 = vadd.f32 %v13234_v56, %v7326_v36  ;;  %v3671_v22 = vrot.slane %v3670_v61, 4  ;;  %v11073_v36 = vld [vmem:[#allocation4 + $0x204] sm:$0xf0]  ;;  %v11064_v52 = vld [vmem:[#allocation4 + $0x1c4] sm:$0xf]  ;;  %v3707_v45 = vshll.u32 %v3620_v1, 16 }
 0x484   : > { %v3675_v48 = vrot.slane %v3673_v32, 5  ;;  %v13393_v32 = vld [vmem:[#allocation3 + $0x68] sm:$0xff]  ;;  %v3694_v6 = vor.u32 %v3693_v29, %v3690_v4  ;;  %3592 = vst [vmem:[#allocation4 + $0x2b8] sm:$0xff] %v13388_v31  ;;  %v11074_v1 = vld [vmem:[#allocation4 + $0x20c] sm:$0xf0] }
 0x485   : > { %v7416_v33 = vadd.f32 %v7415_v35, %v7327_v26  ;;  %v7504_v13 = vpop.f32.mrf.mxu0  ;;  %v7593_v21 = vpop.f32.mrf.mxu1  ;;  %v9472_v35 = vld [vmem:[#allocation4 + $0x208] sm:$0xf0]  ;;  %v3699_v26 = vrot.slane %v3697_v47, 5  ;;  %v3715_v47 = vshll.u32 %v13337_v27, 16  ;;  %3593 = vst [vmem:[#allocation4 + $0x300] sm:$0xff] %v13393_v32 }
 0x486   : > { %v3680_v15 = vor.u32 %v3675_v48, %v12928_v19  ;;  %v3676_v19 = vsel %vm12934_vm5, %v3671_v22, %v3675_v48  ;;  %v9471_v48 = vor.u32 %v11073_v36, %v9470_v5  ;;  %v9475_v61 = vor.u32 %v11064_v52, %v9472_v35  ;;  %v13406_v35 = vld [vmem:[#allocation3 + $0xa8] sm:$0xff] }
 0x487   : > { %v7505_v50 = vadd.f32 %v7504_v13, %v7416_v33  ;;  %4079 = vst [vmem:[#allocation4 + $0x38] sm:$0xff] %v3676_v19  ;;  %v3703_v33 = vrot.slane %v3701_v44, 4  ;;  %v13395_v13 = vld [vmem:[#allocation3 + $0x8] sm:$0xff]  ;;  %v3695_v18 = vrot.slane %v3694_v6, 4  ;;  %v3721_v44 = vshll.u32 %v13347_v38, 16 }
 0x488   : > { %7819 = vmatmul.bf16.gmra.mxu0 %v9407_v49  ;;  %7908 = vmatmul.bf16.gmra.mxu1 %v9411_v25  ;;  %v3681_v3 = vrot.slane %v3680_v15, 4  ;;  %v3712_v15 = vshrl.u32 %v13337_v27, 16  ;;  %v3725_v36 = vshrl.u32 %v13347_v38, 16  ;;  %3594 = vst [vmem:[#allocation4 + $0x348] sm:$0xff] %v13395_v13 }
 0x489   : > { %v13384_v24 = vadd.f32 %v7593_v21, %v7505_v50  ;;  %v3704_v59 = vor.u32 %v3703_v33, %v3699_v26  ;;  %v3623_v50 = vld [vmem:[#allocation3 + $0x180] sm:$0x11]  ;;  %v3700_v4 = vsel %vm12934_vm5, %v3695_v18, %v3699_v26  ;;  %v3723_v29 = vrot.slane %v3721_v44, 5  ;;  %3596 = vst [vmem:[#allocation4 + $0x3d8] sm:$0xff] %v13406_v35  ;;  %v13416_v26 = vld [vmem:[#allocation3 + $0x90] sm:$0xff] }
 0x48a   : > { %v7328_v9 = vpop.f32.mrf.mxu2  ;;  %v7417_v7 = vpop.f32.mrf.mxu3  ;;  %v3686_v40 = vsel %vm12934_vm5, %v3681_v3, %v3685_v8  ;;  %v3709_v8 = vrot.slane %v3707_v45, 5  ;;  %v9478_v3 = vld [vmem:[#allocation4 + $0x1c8] sm:$0xf]  ;;  %v3714_v27 = vrot.slane %v3712_v15, 4  ;;  %4081 = vst [vmem:[#allocation4 + $0xc8] sm:$0xff] %v3700_v4  ;;  %v3731_v38 = vshll.u32 %v3623_v50, 16 }
 0x48b   : > { %v7329_v51 = vadd.f32 %v13234_v56, %v7328_v9  ;;  %4080 = vst [vmem:[#allocation4 + $0x80] sm:$0xff] %v3686_v40  ;;  %v13398_v56 = vld [vmem:[#allocation3 + $0x118] sm:$0xff]  ;;  %v3705_v9 = vrot.slane %v3704_v59, 4  ;;  %v13421_v33 = vld [vmem:[%s14115_s6] ss:$0 sm:$0xff]  ;;  %v9479_v45 = vor.u32 %v11074_v1, %v9478_v3  ;;  %v3736_v50 = vshrl.u32 %v13355_v34, 16 }
 0x48c   : > { %3595 = vst [vmem:[#allocation4 + $0x390] sm:$0xff] %v13398_v56  ;;  %v3733_v59 = vrot.slane %v3731_v38, 5  ;;  %v3626_v44 = vld [vmem:[#allocation3 + $0x1a8] sm:$0x11]  ;;  %v3745_v4 = vshll.u32 %v13371_v41, 16 }
 0x48d   : > { %v7418_v21 = vadd.f32 %v7417_v7, %v7329_v51  ;;  %v7506_v49 = vpop.f32.mrf.mxu0  ;;  %v7595_v25 = vpop.f32.mrf.mxu1  ;;  %v3717_v7 = vrot.slane %v3715_v47, 5  ;;  %v3727_v51 = vrot.slane %v3725_v36, 4  ;;  %v3710_v52 = vsel %vm12934_vm5, %v3705_v9, %v3709_v8  ;;  %3597 = vst [vmem:[#allocation4 + $0x420] sm:$0xff] %v13416_v26 }
 0x48e   : > { %4082 = vst [vmem:[#allocation4 + $0x110] sm:$0xff] %v3710_v52  ;;  %v3739_v36 = vshll.u32 %v13355_v34, 16  ;;  %v3738_v3 = vrot.slane %v3736_v50, 4 }
 0x48f   : > { %v7507_v22 = vadd.f32 %v7506_v49, %v7418_v21  ;;  %7646 = vmatmul.bf16.gmra.mxu2 %v9471_v48  ;;  %7735 = vmatmul.bf16.gmra.mxu3 %v9475_v61  ;;  %v3718_v6 = vor.u32 %v3717_v7, %v3714_v27  ;;  %v11065_v49 = vld [vmem:[#allocation4 + $0x1cc] sm:$0xf]  ;;  %v3728_v48 = vor.u32 %v3727_v51, %v3723_v29  ;;  %v3749_v7 = vshrl.u32 %v13371_v41, 16  ;;  %v11091_v51 = vld [vmem:[#allocation4 + $0x294] sm:$0xf0] }
 0x490   : > { %v13424_v61 = vld [vmem:[#allocation3 + $0xd8] sm:$0xff]  ;;  %v3741_v34 = vrot.slane %v3739_v36, 5 }
 0x491   : > { %v13411_v19 = vadd.f32 %v7595_v25, %v7507_v22  ;;  %v9480_v25 = vld [vmem:[#allocation4 + $0x210] sm:$0xf0]  ;;  %v3719_v18 = vrot.slane %v3718_v6, 4  ;;  %v3729_v8 = vrot.slane %v3728_v48, 4  ;;  %3598 = vst [vmem:[#allocation4 + $0x468] sm:$0xff] %v13424_v61  ;;  %v3751_v52 = vrot.slane %v3749_v7, 4 }
 0x492   : > { %v7331_v5 = vpop.f32.mrf.mxu2  ;;  %v7420_v40 = vpop.f32.mrf.mxu3  ;;  %v9483_v9 = vor.u32 %v11065_v49, %v9480_v25  ;;  %v3755_v6 = vshll.u32 %v3626_v44, 16  ;;  %v3742_v41 = vor.u32 %v3741_v34, %v3738_v3  ;;  %v3760_v49 = vshrl.u32 %v13375_v62, 16 }
 0x493   : > { %v7332_v21 = vadd.f32 %v13421_v33, %v7331_v5  ;;  %v3724_v27 = vsel %vm12934_vm5, %v3719_v18, %v3723_v29  ;;  %v3734_v38 = vsel %vm12934_vm5, %v3729_v8, %v3733_v59  ;;  %v3747_v5 = vrot.slane %v3745_v4, 5  ;;  %v13436_v29 = vld [vmem:[#allocation3 + $0xa0] sm:$0xff] }
 0x494   : > { %4083 = vst [vmem:[#allocation4 + $0x158] sm:$0xff] %v3724_v27  ;;  %v9542_v18 = vld [vmem:[#allocation4 + $0x250] sm:$0xf]  ;;  %v11082_v59 = vld [vmem:[#allocation4 + $0x254] sm:$0xf]  ;;  %v3743_v36 = vrot.slane %v3742_v41, 4 }
 0x495   : > { %v7421_v15 = vadd.f32 %v7420_v40, %v7332_v21  ;;  %v7509_v47 = vpop.f32.mrf.mxu0  ;;  %v7598_v22 = vpop.f32.mrf.mxu1  ;;  %v9544_v40 = vld [vmem:[#allocation4 + $0x298] sm:$0xf0]  ;;  %4084 = vst [vmem:[#allocation4 + $0x1a0] sm:$0xff] %v3734_v38  ;;  %v3752_v50 = vor.u32 %v3751_v52, %v3747_v5  ;;  %v9543_v8 = vor.u32 %v11091_v51, %v9542_v18  ;;  %v3629_v4 = vld [vmem:[#allocation3] sm:$0x11]  ;;  %v3762_v27 = vrot.slane %v3760_v49, 4 }
 0x496   : > { %v9547_v44 = vor.u32 %v11082_v59, %v9544_v40  ;;  %3599 = vst [vmem:[#allocation4 + $0x4b0] sm:$0xff] %v13436_v29  ;;  %v3773_v52 = vshrl.u32 %v13388_v31, 16  ;;  %v3779_v41 = vshll.u32 %v3629_v4, 16  ;;  %v13453_v18 = vld [vmem:[#allocation3 + $0x110] sm:$0xff]  ;;  %v3632_v59 = vld [vmem:[#allocation3 + $0xc8] sm:$0x11] }
 0x497   : > { %v7510_v1 = vadd.f32 %v7509_v47, %v7421_v15  ;;  %v3763_v15 = vshll.u32 %v13375_v62, 16  ;;  %v3748_v62 = vsel %vm12934_vm5, %v3743_v36, %v3747_v5  ;;  %v11372_v36 = vld [vmem:[#allocation5 + $0x260] sm:$0xff]  ;;  %3601 = vst [vmem:[#allocation4 + $0x540] sm:$0xff] %v13453_v18 }
 0x498   : > { %7824 = vmatmul.bf16.gmra.mxu0 %v9479_v45  ;;  %7913 = vmatmul.bf16.gmra.mxu1 %v9483_v9  ;;  %v3769_v45 = vshll.u32 %v13388_v31, 16  ;;  %v3757_v9 = vrot.slane %v3755_v6, 5  ;;  %4085 = vst [vmem:[#allocation4 + $0x1e8] sm:$0xff] %v3748_v62  ;;  %v13451_v6 = vld [vmem:[#allocation3 + $0xc0] sm:$0xff] }
 0x499   : > { %v13438_v21 = vadd.f32 %v7598_v22, %v7510_v1  ;;  %v3753_v22 = vrot.slane %v3752_v50, 4  ;;  %v3765_v3 = vrot.slane %v3763_v15, 5  ;;  %v9550_v50 = vld [vmem:[#allocation4 + $0x258] sm:$0xf]  ;;  %v11092_v15 = vld [vmem:[#allocation4 + $0x29c] sm:$0xf0]  ;;  %8071 = vmatpush.bf16.msrb.mxu3 %v11372_v36 }
 0x49a   : > { %v7333_v25 = vpop.f32.mrf.mxu2  ;;  %v7422_v48 = vpop.f32.mrf.mxu3  ;;  %v3771_v34 = vrot.slane %v3769_v45, 5  ;;  %v11083_v45 = vld [vmem:[#allocation4 + $0x25c] sm:$0xf]  ;;  %3600 = vst [vmem:[#allocation4 + $0x4f8] sm:$0xff] %v13451_v6  ;;  %v9551_v36 = vor.u32 %v11092_v15, %v9550_v50  ;;  %v11109_v50 = vld [vmem:[#allocation4 + $0x324] sm:$0xf0] }
 0x49b   : > { %v7334_v47 = vadd.f32 %v13421_v33, %v7333_v25  ;;  %v3758_v51 = vsel %vm12934_vm5, %v3753_v22, %v3757_v9  ;;  %v3766_v40 = vor.u32 %v3765_v3, %v3762_v27  ;;  %v3784_v25 = vshrl.u32 %v13393_v32, 16 }
 0x49c   : > { %4086 = vst [vmem:[#allocation4 + $0x230] sm:$0xff] %v3758_v51  ;;  %v3787_v9 = vshll.u32 %v13393_v32, 16  ;;  %v3781_v3 = vrot.slane %v3779_v41, 5  ;;  %v3808_v41 = vshrl.u32 %v13398_v56, 16  ;;  %v3832_v15 = vshrl.u32 %v13416_v26, 16 }
 0x49d   : > { %v7423_v7 = vadd.f32 %v7422_v48, %v7334_v47  ;;  %v7511_v1 = vpop.f32.mrf.mxu0  ;;  %v7600_v38 = vpop.f32.mrf.mxu1  ;;  %v3775_v48 = vrot.slane %v3773_v52, 4  ;;  %v3767_v5 = vrot.slane %v3766_v40, 4  ;;  %v11364_v47 = vld [vmem:[#allocation5 + $0x220] sm:$0xff]  ;;  %v3786_v22 = vrot.slane %v3784_v25, 4 }
 0x49e   : > { %v9552_v52 = vld [vmem:[#allocation4 + $0x2a0] sm:$0xf0]  ;;  %7982 = vmatpush.bf16.msrb.mxu2 %v11364_v47  ;;  %v3789_v51 = vrot.slane %v3787_v9, 5  ;;  %v3803_v40 = vshll.u32 %v3632_v59, 16  ;;  %v3811_v47 = vshll.u32 %v13398_v56, 16  ;;  %v3810_v9 = vrot.slane %v3808_v41, 4 }
 0x49f   : > { %v7512_v49 = vadd.f32 %v7511_v1, %v7423_v7  ;;  %7651 = vmatmul.bf16.gmra.mxu2 %v9543_v8  ;;  %7740 = vmatmul.bf16.gmra.mxu3 %v9547_v44  ;;  %v3776_v4 = vor.u32 %v3775_v48, %v3771_v34  ;;  %v3772_v27 = vsel %vm12934_vm5, %v3767_v5, %v3771_v34  ;;  %v3793_v7 = vshll.u32 %v13395_v13, 16 }
 0x4a0   : > { %v3797_v1 = vshrl.u32 %v13395_v13, 16  ;;  %4087 = vst [vmem:[#allocation4 + $0x278] sm:$0xff] %v3772_v27  ;;  %v3821_v56 = vshrl.u32 %v13406_v35, 16 }
 0x4a1   : > { %v13455_v31 = vadd.f32 %v7600_v38, %v7512_v49  ;;  %v13463_v38 = vld [vmem:[#allocation3 + $0x30] sm:$0xff]  ;;  %v3777_v32 = vrot.slane %v3776_v4, 4  ;;  %v3795_v25 = vrot.slane %v3793_v7, 5  ;;  %v13468_v49 = vld [vmem:[#allocation3 + $0x20] sm:$0xff]  ;;  %v9555_v4 = vor.u32 %v11083_v45, %v9552_v52 }
 0x4a2   : > { %v7336_v8 = vpop.f32.mrf.mxu2  ;;  %v7425_v44 = vpop.f32.mrf.mxu3  ;;  %v3799_v34 = vrot.slane %v3797_v1, 4  ;;  %3602 = vst [vmem:[#allocation4 + $0x588] sm:$0xff] %v13463_v38  ;;  %v3805_v1 = vrot.slane %v3803_v40, 5 }
 0x4a3   : > { %v7337_v62 = vadd.f32 %v13421_v33, %v7336_v8  ;;  %v3782_v43 = vsel %vm12934_vm5, %v3777_v32, %v3781_v3  ;;  %v3790_v8 = vor.u32 %v3789_v51, %v3786_v22  ;;  %3603 = vst [vmem:[#allocation4 + $0x5d0] sm:$0xff] %v13468_v49  ;;  %v3813_v3 = vrot.slane %v3811_v47, 5  ;;  %v9614_v32 = vld [vmem:[#allocation4 + $0x2e0] sm:$0xf]  ;;  %v9616_v51 = vld [vmem:[#allocation4 + $0x328] sm:$0xf0] }
 0x4a4   : > { %4088 = vst [vmem:[#allocation4 + $0x2c0] sm:$0xff] %v3782_v43  ;;  %v3800_v59 = vor.u32 %v3799_v34, %v3795_v25  ;;  %v3817_v22 = vshll.u32 %v13406_v35, 16  ;;  %v13484_v35 = vld [vmem:[#allocation3 + $0x1a0] sm:$0xff]  ;;  %v11100_v47 = vld [vmem:[#allocation4 + $0x2e4] sm:$0xf] }
 0x4a5   : > { %v7426_v13 = vadd.f32 %v7425_v44, %v7337_v62  ;;  %v7514_v48 = vpop.f32.mrf.mxu0  ;;  %v7603_v5 = vpop.f32.mrf.mxu1  ;;  %v3791_v7 = vrot.slane %v3790_v8, 4  ;;  %v3814_v34 = vor.u32 %v3813_v3, %v3810_v9  ;;  %v3834_v8 = vrot.slane %v3832_v15, 4  ;;  %3604 = vst [vmem:[#allocation4 + $0x618] sm:$0xff] %v13484_v35 }
 0x4a6   : > { %v3801_v44 = vrot.slane %v3800_v59, 4  ;;  %v3819_v41 = vrot.slane %v3817_v22, 5  ;;  %v3841_v59 = vshll.u32 %v13424_v61, 16  ;;  %v13491_v22 = vld [vmem:[#allocation3 + $0x38] sm:$0xff] }
 0x4a7   : > { %v7515_v27 = vadd.f32 %v7514_v48, %v7426_v13  ;;  %v3796_v43 = vsel %vm12934_vm5, %v3791_v7, %v3795_v25  ;;  %v3827_v13 = vshll.u32 %v3635_v23, 16  ;;  %v3638_v25 = vld [vmem:[#allocation3 + $0x188] sm:$0x11]  ;;  %v9615_v23 = vor.u32 %v11109_v50, %v9614_v32  ;;  %3605 = vst [vmem:[#allocation4 + $0x660] sm:$0xff] %v13491_v22 }
 0x4a8   : > { %7829 = vmatmul.bf16.gmra.mxu0 %v9551_v36  ;;  %7918 = vmatmul.bf16.gmra.mxu1 %v9555_v4  ;;  %v3806_v40 = vsel %vm12934_vm5, %v3801_v44, %v3805_v1  ;;  %4089 = vst [vmem:[#allocation4 + $0x308] sm:$0xff] %v3796_v43  ;;  %v3815_v36 = vrot.slane %v3814_v34, 4  ;;  %v3835_v4 = vshll.u32 %v13416_v26, 16  ;;  %v9619_v44 = vor.u32 %v11100_v47, %v9616_v51 }
 0x4a9   : > { %v13477_v62 = vadd.f32 %v7603_v5, %v7515_v27  ;;  %4090 = vst [vmem:[#allocation4 + $0x350] sm:$0xff] %v3806_v40  ;;  %v3823_v5 = vrot.slane %v3821_v56, 4  ;;  %v3845_v27 = vshrl.u32 %v13424_v61, 16  ;;  %v3829_v43 = vrot.slane %v3827_v13, 5  ;;  %v9622_v13 = vld [vmem:[#allocation4 + $0x2e8] sm:$0xf] }
 0x4aa   : > { %v7338_v45 = vpop.f32.mrf.mxu2  ;;  %v7427_v52 = vpop.f32.mrf.mxu3  ;;  %v3820_v56 = vsel %vm12934_vm5, %v3815_v36, %v3819_v41  ;;  %v3837_v15 = vrot.slane %v3835_v4, 5  ;;  %v3851_v26 = vshll.u32 %v3638_v25, 16  ;;  %v3843_v50 = vrot.slane %v3841_v59, 5  ;;  %v11101_v4 = vld [vmem:[#allocation4 + $0x2ec] sm:$0xf] }
 0x4ab   : > { %v7339_v48 = vadd.f32 %v13421_v33, %v7338_v45  ;;  %v3824_v3 = vor.u32 %v3823_v5, %v3819_v41  ;;  %v13495_v45 = vld [vmem:[#allocation3 + $0x120] sm:$0xff]  ;;  %4091 = vst [vmem:[#allocation4 + $0x398] sm:$0xff] %v3820_v56  ;;  %v3856_v51 = vshrl.u32 %v13436_v29, 16  ;;  %v3859_v34 = vshll.u32 %v13436_v29, 16 }
 0x4ac   : > { %v3838_v32 = vor.u32 %v3837_v15, %v3834_v8  ;;  %v3865_v47 = vshll.u32 %v13451_v6, 16  ;;  %3606 = vst [vmem:[#allocation4 + $0x6a8] sm:$0xff] %v13495_v45  ;;  %v9624_v59 = vld [vmem:[#allocation4 + $0x330] sm:$0xf0]  ;;  %v13511_v15 = vld [vmem:[#allocation3 + $0xb8] sm:$0xff] }
 0x4ad   : > { %v7428_v7 = vadd.f32 %v7427_v52, %v7339_v48  ;;  %v7516_v9 = vpop.f32.mrf.mxu0  ;;  %v7605_v1 = vpop.f32.mrf.mxu1  ;;  %v3825_v61 = vrot.slane %v3824_v3, 4  ;;  %v3847_v52 = vrot.slane %v3845_v27, 4  ;;  %v11110_v48 = vld [vmem:[#allocation4 + $0x32c] sm:$0xf0]  ;;  %v3858_v56 = vrot.slane %v3856_v51, 4  ;;  %3608 = vst [vmem:[#allocation4 + $0x738] sm:$0xff] %v13511_v15 }
 0x4ae   : > { %v3839_v29 = vrot.slane %v3838_v32, 4  ;;  %v3880_v51 = vshrl.u32 %v13453_v18, 16 }
 0x4af   : > { %v7517_v40 = vadd.f32 %v7516_v9, %v7428_v7  ;;  %7656 = vmatmul.bf16.gmra.mxu2 %v9615_v23  ;;  %7745 = vmatmul.bf16.gmra.mxu3 %v9619_v44  ;;  %v3830_v5 = vsel %vm12934_vm5, %v3825_v61, %v3829_v43  ;;  %v3848_v25 = vor.u32 %v3847_v52, %v3843_v50  ;;  %v3853_v9 = vrot.slane %v3851_v26, 5  ;;  %v13507_v23 = vld [vmem:[#allocation3 + $0xf0] sm:$0xff] }
 0x4b0   : > { %4092 = vst [vmem:[#allocation4 + $0x3e0] sm:$0xff] %v3830_v5  ;;  %v9623_v44 = vor.u32 %v11110_v48, %v9622_v13  ;;  %v3844_v3 = vsel %vm12934_vm5, %v3839_v29, %v3843_v50  ;;  %v3861_v43 = vrot.slane %v3859_v34, 5  ;;  %v3867_v26 = vrot.slane %v3865_v47, 5 }
 0x4b1   : > { %v13500_v41 = vadd.f32 %v7605_v1, %v7517_v40  ;;  %v3849_v7 = vrot.slane %v3848_v25, 4  ;;  %v3641_v1 = vld [vmem:[#allocation3 + $0x50] sm:$0x11]  ;;  %3607 = vst [vmem:[#allocation4 + $0x6f0] sm:$0xff] %v13507_v23  ;;  %v3869_v5 = vshrl.u32 %v13451_v6, 16  ;;  %v9627_v13 = vor.u32 %v11101_v4, %v9624_v59 }
 0x4b2   : > { %v7341_v36 = vpop.f32.mrf.mxu2  ;;  %v7430_v8 = vpop.f32.mrf.mxu3  ;;  %4093 = vst [vmem:[#allocation4 + $0x428] sm:$0xff] %v3844_v3  ;;  %v3862_v48 = vor.u32 %v3861_v43, %v3858_v56  ;;  %v3875_v50 = vshll.u32 %v3641_v1, 16  ;;  %v3889_v47 = vshll.u32 %v13463_v38, 16  ;;  %v3893_v6 = vshrl.u32 %v13463_v38, 16  ;;  %v11127_v59 = vld [vmem:[#allocation4 + $0x3b4] sm:$0xf0] }
 0x4b3   : > { %14229 = vst [vmem:[#allocation15_spill] sm:$0xff] %v13500_v41  ;;  %v7342_v27 = vadd.f32 %v13421_v33, %v7341_v36  ;;  %v3854_v32 = vsel %vm12934_vm5, %v3849_v7, %v3853_v9  ;;  %v3871_v25 = vrot.slane %v3869_v5, 4  ;;  %v3644_v36 = vld [vmem:[#allocation3 + $0x78] sm:$0x11]  ;;  %v9688_v7 = vld [vmem:[#allocation4 + $0x3b8] sm:$0xf0] }
 0x4b4   : > { %4094 = vst [vmem:[#allocation4 + $0x470] sm:$0xff] %v3854_v32  ;;  %v3863_v29 = vrot.slane %v3862_v48, 4  ;;  %v9686_v43 = vld [vmem:[#allocation4 + $0x370] sm:$0xf]  ;;  %v13526_v32 = vld [vmem:[#allocation3 + $0x170] sm:$0xff]  ;;  %v3895_v48 = vrot.slane %v3893_v6, 4 }
 0x4b5   : > { %v7431_v40 = vadd.f32 %v7430_v8, %v7342_v27  ;;  %v7519_v61 = vpop.f32.mrf.mxu0  ;;  %v7608_v52 = vpop.f32.mrf.mxu1  ;;  %v3883_v8 = vshll.u32 %v13453_v18, 16  ;;  %v3882_v27 = vrot.slane %v3880_v51, 4  ;;  %v3872_v9 = vor.u32 %v3871_v25, %v3867_v26  ;;  %v11118_v38 = vld [vmem:[#allocation4 + $0x374] sm:$0xf]  ;;  %3609 = vst [vmem:[#allocation4 + $0x780] sm:$0xff] %v13526_v32 }
 0x4b6   : > { %v3868_v18 = vsel %vm12934_vm5, %v3863_v29, %v3867_v26  ;;  %v9687_v51 = vor.u32 %v11127_v59, %v9686_v43  ;;  %v3904_v25 = vshrl.u32 %v13468_v49, 16  ;;  %v11119_v43 = vld [vmem:[#allocation4 + $0x37c] sm:$0xf] }
 0x4b7   : > { %v7520_v34 = vadd.f32 %v7519_v61, %v7431_v40  ;;  %v3885_v1 = vrot.slane %v3883_v8, 5  ;;  %v3891_v40 = vrot.slane %v3889_v47, 5  ;;  %v3899_v61 = vshll.u32 %v3644_v36, 16  ;;  %4095 = vst [vmem:[#allocation4 + $0x4b8] sm:$0xff] %v3868_v18 }
 0x4b8   : > { %7834 = vmatmul.bf16.gmra.mxu0 %v9623_v44  ;;  %7923 = vmatmul.bf16.gmra.mxu1 %v9627_v13  ;;  %v3877_v44 = vrot.slane %v3875_v50, 5  ;;  %v3906_v47 = vrot.slane %v3904_v25, 4  ;;  %v9696_v25 = vld [vmem:[#allocation4 + $0x3c0] sm:$0xf0] }
 0x4b9   : > { %v13522_v4 = vadd.f32 %v7608_v52, %v7520_v34  ;;  %v3873_v52 = vrot.slane %v3872_v9, 4  ;;  %v3886_v13 = vor.u32 %v3885_v1, %v3882_v27  ;;  %v9691_v34 = vor.u32 %v11118_v38, %v9688_v7  ;;  %v3647_v9 = vld [vmem:[#allocation3 + $0x168] sm:$0x11] }
 0x4ba   : > { %v7343_v3 = vpop.f32.mrf.mxu2  ;;  %v7432_v56 = vpop.f32.mrf.mxu3  ;;  %v3896_v36 = vor.u32 %v3895_v48, %v3891_v40  ;;  %v3901_v29 = vrot.slane %v3899_v61, 5  ;;  %v3907_v27 = vshll.u32 %v13468_v49, 16  ;;  %v3913_v1 = vshll.u32 %v13484_v35, 16  ;;  %v13539_v49 = vld [vmem:[#allocation3 + $0x178] sm:$0xff]  ;;  %v11371_v38 = vld [vmem:[#allocation5 + $0x258] sm:$0xff] }
 0x4bb   : > { %14230 = vst [vmem:[#allocation16_spill] sm:$0xff] %v13522_v4  ;;  %v7344_v5 = vadd.f32 %v13421_v33, %v7343_v3  ;;  %v3878_v26 = vsel %vm12934_vm5, %v3873_v52, %v3877_v44  ;;  %v3887_v50 = vrot.slane %v3886_v13, 4  ;;  %v9694_v3 = vld [vmem:[#allocation4 + $0x378] sm:$0xf]  ;;  %v3917_v44 = vshrl.u32 %v13484_v35, 16  ;;  %v13546_v48 = vld [vmem:[#allocation3 + $0x98] sm:$0xff]  ;;  %8072 = vmatpush.bf16.msrb.mxu3 %v11371_v38 }
 0x4bc   : > { %4096 = vst [vmem:[#allocation4 + $0x500] sm:$0xff] %v3878_v26  ;;  %v3897_v7 = vrot.slane %v3896_v36, 4  ;;  %v3909_v18 = vrot.slane %v3907_v27, 5  ;;  %v3928_v61 = vshrl.u32 %v13491_v22, 16  ;;  %v3915_v52 = vrot.slane %v3913_v1, 5 }
 0x4bd   : > { %v7433_v8 = vadd.f32 %v7432_v56, %v7344_v5  ;;  %v7521_v4 = vpop.f32.mrf.mxu0  ;;  %v7610_v41 = vpop.f32.mrf.mxu1  ;;  %v3892_v59 = vsel %vm12934_vm5, %v3887_v50, %v3891_v40  ;;  %v11128_v56 = vld [vmem:[#allocation4 + $0x3bc] sm:$0xf0]  ;;  %v11363_v5 = vld [vmem:[#allocation5 + $0x218] sm:$0xff]  ;;  %v3931_v13 = vshll.u32 %v13491_v22, 16  ;;  %v3923_v26 = vshll.u32 %v3647_v9, 16  ;;  %3610 = vst [vmem:[#allocation4 + $0x7c8] sm:$0xff] %v13539_v49 }
 0x4be   : > { %4097 = vst [vmem:[#allocation4 + $0x548] sm:$0xff] %v3892_v59  ;;  %v3902_v40 = vsel %vm12934_vm5, %v3897_v7, %v3901_v29  ;;  %v3910_v35 = vor.u32 %v3909_v18, %v3906_v47  ;;  %7983 = vmatpush.bf16.msrb.mxu2 %v11363_v5  ;;  %v3930_v50 = vrot.slane %v3928_v61, 4  ;;  %v13550_v29 = vld [vmem:[#allocation3 + $0x128] sm:$0xff]  ;;  %v3941_v59 = vshrl.u32 %v13495_v45, 16 }
 0x4bf   : > { %v7522_v6 = vadd.f32 %v7521_v4, %v7433_v8  ;;  %7661 = vmatmul.bf16.gmra.mxu2 %v9687_v51  ;;  %7750 = vmatmul.bf16.gmra.mxu3 %v9691_v34  ;;  %4098 = vst [vmem:[#allocation4 + $0x590] sm:$0xff] %v3902_v40  ;;  %v3919_v8 = vrot.slane %v3917_v44, 4  ;;  %v3933_v36 = vrot.slane %v3931_v13, 5  ;;  %v9695_v1 = vor.u32 %v11128_v56, %v9694_v3  ;;  %v3650_v44 = vld [vmem:[#allocation3 + $0xe0] sm:$0x11] }
 0x4c0   : > { %v3911_v22 = vrot.slane %v3910_v35, 4  ;;  %3611 = vst [vmem:[#allocation4 + $0x810] sm:$0xff] %v13546_v48  ;;  %v9699_v18 = vor.u32 %v11119_v43, %v9696_v25  ;;  %v3925_v40 = vrot.slane %v3923_v26, 5  ;;  %v3952_v13 = vshrl.u32 %v13507_v23, 16  ;;  %v9760_v35 = vld [vmem:[#allocation4 + $0x448] sm:$0xf0] }
 0x4c1   : > { %v13541_v4 = vadd.f32 %v7610_v41, %v7522_v6  ;;  %v3920_v27 = vor.u32 %v3919_v8, %v3915_v52  ;;  %v3937_v6 = vshll.u32 %v13495_v45, 16  ;;  %v3934_v61 = vor.u32 %v3933_v36, %v3930_v50  ;;  %3612 = vst [vmem:[#allocation4 + $0x858] sm:$0xff] %v13550_v29  ;;  %v11136_v50 = vld [vmem:[#allocation4 + $0x404] sm:$0xf] }
 0x4c2   : > { %v7346_v51 = vpop.f32.mrf.mxu2  ;;  %v7435_v34 = vpop.f32.mrf.mxu3  ;;  %v3916_v5 = vsel %vm12934_vm5, %v3911_v22, %v3915_v52  ;;  %v3943_v43 = vrot.slane %v3941_v59, 4  ;;  %v11145_v52 = vld [vmem:[#allocation4 + $0x444] sm:$0xf0]  ;;  %v3955_v59 = vshll.u32 %v13507_v23, 16  ;;  %v3976_v23 = vshrl.u32 %v13526_v32, 16 }
 0x4c3   : > { %v7347_v41 = vadd.f32 %v13421_v33, %v7346_v51  ;;  %v3921_v38 = vrot.slane %v3920_v27, 4  ;;  %4099 = vst [vmem:[#allocation4 + $0x5d8] sm:$0xff] %v3916_v5  ;;  %v3935_v45 = vrot.slane %v3934_v61, 4  ;;  %v3939_v56 = vrot.slane %v3937_v6, 5  ;;  %v3653_v6 = vld [vmem:[#allocation3 + $0x158] sm:$0x11] }
 0x4c4   : > { %v3954_v27 = vrot.slane %v3952_v13, 4 }
 0x4c5   : > { %v7436_v47 = vadd.f32 %v7435_v34, %v7347_v41  ;;  %v7524_v7 = vpop.f32.mrf.mxu0  ;;  %v7613_v9 = vpop.f32.mrf.mxu1  ;;  %v3926_v3 = vsel %vm12934_vm5, %v3921_v38, %v3925_v40  ;;  %v3947_v34 = vshll.u32 %v3650_v44, 16  ;;  %v9758_v41 = vld [vmem:[#allocation4 + $0x400] sm:$0xf]  ;;  %v3940_v36 = vsel %vm12934_vm5, %v3935_v45, %v3939_v56 }
 0x4c6   : > { %4100 = vst [vmem:[#allocation4 + $0x620] sm:$0xff] %v3926_v3  ;;  %v3944_v22 = vor.u32 %v3943_v43, %v3939_v56  ;;  %v3971_v56 = vshll.u32 %v3653_v6, 16 }
 0x4c7   : > { %v7525_v51 = vadd.f32 %v7524_v7, %v7436_v47  ;;  %4101 = vst [vmem:[#allocation4 + $0x668] sm:$0xff] %v3940_v36  ;;  %v3961_v7 = vshll.u32 %v13511_v15, 16  ;;  %v3949_v61 = vrot.slane %v3947_v34, 5  ;;  %v3979_v34 = vshll.u32 %v13526_v32, 16 }
 0x4c8   : > { %7839 = vmatmul.bf16.gmra.mxu0 %v9695_v1  ;;  %7928 = vmatmul.bf16.gmra.mxu1 %v9699_v18  ;;  %v9759_v1 = vor.u32 %v11145_v52, %v9758_v41  ;;  %v9763_v18 = vor.u32 %v11136_v50, %v9760_v35  ;;  %v3945_v44 = vrot.slane %v3944_v22, 4  ;;  %v3978_v35 = vrot.slane %v3976_v23, 4  ;;  %v3656_v50 = vld [vmem:[#allocation3 + $0x58] sm:$0x11] }
 0x4c9   : > { %v13561_v25 = vadd.f32 %v7613_v9, %v7525_v51  ;;  %v3965_v9 = vshrl.u32 %v13511_v15, 16  ;;  %v3957_v51 = vrot.slane %v3955_v59, 5  ;;  %v3963_v45 = vrot.slane %v3961_v7, 5 }
 0x4ca   : > { %v7348_v8 = vpop.f32.mrf.mxu2  ;;  %v7437_v26 = vpop.f32.mrf.mxu3  ;;  %v3950_v3 = vsel %vm12934_vm5, %v3945_v44, %v3949_v61  ;;  %v3973_v59 = vrot.slane %v3971_v56, 5  ;;  %v3981_v7 = vrot.slane %v3979_v34, 5  ;;  %v3985_v32 = vshll.u32 %v13539_v49, 16 }
 0x4cb   : > { %v7349_v47 = vadd.f32 %v13421_v33, %v7348_v8  ;;  %v3967_v13 = vrot.slane %v3965_v9, 4  ;;  %4102 = vst [vmem:[#allocation4 + $0x6b0] sm:$0xff] %v3950_v3  ;;  %v3958_v15 = vor.u32 %v3957_v51, %v3954_v27  ;;  %v3989_v44 = vshrl.u32 %v13539_v49, 16 }
 0x4cc   : > { %v3987_v56 = vrot.slane %v3985_v32, 5  ;;  %v9832_v32 = vld [vmem:[#allocation4 + $0x4d8] sm:$0xf0] }
 0x4cd   : > { %v7438_v5 = vadd.f32 %v7437_v26, %v7349_v47  ;;  %v7526_v38 = vpop.f32.mrf.mxu0  ;;  %v7615_v40 = vpop.f32.mrf.mxu1  ;;  %v3968_v52 = vor.u32 %v3967_v13, %v3963_v45  ;;  %v9766_v26 = vld [vmem:[#allocation4 + $0x408] sm:$0xf]  ;;  %v3959_v41 = vrot.slane %v3958_v15, 4  ;;  %v11137_v47 = vld [vmem:[#allocation4 + $0x40c] sm:$0xf]  ;;  %v3991_v23 = vrot.slane %v3989_v44, 4 }
 0x4cf   : > { %v7527_v43 = vadd.f32 %v7526_v38, %v7438_v5  ;;  %7666 = vmatmul.bf16.gmra.mxu2 %v9759_v1  ;;  %7755 = vmatmul.bf16.gmra.mxu3 %v9763_v18  ;;  %v3969_v6 = vrot.slane %v3968_v52, 4  ;;  %v11146_v1 = vld [vmem:[#allocation4 + $0x44c] sm:$0xf0]  ;;  %v9768_v18 = vld [vmem:[#allocation4 + $0x450] sm:$0xf0]  ;;  %v3964_v27 = vsel %vm12934_vm5, %v3959_v41, %v3963_v45  ;;  %v3982_v5 = vor.u32 %v3981_v7, %v3978_v35 }
 0x4d0   : > { %4103 = vst [vmem:[#allocation4 + $0x6f8] sm:$0xff] %v3964_v27  ;;  %v3995_v38 = vshll.u32 %v3656_v50, 16  ;;  %v4003_v45 = vshll.u32 %v13546_v48, 16  ;;  %v9771_v15 = vor.u32 %v11137_v47, %v9768_v18  ;;  %v3992_v34 = vor.u32 %v3991_v23, %v3987_v56  ;;  %v4111_v41 = vld [vmem:[#allocation3 + $0xf8] sm:$0xee] }
 0x4d1   : > { %v13573_v8 = vadd.f32 %v7615_v40, %v7527_v43  ;;  %v3974_v61 = vsel %vm12934_vm5, %v3969_v6, %v3973_v59  ;;  %v4000_v40 = vshrl.u32 %v13546_v48, 16  ;;  %v9767_v43 = vor.u32 %v11146_v1, %v9766_v26  ;;  %v3659_v50 = vld [vmem:[#allocation3 + $0x140] sm:$0x11]  ;;  %v11163_v48 = vld [vmem:[#allocation4 + $0x4d4] sm:$0xf0] }
 0x4d2   : > { %v7351_v36 = vpop.f32.mrf.mxu2  ;;  %v7440_v22 = vpop.f32.mrf.mxu3  ;;  %4104 = vst [vmem:[#allocation4 + $0x740] sm:$0xff] %v3974_v61  ;;  %v3983_v52 = vrot.slane %v3982_v5, 4  ;;  %v4005_v6 = vrot.slane %v4003_v45, 5  ;;  %v4009_v59 = vshll.u32 %v13550_v29, 16  ;;  %v3993_v26 = vrot.slane %v3992_v34, 4 }
 0x4d3   : > { %v7352_v9 = vadd.f32 %v13421_v33, %v7351_v36  ;;  %v4112_v36 = vld [vmem:[#allocation3 + $0xe8] sm:$0xff]  ;;  %v3997_v47 = vrot.slane %v3995_v38, 5  ;;  %v9830_v27 = vld [vmem:[#allocation4 + $0x490] sm:$0xf]  ;;  %v9220_v5 = vrot.slane %v4111_v41, 9 }
 0x4d4   : > { %v3988_v35 = vsel %vm12934_vm5, %v3983_v52, %v3987_v56  ;;  %v4011_v61 = vrot.slane %v4009_v59, 5  ;;  %v4019_v56 = vshll.u32 %v3659_v50, 16  ;;  %v4113_v23 = vld [vmem:[#allocation3 + $0xd0] sm:$0x11]  ;;  %v4114_v38 = vld [vmem:[#allocation3 + $0x130] sm:$0xee]  ;;  %v9831_v41 = vor.u32 %v11163_v48, %v9830_v27 }
 0x4d5   : > { %v7441_v51 = vadd.f32 %v7440_v22, %v7352_v9  ;;  %v7529_v13 = vpop.f32.mrf.mxu0  ;;  %v7618_v3 = vpop.f32.mrf.mxu1  ;;  %v4002_v22 = vrot.slane %v4000_v40, 4  ;;  %4105 = vst [vmem:[#allocation4 + $0x788] sm:$0xff] %v3988_v35  ;;  %v4013_v9 = vshrl.u32 %v13550_v29, 16  ;;  %v11154_v45 = vld [vmem:[#allocation4 + $0x494] sm:$0xf] }
 0x4d6   : > { %v4116_v35 = vld [vmem:[#allocation3 + $0x108] sm:$0x11]  ;;  %v4120_v27 = vld [vmem:[#allocation3 + $0x138] sm:$0xee] }
 0x4d7   : > { %v7530_v49 = vadd.f32 %v7529_v13, %v7441_v51  ;;  %v4006_v44 = vor.u32 %v4005_v6, %v4002_v22  ;;  %v4209_v51 = vrot.slane %v4112_v36, 5  ;;  %v3998_v13 = vsel %vm12934_vm5, %v3993_v26, %v3997_v47  ;;  %v4117_v22 = vld [vmem:[#allocation3 + $0x148] sm:$0xee]  ;;  %v4118_v6 = vld [vmem:[#allocation3 + $0x18] sm:$0xff] }
 0x4d8   : > { %7844 = vmatmul.bf16.gmra.mxu0 %v9767_v43  ;;  %7933 = vmatmul.bf16.gmra.mxu1 %v9771_v15  ;;  %4106 = vst [vmem:[#allocation4 + $0x7d0] sm:$0xff] %v3998_v13  ;;  %v4115_v15 = vld [vmem:[#allocation3 + $0x80] sm:$0xff]  ;;  %v9835_v36 = vor.u32 %v11154_v45, %v9832_v32  ;;  %v4212_v26 = vrot.slane %v4113_v23, 5  ;;  %v9221_v47 = vrot.slane %v4114_v38, 9  ;;  %v4223_v13 = vrot.slane %v4118_v6, 5 }
 0x4d9   : > { %v13587_v7 = vadd.f32 %v7618_v3, %v7530_v49  ;;  %v4015_v3 = vrot.slane %v4013_v9, 4  ;;  %v4007_v29 = vrot.slane %v4006_v44, 4  ;;  %v4210_v43 = vsel %vm13040_vm4, %v9220_v5, %v4209_v51  ;;  %v4119_v9 = vld [vmem:[#allocation3 + $0x180] sm:$0x11]  ;;  %v11164_v23 = vld [vmem:[#allocation4 + $0x4dc] sm:$0xf0] }
 0x4da   : > { %v7353_v1 = vpop.f32.mrf.mxu2  ;;  %v7442_v18 = vpop.f32.mrf.mxu3  ;;  %4351 = vst [vmem:[#allocation4 + $0x40] sm:$0xff] %v4210_v43  ;;  %v4211_v59 = vrot.slane %v4209_v51, 4  ;;  %v4021_v44 = vrot.slane %v4019_v56, 5  ;;  %v4216_v48 = vrot.slane %v4115_v15, 5  ;;  %v4219_v5 = vrot.slane %v4116_v35, 5  ;;  %v11362_v45 = vld [vmem:[#allocation5 + $0x210] sm:$0xff] }
 0x4db   : > { %v7354_v40 = vadd.f32 %v13421_v33, %v7353_v1  ;;  %v4016_v33 = vor.u32 %v4015_v3, %v4011_v61  ;;  %v4012_v50 = vsel %vm12934_vm5, %v4007_v29, %v4011_v61  ;;  %v4121_v3 = vld [vmem:[#allocation3 + $0x100] sm:$0xff]  ;;  %v9838_v51 = vld [vmem:[#allocation4 + $0x498] sm:$0xf]  ;;  %v11155_v38 = vld [vmem:[#allocation4 + $0x49c] sm:$0xf]  ;;  %v9223_v35 = vrot.slane %v4120_v27, 9  ;;  %7984 = vmatpush.bf16.msrb.mxu2 %v11362_v45 }
 0x4dc   : > { %4107 = vst [vmem:[#allocation4 + $0x818] sm:$0xff] %v4012_v50  ;;  %v4213_v32 = vsel %vm13040_vm4, %v4211_v59, %v4212_v26  ;;  %v11370_v29 = vld [vmem:[#allocation5 + $0x250] sm:$0xff]  ;;  %v4217_v43 = vsel %vm13040_vm4, %v9221_v47, %v4216_v48  ;;  %v4218_v15 = vrot.slane %v4216_v48, 4  ;;  %v9840_v50 = vld [vmem:[#allocation4 + $0x4e0] sm:$0xf0]  ;;  %v4230_v26 = vrot.slane %v4121_v3, 5 }
 0x4dd   : > { %v7443_v52 = vadd.f32 %v7442_v18, %v7354_v40  ;;  %v7531_v49 = vpop.f32.mrf.mxu0  ;;  %v7620_v34 = vpop.f32.mrf.mxu1  ;;  %v4017_v18 = vrot.slane %v4016_v33, 4  ;;  %v9222_v40 = vrot.slane %v4117_v22, 9  ;;  %4352 = vst [vmem:[#allocation4 + $0x88] sm:$0xff] %v4213_v32  ;;  %v4226_v33 = vrot.slane %v4119_v9, 5  ;;  %v4123_v22 = vld [vmem:[#allocation3 + $0x160] sm:$0xee]  ;;  %8073 = vmatpush.bf16.msrb.mxu3 %v11370_v29 }
 0x4de   : > { %v4220_v59 = vsel %vm13040_vm4, %v4218_v15, %v4219_v5  ;;  %4353 = vst [vmem:[#allocation4 + $0xd0] sm:$0xff] %v4217_v43  ;;  %v4124_v47 = vld [vmem:[#allocation3 + $0x198] sm:$0xff]  ;;  %v4232_v32 = vrot.slane %v4230_v26, 4  ;;  %v9839_v5 = vor.u32 %v11164_v23, %v9838_v51  ;;  %v9843_v45 = vor.u32 %v11155_v38, %v9840_v50  ;;  %v4127_v29 = vld [vmem:[#allocation3 + $0x8] sm:$0xff]  ;;  %v9902_v23 = vld [vmem:[#allocation4 + $0x520] sm:$0xf] }
 0x4df   : > { %v7532_v1 = vadd.f32 %v7531_v49, %v7443_v52  ;;  %7671 = vmatmul.bf16.gmra.mxu2 %v9831_v41  ;;  %7760 = vmatmul.bf16.gmra.mxu3 %v9835_v36  ;;  %v4022_v56 = vsel %vm12934_vm5, %v4017_v18, %v4021_v44  ;;  %v4122_v52 = vld [vmem:[#allocation3 + $0x1a8] sm:$0x11]  ;;  %v4225_v36 = vrot.slane %v4223_v13, 4  ;;  %4354 = vst [vmem:[#allocation4 + $0x118] sm:$0xff] %v4220_v59  ;;  %v4126_v44 = vld [vmem:[#allocation3 + $0x68] sm:$0xee] }
 0x4e0   : > { %4108 = vst [vmem:[#allocation4 + $0x860] sm:$0xff] %v4022_v56  ;;  %v4233_v18 = vrot.slane %v4122_v52, 5  ;;  %v4237_v3 = vrot.slane %v4124_v47, 5  ;;  %v9225_v15 = vrot.slane %v4126_v44, 9  ;;  %v11181_v38 = vld [vmem:[#allocation4 + $0x564] sm:$0xf0] }
 0x4e1   : > { %v13599_v61 = vadd.f32 %v7620_v34, %v7532_v1  ;;  %v4224_v34 = vsel %vm13040_vm4, %v9222_v40, %v4223_v13  ;;  %v4227_v1 = vsel %vm13040_vm4, %v4225_v36, %v4226_v33  ;;  %v4125_v40 = vld [vmem:[#allocation3] sm:$0x11]  ;;  %v9224_v13 = vrot.slane %v4123_v22, 9  ;;  %v4129_v33 = vld [vmem:[#allocation3 + $0x118] sm:$0xee]  ;;  %v4130_v59 = vld [vmem:[#allocation3 + $0xa8] sm:$0xff] }
 0x4e2   : > { %v7632_v49 = vpop.f32.mrf.mxu2  ;;  %v7721_v41 = vpop.f32.mrf.mxu3  ;;  %4355 = vst [vmem:[#allocation4 + $0x160] sm:$0xff] %v4224_v34  ;;  %v4234_v43 = vsel %vm13040_vm4, %v4232_v32, %v4233_v18  ;;  %v4128_v34 = vld [vmem:[#allocation3 + $0xc8] sm:$0x11]  ;;  %v4244_v36 = vrot.slane %v4127_v29, 5  ;;  %v4133_v32 = vld [vmem:[#allocation3 + $0xd8] sm:$0xff] }
 0x4e3   : > { %v7633_v6 = vadd.f32 %v7632_v49, %v13100_v20  ;;  %v4231_v20 = vsel %vm13040_vm4, %v9223_v35, %v4230_v26  ;;  %4356 = vst [vmem:[#allocation4 + $0x1a8] sm:$0xff] %v4227_v1  ;;  %v4238_v52 = vsel %vm13040_vm4, %v9224_v13, %v4237_v3  ;;  %v4239_v49 = vrot.slane %v4237_v3, 4  ;;  %v4131_v26 = vld [vmem:[#allocation3 + $0x40] sm:$0x11]  ;;  %v4134_v29 = vld [vmem:[#allocation3 + $0x188] sm:$0x11] }
 0x4e4   : > { %4357 = vst [vmem:[#allocation4 + $0x1f0] sm:$0xff] %v4231_v20  ;;  %v4245_v1 = vsel %vm13040_vm4, %v9225_v15, %v4244_v36  ;;  %v4246_v18 = vrot.slane %v4244_v36, 4  ;;  %v4247_v44 = vrot.slane %v4128_v34, 5  ;;  %v9226_v20 = vrot.slane %v4129_v33, 9  ;;  %v4135_v34 = vld [vmem:[#allocation3 + $0xa0] sm:$0xee] }
 0x4e5   : > { %v7722_v9 = vadd.f32 %v7721_v41, %v7633_v6  ;;  %v7810_v48 = vpop.f32.mrf.mxu0  ;;  %v7899_v27 = vpop.f32.mrf.mxu1  ;;  %4358 = vst [vmem:[#allocation4 + $0x238] sm:$0xff] %v4234_v43  ;;  %v4240_v41 = vrot.slane %v4125_v40, 5  ;;  %v9904_v6 = vld [vmem:[#allocation4 + $0x568] sm:$0xf0]  ;;  %v4261_v36 = vrot.slane %v4134_v29, 5 }
 0x4e6   : > { %4359 = vst [vmem:[#allocation4 + $0x280] sm:$0xff] %v4238_v52  ;;  %v4248_v3 = vsel %vm13040_vm4, %v4246_v18, %v4247_v44  ;;  %v11182_v18 = vld [vmem:[#allocation4 + $0x56c] sm:$0xf0]  ;;  %v9912_v44 = vld [vmem:[#allocation4 + $0x570] sm:$0xf0] }
 0x4e7   : > { %v7811_v56 = vadd.f32 %v7810_v48, %v7722_v9  ;;  %v4241_v50 = vsel %vm13040_vm4, %v4239_v49, %v4240_v41  ;;  %v4132_v9 = vld [vmem:[#allocation3 + $0x90] sm:$0xee]  ;;  %v9903_v48 = vor.u32 %v11181_v38, %v9902_v23  ;;  %4361 = vst [vmem:[#allocation4 + $0x310] sm:$0xff] %v4245_v1  ;;  %v4258_v41 = vrot.slane %v4133_v32, 5  ;;  %v9910_v23 = vld [vmem:[#allocation4 + $0x528] sm:$0xf] }
 0x4e8   : > { %7849 = vmatmul.bf16.gmra.mxu0 %v9839_v5  ;;  %7938 = vmatmul.bf16.gmra.mxu1 %v9843_v45  ;;  %4360 = vst [vmem:[#allocation4 + $0x2c8] sm:$0xff] %v4241_v50  ;;  %v9227_v43 = vrot.slane %v4132_v9, 9  ;;  %v11173_v38 = vld [vmem:[#allocation4 + $0x52c] sm:$0xf]  ;;  %v4136_v50 = vld [vmem:[#allocation3 + $0xc0] sm:$0xff]  ;;  %v9228_v9 = vrot.slane %v4135_v34, 9 }
 0x4e9   : > { %v13618_v51 = vadd.f32 %v7899_v27, %v7811_v56  ;;  %v11172_v27 = vld [vmem:[#allocation4 + $0x524] sm:$0xf]  ;;  %4362 = vst [vmem:[#allocation4 + $0x358] sm:$0xff] %v4248_v3  ;;  %v4254_v56 = vrot.slane %v4131_v26, 5  ;;  %v4141_v32 = vld [vmem:[#allocation3 + $0x20] sm:$0xee] }
 0x4ea   : > { %v7634_v35 = vpop.f32.mrf.mxu2  ;;  %v7723_v22 = vpop.f32.mrf.mxu3  ;;  %v9907_v45 = vor.u32 %v11172_v27, %v9904_v6  ;;  %v4260_v6 = vrot.slane %v4258_v41, 4  ;;  %v4139_v26 = vld [vmem:[#allocation3 + $0x30] sm:$0xff]  ;;  %v9230_v34 = vrot.slane %v4141_v32, 9 }
 0x4eb   : > { %v7635_v47 = vadd.f32 %v7634_v35, %v13111_v39  ;;  %v4251_v39 = vrot.slane %v4130_v59, 5  ;;  %v4138_v59 = vld [vmem:[#allocation3 + $0x110] sm:$0xee] }
 0x4ec   : > { %v4262_v27 = vsel %vm13040_vm4, %v4260_v6, %v4261_v36  ;;  %v4145_v36 = vld [vmem:[#allocation3 + $0x120] sm:$0xff] }
 0x4ed   : > { %v7724_v40 = vadd.f32 %v7723_v22, %v7635_v47  ;;  %v7812_v13 = vpop.f32.mrf.mxu0  ;;  %v7901_v5 = vpop.f32.mrf.mxu1  ;;  %v4252_v52 = vsel %vm13040_vm4, %v9226_v20, %v4251_v39  ;;  %v4253_v49 = vrot.slane %v4251_v39, 4  ;;  %v4259_v22 = vsel %vm13040_vm4, %v9227_v43, %v4258_v41  ;;  %v4137_v20 = vld [vmem:[#allocation3 + $0x50] sm:$0x11]  ;;  %4366 = vst [vmem:[#allocation4 + $0x478] sm:$0xff] %v4262_v27 }
 0x4ee   : > { %4363 = vst [vmem:[#allocation4 + $0x3a0] sm:$0xff] %v4252_v52  ;;  %v9915_v43 = vor.u32 %v11173_v38, %v9912_v44  ;;  %v4144_v52 = vld [vmem:[#allocation3 + $0x38] sm:$0xee]  ;;  %v4268_v41 = vrot.slane %v4137_v20, 5  ;;  %v9976_v44 = vld [vmem:[#allocation4 + $0x5f8] sm:$0xf0] }
 0x4ef   : > { %v7813_v15 = vadd.f32 %v7812_v13, %v7724_v40  ;;  %7676 = vmatmul.bf16.gmra.mxu2 %v9903_v48  ;;  %7765 = vmatmul.bf16.gmra.mxu3 %v9907_v45  ;;  %v4255_v35 = vsel %vm13040_vm4, %v4253_v49, %v4254_v56  ;;  %4365 = vst [vmem:[#allocation4 + $0x430] sm:$0xff] %v4259_v22  ;;  %v4265_v40 = vrot.slane %v4136_v50, 5  ;;  %v4140_v13 = vld [vmem:[#allocation3 + $0x78] sm:$0x11]  ;;  %v4272_v45 = vrot.slane %v4139_v26, 5 }
 0x4f0   : > { %4364 = vst [vmem:[#allocation4 + $0x3e8] sm:$0xff] %v4255_v35  ;;  %v9911_v56 = vor.u32 %v11182_v18, %v9910_v23  ;;  %v4275_v50 = vrot.slane %v4140_v13, 5  ;;  %v11199_v23 = vld [vmem:[#allocation4 + $0x5f4] sm:$0xf0]  ;;  %v9974_v18 = vld [vmem:[#allocation4 + $0x5b0] sm:$0xf] }
 0x4f1   : > { %v13629_v33 = vadd.f32 %v7901_v5, %v7813_v15  ;;  %v9229_v5 = vrot.slane %v4138_v59, 9  ;;  %v4142_v15 = vld [vmem:[#allocation3 + $0x1a0] sm:$0xff]  ;;  %v4267_v49 = vrot.slane %v4265_v40, 4  ;;  %v4274_v6 = vrot.slane %v4272_v45, 4  ;;  %v4143_v59 = vld [vmem:[#allocation3 + $0x168] sm:$0x11] }
 0x4f2   : > { %v7637_v47 = vpop.f32.mrf.mxu2  ;;  %v7726_v1 = vpop.f32.mrf.mxu3  ;;  %v4279_v26 = vrot.slane %v4142_v15, 5  ;;  %v4286_v27 = vrot.slane %v4145_v36, 5  ;;  %v4151_v15 = vld [vmem:[#allocation3 + $0x178] sm:$0xff] }
 0x4f3   : > { %v7638_v48 = vadd.f32 %v7637_v47, %v13119_v28  ;;  %v4266_v28 = vsel %vm13040_vm4, %v9228_v9, %v4265_v40  ;;  %v4273_v22 = vsel %vm13040_vm4, %v9229_v5, %v4272_v45  ;;  %v4269_v38 = vsel %vm13040_vm4, %v4267_v49, %v4268_v41  ;;  %v4147_v45 = vld [vmem:[#allocation3 + $0xf0] sm:$0xee] }
 0x4f4   : > { %4367 = vst [vmem:[#allocation4 + $0x4c0] sm:$0xff] %v4266_v28  ;;  %v9231_v47 = vrot.slane %v4144_v52, 9  ;;  %v4276_v9 = vsel %vm13040_vm4, %v4274_v6, %v4275_v50  ;;  %v4280_v40 = vsel %vm13040_vm4, %v9230_v34, %v4279_v26  ;;  %v4281_v13 = vrot.slane %v4279_v26, 4  ;;  %v11190_v28 = vld [vmem:[#allocation4 + $0x5b4] sm:$0xf] }
 0x4f5   : > { %v7727_v3 = vadd.f32 %v7726_v1, %v7638_v48  ;;  %v7815_v39 = vpop.f32.mrf.mxu0  ;;  %v7904_v29 = vpop.f32.mrf.mxu1  ;;  %4369 = vst [vmem:[#allocation4 + $0x550] sm:$0xff] %v4273_v22  ;;  %v4146_v48 = vld [vmem:[#allocation3 + $0xe0] sm:$0x11]  ;;  %v4282_v5 = vrot.slane %v4143_v59, 5  ;;  %v9975_v52 = vor.u32 %v11199_v23, %v9974_v18  ;;  %v4149_v34 = vld [vmem:[#allocation3 + $0x158] sm:$0x11]  ;;  %v9979_v6 = vor.u32 %v11190_v28, %v9976_v44 }
 0x4f6   : > { %4368 = vst [vmem:[#allocation4 + $0x508] sm:$0xff] %v4269_v38  ;;  %v4289_v41 = vrot.slane %v4146_v48, 5  ;;  %v4300_v26 = vrot.slane %v4151_v15, 5  ;;  %v4152_v48 = vld [vmem:[#allocation3 + $0x58] sm:$0x11] }
 0x4f7   : > { %v7816_v35 = vadd.f32 %v7815_v39, %v7727_v3  ;;  %4370 = vst [vmem:[#allocation4 + $0x598] sm:$0xff] %v4276_v9  ;;  %v4148_v3 = vld [vmem:[#allocation3 + $0xb8] sm:$0xff]  ;;  %v4283_v49 = vsel %vm13040_vm4, %v4281_v13, %v4282_v5  ;;  %v4296_v9 = vrot.slane %v4149_v34, 5  ;;  %v11191_v15 = vld [vmem:[#allocation4 + $0x5bc] sm:$0xf]  ;;  %v4303_v28 = vrot.slane %v4152_v48, 5 }
 0x4f8   : > { %7854 = vmatmul.bf16.gmra.mxu0 %v9911_v56  ;;  %7943 = vmatmul.bf16.gmra.mxu1 %v9915_v43  ;;  %4371 = vst [vmem:[#allocation4 + $0x5e0] sm:$0xff] %v4280_v40  ;;  %v4288_v56 = vrot.slane %v4286_v27, 4  ;;  %v4150_v43 = vld [vmem:[#allocation3 + $0x170] sm:$0xee]  ;;  %v4293_v50 = vrot.slane %v4148_v3, 5  ;;  %v11369_v40 = vld [vmem:[#allocation5 + $0x248] sm:$0xff] }
 0x4f9   : > { %v13644_v1 = vadd.f32 %v7904_v29, %v7816_v35  ;;  %v4287_v29 = vsel %vm13040_vm4, %v9231_v47, %v4286_v27  ;;  %4372 = vst [vmem:[#allocation4 + $0x628] sm:$0xff] %v4283_v49  ;;  %v9233_v38 = vrot.slane %v4150_v43, 9  ;;  %v4154_v27 = vld [vmem:[#allocation3 + $0x128] sm:$0xff]  ;;  %v4302_v5 = vrot.slane %v4300_v26, 4  ;;  %8074 = vmatpush.bf16.msrb.mxu3 %v11369_v40  ;;  %v4155_v49 = vld [vmem:[#allocation3 + $0x140] sm:$0x11] }
 0x4fa   : > { %v7639_v20 = vpop.f32.mrf.mxu2  ;;  %v7728_v32 = vpop.f32.mrf.mxu3  ;;  %4373 = vst [vmem:[#allocation4 + $0x670] sm:$0xff] %v4287_v29  ;;  %v4290_v59 = vsel %vm13040_vm4, %v4288_v56, %v4289_v41  ;;  %v4295_v18 = vrot.slane %v4293_v50, 4  ;;  %v9982_v29 = vld [vmem:[#allocation4 + $0x5b8] sm:$0xf]  ;;  %v11200_v56 = vld [vmem:[#allocation4 + $0x5fc] sm:$0xf0] }
 0x4fb   : > { %v7640_v39 = vadd.f32 %v7639_v20, %v13134_v10  ;;  %v9232_v10 = vrot.slane %v4147_v45, 9  ;;  %4374 = vst [vmem:[#allocation4 + $0x6b8] sm:$0xff] %v4290_v59  ;;  %v4301_v44 = vsel %vm13040_vm4, %v9233_v38, %v4300_v26  ;;  %v4153_v45 = vld [vmem:[#allocation3 + $0x98] sm:$0xee]  ;;  %v4307_v34 = vrot.slane %v4154_v27, 5 }
 0x4fc   : > { %v4297_v13 = vsel %vm13040_vm4, %v4295_v18, %v4296_v9  ;;  %4377 = vst [vmem:[#allocation4 + $0x790] sm:$0xff] %v4301_v44  ;;  %v9234_v41 = vrot.slane %v4153_v45, 9  ;;  %v4310_v26 = vrot.slane %v4155_v49, 5  ;;  %v11217_v48 = vld [vmem:[#allocation4 + $0x684] sm:$0xf0] }
 0x4fd   : > { %v7729_v36 = vadd.f32 %v7728_v32, %v7640_v39  ;;  %v7817_v35 = vpop.f32.mrf.mxu0  ;;  %v7906_v22 = vpop.f32.mrf.mxu1  ;;  %v4294_v47 = vsel %vm13040_vm4, %v9232_v10, %v4293_v50  ;;  %v11361_v32 = vld [vmem:[#allocation5 + $0x208] sm:$0xff]  ;;  %4376 = vst [vmem:[#allocation4 + $0x748] sm:$0xff] %v4297_v13  ;;  %v9983_v10 = vor.u32 %v11200_v56, %v9982_v29  ;;  %v4309_v59 = vrot.slane %v4307_v34, 4  ;;  %v11208_v40 = vld [vmem:[#allocation4 + $0x644] sm:$0xf] }
 0x4fe   : > { %4375 = vst [vmem:[#allocation4 + $0x700] sm:$0xff] %v4294_v47  ;;  %7985 = vmatpush.bf16.msrb.mxu2 %v11361_v32  ;;  %v10048_v44 = vld [vmem:[#allocation4 + $0x688] sm:$0xf0]  ;;  %v10046_v32 = vld [vmem:[#allocation4 + $0x640] sm:$0xf] }
 0x4ff   : > { %v7818_v23 = vadd.f32 %v7817_v35, %v7729_v36  ;;  %7681 = vmatmul.bf16.gmra.mxu2 %v9975_v52  ;;  %7770 = vmatmul.bf16.gmra.mxu3 %v9979_v6  ;;  %v9984_v52 = vld [vmem:[#allocation4 + $0x600] sm:$0xf0]  ;;  %v4304_v6 = vsel %vm13040_vm4, %v4302_v5, %v4303_v28  ;;  %v4311_v47 = vsel %vm13040_vm4, %v4309_v59, %v4310_v26  ;;  %v11218_v49 = vld [vmem:[#allocation4 + $0x68c] sm:$0xf0]  ;;  %v10120_v26 = vld [vmem:[#allocation4 + $0x718] sm:$0xf0] }
 0x500   : > { %v9987_v50 = vor.u32 %v11191_v15, %v9984_v52  ;;  %4378 = vst [vmem:[#allocation4 + $0x7d8] sm:$0xff] %v4304_v6  ;;  %v10054_v52 = vld [vmem:[#allocation4 + $0x648] sm:$0xf] }
 0x501   : > { %v13661_v20 = vadd.f32 %v7906_v22, %v7818_v23  ;;  %4380 = vst [vmem:[#allocation4 + $0x868] sm:$0xff] %v4311_v47 }
 0x502   : > { %v7642_v3 = vpop.f32.mrf.mxu2  ;;  %v7731_v39 = vpop.f32.mrf.mxu3 }
 0x503   : > { %v7643_v43 = vadd.f32 %v7642_v3, %v13152_v17  ;;  %v4308_v17 = vsel %vm13040_vm4, %v9234_v41, %v4307_v34  ;;  %v10047_v3 = vor.u32 %v11217_v48, %v10046_v32  ;;  %v11209_v41 = vld [vmem:[#allocation4 + $0x64c] sm:$0xf] }
 0x504   : > { %4379 = vst [vmem:[#allocation4 + $0x820] sm:$0xff] %v4308_v17 }
 0x505   : > { %v7732_v36 = vadd.f32 %v7731_v39, %v7643_v43  ;;  %v7820_v35 = vpop.f32.mrf.mxu0  ;;  %v7909_v22 = vpop.f32.mrf.mxu1  ;;  %v10051_v39 = vor.u32 %v11208_v40, %v10048_v44 }
 0x507   : > { %v7821_v38 = vadd.f32 %v7820_v35, %v7732_v36 }
 0x508   : > { %7859 = vmatmul.bf16.gmra.mxu0 %v9983_v10  ;;  %7948 = vmatmul.bf16.gmra.mxu1 %v9987_v50 }
 0x509   : > { %v13670_v23 = vadd.f32 %v7909_v22, %v7821_v38  ;;  %v10055_v22 = vor.u32 %v11218_v49, %v10054_v52  ;;  %v11235_v38 = vld [vmem:[#allocation4 + $0x714] sm:$0xf0]  ;;  %v10128_v52 = vld [vmem:[#allocation4 + $0x720] sm:$0xf0] }
 0x50a   : > { %v7644_v18 = vpop.f32.mrf.mxu2  ;;  %v7733_v9 = vpop.f32.mrf.mxu3 }
 0x50b   : > { %v7645_v27 = vadd.f32 %v7644_v18, %v13166_v11  ;;  %v10056_v11 = vld [vmem:[#allocation4 + $0x690] sm:$0xf0]  ;;  %v11268_v37 = vld [vmem:[#allocation4 + $0x824] sm:$0xf] }
 0x50c   : > { %v10059_v6 = vor.u32 %v11209_v41, %v10056_v11  ;;  %v11226_v18 = vld [vmem:[#allocation4 + $0x6d4] sm:$0xf] }
 0x50d   : > { %v7734_v13 = vadd.f32 %v7733_v9, %v7645_v27  ;;  %v7822_v5 = vpop.f32.mrf.mxu0  ;;  %v7911_v45 = vpop.f32.mrf.mxu1  ;;  %v10123_v32 = vor.u32 %v11226_v18, %v10120_v26  ;;  %v10190_v26 = vld [vmem:[#allocation4 + $0x760] sm:$0xf] }
 0x50f   : > { %v7823_v29 = vadd.f32 %v7822_v5, %v7734_v13  ;;  %7686 = vmatmul.bf16.gmra.mxu2 %v10047_v3  ;;  %7775 = vmatmul.bf16.gmra.mxu3 %v10051_v39  ;;  %v11360_v5 = vld [vmem:[#allocation5 + $0x200] sm:$0xff] }
 0x510   : > { %7986 = vmatpush.bf16.msrb.mxu2 %v11360_v5  ;;  %v11390_v5 = vld [vmem:[#allocation5 + $0x2f0] sm:$0xff] }
 0x511   : > { %v13675_v56 = vadd.f32 %v7911_v45, %v7823_v29  ;;  %v11368_v45 = vld [vmem:[#allocation5 + $0x240] sm:$0xff]  ;;  %v10126_v29 = vld [vmem:[#allocation4 + $0x6d8] sm:$0xf] }
 0x512   : > { %v7647_v43 = vpop.f32.mrf.mxu2  ;;  %v7736_v15 = vpop.f32.mrf.mxu3  ;;  %8075 = vmatpush.bf16.msrb.mxu3 %v11368_v45 }
 0x513   : > { %v7648_v28 = vadd.f32 %v7647_v43, %v13177_v0  ;;  %v10118_v0 = vld [vmem:[#allocation4 + $0x6d0] sm:$0xf] }
 0x514   : > { %v10119_v27 = vor.u32 %v11235_v38, %v10118_v0 }
 0x515   : > { %v7737_v34 = vadd.f32 %v7736_v15, %v7648_v28  ;;  %v7825_v36 = vpop.f32.mrf.mxu0  ;;  %v7914_v35 = vpop.f32.mrf.mxu1  ;;  %v11227_v15 = vld [vmem:[#allocation4 + $0x6dc] sm:$0xf] }
 0x517   : > { %v7826_v10 = vadd.f32 %v7825_v36, %v7737_v34  ;;  %v10131_v34 = vor.u32 %v11227_v15, %v10128_v52  ;;  %v11381_v15 = vld [vmem:[#allocation5 + $0x2a8] sm:$0xff] }
 0x518   : > { %7864 = vmatmul.bf16.gmra.mxu0 %v10055_v22  ;;  %7953 = vmatmul.bf16.gmra.mxu1 %v10059_v6  ;;  %v11383_v22 = vld [vmem:[#allocation5 + $0x2b8] sm:$0xff]  ;;  %v11389_v52 = vld [vmem:[#allocation5 + $0x2e8] sm:$0xff] }
 0x519   : > { %v13678_v50 = vadd.f32 %v7914_v35, %v7826_v10  ;;  %v11391_v6 = vld [vmem:[#allocation5 + $0x2f8] sm:$0xff]  ;;  %8157 = vmatpush.bf16.msra.mxu0 %v11383_v22 }
 0x51a   : > { %v7649_v17 = vpop.f32.mrf.mxu2  ;;  %v7738_v59 = vpop.f32.mrf.mxu3  ;;  %8246 = vmatpush.bf16.msra.mxu1 %v11391_v6  ;;  %v11380_v6 = vld [vmem:[#allocation5 + $0x2a0] sm:$0xff] }
 0x51b   : > { %v7650_v47 = vadd.f32 %v7649_v17, %v13189_v60  ;;  %v11236_v60 = vld [vmem:[#allocation4 + $0x71c] sm:$0xf0] }
 0x51c   : > { %v10127_v11 = vor.u32 %v11236_v60, %v10126_v29  ;;  %v11245_v29 = vld [vmem:[#allocation4 + $0x76c] sm:$0xf]  ;;  %v10200_v60 = vld [vmem:[#allocation4 + $0x7b0] sm:$0xf0] }
 0x51d   : > { %v7739_v9 = vadd.f32 %v7738_v59, %v7650_v47  ;;  %v7827_v48 = vpop.f32.mrf.mxu0  ;;  %v7916_v44 = vpop.f32.mrf.mxu1  ;;  %v10192_v59 = vld [vmem:[#allocation4 + $0x7a8] sm:$0xf0]  ;;  %v11244_v47 = vld [vmem:[#allocation4 + $0x764] sm:$0xf] }
 0x51e   : > { %8247 = vmatpush.bf16.msra.mxu1 %v11390_v5 }
 0x51f   : > { %v7828_v40 = vadd.f32 %v7827_v48, %v7739_v9  ;;  %7691 = vmatmul.bf16.gmra.mxu2 %v10119_v27  ;;  %7780 = vmatmul.bf16.gmra.mxu3 %v10123_v32 }
 0x521   : > { %v13681_v13 = vadd.f32 %v7916_v44, %v7828_v40  ;;  %v10195_v44 = vor.u32 %v11244_v47, %v10192_v59  ;;  %v11382_v40 = vld [vmem:[#allocation5 + $0x2b0] sm:$0xff]  ;;  %v10264_v59 = vld [vmem:[#allocation4 + $0x838] sm:$0xf0] }
 0x522   : > { %v7652_v3 = vpop.f32.mrf.mxu2  ;;  %v7741_v39 = vpop.f32.mrf.mxu3  ;;  %8158 = vmatpush.bf16.msra.mxu0 %v11382_v40  ;;  %8248 = vmatpush.bf16.msra.mxu1 %v11389_v52  ;;  %v11262_v47 = vld [vmem:[#allocation4 + $0x7f4] sm:$0xf]  ;;  %v11272_v52 = vld [vmem:[#allocation4 + $0x83c] sm:$0xf0] }
 0x523   : > { %v7653_v43 = vadd.f32 %v7652_v3, %v13200_v58  ;;  %v11253_v58 = vld [vmem:[#allocation4 + $0x7a4] sm:$0xf0]  ;;  %v10267_v40 = vor.u32 %v11262_v47, %v10264_v59  ;;  %v11384_v59 = vld [vmem:[#allocation5 + $0x2c0] sm:$0xff] }
 0x524   : > { %v10191_v48 = vor.u32 %v11253_v58, %v10190_v26  ;;  %v11271_v58 = vld [vmem:[#allocation4 + $0x834] sm:$0xf0]  ;;  %v10262_v26 = vld [vmem:[#allocation4 + $0x7f0] sm:$0xf]  ;;  %v11289_v47 = vld [vmem:[#allocation4 + $0x8c4] sm:$0xf0] }
 0x525   : > { %v7742_v28 = vadd.f32 %v7741_v39, %v7653_v43  ;;  %v7830_v49 = vpop.f32.mrf.mxu0  ;;  %v7919_v41 = vpop.f32.mrf.mxu1  ;;  %v10198_v39 = vld [vmem:[#allocation4 + $0x768] sm:$0xf] }
 0x526   : > { %8159 = vmatpush.bf16.msra.mxu0 %v11381_v15 }
 0x527   : > { %v7831_v36 = vadd.f32 %v7830_v49, %v7742_v28 }
 0x528   : > { %7869 = vmatmul.bf16.gmra.mxu0 %v10127_v11  ;;  %7958 = vmatmul.bf16.gmra.mxu1 %v10131_v34  ;;  %v10203_v34 = vor.u32 %v11245_v29, %v10200_v60  ;;  %v11407_v60 = vld [vmem:[#allocation5 + $0x378] sm:$0xff] }
 0x529   : > { %v13684_v35 = vadd.f32 %v7919_v41, %v7831_v36  ;;  %8424 = vmatpush.bf16.msra.mxu3 %v11407_v60 }
 0x52a   : > { %v7654_v10 = vpop.f32.mrf.mxu2  ;;  %v7743_v17 = vpop.f32.mrf.mxu3  ;;  %8160 = vmatpush.bf16.msra.mxu0 %v11380_v6  ;;  %v11385_v6 = vld [vmem:[#allocation5 + $0x2c8] sm:$0xff] }
 0x52b   : > { %v7655_v38 = vadd.f32 %v7654_v10, %v13215_v30  ;;  %v11254_v30 = vld [vmem:[#allocation4 + $0x7ac] sm:$0xf0]  ;;  %v11388_v10 = vld [vmem:[#allocation5 + $0x2e0] sm:$0xff] }
 0x52c   : > { %v10199_v11 = vor.u32 %v11254_v30, %v10198_v39  ;;  %8249 = vmatpush.bf16.msra.mxu1 %v11388_v10  ;;  %v11399_v39 = vld [vmem:[#allocation5 + $0x338] sm:$0xff] }
 0x52d   : > { %v7744_v0 = vadd.f32 %v7743_v17, %v7655_v38  ;;  %v7832_v18 = vpop.f32.mrf.mxu0  ;;  %v7921_v9 = vpop.f32.mrf.mxu1  ;;  %8335 = vmatpush.bf16.msra.mxu2 %v11399_v39 }
 0x52f   : > { %v7833_v27 = vadd.f32 %v7832_v18, %v7744_v0  ;;  %7696 = vmatmul.bf16.gmra.mxu2 %v10191_v48  ;;  %7785 = vmatmul.bf16.gmra.mxu3 %v10195_v44  ;;  %v11379_v0 = vld [vmem:[#allocation5 + $0x298] sm:$0xff] }
 0x530   : > { %v11387_v18 = vld [vmem:[#allocation5 + $0x2d8] sm:$0xff]  ;;  %8161 = vmatpush.bf16.msra.mxu0 %v11379_v0  ;;  %v10336_v0 = vld [vmem:[#allocation4 + $0x8c8] sm:$0xf0] }
 0x531   : > { %v13687_v32 = vadd.f32 %v7921_v9, %v7833_v27  ;;  %v10263_v27 = vor.u32 %v11271_v58, %v10262_v26  ;;  %8250 = vmatpush.bf16.msra.mxu1 %v11387_v18 }
 0x532   : > { %v7657_v45 = vpop.f32.mrf.mxu2  ;;  %v7746_v3 = vpop.f32.mrf.mxu3 }
 0x533   : > { %v7658_v43 = vadd.f32 %v7657_v45, %v13227_v53 }
 0x535   : > { %v7747_v28 = vadd.f32 %v7746_v3, %v7658_v43  ;;  %v7835_v49 = vpop.f32.mrf.mxu0  ;;  %v7924_v41 = vpop.f32.mrf.mxu1  ;;  %v11378_v3 = vld [vmem:[#allocation5 + $0x290] sm:$0xff]  ;;  %v10270_v43 = vld [vmem:[#allocation4 + $0x7f8] sm:$0xf] }
 0x536   : > { %8162 = vmatpush.bf16.msra.mxu0 %v11378_v3  ;;  %v10271_v10 = vor.u32 %v11272_v52, %v10270_v43  ;;  %v10342_v43 = vld [vmem:[#allocation4 + $0x888] sm:$0xf]  ;;  %v10344_v52 = vld [vmem:[#allocation4 + $0x8d0] sm:$0xf0] }
 0x537   : > { %v7836_v36 = vadd.f32 %v7835_v49, %v7747_v28  ;;  %v11263_v28 = vld [vmem:[#allocation4 + $0x7fc] sm:$0xf]  ;;  %v10272_v49 = vld [vmem:[#allocation4 + $0x840] sm:$0xf0] }
 0x538   : > { %7874 = vmatmul.bf16.gmra.mxu0 %v10199_v11  ;;  %7963 = vmatmul.bf16.gmra.mxu1 %v10203_v34 }
 0x539   : > { %v13690_v22 = vadd.f32 %v7924_v41, %v7836_v36  ;;  %v11377_v36 = vld [vmem:[#allocation5 + $0x288] sm:$0xff] }
 0x53a   : > { %v7659_v53 = vpop.f32.mrf.mxu2  ;;  %v7748_v17 = vpop.f32.mrf.mxu3  ;;  %8163 = vmatpush.bf16.msra.mxu0 %v11377_v36 }
 0x53b   : > { %v7660_v38 = vadd.f32 %v7659_v53, %v13245_v12  ;;  %v11386_v12 = vld [vmem:[#allocation5 + $0x2d0] sm:$0xff]  ;;  %v10275_v53 = vor.u32 %v11263_v28, %v10272_v49 }
 0x53c   : > { %8251 = vmatpush.bf16.msra.mxu1 %v11386_v12 }
 0x53d   : > { %v7749_v9 = vadd.f32 %v7748_v17, %v7660_v38  ;;  %v7837_v48 = vpop.f32.mrf.mxu0  ;;  %v7926_v44 = vpop.f32.mrf.mxu1 }
 0x53f   : > { %v7838_v5 = vadd.f32 %v7837_v48, %v7749_v9  ;;  %7701 = vmatmul.bf16.gmra.mxu2 %v10263_v27  ;;  %7790 = vmatmul.bf16.gmra.mxu3 %v10267_v40  ;;  %v10334_v9 = vld [vmem:[#allocation4 + $0x880] sm:$0xf]  ;;  %v11280_v48 = vld [vmem:[#allocation4 + $0x884] sm:$0xf] }
 0x540   : > { %8252 = vmatpush.bf16.msra.mxu1 %v11385_v6  ;;  %v10339_v3 = vor.u32 %v11280_v48, %v10336_v0 }
 0x541   : > { %v13693_v45 = vadd.f32 %v7926_v44, %v7838_v5  ;;  %v10335_v5 = vor.u32 %v11289_v47, %v10334_v9 }
 0x542   : > { %v7662_v30 = vpop.f32.mrf.mxu2  ;;  %v7751_v29 = vpop.f32.mrf.mxu3 }
 0x543   : > { %v7663_v15 = vadd.f32 %v7662_v30, %v13270_v14  ;;  %v11376_v14 = vld [vmem:[#allocation5 + $0x280] sm:$0xff] }
 0x544   : > { %8164 = vmatpush.bf16.msra.mxu0 %v11376_v14  ;;  %8253 = vmatpush.bf16.msra.mxu1 %v11384_v59  ;;  %v11012_v14 = vld [vmem:[#allocation4 + $0x24] sm:$0xf] }
 0x545   : > { %v7752_v41 = vadd.f32 %v7751_v29, %v7663_v15  ;;  %v7840_v11 = vpop.f32.mrf.mxu0  ;;  %v7929_v34 = vpop.f32.mrf.mxu1  ;;  %v11281_v15 = vld [vmem:[#allocation4 + $0x88c] sm:$0xf] }
 0x547   : > { %v7841_v17 = vadd.f32 %v7840_v11, %v7752_v41 }
 0x548   : > { %7879 = vmatmul.bf16.gmra.mxu0 %v10271_v10  ;;  %7968 = vmatmul.bf16.gmra.mxu1 %v10275_v53 }
 0x549   : > { %v13696_v58 = vadd.f32 %v7929_v34, %v7841_v17  ;;  %v10347_v34 = vor.u32 %v11281_v15, %v10344_v52  ;;  %v9270_v17 = vld [vmem:[#allocation4 + $0x20] sm:$0xf]  ;;  %v11013_v15 = vld [vmem:[#allocation4 + $0x2c] sm:$0xf] }
 0x54a   : > { %v7664_v38 = vpop.f32.mrf.mxu2  ;;  %v7753_v26 = vpop.f32.mrf.mxu3 }
 0x54b   : > { %v7665_v18 = vadd.f32 %v7664_v38, %v13284_v42  ;;  %v11290_v42 = vld [vmem:[#allocation4 + $0x8cc] sm:$0xf0]  ;;  %v9272_v38 = vld [vmem:[#allocation4 + $0x68] sm:$0xf0] }
 0x54c   : > { %v10343_v11 = vor.u32 %v11290_v42, %v10342_v43  ;;  %v9275_v9 = vor.u32 %v11012_v14, %v9272_v38  ;;  %v9278_v42 = vld [vmem:[#allocation4 + $0x28] sm:$0xf] }
 0x54d   : > { %v7754_v44 = vadd.f32 %v7753_v26, %v7665_v18  ;;  %v7842_v27 = vpop.f32.mrf.mxu0  ;;  %v7931_v40 = vpop.f32.mrf.mxu1 }
 0x54f   : > { %v7843_v12 = vadd.f32 %v7842_v27, %v7754_v44  ;;  %7706 = vmatmul.bf16.gmra.mxu2 %v10335_v5  ;;  %7795 = vmatmul.bf16.gmra.mxu3 %v10339_v3  ;;  %v11398_v27 = vld [vmem:[#allocation5 + $0x330] sm:$0xff] }
 0x550   : > { %8336 = vmatpush.bf16.msra.mxu2 %v11398_v27  ;;  %v11040_v27 = vld [vmem:[#allocation4 + $0xfc] sm:$0xf0] }
 0x551   : > { %v13699_v39 = vadd.f32 %v7931_v40, %v7843_v12  ;;  %v11406_v40 = vld [vmem:[#allocation5 + $0x370] sm:$0xff] }
 0x552   : > { %v7667_v30 = vpop.f32.mrf.mxu2  ;;  %v7756_v29 = vpop.f32.mrf.mxu3  ;;  %8425 = vmatpush.bf16.msra.mxu3 %v11406_v40  ;;  %v9352_v40 = vld [vmem:[#allocation4 + $0x100] sm:$0xf0] }
 0x553   : > { %v7668_v60 = vadd.f32 %v7667_v30, %v13293_v16  ;;  %v11021_v16 = vld [vmem:[#allocation4 + $0x64] sm:$0xf0]  ;;  %v11022_v30 = vld [vmem:[#allocation4 + $0x6c] sm:$0xf0] }
 0x554   : > { %v9271_v18 = vor.u32 %v11021_v16, %v9270_v17  ;;  %v9279_v52 = vor.u32 %v11022_v30, %v9278_v42  ;;  %v11031_v30 = vld [vmem:[#allocation4 + $0xbc] sm:$0xf]  ;;  %v9414_v42 = vld [vmem:[#allocation4 + $0x140] sm:$0xf] }
 0x555   : > { %v7757_v28 = vadd.f32 %v7756_v29, %v7668_v60  ;;  %v7845_v49 = vpop.f32.mrf.mxu0  ;;  %v7934_v41 = vpop.f32.mrf.mxu1 }
 0x557   : > { %v7846_v36 = vadd.f32 %v7845_v49, %v7757_v28 }
 0x558   : > { %7884 = vmatmul.bf16.gmra.mxu0 %v10343_v11  ;;  %7973 = vmatmul.bf16.gmra.mxu1 %v10347_v34  ;;  %v9342_v11 = vld [vmem:[#allocation4 + $0xb0] sm:$0xf] }
 0x559   : > { %v13702_v6 = vadd.f32 %v7934_v41, %v7846_v36 }
 0x55a   : > { %v7669_v10 = vpop.f32.mrf.mxu2  ;;  %v7758_v53 = vpop.f32.mrf.mxu3 }
 0x55b   : > { %v7670_v59 = vadd.f32 %v7669_v10, %v13306_v57  ;;  %v9280_v57 = vld [vmem:[#allocation4 + $0x70] sm:$0xf0] }
 0x55c   : > { %v9283_v28 = vor.u32 %v11013_v15, %v9280_v57  ;;  %v11030_v10 = vld [vmem:[#allocation4 + $0xb4] sm:$0xf] }
 0x55d   : > { %v7759_v26 = vadd.f32 %v7758_v53, %v7670_v59  ;;  %v7847_v47 = vpop.f32.mrf.mxu0  ;;  %v7936_v0 = vpop.f32.mrf.mxu1  ;;  %v9344_v53 = vld [vmem:[#allocation4 + $0xf8] sm:$0xf0] }
 0x55f   : > { %v7848_v48 = vadd.f32 %v7847_v47, %v7759_v26  ;;  %7987 = vmatmul.bf16.vlgmr.msrb.gmra.mxu2 %v9271_v18  ;;  %8076 = vmatmul.bf16.vlgmr.msrb.gmra.mxu3 %v9275_v9  ;;  %v9347_v26 = vor.u32 %v11030_v10, %v9344_v53 }
 0x561   : > { %v13705_v44 = vadd.f32 %v7936_v0, %v7848_v48 }
 0x562   : > { %v7672_v5 = vpop.f32.mrf.mxu2  ;;  %v7761_v3 = vpop.f32.mrf.mxu3 }
 0x563   : > { %v7673_v12 = vadd.f32 %v7672_v5, %v13316_v55  ;;  %v11039_v55 = vld [vmem:[#allocation4 + $0xf4] sm:$0xf0] }
 0x564   : > { %v9343_v38 = vor.u32 %v11039_v55, %v9342_v11 }
 0x565   : > { %v7762_v29 = vadd.f32 %v7761_v3, %v7673_v12  ;;  %v7850_v43 = vpop.f32.mrf.mxu0  ;;  %v7939_v60 = vpop.f32.mrf.mxu1 }
 0x567   : > { %v7851_v49 = vadd.f32 %v7850_v43, %v7762_v29  ;;  %v9355_v29 = vor.u32 %v11031_v30, %v9352_v40  ;;  %v9422_v40 = vld [vmem:[#allocation4 + $0x148] sm:$0xf] }
 0x568   : > { %8165 = vmatmul.bf16.vlgmr.msra.gmra.mxu0 %v9279_v52  ;;  %8254 = vmatmul.bf16.vlgmr.msra.gmra.mxu1 %v9283_v28  ;;  %v11057_v28 = vld [vmem:[#allocation4 + $0x184] sm:$0xf0] }
 0x569   : > { %v13708_v41 = vadd.f32 %v7939_v60, %v7851_v49  ;;  %v11048_v49 = vld [vmem:[#allocation4 + $0x144] sm:$0xf]  ;;  %v9415_v10 = vor.u32 %v11057_v28, %v9414_v42  ;;  %v11066_v42 = vld [vmem:[#allocation4 + $0x1d4] sm:$0xf] }
 0x56a   : > { %v7674_v34 = vpop.f32.mrf.mxu2  ;;  %v7763_v36 = vpop.f32.mrf.mxu3 }
 0x56b   : > { %v7675_v17 = vadd.f32 %v7674_v34, %v13330_v46  ;;  %v9350_v46 = vld [vmem:[#allocation4 + $0xb8] sm:$0xf] }
 0x56c   : > { %v9351_v57 = vor.u32 %v11040_v27, %v9350_v46 }
 0x56d   : > { %v7764_v14 = vadd.f32 %v7763_v36, %v7675_v17  ;;  %v7852_v59 = vpop.f32.mrf.mxu0  ;;  %v7941_v16 = vpop.f32.mrf.mxu1 }
 0x56f   : > { %v7853_v47 = vadd.f32 %v7852_v59, %v7764_v14  ;;  %7992 = vmatmul.bf16.gmra.mxu2 %v9343_v38  ;;  %8081 = vmatmul.bf16.gmra.mxu3 %v9347_v26  ;;  %v11397_v59 = vld [vmem:[#allocation5 + $0x328] sm:$0xff] }
 0x570   : > { %8337 = vmatpush.bf16.msra.mxu2 %v11397_v59  ;;  %v11076_v59 = vld [vmem:[#allocation4 + $0x21c] sm:$0xf0] }
 0x571   : > { %v13711_v0 = vadd.f32 %v7941_v16, %v7853_v47  ;;  %v11405_v16 = vld [vmem:[#allocation5 + $0x368] sm:$0xff] }
 0x572   : > { %v7677_v18 = vpop.f32.mrf.mxu2  ;;  %v7766_v9 = vpop.f32.mrf.mxu3  ;;  %8426 = vmatpush.bf16.msra.mxu3 %v11405_v16  ;;  %v9496_v16 = vld [vmem:[#allocation4 + $0x220] sm:$0xf0] }
 0x573   : > { %v7678_v48 = vadd.f32 %v7677_v18, %v13349_v54  ;;  %v9416_v54 = vld [vmem:[#allocation4 + $0x188] sm:$0xf0]  ;;  %v11058_v18 = vld [vmem:[#allocation4 + $0x18c] sm:$0xf0] }
 0x574   : > { %v9419_v53 = vor.u32 %v11048_v49, %v9416_v54 }
 0x575   : > { %v7767_v5 = vadd.f32 %v7766_v9, %v7678_v48  ;;  %v7855_v3 = vpop.f32.mrf.mxu0  ;;  %v7944_v12 = vpop.f32.mrf.mxu1  ;;  %v9424_v9 = vld [vmem:[#allocation4 + $0x190] sm:$0xf0] }
 0x577   : > { %v7856_v43 = vadd.f32 %v7855_v3, %v7767_v5  ;;  %v11049_v5 = vld [vmem:[#allocation4 + $0x14c] sm:$0xf]  ;;  %v9423_v3 = vor.u32 %v11058_v18, %v9422_v40  ;;  %v11067_v18 = vld [vmem:[#allocation4 + $0x1dc] sm:$0xf]  ;;  %v9558_v40 = vld [vmem:[#allocation4 + $0x260] sm:$0xf] }
 0x578   : > { %8170 = vmatmul.bf16.gmra.mxu0 %v9351_v57  ;;  %8259 = vmatmul.bf16.gmra.mxu1 %v9355_v29  ;;  %v9486_v57 = vld [vmem:[#allocation4 + $0x1d0] sm:$0xf] }
 0x579   : > { %v13714_v60 = vadd.f32 %v7944_v12, %v7856_v43  ;;  %v9427_v12 = vor.u32 %v11049_v5, %v9424_v9 }
 0x57a   : > { %v7679_v15 = vpop.f32.mrf.mxu2  ;;  %v7768_v52 = vpop.f32.mrf.mxu3 }
 0x57b   : > { %v7680_v11 = vadd.f32 %v7679_v15, %v13362_v2  ;;  %v9488_v15 = vld [vmem:[#allocation4 + $0x218] sm:$0xf0] }
 0x57d   : > { %v7769_v34 = vadd.f32 %v7768_v52, %v7680_v11  ;;  %v7857_v36 = vpop.f32.mrf.mxu0  ;;  %v7946_v55 = vpop.f32.mrf.mxu1 }
 0x57f   : > { %v7858_v17 = vadd.f32 %v7857_v36, %v7769_v34  ;;  %7997 = vmatmul.bf16.gmra.mxu2 %v9415_v10  ;;  %8086 = vmatmul.bf16.gmra.mxu3 %v9419_v53  ;;  %v9491_v34 = vor.u32 %v11066_v42, %v9488_v15 }
 0x581   : > { %v13717_v14 = vadd.f32 %v7946_v55, %v7858_v17 }
 0x582   : > { %v7682_v38 = vpop.f32.mrf.mxu2  ;;  %v7771_v26 = vpop.f32.mrf.mxu3 }
 0x583   : > { %v7683_v47 = vadd.f32 %v7682_v38, %v13384_v24  ;;  %v11075_v24 = vld [vmem:[#allocation4 + $0x214] sm:$0xf0] }
 0x584   : > { %v9487_v11 = vor.u32 %v11075_v24, %v9486_v57 }
 0x585   : > { %v7772_v2 = vadd.f32 %v7771_v26, %v7683_v47  ;;  %v7860_v48 = vpop.f32.mrf.mxu0  ;;  %v7949_v27 = vpop.f32.mrf.mxu1 }
 0x587   : > { %v7861_v46 = vadd.f32 %v7860_v48, %v7772_v2  ;;  %v9499_v2 = vor.u32 %v11067_v18, %v9496_v16  ;;  %v9566_v16 = vld [vmem:[#allocation4 + $0x268] sm:$0xf] }
 0x588   : > { %8175 = vmatmul.bf16.gmra.mxu0 %v9423_v3  ;;  %8264 = vmatmul.bf16.gmra.mxu1 %v9427_v12  ;;  %v11093_v12 = vld [vmem:[#allocation4 + $0x2a4] sm:$0xf0] }
 0x589   : > { %v13720_v30 = vadd.f32 %v7949_v27, %v7861_v46  ;;  %v11084_v46 = vld [vmem:[#allocation4 + $0x264] sm:$0xf]  ;;  %v9559_v42 = vor.u32 %v11093_v12, %v9558_v40  ;;  %v11102_v40 = vld [vmem:[#allocation4 + $0x2f4] sm:$0xf] }
 0x58a   : > { %v7684_v29 = vpop.f32.mrf.mxu2  ;;  %v7773_v43 = vpop.f32.mrf.mxu3 }
 0x58b   : > { %v7685_v52 = vadd.f32 %v7684_v29, %v13411_v19  ;;  %v9494_v19 = vld [vmem:[#allocation4 + $0x1d8] sm:$0xf] }
 0x58c   : > { %v9495_v9 = vor.u32 %v11076_v59, %v9494_v19 }
 0x58d   : > { %v7774_v28 = vadd.f32 %v7773_v43, %v7685_v52  ;;  %v7862_v49 = vpop.f32.mrf.mxu0  ;;  %v7951_v54 = vpop.f32.mrf.mxu1 }
 0x58f   : > { %v7863_v36 = vadd.f32 %v7862_v49, %v7774_v28  ;;  %8002 = vmatmul.bf16.gmra.mxu2 %v9487_v11  ;;  %8091 = vmatmul.bf16.gmra.mxu3 %v9491_v34  ;;  %v11396_v49 = vld [vmem:[#allocation5 + $0x320] sm:$0xff] }
 0x590   : > { %8338 = vmatpush.bf16.msra.mxu2 %v11396_v49  ;;  %v14232_v49 = vld [vmem:[#allocation16_spill] sm:$0xff] }
 0x591   : > { %v13723_v55 = vadd.f32 %v7951_v54, %v7863_v36  ;;  %v11404_v54 = vld [vmem:[#allocation5 + $0x360] sm:$0xff] }
 0x592   : > { %v7687_v10 = vpop.f32.mrf.mxu2  ;;  %v7776_v53 = vpop.f32.mrf.mxu3  ;;  %8427 = vmatpush.bf16.msra.mxu3 %v11404_v54 }
 0x593   : > { %v7688_v17 = vadd.f32 %v7687_v10, %v13438_v21  ;;  %v9560_v21 = vld [vmem:[#allocation4 + $0x2a8] sm:$0xf0]  ;;  %v11094_v10 = vld [vmem:[#allocation4 + $0x2ac] sm:$0xf0] }
 0x594   : > { %v9563_v15 = vor.u32 %v11084_v46, %v9560_v21 }
 0x595   : > { %v7777_v38 = vadd.f32 %v7776_v53, %v7688_v17  ;;  %v7865_v26 = vpop.f32.mrf.mxu0  ;;  %v7954_v47 = vpop.f32.mrf.mxu1  ;;  %v9568_v53 = vld [vmem:[#allocation4 + $0x2b0] sm:$0xf0] }
 0x597   : > { %v7866_v48 = vadd.f32 %v7865_v26, %v7777_v38  ;;  %v11085_v38 = vld [vmem:[#allocation4 + $0x26c] sm:$0xf]  ;;  %v9567_v26 = vor.u32 %v11094_v10, %v9566_v16 }
 0x598   : > { %8180 = vmatmul.bf16.gmra.mxu0 %v9495_v9  ;;  %8269 = vmatmul.bf16.gmra.mxu1 %v9499_v2  ;;  %v9630_v9 = vld [vmem:[#allocation4 + $0x2f0] sm:$0xf] }
 0x599   : > { %v13726_v27 = vadd.f32 %v7954_v47, %v7866_v48  ;;  %v9571_v47 = vor.u32 %v11085_v38, %v9568_v53 }
 0x59a   : > { %v7689_v5 = vpop.f32.mrf.mxu2  ;;  %v7778_v3 = vpop.f32.mrf.mxu3 }
 0x59b   : > { %v7690_v57 = vadd.f32 %v7689_v5, %v13455_v31  ;;  %v9632_v5 = vld [vmem:[#allocation4 + $0x338] sm:$0xf0] }
 0x59d   : > { %v7779_v29 = vadd.f32 %v7778_v3, %v7690_v57  ;;  %v7867_v43 = vpop.f32.mrf.mxu0  ;;  %v7956_v24 = vpop.f32.mrf.mxu1  ;;  %v14231_v3 = vld [vmem:[#allocation15_spill] sm:$0xff] }
 0x59f   : > { %v7868_v52 = vadd.f32 %v7867_v43, %v7779_v29  ;;  %8007 = vmatmul.bf16.gmra.mxu2 %v9559_v42  ;;  %8096 = vmatmul.bf16.gmra.mxu3 %v9563_v15  ;;  %v9635_v43 = vor.u32 %v11102_v40, %v9632_v5 }
 0x5a1   : > { %v13729_v28 = vadd.f32 %v7956_v24, %v7868_v52 }
 0x5a2   : > { %v7692_v11 = vpop.f32.mrf.mxu2  ;;  %v7781_v34 = vpop.f32.mrf.mxu3 }
 0x5a3   : > { %v7693_v36 = vadd.f32 %v7692_v11, %v13477_v62  ;;  %v11111_v62 = vld [vmem:[#allocation4 + $0x334] sm:$0xf0]  ;;  %v11112_v11 = vld [vmem:[#allocation4 + $0x33c] sm:$0xf0] }
 0x5a4   : > { %v9631_v29 = vor.u32 %v11111_v62, %v9630_v9  ;;  %v9704_v62 = vld [vmem:[#allocation4 + $0x3c8] sm:$0xf0] }
 0x5a5   : > { %v7782_v31 = vadd.f32 %v7781_v34, %v7693_v36  ;;  %v7870_v17 = vpop.f32.mrf.mxu0  ;;  %v7959_v59 = vpop.f32.mrf.mxu1  ;;  %v9640_v34 = vld [vmem:[#allocation4 + $0x340] sm:$0xf0] }
 0x5a7   : > { %v7871_v19 = vadd.f32 %v7870_v17, %v7782_v31  ;;  %v9638_v31 = vld [vmem:[#allocation4 + $0x2f8] sm:$0xf]  ;;  %v11103_v17 = vld [vmem:[#allocation4 + $0x2fc] sm:$0xf] }
 0x5a8   : > { %8185 = vmatmul.bf16.gmra.mxu0 %v9567_v26  ;;  %8274 = vmatmul.bf16.gmra.mxu1 %v9571_v47  ;;  %v9643_v16 = vor.u32 %v11103_v17, %v9640_v34  ;;  %v9702_v47 = vld [vmem:[#allocation4 + $0x380] sm:$0xf] }
 0x5a9   : > { %v13732_v18 = vadd.f32 %v7959_v59, %v7871_v19  ;;  %v9639_v59 = vor.u32 %v11112_v11, %v9638_v31  ;;  %v9712_v11 = vld [vmem:[#allocation4 + $0x3d0] sm:$0xf0] }
 0x5aa   : > { %v7694_v2 = vpop.f32.mrf.mxu2  ;;  %v7783_v48 = vpop.f32.mrf.mxu3 }
 0x5ab   : > { %v7695_v12 = vadd.f32 %v7694_v2, %v14231_v3  ;;  %v11129_v2 = vld [vmem:[#allocation4 + $0x3c4] sm:$0xf0] }
 0x5ad   : > { %v7784_v46 = vadd.f32 %v7783_v48, %v7695_v12  ;;  %v7872_v21 = vpop.f32.mrf.mxu0  ;;  %v7961_v57 = vpop.f32.mrf.mxu1  ;;  %v11120_v48 = vld [vmem:[#allocation4 + $0x384] sm:$0xf] }
 0x5af   : > { %v7873_v24 = vadd.f32 %v7872_v21, %v7784_v46  ;;  %8012 = vmatmul.bf16.gmra.mxu2 %v9631_v29  ;;  %8101 = vmatmul.bf16.gmra.mxu3 %v9635_v43  ;;  %v9703_v46 = vor.u32 %v11129_v2, %v9702_v47  ;;  %v9707_v21 = vor.u32 %v11120_v48, %v9704_v62  ;;  %v11395_v43 = vld [vmem:[#allocation5 + $0x318] sm:$0xff] }
 0x5b0   : > { %8339 = vmatpush.bf16.msra.mxu2 %v11395_v43  ;;  %v9776_v2 = vld [vmem:[#allocation4 + $0x458] sm:$0xf0] }
 0x5b1   : > { %v13735_v42 = vadd.f32 %v7961_v57, %v7873_v24  ;;  %v11403_v24 = vld [vmem:[#allocation5 + $0x358] sm:$0xff] }
 0x5b2   : > { %v7697_v15 = vpop.f32.mrf.mxu2  ;;  %v7786_v52 = vpop.f32.mrf.mxu3  ;;  %8428 = vmatpush.bf16.msra.mxu3 %v11403_v24 }
 0x5b3   : > { %v7698_v54 = vadd.f32 %v7697_v15, %v14232_v49 }
 0x5b5   : > { %v7787_v36 = vadd.f32 %v7786_v52, %v7698_v54  ;;  %v7875_v10 = vpop.f32.mrf.mxu0  ;;  %v7964_v53 = vpop.f32.mrf.mxu1  ;;  %v11130_v54 = vld [vmem:[#allocation4 + $0x3cc] sm:$0xf0] }
 0x5b7   : > { %v7876_v38 = vadd.f32 %v7875_v10, %v7787_v36  ;;  %v9710_v10 = vld [vmem:[#allocation4 + $0x388] sm:$0xf] }
 0x5b8   : > { %8190 = vmatmul.bf16.gmra.mxu0 %v9639_v59  ;;  %8279 = vmatmul.bf16.gmra.mxu1 %v9643_v16  ;;  %v9711_v31 = vor.u32 %v11130_v54, %v9710_v10 }
 0x5b9   : > { %v13738_v26 = vadd.f32 %v7964_v53, %v7876_v38  ;;  %v11121_v53 = vld [vmem:[#allocation4 + $0x38c] sm:$0xf]  ;;  %v9774_v38 = vld [vmem:[#allocation4 + $0x410] sm:$0xf] }
 0x5ba   : > { %v7699_v19 = vpop.f32.mrf.mxu2  ;;  %v7788_v9 = vpop.f32.mrf.mxu3  ;;  %v9715_v17 = vor.u32 %v11121_v53, %v9712_v11 }
 0x5bb   : > { %v7700_v40 = vadd.f32 %v7699_v19, %v13541_v4 }
 0x5bd   : > { %v7789_v5 = vadd.f32 %v7788_v9, %v7700_v40  ;;  %v7877_v3 = vpop.f32.mrf.mxu0  ;;  %v7966_v12 = vpop.f32.mrf.mxu1  ;;  %v11138_v9 = vld [vmem:[#allocation4 + $0x414] sm:$0xf] }
 0x5bf   : > { %v7878_v57 = vadd.f32 %v7877_v3, %v7789_v5  ;;  %8017 = vmatmul.bf16.gmra.mxu2 %v9703_v46  ;;  %8106 = vmatmul.bf16.gmra.mxu3 %v9707_v21 }
 0x5c1   : > { %v13741_v29 = vadd.f32 %v7966_v12, %v7878_v57  ;;  %v9779_v12 = vor.u32 %v11138_v9, %v9776_v2 }
 0x5c2   : > { %v7702_v15 = vpop.f32.mrf.mxu2  ;;  %v7791_v52 = vpop.f32.mrf.mxu3 }
 0x5c3   : > { %v7703_v49 = vadd.f32 %v7702_v15, %v13561_v25  ;;  %v11147_v25 = vld [vmem:[#allocation4 + $0x454] sm:$0xf0]  ;;  %v11148_v15 = vld [vmem:[#allocation4 + $0x45c] sm:$0xf0] }
 0x5c4   : > { %v9775_v3 = vor.u32 %v11147_v25, %v9774_v38  ;;  %v11165_v38 = vld [vmem:[#allocation4 + $0x4e4] sm:$0xf0] }
 0x5c5   : > { %v7792_v4 = vadd.f32 %v7791_v52, %v7703_v49  ;;  %v7880_v34 = vpop.f32.mrf.mxu0  ;;  %v7969_v36 = vpop.f32.mrf.mxu1  ;;  %v9784_v52 = vld [vmem:[#allocation4 + $0x460] sm:$0xf0] }
 0x5c7   : > { %v7881_v59 = vadd.f32 %v7880_v34, %v7792_v4  ;;  %v11139_v4 = vld [vmem:[#allocation4 + $0x41c] sm:$0xf] }
 0x5c8   : > { %8195 = vmatmul.bf16.gmra.mxu0 %v9711_v31  ;;  %8284 = vmatmul.bf16.gmra.mxu1 %v9715_v17  ;;  %v9846_v31 = vld [vmem:[#allocation4 + $0x4a0] sm:$0xf] }
 0x5c9   : > { %v13744_v16 = vadd.f32 %v7969_v36, %v7881_v59  ;;  %v9787_v36 = vor.u32 %v11139_v4, %v9784_v52 }
 0x5ca   : > { %v7704_v47 = vpop.f32.mrf.mxu2  ;;  %v7793_v19 = vpop.f32.mrf.mxu3 }
 0x5cb   : > { %v7705_v48 = vadd.f32 %v7704_v47, %v13573_v8  ;;  %v9782_v8 = vld [vmem:[#allocation4 + $0x418] sm:$0xf]  ;;  %v11156_v47 = vld [vmem:[#allocation4 + $0x4a4] sm:$0xf] }
 0x5cc   : > { %v9783_v34 = vor.u32 %v11148_v15, %v9782_v8  ;;  %v9856_v15 = vld [vmem:[#allocation4 + $0x4f0] sm:$0xf0] }
 0x5cd   : > { %v7794_v62 = vadd.f32 %v7793_v19, %v7705_v48  ;;  %v7882_v40 = vpop.f32.mrf.mxu0  ;;  %v7971_v5 = vpop.f32.mrf.mxu1  ;;  %v9847_v48 = vor.u32 %v11165_v38, %v9846_v31  ;;  %v9920_v38 = vld [vmem:[#allocation4 + $0x578] sm:$0xf0] }
 0x5cf   : > { %v7883_v46 = vadd.f32 %v7882_v40, %v7794_v62  ;;  %8022 = vmatmul.bf16.gmra.mxu2 %v9775_v3  ;;  %8111 = vmatmul.bf16.gmra.mxu3 %v9779_v12  ;;  %v11394_v3 = vld [vmem:[#allocation5 + $0x310] sm:$0xff] }
 0x5d0   : > { %v11402_v12 = vld [vmem:[#allocation5 + $0x350] sm:$0xff]  ;;  %8340 = vmatpush.bf16.msra.mxu2 %v11394_v3 }
 0x5d1   : > { %v13747_v21 = vadd.f32 %v7971_v5, %v7883_v46  ;;  %8429 = vmatpush.bf16.msra.mxu3 %v11402_v12 }
 0x5d2   : > { %v7707_v57 = vpop.f32.mrf.mxu2  ;;  %v7796_v43 = vpop.f32.mrf.mxu3 }
 0x5d3   : > { %v7708_v24 = vadd.f32 %v7707_v57, %v13587_v7  ;;  %v9848_v7 = vld [vmem:[#allocation4 + $0x4e8] sm:$0xf0] }
 0x5d4   : > { %v9851_v62 = vor.u32 %v11156_v47, %v9848_v7 }
 0x5d5   : > { %v7797_v49 = vadd.f32 %v7796_v43, %v7708_v24  ;;  %v7885_v54 = vpop.f32.mrf.mxu0  ;;  %v7974_v11 = vpop.f32.mrf.mxu1  ;;  %v11166_v24 = vld [vmem:[#allocation4 + $0x4ec] sm:$0xf0] }
 0x5d7   : > { %v7886_v10 = vadd.f32 %v7885_v54, %v7797_v49  ;;  %v9854_v54 = vld [vmem:[#allocation4 + $0x4a8] sm:$0xf] }
 0x5d8   : > { %8200 = vmatmul.bf16.gmra.mxu0 %v9783_v34  ;;  %8289 = vmatmul.bf16.gmra.mxu1 %v9787_v36  ;;  %v9855_v8 = vor.u32 %v11166_v24, %v9854_v54 }
 0x5d9   : > { %v13750_v53 = vadd.f32 %v7974_v11, %v7886_v10  ;;  %v11157_v11 = vld [vmem:[#allocation4 + $0x4ac] sm:$0xf]  ;;  %v9918_v10 = vld [vmem:[#allocation4 + $0x530] sm:$0xf] }
 0x5da   : > { %v7709_v17 = vpop.f32.mrf.mxu2  ;;  %v7798_v59 = vpop.f32.mrf.mxu3  ;;  %v9859_v4 = vor.u32 %v11157_v11, %v9856_v15 }
 0x5db   : > { %v7710_v19 = vadd.f32 %v7709_v17, %v13599_v61 }
 0x5dd   : > { %v7799_v25 = vadd.f32 %v7798_v59, %v7710_v19  ;;  %v7887_v9 = vpop.f32.mrf.mxu0  ;;  %v7976_v2 = vpop.f32.mrf.mxu1  ;;  %v11174_v59 = vld [vmem:[#allocation4 + $0x534] sm:$0xf] }
 0x5df   : > { %v7888_v40 = vadd.f32 %v7887_v9, %v7799_v25  ;;  %8027 = vmatmul.bf16.gmra.mxu2 %v9847_v48  ;;  %8116 = vmatmul.bf16.gmra.mxu3 %v9851_v62 }
 0x5e1   : > { %v13753_v5 = vadd.f32 %v7976_v2, %v7888_v40  ;;  %v9923_v2 = vor.u32 %v11174_v59, %v9920_v38 }
 0x5e2   : > { %v7988_v46 = vpop.f32.mrf.mxu2  ;;  %v8077_v57 = vpop.f32.mrf.mxu3 }
 0x5e3   : > { %v7989_v43 = vadd.f32 %v7988_v46, %v13618_v51  ;;  %v11183_v51 = vld [vmem:[#allocation4 + $0x574] sm:$0xf0]  ;;  %v11184_v46 = vld [vmem:[#allocation4 + $0x57c] sm:$0xf0] }
 0x5e4   : > { %v9919_v9 = vor.u32 %v11183_v51, %v9918_v10  ;;  %v11201_v10 = vld [vmem:[#allocation4 + $0x604] sm:$0xf0] }
 0x5e5   : > { %v8078_v61 = vadd.f32 %v8077_v57, %v7989_v43  ;;  %v8166_v52 = vpop.f32.mrf.mxu0  ;;  %v8255_v49 = vpop.f32.mrf.mxu1  ;;  %v9928_v57 = vld [vmem:[#allocation4 + $0x580] sm:$0xf0] }
 0x5e7   : > { %v8167_v34 = vadd.f32 %v8166_v52, %v8078_v61  ;;  %v11175_v61 = vld [vmem:[#allocation4 + $0x53c] sm:$0xf] }
 0x5e8   : > { %8205 = vmatmul.bf16.gmra.mxu0 %v9855_v8  ;;  %8294 = vmatmul.bf16.gmra.mxu1 %v9859_v4  ;;  %v9990_v8 = vld [vmem:[#allocation4 + $0x5c0] sm:$0xf] }
 0x5e9   : > { %v13756_v36 = vadd.f32 %v8255_v49, %v8167_v34  ;;  %v9931_v49 = vor.u32 %v11175_v61, %v9928_v57 }
 0x5ea   : > { %v7990_v31 = vpop.f32.mrf.mxu2  ;;  %v8079_v17 = vpop.f32.mrf.mxu3 }
 0x5eb   : > { %v7991_v47 = vadd.f32 %v7990_v31, %v13629_v33  ;;  %v9926_v33 = vld [vmem:[#allocation4 + $0x538] sm:$0xf]  ;;  %v11192_v31 = vld [vmem:[#allocation4 + $0x5c4] sm:$0xf] }
 0x5ec   : > { %v9927_v52 = vor.u32 %v11184_v46, %v9926_v33  ;;  %v10000_v46 = vld [vmem:[#allocation4 + $0x610] sm:$0xf0] }
 0x5ed   : > { %v8080_v7 = vadd.f32 %v8079_v17, %v7991_v47  ;;  %v8168_v19 = vpop.f32.mrf.mxu0  ;;  %v8257_v25 = vpop.f32.mrf.mxu1  ;;  %v9991_v47 = vor.u32 %v11201_v10, %v9990_v8  ;;  %v10064_v10 = vld [vmem:[#allocation4 + $0x698] sm:$0xf0] }
 0x5ef   : > { %v8169_v48 = vadd.f32 %v8168_v19, %v8080_v7  ;;  %8032 = vmatmul.bf16.gmra.mxu2 %v9919_v9  ;;  %8121 = vmatmul.bf16.gmra.mxu3 %v9923_v2  ;;  %v11393_v9 = vld [vmem:[#allocation5 + $0x308] sm:$0xff] }
 0x5f0   : > { %v11401_v2 = vld [vmem:[#allocation5 + $0x348] sm:$0xff]  ;;  %8341 = vmatpush.bf16.msra.mxu2 %v11393_v9 }
 0x5f1   : > { %v13759_v62 = vadd.f32 %v8257_v25, %v8169_v48  ;;  %8430 = vmatpush.bf16.msra.mxu3 %v11401_v2 }
 0x5f2   : > { %v7993_v40 = vpop.f32.mrf.mxu2  ;;  %v8082_v3 = vpop.f32.mrf.mxu3 }
 0x5f3   : > { %v7994_v12 = vadd.f32 %v7993_v40, %v13644_v1  ;;  %v9992_v1 = vld [vmem:[#allocation4 + $0x608] sm:$0xf0] }
 0x5f4   : > { %v9995_v7 = vor.u32 %v11192_v31, %v9992_v1 }
 0x5f5   : > { %v8083_v43 = vadd.f32 %v8082_v3, %v7994_v12  ;;  %v8171_v24 = vpop.f32.mrf.mxu0  ;;  %v8260_v15 = vpop.f32.mrf.mxu1  ;;  %v11202_v12 = vld [vmem:[#allocation4 + $0x60c] sm:$0xf0] }
 0x5f7   : > { %v8172_v54 = vadd.f32 %v8171_v24, %v8083_v43  ;;  %v9998_v24 = vld [vmem:[#allocation4 + $0x5c8] sm:$0xf] }
 0x5f8   : > { %8210 = vmatmul.bf16.gmra.mxu0 %v9927_v52  ;;  %8299 = vmatmul.bf16.gmra.mxu1 %v9931_v49  ;;  %v9999_v33 = vor.u32 %v11202_v12, %v9998_v24 }
 0x5f9   : > { %v13762_v11 = vadd.f32 %v8260_v15, %v8172_v54  ;;  %v11193_v15 = vld [vmem:[#allocation4 + $0x5cc] sm:$0xf]  ;;  %v10062_v54 = vld [vmem:[#allocation4 + $0x650] sm:$0xf] }
 0x5fa   : > { %v7995_v4 = vpop.f32.mrf.mxu2  ;;  %v8084_v34 = vpop.f32.mrf.mxu3  ;;  %v10003_v61 = vor.u32 %v11193_v15, %v10000_v46 }
 0x5fb   : > { %v7996_v17 = vadd.f32 %v7995_v4, %v13661_v20 }
 0x5fd   : > { %v8085_v51 = vadd.f32 %v8084_v34, %v7996_v17  ;;  %v8173_v59 = vpop.f32.mrf.mxu0  ;;  %v8262_v38 = vpop.f32.mrf.mxu1  ;;  %v11210_v34 = vld [vmem:[#allocation4 + $0x654] sm:$0xf] }
 0x5ff   : > { %v8174_v19 = vadd.f32 %v8173_v59, %v8085_v51  ;;  %8037 = vmatmul.bf16.gmra.mxu2 %v9991_v47  ;;  %8126 = vmatmul.bf16.gmra.mxu3 %v9995_v7 }
 0x601   : > { %v13765_v25 = vadd.f32 %v8262_v38, %v8174_v19  ;;  %v10067_v38 = vor.u32 %v11210_v34, %v10064_v10 }
 0x602   : > { %v7998_v48 = vpop.f32.mrf.mxu2  ;;  %v8087_v40 = vpop.f32.mrf.mxu3 }
 0x603   : > { %v7999_v3 = vadd.f32 %v7998_v48, %v13670_v23  ;;  %v11219_v23 = vld [vmem:[#allocation4 + $0x694] sm:$0xf0]  ;;  %v11220_v48 = vld [vmem:[#allocation4 + $0x69c] sm:$0xf0] }
 0x604   : > { %v10063_v59 = vor.u32 %v11219_v23, %v10062_v54  ;;  %v11237_v54 = vld [vmem:[#allocation4 + $0x724] sm:$0xf0] }
 0x605   : > { %v8088_v20 = vadd.f32 %v8087_v40, %v7999_v3  ;;  %v8176_v57 = vpop.f32.mrf.mxu0  ;;  %v8265_v43 = vpop.f32.mrf.mxu1  ;;  %v10072_v40 = vld [vmem:[#allocation4 + $0x6a0] sm:$0xf0] }
 0x607   : > { %v8177_v52 = vadd.f32 %v8176_v57, %v8088_v20  ;;  %v11211_v20 = vld [vmem:[#allocation4 + $0x65c] sm:$0xf] }
 0x608   : > { %8215 = vmatmul.bf16.gmra.mxu0 %v9999_v33  ;;  %8304 = vmatmul.bf16.gmra.mxu1 %v10003_v61  ;;  %v10134_v33 = vld [vmem:[#allocation4 + $0x6e0] sm:$0xf] }
 0x609   : > { %v13768_v49 = vadd.f32 %v8265_v43, %v8177_v52  ;;  %v10075_v43 = vor.u32 %v11211_v20, %v10072_v40 }
 0x60a   : > { %v8000_v8 = vpop.f32.mrf.mxu2  ;;  %v8089_v4 = vpop.f32.mrf.mxu3 }
 0x60b   : > { %v8001_v31 = vadd.f32 %v8000_v8, %v13675_v56  ;;  %v10070_v56 = vld [vmem:[#allocation4 + $0x658] sm:$0xf]  ;;  %v11228_v8 = vld [vmem:[#allocation4 + $0x6e4] sm:$0xf] }
 0x60c   : > { %v10071_v57 = vor.u32 %v11220_v48, %v10070_v56  ;;  %v10144_v48 = vld [vmem:[#allocation4 + $0x730] sm:$0xf0] }
 0x60d   : > { %v8090_v1 = vadd.f32 %v8089_v4, %v8001_v31  ;;  %v8178_v17 = vpop.f32.mrf.mxu0  ;;  %v8267_v51 = vpop.f32.mrf.mxu1  ;;  %v10135_v31 = vor.u32 %v11237_v54, %v10134_v33  ;;  %v11415_v33 = vld [vmem:[#allocation5 + $0x3b8] sm:$0xff] }
 0x60e   : > { %v11255_v54 = vld [vmem:[#allocation4 + $0x7b4] sm:$0xf0]  ;;  %8513 = vmatpush.bf16.msrb.mxu0 %v11415_v33 }
 0x60f   : > { %v8179_v47 = vadd.f32 %v8178_v17, %v8090_v1  ;;  %8042 = vmatmul.bf16.gmra.mxu2 %v10063_v59  ;;  %8131 = vmatmul.bf16.gmra.mxu3 %v10067_v38  ;;  %v11392_v59 = vld [vmem:[#allocation5 + $0x300] sm:$0xff] }
 0x610   : > { %v11400_v38 = vld [vmem:[#allocation5 + $0x340] sm:$0xff]  ;;  %8342 = vmatpush.bf16.msra.mxu2 %v11392_v59 }
 0x611   : > { %v13771_v7 = vadd.f32 %v8267_v51, %v8179_v47  ;;  %8431 = vmatpush.bf16.msra.mxu3 %v11400_v38  ;;  %v11414_v38 = vld [vmem:[#allocation5 + $0x3b0] sm:$0xff] }
 0x612   : > { %v8003_v19 = vpop.f32.mrf.mxu2  ;;  %v8092_v9 = vpop.f32.mrf.mxu3  ;;  %8514 = vmatpush.bf16.msrb.mxu0 %v11414_v38 }
 0x613   : > { %v8004_v2 = vadd.f32 %v8003_v19, %v13678_v50  ;;  %v10136_v50 = vld [vmem:[#allocation4 + $0x728] sm:$0xf0] }
 0x614   : > { %v10139_v1 = vor.u32 %v11228_v8, %v10136_v50  ;;  %v11246_v8 = vld [vmem:[#allocation4 + $0x774] sm:$0xf]  ;;  %v10208_v50 = vld [vmem:[#allocation4 + $0x7b8] sm:$0xf0] }
 0x615   : > { %v8093_v3 = vadd.f32 %v8092_v9, %v8004_v2  ;;  %v8181_v12 = vpop.f32.mrf.mxu0  ;;  %v8270_v46 = vpop.f32.mrf.mxu1  ;;  %v11238_v2 = vld [vmem:[#allocation4 + $0x72c] sm:$0xf0] }
 0x617   : > { %v8182_v24 = vadd.f32 %v8181_v12, %v8093_v3  ;;  %v10142_v12 = vld [vmem:[#allocation4 + $0x6e8] sm:$0xf] }
 0x618   : > { %8220 = vmatmul.bf16.gmra.mxu0 %v10071_v57  ;;  %8309 = vmatmul.bf16.gmra.mxu1 %v10075_v43  ;;  %v10143_v56 = vor.u32 %v11238_v2, %v10142_v12  ;;  %v11256_v2 = vld [vmem:[#allocation4 + $0x7bc] sm:$0xf0] }
 0x619   : > { %v13774_v15 = vadd.f32 %v8270_v46, %v8182_v24  ;;  %v11229_v46 = vld [vmem:[#allocation4 + $0x6ec] sm:$0xf]  ;;  %v10206_v24 = vld [vmem:[#allocation4 + $0x770] sm:$0xf] }
 0x61a   : > { %v8005_v61 = vpop.f32.mrf.mxu2  ;;  %v8094_v52 = vpop.f32.mrf.mxu3  ;;  %v10147_v20 = vor.u32 %v11229_v46, %v10144_v48 }
 0x61b   : > { %v8006_v4 = vadd.f32 %v8005_v61, %v13681_v13  ;;  %v11423_v61 = vld [vmem:[#allocation5 + $0x3f8] sm:$0xff] }
 0x61c   : > { %8602 = vmatpush.bf16.msrb.mxu1 %v11423_v61 }
 0x61d   : > { %v8095_v23 = vadd.f32 %v8094_v52, %v8006_v4  ;;  %v8183_v34 = vpop.f32.mrf.mxu0  ;;  %v8272_v10 = vpop.f32.mrf.mxu1 }
 0x61f   : > { %v8184_v17 = vadd.f32 %v8183_v34, %v8095_v23  ;;  %8047 = vmatmul.bf16.gmra.mxu2 %v10135_v31  ;;  %8136 = vmatmul.bf16.gmra.mxu3 %v10139_v1  ;;  %v10207_v31 = vor.u32 %v11255_v54, %v10206_v24  ;;  %v10211_v1 = vor.u32 %v11246_v8, %v10208_v50  ;;  %v11273_v50 = vld [vmem:[#allocation4 + $0x844] sm:$0xf0] }
 0x621   : > { %v13777_v51 = vadd.f32 %v8272_v10, %v8184_v17 }
 0x622   : > { %v8008_v47 = vpop.f32.mrf.mxu2  ;;  %v8097_v19 = vpop.f32.mrf.mxu3 }
 0x623   : > { %v8009_v9 = vadd.f32 %v8008_v47, %v13684_v35  ;;  %v11422_v47 = vld [vmem:[#allocation5 + $0x3f0] sm:$0xff] }
 0x624   : > { %8603 = vmatpush.bf16.msrb.mxu1 %v11422_v47 }
 0x625   : > { %v8098_v13 = vadd.f32 %v8097_v19, %v8009_v9  ;;  %v8186_v40 = vpop.f32.mrf.mxu0  ;;  %v8275_v3 = vpop.f32.mrf.mxu1 }
 0x627   : > { %v8187_v57 = vadd.f32 %v8186_v40, %v8098_v13  ;;  %v11413_v13 = vld [vmem:[#allocation5 + $0x3a8] sm:$0xff] }
 0x628   : > { %8225 = vmatmul.bf16.gmra.mxu0 %v10143_v56  ;;  %8314 = vmatmul.bf16.gmra.mxu1 %v10147_v20  ;;  %v11421_v40 = vld [vmem:[#allocation5 + $0x3e8] sm:$0xff]  ;;  %v10214_v56 = vld [vmem:[#allocation4 + $0x778] sm:$0xf]  ;;  %v11247_v20 = vld [vmem:[#allocation4 + $0x77c] sm:$0xf] }
 0x629   : > { %v13780_v43 = vadd.f32 %v8275_v3, %v8187_v57  ;;  %v10215_v57 = vor.u32 %v11256_v2, %v10214_v56  ;;  %8515 = vmatpush.bf16.msrb.mxu0 %v11413_v13  ;;  %8604 = vmatpush.bf16.msrb.mxu1 %v11421_v40  ;;  %v11431_v13 = vld [vmem:[#allocation5 + $0x438] sm:$0xff]  ;;  %v10288_v56 = vld [vmem:[#allocation4 + $0x850] sm:$0xf0] }
 0x62a   : > { %v8010_v35 = vpop.f32.mrf.mxu2  ;;  %v8099_v52 = vpop.f32.mrf.mxu3  ;;  %8691 = vmatpush.bf16.msrb.mxu2 %v11431_v13 }
 0x62b   : > { %v8011_v4 = vadd.f32 %v8010_v35, %v13687_v32  ;;  %v10216_v32 = vld [vmem:[#allocation4 + $0x7c0] sm:$0xf0] }
 0x62c   : > { %v10219_v24 = vor.u32 %v11247_v20, %v10216_v32  ;;  %v11412_v35 = vld [vmem:[#allocation5 + $0x3a0] sm:$0xff]  ;;  %v11418_v32 = vld [vmem:[#allocation5 + $0x3d0] sm:$0xff]  ;;  %v10286_v20 = vld [vmem:[#allocation4 + $0x808] sm:$0xf] }
 0x62d   : > { %v8100_v23 = vadd.f32 %v8099_v52, %v8011_v4  ;;  %v8188_v34 = vpop.f32.mrf.mxu0  ;;  %v8277_v10 = vpop.f32.mrf.mxu1  ;;  %v11420_v52 = vld [vmem:[#allocation5 + $0x3e0] sm:$0xff]  ;;  %8516 = vmatpush.bf16.msrb.mxu0 %v11412_v35  ;;  %v11409_v35 = vld [vmem:[#allocation5 + $0x388] sm:$0xff] }
 0x62e   : > { %v11264_v4 = vld [vmem:[#allocation4 + $0x804] sm:$0xf]  ;;  %8605 = vmatpush.bf16.msrb.mxu1 %v11420_v52  ;;  %v11417_v52 = vld [vmem:[#allocation5 + $0x3c8] sm:$0xff] }
 0x62f   : > { %v8189_v17 = vadd.f32 %v8188_v34, %v8100_v23  ;;  %8052 = vmatmul.bf16.gmra.mxu2 %v10207_v31  ;;  %8141 = vmatmul.bf16.gmra.mxu3 %v10211_v1  ;;  %v10280_v23 = vld [vmem:[#allocation4 + $0x848] sm:$0xf0]  ;;  %v11419_v31 = vld [vmem:[#allocation5 + $0x3d8] sm:$0xff] }
 0x631   : > { %v13783_v59 = vadd.f32 %v8277_v10, %v8189_v17  ;;  %v11411_v10 = vld [vmem:[#allocation5 + $0x398] sm:$0xff] }
 0x632   : > { %v8013_v19 = vpop.f32.mrf.mxu2  ;;  %v8102_v9 = vpop.f32.mrf.mxu3  ;;  %8517 = vmatpush.bf16.msrb.mxu0 %v11411_v10  ;;  %8606 = vmatpush.bf16.msrb.mxu1 %v11419_v31 }
 0x633   : > { %v8014_v48 = vadd.f32 %v8013_v19, %v13690_v22  ;;  %v10278_v22 = vld [vmem:[#allocation4 + $0x800] sm:$0xf]  ;;  %v10283_v19 = vor.u32 %v11264_v4, %v10280_v23 }
 0x634   : > { %v10279_v47 = vor.u32 %v11273_v50, %v10278_v22  ;;  %v11265_v22 = vld [vmem:[#allocation4 + $0x80c] sm:$0xf]  ;;  %v11408_v23 = vld [vmem:[#allocation5 + $0x380] sm:$0xff] }
 0x635   : > { %v8103_v3 = vadd.f32 %v8102_v9, %v8014_v48  ;;  %v8191_v12 = vpop.f32.mrf.mxu0  ;;  %v8280_v46 = vpop.f32.mrf.mxu1  ;;  %v11410_v48 = vld [vmem:[#allocation5 + $0x390] sm:$0xff] }
 0x636   : > { %8518 = vmatpush.bf16.msrb.mxu0 %v11410_v48  ;;  %8607 = vmatpush.bf16.msrb.mxu1 %v11418_v32 }
 0x637   : > { %v8192_v33 = vadd.f32 %v8191_v12, %v8103_v3  ;;  %v11439_v3 = vld [vmem:[#allocation5 + $0x478] sm:$0xff] }
 0x638   : > { %8230 = vmatmul.bf16.gmra.mxu0 %v10215_v57  ;;  %8319 = vmatmul.bf16.gmra.mxu1 %v10219_v24 }
 0x639   : > { %v13786_v61 = vadd.f32 %v8280_v46, %v8192_v33  ;;  %v11274_v46 = vld [vmem:[#allocation4 + $0x84c] sm:$0xf0]  ;;  %8780 = vmatpush.bf16.msrb.mxu3 %v11439_v3 }
 0x63a   : > { %v8015_v54 = vpop.f32.mrf.mxu2  ;;  %v8104_v8 = vpop.f32.mrf.mxu3  ;;  %8519 = vmatpush.bf16.msrb.mxu0 %v11409_v35  ;;  %8608 = vmatpush.bf16.msrb.mxu1 %v11417_v52 }
 0x63b   : > { %v8016_v34 = vadd.f32 %v8015_v54, %v13693_v45  ;;  %v10287_v54 = vor.u32 %v11274_v46, %v10286_v20  ;;  %v10360_v20 = vld [vmem:[#allocation4 + $0x8e0] sm:$0xf0] }
 0x63d   : > { %v8105_v1 = vadd.f32 %v8104_v8, %v8016_v34  ;;  %v8193_v17 = vpop.f32.mrf.mxu0  ;;  %v8282_v38 = vpop.f32.mrf.mxu1  ;;  %v10291_v8 = vor.u32 %v11265_v22, %v10288_v56  ;;  %v11416_v34 = vld [vmem:[#allocation5 + $0x3c0] sm:$0xff]  ;;  %v11283_v22 = vld [vmem:[#allocation4 + $0x89c] sm:$0xf] }
 0x63e   : > { %8520 = vmatpush.bf16.msrb.mxu0 %v11408_v23  ;;  %8609 = vmatpush.bf16.msrb.mxu1 %v11416_v34  ;;  %v11292_v56 = vld [vmem:[#allocation4 + $0x8dc] sm:$0xf0]  ;;  %v10363_v52 = vor.u32 %v11283_v22, %v10360_v20  ;;  %v11023_v34 = vld [vmem:[#allocation4 + $0x74] sm:$0xf0] }
 0x63f   : > { %v8194_v9 = vadd.f32 %v8193_v17, %v8105_v1  ;;  %8057 = vmatmul.bf16.gmra.mxu2 %v10279_v47  ;;  %8146 = vmatmul.bf16.gmra.mxu3 %v10283_v19  ;;  %v11291_v1 = vld [vmem:[#allocation4 + $0x8d4] sm:$0xf0]  ;;  %v11282_v17 = vld [vmem:[#allocation4 + $0x894] sm:$0xf] }
 0x641   : > { %v13789_v2 = vadd.f32 %v8282_v38, %v8194_v9  ;;  %v10352_v38 = vld [vmem:[#allocation4 + $0x8d8] sm:$0xf0] }
 0x642   : > { %v8018_v45 = vpop.f32.mrf.mxu2  ;;  %v8107_v40 = vpop.f32.mrf.mxu3  ;;  %v10355_v13 = vor.u32 %v11282_v17, %v10352_v38 }
 0x643   : > { %v8019_v12 = vadd.f32 %v8018_v45, %v13696_v58  ;;  %v10350_v58 = vld [vmem:[#allocation4 + $0x890] sm:$0xf] }
 0x644   : > { %v10351_v32 = vor.u32 %v11291_v1, %v10350_v58 }
 0x645   : > { %v8108_v57 = vadd.f32 %v8107_v40, %v8019_v12  ;;  %v8196_v24 = vpop.f32.mrf.mxu0  ;;  %v8285_v33 = vpop.f32.mrf.mxu1 }
 0x647   : > { %v8197_v50 = vadd.f32 %v8196_v24, %v8108_v57 }
 0x648   : > { %8235 = vmatmul.bf16.gmra.mxu0 %v10287_v54  ;;  %8324 = vmatmul.bf16.gmra.mxu1 %v10291_v8 }
 0x649   : > { %v13792_v4 = vadd.f32 %v8285_v33, %v8197_v50  ;;  %v10358_v33 = vld [vmem:[#allocation4 + $0x898] sm:$0xf]  ;;  %v9286_v50 = vld [vmem:[#allocation4 + $0x30] sm:$0xf] }
 0x64a   : > { %v8020_v10 = vpop.f32.mrf.mxu2  ;;  %v8109_v31 = vpop.f32.mrf.mxu3  ;;  %v10359_v35 = vor.u32 %v11292_v56, %v10358_v33  ;;  %v11015_v56 = vld [vmem:[#allocation4 + $0x3c] sm:$0xf] }
 0x64b   : > { %v8021_v47 = vadd.f32 %v8020_v10, %v13699_v39  ;;  %v11014_v10 = vld [vmem:[#allocation4 + $0x34] sm:$0xf] }
 0x64d   : > { %v8110_v19 = vadd.f32 %v8109_v31, %v8021_v47  ;;  %v8198_v9 = vpop.f32.mrf.mxu0  ;;  %v8287_v48 = vpop.f32.mrf.mxu1  ;;  %v9287_v47 = vor.u32 %v11023_v34, %v9286_v50  ;;  %v9360_v34 = vld [vmem:[#allocation4 + $0x108] sm:$0xf0] }
 0x64f   : > { %v8199_v45 = vadd.f32 %v8198_v9, %v8110_v19  ;;  %8062 = vmatmul.bf16.gmra.mxu2 %v10351_v32  ;;  %8151 = vmatmul.bf16.gmra.mxu3 %v10355_v13  ;;  %v11430_v32 = vld [vmem:[#allocation5 + $0x430] sm:$0xff] }
 0x650   : > { %v11438_v13 = vld [vmem:[#allocation5 + $0x470] sm:$0xff]  ;;  %8692 = vmatpush.bf16.msrb.mxu2 %v11430_v32 }
 0x651   : > { %v13795_v40 = vadd.f32 %v8287_v48, %v8199_v45  ;;  %8781 = vmatpush.bf16.msrb.mxu3 %v11438_v13  ;;  %v9366_v13 = vld [vmem:[#allocation4 + $0xc8] sm:$0xf] }
 0x652   : > { %v8023_v3 = vpop.f32.mrf.mxu2  ;;  %v8112_v12 = vpop.f32.mrf.mxu3 }
 0x653   : > { %v8024_v46 = vadd.f32 %v8023_v3, %v13702_v6  ;;  %v9288_v6 = vld [vmem:[#allocation4 + $0x78] sm:$0xf0] }
 0x654   : > { %v9291_v19 = vor.u32 %v11014_v10, %v9288_v6 }
 0x655   : > { %v8113_v57 = vadd.f32 %v8112_v12, %v8024_v46  ;;  %v8201_v39 = vpop.f32.mrf.mxu0  ;;  %v8290_v24 = vpop.f32.mrf.mxu1  ;;  %v9294_v46 = vld [vmem:[#allocation4 + $0x38] sm:$0xf] }
 0x657   : > { %v8202_v54 = vadd.f32 %v8201_v39, %v8113_v57  ;;  %v11024_v39 = vld [vmem:[#allocation4 + $0x7c] sm:$0xf0] }
 0x658   : > { %8240 = vmatmul.bf16.gmra.mxu0 %v10359_v35  ;;  %8329 = vmatmul.bf16.gmra.mxu1 %v10363_v52  ;;  %v9295_v33 = vor.u32 %v11024_v39, %v9294_v46  ;;  %v9368_v46 = vld [vmem:[#allocation4 + $0x110] sm:$0xf0] }
 0x659   : > { %v13798_v8 = vadd.f32 %v8290_v24, %v8202_v54  ;;  %v9296_v24 = vld [vmem:[#allocation4 + $0x80] sm:$0xf0]  ;;  %v9358_v54 = vld [vmem:[#allocation4 + $0xc0] sm:$0xf] }
 0x65a   : > { %v8025_v58 = vpop.f32.mrf.mxu2  ;;  %v8114_v23 = vpop.f32.mrf.mxu3  ;;  %v9299_v22 = vor.u32 %v11015_v56, %v9296_v24 }
 0x65b   : > { %v8026_v31 = vadd.f32 %v8025_v58, %v13705_v44 }
 0x65d   : > { %v8115_v1 = vadd.f32 %v8114_v23, %v8026_v31  ;;  %v8203_v17 = vpop.f32.mrf.mxu0  ;;  %v8292_v38 = vpop.f32.mrf.mxu1  ;;  %v11032_v23 = vld [vmem:[#allocation4 + $0xc4] sm:$0xf] }
 0x65f   : > { %v8204_v9 = vadd.f32 %v8203_v17, %v8115_v1  ;;  %8343 = vmatmul.bf16.vlgmr.msra.gmra.mxu2 %v9287_v47  ;;  %8432 = vmatmul.bf16.vlgmr.msra.gmra.mxu3 %v9291_v19 }
 0x661   : > { %v13801_v48 = vadd.f32 %v8292_v38, %v8204_v9  ;;  %v9363_v38 = vor.u32 %v11032_v23, %v9360_v34 }
 0x662   : > { %v8028_v45 = vpop.f32.mrf.mxu2  ;;  %v8117_v3 = vpop.f32.mrf.mxu3 }
 0x663   : > { %v8029_v12 = vadd.f32 %v8028_v45, %v13708_v41  ;;  %v11041_v41 = vld [vmem:[#allocation4 + $0x104] sm:$0xf0] }
 0x664   : > { %v9359_v17 = vor.u32 %v11041_v41, %v9358_v54  ;;  %v11059_v54 = vld [vmem:[#allocation4 + $0x194] sm:$0xf0] }
 0x665   : > { %v8118_v44 = vadd.f32 %v8117_v3, %v8029_v12  ;;  %v8206_v20 = vpop.f32.mrf.mxu0  ;;  %v8295_v57 = vpop.f32.mrf.mxu1  ;;  %v11042_v3 = vld [vmem:[#allocation4 + $0x10c] sm:$0xf0]  ;;  %v11033_v12 = vld [vmem:[#allocation4 + $0xcc] sm:$0xf] }
 0x667   : > { %v8207_v35 = vadd.f32 %v8206_v20, %v8118_v44  ;;  %v9367_v20 = vor.u32 %v11042_v3, %v9366_v13  ;;  %v11051_v3 = vld [vmem:[#allocation4 + $0x15c] sm:$0xf] }
 0x668   : > { %8521 = vmatmul.bf16.vlgmr.msrb.gmra.mxu0 %v9295_v33  ;;  %8610 = vmatmul.bf16.vlgmr.msrb.gmra.mxu1 %v9299_v22  ;;  %v9430_v33 = vld [vmem:[#allocation4 + $0x150] sm:$0xf] }
 0x669   : > { %v13804_v52 = vadd.f32 %v8295_v57, %v8207_v35  ;;  %v9371_v57 = vor.u32 %v11033_v12, %v9368_v46 }
 0x66a   : > { %v8030_v50 = vpop.f32.mrf.mxu2  ;;  %v8119_v58 = vpop.f32.mrf.mxu3 }
 0x66b   : > { %v8031_v10 = vadd.f32 %v8030_v50, %v13711_v0  ;;  %v11050_v50 = vld [vmem:[#allocation4 + $0x154] sm:$0xf] }
 0x66d   : > { %v8120_v6 = vadd.f32 %v8119_v58, %v8031_v10  ;;  %v8208_v31 = vpop.f32.mrf.mxu0  ;;  %v8297_v1 = vpop.f32.mrf.mxu1  ;;  %v9432_v58 = vld [vmem:[#allocation4 + $0x198] sm:$0xf0]  ;;  %v9431_v10 = vor.u32 %v11059_v54, %v9430_v33  ;;  %v9504_v54 = vld [vmem:[#allocation4 + $0x228] sm:$0xf0] }
 0x66f   : > { %v8209_v47 = vadd.f32 %v8208_v31, %v8120_v6  ;;  %8348 = vmatmul.bf16.gmra.mxu2 %v9359_v17  ;;  %8437 = vmatmul.bf16.gmra.mxu3 %v9363_v38  ;;  %v9435_v6 = vor.u32 %v11050_v50, %v9432_v58  ;;  %v11429_v17 = vld [vmem:[#allocation5 + $0x428] sm:$0xff] }
 0x670   : > { %v11437_v38 = vld [vmem:[#allocation5 + $0x468] sm:$0xff]  ;;  %8693 = vmatpush.bf16.msrb.mxu2 %v11429_v17 }
 0x671   : > { %v13807_v19 = vadd.f32 %v8297_v1, %v8209_v47  ;;  %8782 = vmatpush.bf16.msrb.mxu3 %v11437_v38  ;;  %v9510_v38 = vld [vmem:[#allocation4 + $0x1e8] sm:$0xf] }
 0x672   : > { %v8033_v9 = vpop.f32.mrf.mxu2  ;;  %v8122_v32 = vpop.f32.mrf.mxu3 }
 0x673   : > { %v8034_v45 = vadd.f32 %v8033_v9, %v13714_v60 }
 0x675   : > { %v8123_v56 = vadd.f32 %v8122_v32, %v8034_v45  ;;  %v8211_v0 = vpop.f32.mrf.mxu0  ;;  %v8300_v44 = vpop.f32.mrf.mxu1  ;;  %v9438_v32 = vld [vmem:[#allocation4 + $0x158] sm:$0xf]  ;;  %v11060_v45 = vld [vmem:[#allocation4 + $0x19c] sm:$0xf0] }
 0x677   : > { %v8212_v39 = vadd.f32 %v8211_v0, %v8123_v56  ;;  %v9439_v0 = vor.u32 %v11060_v45, %v9438_v32  ;;  %v11069_v32 = vld [vmem:[#allocation4 + $0x1ec] sm:$0xf] }
 0x678   : > { %8526 = vmatmul.bf16.gmra.mxu0 %v9367_v20  ;;  %8615 = vmatmul.bf16.gmra.mxu1 %v9371_v57 }
 0x679   : > { %v13810_v24 = vadd.f32 %v8300_v44, %v8212_v39  ;;  %v9502_v39 = vld [vmem:[#allocation4 + $0x1e0] sm:$0xf] }
 0x67a   : > { %v8035_v22 = vpop.f32.mrf.mxu2  ;;  %v8124_v35 = vpop.f32.mrf.mxu3 }
 0x67b   : > { %v8036_v60 = vadd.f32 %v8035_v22, %v13717_v14  ;;  %v9440_v14 = vld [vmem:[#allocation4 + $0x1a0] sm:$0xf0] }
 0x67c   : > { %v9443_v44 = vor.u32 %v11051_v3, %v9440_v14 }
 0x67d   : > { %v8125_v41 = vadd.f32 %v8124_v35, %v8036_v60  ;;  %v8213_v23 = vpop.f32.mrf.mxu0  ;;  %v8302_v34 = vpop.f32.mrf.mxu1  ;;  %v11077_v35 = vld [vmem:[#allocation4 + $0x224] sm:$0xf0] }
 0x67f   : > { %v8214_v31 = vadd.f32 %v8213_v23, %v8125_v41  ;;  %8353 = vmatmul.bf16.gmra.mxu2 %v9431_v10  ;;  %8442 = vmatmul.bf16.gmra.mxu3 %v9435_v6  ;;  %v9503_v23 = vor.u32 %v11077_v35, %v9502_v39  ;;  %v11095_v39 = vld [vmem:[#allocation4 + $0x2b4] sm:$0xf0] }
 0x681   : > { %v13813_v1 = vadd.f32 %v8302_v34, %v8214_v31 }
 0x682   : > { %v8038_v47 = vpop.f32.mrf.mxu2  ;;  %v8127_v9 = vpop.f32.mrf.mxu3 }
 0x683   : > { %v8039_v13 = vadd.f32 %v8038_v47, %v13720_v30  ;;  %v11068_v30 = vld [vmem:[#allocation4 + $0x1e4] sm:$0xf] }
 0x684   : > { %v9507_v34 = vor.u32 %v11068_v30, %v9504_v54 }
 0x685   : > { %v8128_v12 = vadd.f32 %v8127_v9, %v8039_v13  ;;  %v8216_v46 = vpop.f32.mrf.mxu0  ;;  %v8305_v56 = vpop.f32.mrf.mxu1  ;;  %v11078_v9 = vld [vmem:[#allocation4 + $0x22c] sm:$0xf0]  ;;  %v9512_v13 = vld [vmem:[#allocation4 + $0x230] sm:$0xf0] }
 0x686   : > { %v9511_v14 = vor.u32 %v11078_v9, %v9510_v38  ;;  %v11087_v9 = vld [vmem:[#allocation4 + $0x27c] sm:$0xf] }
 0x687   : > { %v8217_v20 = vadd.f32 %v8216_v46, %v8128_v12  ;;  %v9515_v12 = vor.u32 %v11069_v32, %v9512_v13 }
 0x688   : > { %8531 = vmatmul.bf16.gmra.mxu0 %v9439_v0  ;;  %8620 = vmatmul.bf16.gmra.mxu1 %v9443_v44  ;;  %v9574_v0 = vld [vmem:[#allocation4 + $0x270] sm:$0xf] }
 0x689   : > { %v13816_v57 = vadd.f32 %v8305_v56, %v8217_v20 }
 0x68a   : > { %v8040_v33 = vpop.f32.mrf.mxu2  ;;  %v8129_v22 = vpop.f32.mrf.mxu3 }
 0x68b   : > { %v8041_v50 = vadd.f32 %v8040_v33, %v13723_v55  ;;  %v11086_v33 = vld [vmem:[#allocation4 + $0x274] sm:$0xf] }
 0x68d   : > { %v8130_v58 = vadd.f32 %v8129_v22, %v8041_v50  ;;  %v8218_v60 = vpop.f32.mrf.mxu0  ;;  %v8307_v41 = vpop.f32.mrf.mxu1  ;;  %v9576_v22 = vld [vmem:[#allocation4 + $0x2b8] sm:$0xf0]  ;;  %v9575_v50 = vor.u32 %v11095_v39, %v9574_v0  ;;  %v9648_v39 = vld [vmem:[#allocation4 + $0x348] sm:$0xf0] }
 0x68f   : > { %v8219_v10 = vadd.f32 %v8218_v60, %v8130_v58  ;;  %8358 = vmatmul.bf16.gmra.mxu2 %v9503_v23  ;;  %8447 = vmatmul.bf16.gmra.mxu3 %v9507_v34  ;;  %v9579_v58 = vor.u32 %v11086_v33, %v9576_v22  ;;  %v11428_v23 = vld [vmem:[#allocation5 + $0x420] sm:$0xff] }
 0x690   : > { %v11436_v34 = vld [vmem:[#allocation5 + $0x460] sm:$0xff]  ;;  %8694 = vmatpush.bf16.msrb.mxu2 %v11428_v23 }
 0x691   : > { %v13819_v6 = vadd.f32 %v8307_v41, %v8219_v10  ;;  %8783 = vmatpush.bf16.msrb.mxu3 %v11436_v34  ;;  %v9654_v34 = vld [vmem:[#allocation4 + $0x308] sm:$0xf] }
 0x692   : > { %v8043_v31 = vpop.f32.mrf.mxu2  ;;  %v8132_v17 = vpop.f32.mrf.mxu3 }
 0x693   : > { %v8044_v47 = vadd.f32 %v8043_v31, %v13726_v27 }
 0x695   : > { %v8133_v45 = vadd.f32 %v8132_v17, %v8044_v47  ;;  %v8221_v55 = vpop.f32.mrf.mxu0  ;;  %v8310_v3 = vpop.f32.mrf.mxu1  ;;  %v9582_v17 = vld [vmem:[#allocation4 + $0x278] sm:$0xf]  ;;  %v11096_v47 = vld [vmem:[#allocation4 + $0x2bc] sm:$0xf0] }
 0x697   : > { %v8222_v46 = vadd.f32 %v8221_v55, %v8133_v45  ;;  %v9583_v55 = vor.u32 %v11096_v47, %v9582_v17  ;;  %v11105_v17 = vld [vmem:[#allocation4 + $0x30c] sm:$0xf] }
 0x698   : > { %8536 = vmatmul.bf16.gmra.mxu0 %v9511_v14  ;;  %8625 = vmatmul.bf16.gmra.mxu1 %v9515_v12 }
 0x699   : > { %v13822_v56 = vadd.f32 %v8310_v3, %v8222_v46  ;;  %v9646_v46 = vld [vmem:[#allocation4 + $0x300] sm:$0xf] }
 0x69a   : > { %v8045_v44 = vpop.f32.mrf.mxu2  ;;  %v8134_v20 = vpop.f32.mrf.mxu3 }
 0x69b   : > { %v8046_v27 = vadd.f32 %v8045_v44, %v13729_v28  ;;  %v9584_v28 = vld [vmem:[#allocation4 + $0x2c0] sm:$0xf0] }
 0x69c   : > { %v9587_v3 = vor.u32 %v11087_v9, %v9584_v28 }
 0x69d   : > { %v8135_v35 = vadd.f32 %v8134_v20, %v8046_v27  ;;  %v8223_v30 = vpop.f32.mrf.mxu0  ;;  %v8312_v54 = vpop.f32.mrf.mxu1  ;;  %v11113_v20 = vld [vmem:[#allocation4 + $0x344] sm:$0xf0] }
 0x69f   : > { %v8224_v60 = vadd.f32 %v8223_v30, %v8135_v35  ;;  %8363 = vmatmul.bf16.gmra.mxu2 %v9575_v50  ;;  %8452 = vmatmul.bf16.gmra.mxu3 %v9579_v58  ;;  %v9647_v30 = vor.u32 %v11113_v20, %v9646_v46  ;;  %v11131_v46 = vld [vmem:[#allocation4 + $0x3d4] sm:$0xf0] }
 0x6a1   : > { %v13825_v41 = vadd.f32 %v8312_v54, %v8224_v60 }
 0x6a2   : > { %v8048_v10 = vpop.f32.mrf.mxu2  ;;  %v8137_v31 = vpop.f32.mrf.mxu3 }
 0x6a3   : > { %v8049_v38 = vadd.f32 %v8048_v10, %v13732_v18  ;;  %v11104_v18 = vld [vmem:[#allocation4 + $0x304] sm:$0xf] }
 0x6a4   : > { %v9651_v54 = vor.u32 %v11104_v18, %v9648_v39 }
 0x6a5   : > { %v8138_v32 = vadd.f32 %v8137_v31, %v8049_v38  ;;  %v8226_v13 = vpop.f32.mrf.mxu0  ;;  %v8315_v45 = vpop.f32.mrf.mxu1  ;;  %v11114_v31 = vld [vmem:[#allocation4 + $0x34c] sm:$0xf0]  ;;  %v9656_v38 = vld [vmem:[#allocation4 + $0x350] sm:$0xf0] }
 0x6a6   : > { %v9655_v28 = vor.u32 %v11114_v31, %v9654_v34  ;;  %v11123_v31 = vld [vmem:[#allocation4 + $0x39c] sm:$0xf] }
 0x6a7   : > { %v8227_v14 = vadd.f32 %v8226_v13, %v8138_v32  ;;  %v9659_v32 = vor.u32 %v11105_v17, %v9656_v38 }
 0x6a8   : > { %8541 = vmatmul.bf16.gmra.mxu0 %v9583_v55  ;;  %8630 = vmatmul.bf16.gmra.mxu1 %v9587_v3  ;;  %v9718_v55 = vld [vmem:[#allocation4 + $0x390] sm:$0xf] }
 0x6a9   : > { %v13828_v12 = vadd.f32 %v8315_v45, %v8227_v14 }
 0x6aa   : > { %v8050_v0 = vpop.f32.mrf.mxu2  ;;  %v8139_v44 = vpop.f32.mrf.mxu3 }
 0x6ab   : > { %v8051_v33 = vadd.f32 %v8050_v0, %v13735_v42  ;;  %v11122_v0 = vld [vmem:[#allocation4 + $0x394] sm:$0xf] }
 0x6ad   : > { %v8140_v22 = vadd.f32 %v8139_v44, %v8051_v33  ;;  %v8228_v27 = vpop.f32.mrf.mxu0  ;;  %v8317_v35 = vpop.f32.mrf.mxu1  ;;  %v9720_v44 = vld [vmem:[#allocation4 + $0x3d8] sm:$0xf0]  ;;  %v9719_v33 = vor.u32 %v11131_v46, %v9718_v55  ;;  %v9792_v46 = vld [vmem:[#allocation4 + $0x468] sm:$0xf0] }
 0x6af   : > { %v8229_v50 = vadd.f32 %v8228_v27, %v8140_v22  ;;  %8368 = vmatmul.bf16.gmra.mxu2 %v9647_v30  ;;  %8457 = vmatmul.bf16.gmra.mxu3 %v9651_v54  ;;  %v9723_v22 = vor.u32 %v11122_v0, %v9720_v44  ;;  %v11427_v30 = vld [vmem:[#allocation5 + $0x418] sm:$0xff] }
 0x6b0   : > { %v11435_v54 = vld [vmem:[#allocation5 + $0x458] sm:$0xff]  ;;  %8695 = vmatpush.bf16.msrb.mxu2 %v11427_v30 }
 0x6b1   : > { %v13831_v58 = vadd.f32 %v8317_v35, %v8229_v50  ;;  %8784 = vmatpush.bf16.msrb.mxu3 %v11435_v54  ;;  %v9798_v54 = vld [vmem:[#allocation4 + $0x428] sm:$0xf] }
 0x6b2   : > { %v8053_v60 = vpop.f32.mrf.mxu2  ;;  %v8142_v23 = vpop.f32.mrf.mxu3 }
 0x6b3   : > { %v8054_v10 = vadd.f32 %v8053_v60, %v13738_v26 }
 0x6b5   : > { %v8143_v47 = vadd.f32 %v8142_v23, %v8054_v10  ;;  %v8231_v42 = vpop.f32.mrf.mxu0  ;;  %v8320_v9 = vpop.f32.mrf.mxu1  ;;  %v9726_v23 = vld [vmem:[#allocation4 + $0x398] sm:$0xf]  ;;  %v11132_v10 = vld [vmem:[#allocation4 + $0x3dc] sm:$0xf0] }
 0x6b7   : > { %v8232_v13 = vadd.f32 %v8231_v42, %v8143_v47  ;;  %v9727_v42 = vor.u32 %v11132_v10, %v9726_v23  ;;  %v11141_v23 = vld [vmem:[#allocation4 + $0x42c] sm:$0xf] }
 0x6b8   : > { %8546 = vmatmul.bf16.gmra.mxu0 %v9655_v28  ;;  %8635 = vmatmul.bf16.gmra.mxu1 %v9659_v32 }
 0x6b9   : > { %v13834_v45 = vadd.f32 %v8320_v9, %v8232_v13  ;;  %v9790_v13 = vld [vmem:[#allocation4 + $0x420] sm:$0xf] }
 0x6ba   : > { %v8055_v3 = vpop.f32.mrf.mxu2  ;;  %v8144_v14 = vpop.f32.mrf.mxu3 }
 0x6bb   : > { %v8056_v26 = vadd.f32 %v8055_v3, %v13741_v29  ;;  %v9728_v29 = vld [vmem:[#allocation4 + $0x3e0] sm:$0xf0] }
 0x6bc   : > { %v9731_v9 = vor.u32 %v11123_v31, %v9728_v29 }
 0x6bd   : > { %v8145_v20 = vadd.f32 %v8144_v14, %v8056_v26  ;;  %v8233_v18 = vpop.f32.mrf.mxu0  ;;  %v8322_v39 = vpop.f32.mrf.mxu1  ;;  %v11149_v14 = vld [vmem:[#allocation4 + $0x464] sm:$0xf0] }
 0x6bf   : > { %v8234_v27 = vadd.f32 %v8233_v18, %v8145_v20  ;;  %8373 = vmatmul.bf16.gmra.mxu2 %v9719_v33  ;;  %8462 = vmatmul.bf16.gmra.mxu3 %v9723_v22  ;;  %v9791_v18 = vor.u32 %v11149_v14, %v9790_v13  ;;  %v11167_v13 = vld [vmem:[#allocation4 + $0x4f4] sm:$0xf0] }
 0x6c1   : > { %v13837_v35 = vadd.f32 %v8322_v39, %v8234_v27 }
 0x6c2   : > { %v8058_v50 = vpop.f32.mrf.mxu2  ;;  %v8147_v60 = vpop.f32.mrf.mxu3 }
 0x6c3   : > { %v8059_v34 = vadd.f32 %v8058_v50, %v13744_v16  ;;  %v11140_v16 = vld [vmem:[#allocation4 + $0x424] sm:$0xf] }
 0x6c4   : > { %v9795_v39 = vor.u32 %v11140_v16, %v9792_v46 }
 0x6c5   : > { %v8148_v17 = vadd.f32 %v8147_v60, %v8059_v34  ;;  %v8236_v38 = vpop.f32.mrf.mxu0  ;;  %v8325_v47 = vpop.f32.mrf.mxu1  ;;  %v11150_v60 = vld [vmem:[#allocation4 + $0x46c] sm:$0xf0]  ;;  %v9800_v34 = vld [vmem:[#allocation4 + $0x470] sm:$0xf0] }
 0x6c6   : > { %v9799_v29 = vor.u32 %v11150_v60, %v9798_v54  ;;  %v11159_v60 = vld [vmem:[#allocation4 + $0x4bc] sm:$0xf] }
 0x6c7   : > { %v8237_v28 = vadd.f32 %v8236_v38, %v8148_v17  ;;  %v9803_v17 = vor.u32 %v11141_v23, %v9800_v34 }
 0x6c8   : > { %8551 = vmatmul.bf16.gmra.mxu0 %v9727_v42  ;;  %8640 = vmatmul.bf16.gmra.mxu1 %v9731_v9  ;;  %v9862_v42 = vld [vmem:[#allocation4 + $0x4b0] sm:$0xf] }
 0x6c9   : > { %v13840_v32 = vadd.f32 %v8325_v47, %v8237_v28 }
 0x6ca   : > { %v8060_v55 = vpop.f32.mrf.mxu2  ;;  %v8149_v3 = vpop.f32.mrf.mxu3 }
 0x6cb   : > { %v8061_v0 = vadd.f32 %v8060_v55, %v13747_v21  ;;  %v11158_v55 = vld [vmem:[#allocation4 + $0x4b4] sm:$0xf] }
 0x6cd   : > { %v8150_v44 = vadd.f32 %v8149_v3, %v8061_v0  ;;  %v8238_v26 = vpop.f32.mrf.mxu0  ;;  %v8327_v20 = vpop.f32.mrf.mxu1  ;;  %v9864_v3 = vld [vmem:[#allocation4 + $0x4f8] sm:$0xf0]  ;;  %v9863_v0 = vor.u32 %v11167_v13, %v9862_v42  ;;  %v9936_v13 = vld [vmem:[#allocation4 + $0x588] sm:$0xf0] }
 0x6cf   : > { %v8239_v33 = vadd.f32 %v8238_v26, %v8150_v44  ;;  %8378 = vmatmul.bf16.gmra.mxu2 %v9791_v18  ;;  %8467 = vmatmul.bf16.gmra.mxu3 %v9795_v39  ;;  %v9867_v44 = vor.u32 %v11158_v55, %v9864_v3  ;;  %v11426_v18 = vld [vmem:[#allocation5 + $0x410] sm:$0xff] }
 0x6d0   : > { %v11434_v39 = vld [vmem:[#allocation5 + $0x450] sm:$0xff]  ;;  %8696 = vmatpush.bf16.msrb.mxu2 %v11426_v18 }
 0x6d1   : > { %v13843_v22 = vadd.f32 %v8327_v20, %v8239_v33  ;;  %8785 = vmatpush.bf16.msrb.mxu3 %v11434_v39  ;;  %v9942_v39 = vld [vmem:[#allocation4 + $0x548] sm:$0xf] }
 0x6d2   : > { %v8063_v27 = vpop.f32.mrf.mxu2  ;;  %v8152_v30 = vpop.f32.mrf.mxu3 }
 0x6d3   : > { %v8064_v50 = vadd.f32 %v8063_v27, %v13750_v53 }
 0x6d5   : > { %v8153_v10 = vadd.f32 %v8152_v30, %v8064_v50  ;;  %v8241_v21 = vpop.f32.mrf.mxu0  ;;  %v8330_v31 = vpop.f32.mrf.mxu1  ;;  %v9870_v30 = vld [vmem:[#allocation4 + $0x4b8] sm:$0xf]  ;;  %v11168_v50 = vld [vmem:[#allocation4 + $0x4fc] sm:$0xf0] }
 0x6d7   : > { %v8242_v38 = vadd.f32 %v8241_v21, %v8153_v10  ;;  %v9871_v21 = vor.u32 %v11168_v50, %v9870_v30  ;;  %v11177_v30 = vld [vmem:[#allocation4 + $0x54c] sm:$0xf] }
 0x6d8   : > { %8556 = vmatmul.bf16.gmra.mxu0 %v9799_v29  ;;  %8645 = vmatmul.bf16.gmra.mxu1 %v9803_v17 }
 0x6d9   : > { %v13846_v47 = vadd.f32 %v8330_v31, %v8242_v38  ;;  %v9934_v38 = vld [vmem:[#allocation4 + $0x540] sm:$0xf] }
 0x6da   : > { %v8065_v9 = vpop.f32.mrf.mxu2  ;;  %v8154_v28 = vpop.f32.mrf.mxu3 }
 0x6db   : > { %v8066_v53 = vadd.f32 %v8065_v9, %v13753_v5  ;;  %v9872_v5 = vld [vmem:[#allocation4 + $0x500] sm:$0xf0] }
 0x6dc   : > { %v9875_v31 = vor.u32 %v11159_v60, %v9872_v5 }
 0x6dd   : > { %v8155_v14 = vadd.f32 %v8154_v28, %v8066_v53  ;;  %v8243_v16 = vpop.f32.mrf.mxu0  ;;  %v8332_v46 = vpop.f32.mrf.mxu1  ;;  %v11185_v28 = vld [vmem:[#allocation4 + $0x584] sm:$0xf0] }
 0x6df   : > { %v8244_v26 = vadd.f32 %v8243_v16, %v8155_v14  ;;  %8383 = vmatmul.bf16.gmra.mxu2 %v9863_v0  ;;  %8472 = vmatmul.bf16.gmra.mxu3 %v9867_v44  ;;  %v9935_v16 = vor.u32 %v11185_v28, %v9934_v38  ;;  %v11203_v38 = vld [vmem:[#allocation4 + $0x614] sm:$0xf0] }
 0x6e1   : > { %v13849_v20 = vadd.f32 %v8332_v46, %v8244_v26 }
 0x6e2   : > { %v8344_v33 = vpop.f32.mrf.mxu2  ;;  %v8433_v27 = vpop.f32.mrf.mxu3 }
 0x6e3   : > { %v8345_v54 = vadd.f32 %v8344_v33, %v13756_v36  ;;  %v11176_v36 = vld [vmem:[#allocation4 + $0x544] sm:$0xf] }
 0x6e4   : > { %v9939_v46 = vor.u32 %v11176_v36, %v9936_v13 }
 0x6e5   : > { %v8434_v23 = vadd.f32 %v8433_v27, %v8345_v54  ;;  %v8522_v34 = vpop.f32.mrf.mxu0  ;;  %v8611_v10 = vpop.f32.mrf.mxu1  ;;  %v11186_v27 = vld [vmem:[#allocation4 + $0x58c] sm:$0xf0]  ;;  %v9944_v54 = vld [vmem:[#allocation4 + $0x590] sm:$0xf0] }
 0x6e6   : > { %v9943_v5 = vor.u32 %v11186_v27, %v9942_v39  ;;  %v11195_v27 = vld [vmem:[#allocation4 + $0x5dc] sm:$0xf] }
 0x6e7   : > { %v8523_v29 = vadd.f32 %v8522_v34, %v8434_v23  ;;  %v9947_v23 = vor.u32 %v11177_v30, %v9944_v54 }
 0x6e8   : > { %8561 = vmatmul.bf16.gmra.mxu0 %v9871_v21  ;;  %8650 = vmatmul.bf16.gmra.mxu1 %v9875_v31  ;;  %v10006_v21 = vld [vmem:[#allocation4 + $0x5d0] sm:$0xf] }
 0x6e9   : > { %v13852_v17 = vadd.f32 %v8611_v10, %v8523_v29 }
 0x6ea   : > { %v8346_v42 = vpop.f32.mrf.mxu2  ;;  %v8435_v9 = vpop.f32.mrf.mxu3 }
 0x6eb   : > { %v8347_v55 = vadd.f32 %v8346_v42, %v13759_v62  ;;  %v11194_v42 = vld [vmem:[#allocation4 + $0x5d4] sm:$0xf] }
 0x6ed   : > { %v8436_v3 = vadd.f32 %v8435_v9, %v8347_v55  ;;  %v8524_v53 = vpop.f32.mrf.mxu0  ;;  %v8613_v14 = vpop.f32.mrf.mxu1  ;;  %v10008_v9 = vld [vmem:[#allocation4 + $0x618] sm:$0xf0]  ;;  %v10007_v55 = vor.u32 %v11203_v38, %v10006_v21  ;;  %v10080_v38 = vld [vmem:[#allocation4 + $0x6a8] sm:$0xf0] }
 0x6ef   : > { %v8525_v0 = vadd.f32 %v8524_v53, %v8436_v3  ;;  %8388 = vmatmul.bf16.gmra.mxu2 %v9935_v16  ;;  %8477 = vmatmul.bf16.gmra.mxu3 %v9939_v46  ;;  %v10011_v3 = vor.u32 %v11194_v42, %v10008_v9  ;;  %v11425_v16 = vld [vmem:[#allocation5 + $0x408] sm:$0xff] }
 0x6f0   : > { %v11433_v46 = vld [vmem:[#allocation5 + $0x448] sm:$0xff]  ;;  %8697 = vmatpush.bf16.msrb.mxu2 %v11425_v16 }
 0x6f1   : > { %v13855_v44 = vadd.f32 %v8613_v14, %v8525_v0  ;;  %8786 = vmatpush.bf16.msrb.mxu3 %v11433_v46  ;;  %v10086_v46 = vld [vmem:[#allocation4 + $0x668] sm:$0xf] }
 0x6f2   : > { %v8349_v26 = vpop.f32.mrf.mxu2  ;;  %v8438_v18 = vpop.f32.mrf.mxu3 }
 0x6f3   : > { %v8350_v33 = vadd.f32 %v8349_v26, %v13762_v11 }
 0x6f5   : > { %v8439_v50 = vadd.f32 %v8438_v18, %v8350_v33  ;;  %v8527_v62 = vpop.f32.mrf.mxu0  ;;  %v8616_v60 = vpop.f32.mrf.mxu1  ;;  %v10014_v18 = vld [vmem:[#allocation4 + $0x5d8] sm:$0xf]  ;;  %v11204_v33 = vld [vmem:[#allocation4 + $0x61c] sm:$0xf0] }
 0x6f7   : > { %v8528_v34 = vadd.f32 %v8527_v62, %v8439_v50  ;;  %v10015_v62 = vor.u32 %v11204_v33, %v10014_v18  ;;  %v11213_v18 = vld [vmem:[#allocation4 + $0x66c] sm:$0xf] }
 0x6f8   : > { %8566 = vmatmul.bf16.gmra.mxu0 %v9943_v5  ;;  %8655 = vmatmul.bf16.gmra.mxu1 %v9947_v23 }
 0x6f9   : > { %v13858_v10 = vadd.f32 %v8616_v60, %v8528_v34  ;;  %v10078_v34 = vld [vmem:[#allocation4 + $0x660] sm:$0xf] }
 0x6fa   : > { %v8351_v31 = vpop.f32.mrf.mxu2  ;;  %v8440_v29 = vpop.f32.mrf.mxu3 }
 0x6fb   : > { %v8352_v11 = vadd.f32 %v8351_v31, %v13765_v25  ;;  %v10016_v25 = vld [vmem:[#allocation4 + $0x620] sm:$0xf0] }
 0x6fc   : > { %v10019_v60 = vor.u32 %v11195_v27, %v10016_v25 }
 0x6fd   : > { %v8441_v28 = vadd.f32 %v8440_v29, %v8352_v11  ;;  %v8529_v36 = vpop.f32.mrf.mxu0  ;;  %v8618_v13 = vpop.f32.mrf.mxu1  ;;  %v11221_v29 = vld [vmem:[#allocation4 + $0x6a4] sm:$0xf0] }
 0x6ff   : > { %v8530_v53 = vadd.f32 %v8529_v36, %v8441_v28  ;;  %8393 = vmatmul.bf16.gmra.mxu2 %v10007_v55  ;;  %8482 = vmatmul.bf16.gmra.mxu3 %v10011_v3  ;;  %v10079_v36 = vor.u32 %v11221_v29, %v10078_v34  ;;  %v11239_v34 = vld [vmem:[#allocation4 + $0x734] sm:$0xf0] }
 0x701   : > { %v13861_v14 = vadd.f32 %v8618_v13, %v8530_v53 }
 0x702   : > { %v8354_v0 = vpop.f32.mrf.mxu2  ;;  %v8443_v26 = vpop.f32.mrf.mxu3 }
 0x703   : > { %v8355_v39 = vadd.f32 %v8354_v0, %v13768_v49  ;;  %v11212_v49 = vld [vmem:[#allocation4 + $0x664] sm:$0xf] }
 0x704   : > { %v10083_v13 = vor.u32 %v11212_v49, %v10080_v38 }
 0x705   : > { %v8444_v30 = vadd.f32 %v8443_v26, %v8355_v39  ;;  %v8532_v54 = vpop.f32.mrf.mxu0  ;;  %v8621_v50 = vpop.f32.mrf.mxu1  ;;  %v11222_v26 = vld [vmem:[#allocation4 + $0x6ac] sm:$0xf0]  ;;  %v10088_v39 = vld [vmem:[#allocation4 + $0x6b0] sm:$0xf0] }
 0x706   : > { %v10087_v25 = vor.u32 %v11222_v26, %v10086_v46  ;;  %v11231_v26 = vld [vmem:[#allocation4 + $0x6fc] sm:$0xf] }
 0x707   : > { %v8533_v5 = vadd.f32 %v8532_v54, %v8444_v30  ;;  %v10091_v30 = vor.u32 %v11213_v18, %v10088_v39 }
 0x708   : > { %8571 = vmatmul.bf16.gmra.mxu0 %v10015_v62  ;;  %8660 = vmatmul.bf16.gmra.mxu1 %v10019_v60  ;;  %v10150_v62 = vld [vmem:[#allocation4 + $0x6f0] sm:$0xf] }
 0x709   : > { %v13864_v23 = vadd.f32 %v8621_v50, %v8533_v5  ;;  %v10151_v38 = vor.u32 %v11239_v34, %v10150_v62  ;;  %v10224_v62 = vld [vmem:[#allocation4 + $0x7c8] sm:$0xf0] }
 0x70a   : > { %v8356_v21 = vpop.f32.mrf.mxu2  ;;  %v8445_v31 = vpop.f32.mrf.mxu3 }
 0x70b   : > { %v8357_v42 = vadd.f32 %v8356_v21, %v13771_v7  ;;  %v11230_v21 = vld [vmem:[#allocation4 + $0x6f4] sm:$0xf] }
 0x70d   : > { %v8446_v9 = vadd.f32 %v8445_v31, %v8357_v42  ;;  %v8534_v11 = vpop.f32.mrf.mxu0  ;;  %v8623_v28 = vpop.f32.mrf.mxu1  ;;  %v10152_v31 = vld [vmem:[#allocation4 + $0x738] sm:$0xf0] }
 0x70e   : > { %v10155_v42 = vor.u32 %v11230_v21, %v10152_v31  ;;  %v1184_v21 = vld [vmem:[#allocation3 + $0x60] sm:$0x11] }
 0x70f   : > { %v8535_v55 = vadd.f32 %v8534_v11, %v8446_v9  ;;  %8398 = vmatmul.bf16.gmra.mxu2 %v10079_v36  ;;  %8487 = vmatmul.bf16.gmra.mxu3 %v10083_v13  ;;  %v11424_v36 = vld [vmem:[#allocation5 + $0x400] sm:$0xff] }
 0x710   : > { %v11432_v13 = vld [vmem:[#allocation5 + $0x440] sm:$0xff]  ;;  %8698 = vmatpush.bf16.msrb.mxu2 %v11424_v36  ;;  %v10232_v36 = vld [vmem:[#allocation4 + $0x7d0] sm:$0xf0] }
 0x711   : > { %v13867_v3 = vadd.f32 %v8623_v28, %v8535_v55  ;;  %8787 = vmatpush.bf16.msrb.mxu3 %v11432_v13 }
 0x712   : > { %v8359_v53 = vpop.f32.mrf.mxu2  ;;  %v8448_v16 = vpop.f32.mrf.mxu3 }
 0x713   : > { %v8360_v0 = vadd.f32 %v8359_v53, %v13774_v15 }
 0x715   : > { %v8449_v33 = vadd.f32 %v8448_v16, %v8360_v0  ;;  %v8537_v7 = vpop.f32.mrf.mxu0  ;;  %v8626_v27 = vpop.f32.mrf.mxu1  ;;  %v10158_v16 = vld [vmem:[#allocation4 + $0x6f8] sm:$0xf]  ;;  %v11240_v0 = vld [vmem:[#allocation4 + $0x73c] sm:$0xf0] }
 0x716   : > { %v10159_v39 = vor.u32 %v11240_v0, %v10158_v16  ;;  %v11275_v16 = vld [vmem:[#allocation4 + $0x854] sm:$0xf0] }
 0x717   : > { %v8538_v54 = vadd.f32 %v8537_v7, %v8449_v33  ;;  %v10222_v7 = vld [vmem:[#allocation4 + $0x780] sm:$0xf]  ;;  %v13886_v0 = vld [vmem:[#allocation3 + $0x88] sm:$0xff] }
 0x718   : > { %8576 = vmatmul.bf16.gmra.mxu0 %v10087_v25  ;;  %8665 = vmatmul.bf16.gmra.mxu1 %v10091_v30  ;;  %v11257_v30 = vld [vmem:[#allocation4 + $0x7c4] sm:$0xf0] }
 0x719   : > { %v13870_v50 = vadd.f32 %v8626_v27, %v8538_v54  ;;  %v11248_v54 = vld [vmem:[#allocation4 + $0x784] sm:$0xf] }
 0x71a   : > { %v8361_v60 = vpop.f32.mrf.mxu2  ;;  %v8450_v5 = vpop.f32.mrf.mxu3  ;;  %v10227_v34 = vor.u32 %v11248_v54, %v10224_v62 }
 0x71b   : > { %v8362_v15 = vadd.f32 %v8361_v60, %v13777_v51  ;;  %v10160_v51 = vld [vmem:[#allocation4 + $0x740] sm:$0xf0] }
 0x71c   : > { %v10163_v33 = vor.u32 %v11231_v26, %v10160_v51  ;;  %v4033_v26 = vshll.u32 %v13886_v0, 16  ;;  %v4037_v51 = vshrl.u32 %v13886_v0, 16 }
 0x71d   : > { %v8451_v29 = vadd.f32 %v8450_v5, %v8362_v15  ;;  %v8539_v49 = vpop.f32.mrf.mxu0  ;;  %v8628_v11 = vpop.f32.mrf.mxu1  ;;  %v10223_v5 = vor.u32 %v11257_v30, %v10222_v7  ;;  %v10296_v7 = vld [vmem:[#allocation4 + $0x858] sm:$0xf0] }
 0x71f   : > { %v8540_v9 = vadd.f32 %v8539_v49, %v8451_v29  ;;  %8403 = vmatmul.bf16.gmra.mxu2 %v10151_v38  ;;  %8492 = vmatmul.bf16.gmra.mxu3 %v10155_v42  ;;  %v10230_v29 = vld [vmem:[#allocation4 + $0x788] sm:$0xf]  ;;  %v11249_v49 = vld [vmem:[#allocation4 + $0x78c] sm:$0xf]  ;;  %v1185_v42 = vsel %vm11771_vm10, 0, %v1184_v21  ;;  %v4039_v21 = vrot.slane %v4037_v51, 4 }
 0x720   : > { %1186 = vst [vmem:[#allocation3 + $0x60] sm:$0x11] %v1185_v42 }
 0x721   : > { %v13873_v28 = vadd.f32 %v8628_v11, %v8540_v9  ;;  %v11258_v11 = vld [vmem:[#allocation4 + $0x7cc] sm:$0xf0] }
 0x722   : > { %v8364_v55 = vpop.f32.mrf.mxu2  ;;  %v8453_v53 = vpop.f32.mrf.mxu3  ;;  %v10231_v13 = vor.u32 %v11258_v11, %v10230_v29 }
 0x723   : > { %v8365_v46 = vadd.f32 %v8364_v55, %v13780_v43  ;;  %v10235_v55 = vor.u32 %v11249_v49, %v10232_v36 }
 0x725   : > { %v13876_v18 = vadd.f32 %v8453_v53, %v8365_v46  ;;  %v10294_v53 = vld [vmem:[#allocation4 + $0x810] sm:$0xf]  ;;  %v1243_v46 = vld [vmem:[#allocation3 + $0x190] sm:$0x11] }
 0x726   : > { %v1244_v30 = vsel %vm11784_vm6, 0, %v1243_v46 }
 0x727   : > { %1245 = vst [vmem:[#allocation3 + $0x190] sm:$0x11] %v1244_v30 }
 0x728   : > { %8581 = vmatmul.bf16.gmra.mxu0 %v10159_v39  ;;  %8670 = vmatmul.bf16.gmra.mxu1 %v10163_v33  ;;  %v11266_v33 = vld [vmem:[#allocation4 + $0x814] sm:$0xf] }
 0x72a   : > { %v8366_v27 = vpop.f32.mrf.mxu2  ;;  %v8455_v25 = vpop.f32.mrf.mxu3 }
 0x72b   : > { %v8367_v60 = vadd.f32 %v8366_v27, %v13783_v59  ;;  %v3581_v27 = vld [vmem:[#allocation3 + $0x60] sm:$0xff] }
 0x72c   : > { %3613 = vst [vmem:[#allocation4 + $0x8a0] sm:$0xff] %v3581_v27  ;;  %v4024_v62 = vshrl.u32 %v3581_v27, 16 }
 0x72d   : > { %v13879_v43 = vadd.f32 %v8455_v25, %v8367_v60  ;;  %v4027_v60 = vshll.u32 %v3581_v27, 16  ;;  %v11293_v25 = vld [vmem:[#allocation4 + $0x8e4] sm:$0xf0] }
 0x72e   : > { %v4026_v29 = vrot.slane %v4024_v62, 4  ;;  %v3662_v46 = vld [vmem:[#allocation3 + $0x190] sm:$0x11] }
 0x72f   : > { %8408 = vmatmul.bf16.gmra.mxu2 %v10223_v5  ;;  %8497 = vmatmul.bf16.gmra.mxu3 %v10227_v34  ;;  %v10295_v5 = vor.u32 %v11275_v16, %v10294_v53  ;;  %v4035_v34 = vrot.slane %v4033_v26, 5  ;;  %v4029_v49 = vrot.slane %v4027_v60, 5  ;;  %v11276_v53 = vld [vmem:[#allocation4 + $0x85c] sm:$0xf0]  ;;  %v10304_v16 = vld [vmem:[#allocation4 + $0x860] sm:$0xf0] }
 0x731   : > { %v4030_v38 = vor.u32 %v4029_v49, %v4026_v29  ;;  %v4040_v42 = vor.u32 %v4039_v21, %v4035_v34 }
 0x732   : > { %v8369_v31 = vpop.f32.mrf.mxu2  ;;  %v8458_v15 = vpop.f32.mrf.mxu3 }
 0x733   : > { %v8370_v9 = vadd.f32 %v8369_v31, %v13786_v61  ;;  %v4041_v51 = vrot.slane %v4040_v42, 4  ;;  %v10366_v30 = vld [vmem:[#allocation4 + $0x8a0] sm:$0xf] }
 0x734   : > { %v10367_v21 = vor.u32 %v11293_v25, %v10366_v30 }
 0x735   : > { %v13884_v59 = vadd.f32 %v8458_v15, %v8370_v9  ;;  %v10299_v15 = vor.u32 %v11266_v33, %v10296_v7  ;;  %v4031_v9 = vrot.slane %v4030_v38, 4 }
 0x737   : > { %v4036_v26 = vsel %vm12934_vm5, %v4031_v9, %v4035_v34 }
 0x738   : > { %8586 = vmatmul.bf16.gmra.mxu0 %v10231_v13  ;;  %8675 = vmatmul.bf16.gmra.mxu1 %v10235_v55  ;;  %v11267_v13 = vld [vmem:[#allocation4 + $0x81c] sm:$0xf]  ;;  %4109 = vst [vmem:[#allocation4 + $0x8a8] sm:$0xff] %v4036_v26 }
 0x739   : > { %v10307_v7 = vor.u32 %v11267_v13, %v10304_v16  ;;  %v11025_v16 = vld [vmem:[#allocation4 + $0x84] sm:$0xf0] }
 0x73a   : > { %v8371_v39 = vpop.f32.mrf.mxu2  ;;  %v8460_v61 = vpop.f32.mrf.mxu3 }
 0x73b   : > { %v8372_v54 = vadd.f32 %v8371_v39, %v13789_v2  ;;  %v10302_v2 = vld [vmem:[#allocation4 + $0x818] sm:$0xf]  ;;  %v4043_v39 = vshll.u32 %v3662_v46, 16  ;;  %v9304_v46 = vld [vmem:[#allocation4 + $0x88] sm:$0xf0] }
 0x73c   : > { %v10303_v33 = vor.u32 %v11276_v53, %v10302_v2 }
 0x73d   : > { %v13893_v31 = vadd.f32 %v8460_v61, %v8372_v54  ;;  %v4045_v27 = vrot.slane %v4043_v39, 5  ;;  %v11284_v54 = vld [vmem:[#allocation4 + $0x8a4] sm:$0xf] }
 0x73e   : > { %v11016_v39 = vld [vmem:[#allocation4 + $0x44] sm:$0xf] }
 0x73f   : > { %8413 = vmatmul.bf16.gmra.mxu2 %v10295_v5  ;;  %8502 = vmatmul.bf16.gmra.mxu3 %v10299_v15  ;;  %v4046_v62 = vsel %vm12934_vm5, %v4041_v51, %v4045_v27  ;;  %v10374_v49 = vld [vmem:[#allocation4 + $0x8a8] sm:$0xf]  ;;  %v11285_v42 = vld [vmem:[#allocation4 + $0x8ac] sm:$0xf]  ;;  %v9302_v51 = vld [vmem:[#allocation4 + $0x40] sm:$0xf]  ;;  %v9307_v27 = vor.u32 %v11016_v39, %v9304_v46 }
 0x740   : > { %4110 = vst [vmem:[#allocation4 + $0x8f0] sm:$0xff] %v4046_v62 }
 0x742   : > { %v8374_v11 = vpop.f32.mrf.mxu2  ;;  %v8463_v36 = vpop.f32.mrf.mxu3 }
 0x743   : > { %v8375_v55 = vadd.f32 %v8374_v11, %v13792_v4  ;;  %v10368_v4 = vld [vmem:[#allocation4 + $0x8e8] sm:$0xf0] }
 0x744   : > { %v10371_v15 = vor.u32 %v11284_v54, %v10368_v4 }
 0x745   : > { %v13898_v61 = vadd.f32 %v8463_v36, %v8375_v55 }
 0x747   : > { %v11294_v38 = vld [vmem:[#allocation4 + $0x8ec] sm:$0xf0]  ;;  %v10376_v9 = vld [vmem:[#allocation4 + $0x8f0] sm:$0xf0] }
 0x748   : > { %8591 = vmatmul.bf16.gmra.mxu0 %v10303_v33  ;;  %8680 = vmatmul.bf16.gmra.mxu1 %v10307_v7  ;;  %v10375_v2 = vor.u32 %v11294_v38, %v10374_v49  ;;  %v10379_v13 = vor.u32 %v11285_v42, %v10376_v9  ;;  %v9303_v7 = vor.u32 %v11025_v16, %v9302_v51 }
 0x74a   : > { %v8376_v60 = vpop.f32.mrf.mxu2  ;;  %v8465_v5 = vpop.f32.mrf.mxu3 }
 0x74b   : > { %v8377_v34 = vadd.f32 %v8376_v60, %v13795_v40  ;;  %v11043_v60 = vld [vmem:[#allocation4 + $0x114] sm:$0xf0] }
 0x74d   : > { %v13903_v29 = vadd.f32 %v8465_v5, %v8377_v34  ;;  %v9376_v5 = vld [vmem:[#allocation4 + $0x118] sm:$0xf0]  ;;  %v9374_v34 = vld [vmem:[#allocation4 + $0xd0] sm:$0xf] }
 0x74e   : > { %v9375_v49 = vor.u32 %v11043_v60, %v9374_v34 }
 0x74f   : > { %8418 = vmatmul.bf16.gmra.mxu2 %v10367_v21  ;;  %8507 = vmatmul.bf16.gmra.mxu3 %v10371_v15  ;;  %v11034_v21 = vld [vmem:[#allocation4 + $0xd4] sm:$0xf] }
 0x750   : > { %v9379_v38 = vor.u32 %v11034_v21, %v9376_v5 }
 0x752   : > { %v8379_v11 = vpop.f32.mrf.mxu2  ;;  %v8468_v36 = vpop.f32.mrf.mxu3 }
 0x753   : > { %v8380_v63 = vadd.f32 %v8379_v11, %v13798_v8 }
 0x755   : > { %v13906_v55 = vadd.f32 %v8468_v36, %v8380_v63 }
 0x758   : > { %8596 = vmatmul.bf16.gmra.mxu0 %v10375_v2  ;;  %8685 = vmatmul.bf16.gmra.mxu1 %v10379_v13  ;;  %v11061_v2 = vld [vmem:[#allocation4 + $0x1a4] sm:$0xf0]  ;;  %v9448_v13 = vld [vmem:[#allocation4 + $0x1a8] sm:$0xf0] }
 0x75a   : > { %v8381_v40 = vpop.f32.mrf.mxu2  ;;  %v8470_v53 = vpop.f32.mrf.mxu3 }
 0x75b   : > { %v8382_v26 = vadd.f32 %v8381_v40, %v13801_v48  ;;  %v9446_v40 = vld [vmem:[#allocation4 + $0x160] sm:$0xf] }
 0x75c   : > { %v9447_v46 = vor.u32 %v11061_v2, %v9446_v40 }
 0x75d   : > { %v13909_v33 = vadd.f32 %v8470_v53, %v8382_v26  ;;  %v11052_v53 = vld [vmem:[#allocation4 + $0x164] sm:$0xf] }
 0x75e   : > { %v9451_v26 = vor.u32 %v11052_v53, %v9448_v13 }
 0x75f   : > { %8699 = vmatmul.bf16.vlgmr.msrb.gmra.mxu2 %v9303_v7  ;;  %8788 = vmatmul.bf16.vlgmr.msrb.gmra.mxu3 %v9307_v27 }
 0x762   : > { %v8384_v8 = vpop.f32.mrf.mxu2  ;;  %v8473_v25 = vpop.f32.mrf.mxu3 }
 0x763   : > { %v8385_v30 = vadd.f32 %v8384_v8, %v13804_v52 }
 0x765   : > { %v13912_v54 = vadd.f32 %v8473_v25, %v8385_v30  ;;  %v11079_v25 = vld [vmem:[#allocation4 + $0x234] sm:$0xf0]  ;;  %v9520_v30 = vld [vmem:[#allocation4 + $0x238] sm:$0xf0] }
 0x76a   : > { %v8386_v4 = vpop.f32.mrf.mxu2  ;;  %v8475_v62 = vpop.f32.mrf.mxu3 }
 0x76b   : > { %v8387_v48 = vadd.f32 %v8386_v4, %v13807_v19  ;;  %v9518_v4 = vld [vmem:[#allocation4 + $0x1f0] sm:$0xf] }
 0x76c   : > { %v9519_v5 = vor.u32 %v11079_v25, %v9518_v4 }
 0x76d   : > { %v13915_v15 = vadd.f32 %v8475_v62, %v8387_v48  ;;  %v11070_v62 = vld [vmem:[#allocation4 + $0x1f4] sm:$0xf] }
 0x76e   : > { %v9523_v48 = vor.u32 %v11070_v62, %v9520_v30 }
 0x76f   : > { %8704 = vmatmul.bf16.gmra.mxu2 %v9375_v49  ;;  %8793 = vmatmul.bf16.gmra.mxu3 %v9379_v38 }
 0x772   : > { %v8389_v42 = vpop.f32.mrf.mxu2  ;;  %v8478_v9 = vpop.f32.mrf.mxu3 }
 0x773   : > { %v8390_v52 = vadd.f32 %v8389_v42, %v13810_v24 }
 0x775   : > { %v13918_v11 = vadd.f32 %v8478_v9, %v8390_v52  ;;  %v11097_v9 = vld [vmem:[#allocation4 + $0x2c4] sm:$0xf0]  ;;  %v9592_v52 = vld [vmem:[#allocation4 + $0x2c8] sm:$0xf0] }
 0x77a   : > { %v8391_v36 = vpop.f32.mrf.mxu2  ;;  %v8480_v63 = vpop.f32.mrf.mxu3 }
 0x77b   : > { %v8392_v19 = vadd.f32 %v8391_v36, %v13813_v1  ;;  %v9590_v36 = vld [vmem:[#allocation4 + $0x280] sm:$0xf] }
 0x77c   : > { %v9591_v13 = vor.u32 %v11097_v9, %v9590_v36 }
 0x77d   : > { %v13921_v16 = vadd.f32 %v8480_v63, %v8392_v19  ;;  %v11088_v63 = vld [vmem:[#allocation4 + $0x284] sm:$0xf] }
 0x77e   : > { %v9595_v19 = vor.u32 %v11088_v63, %v9592_v52 }
 0x77f   : > { %8709 = vmatmul.bf16.gmra.mxu2 %v9447_v46  ;;  %8798 = vmatmul.bf16.gmra.mxu3 %v9451_v26 }
 0x782   : > { %v8394_v51 = vpop.f32.mrf.mxu2  ;;  %v8483_v39 = vpop.f32.mrf.mxu3 }
 0x783   : > { %v8395_v24 = vadd.f32 %v8394_v51, %v13816_v57 }
 0x785   : > { %v13924_v7 = vadd.f32 %v8483_v39, %v8395_v24  ;;  %v11115_v39 = vld [vmem:[#allocation4 + $0x354] sm:$0xf0]  ;;  %v9664_v24 = vld [vmem:[#allocation4 + $0x358] sm:$0xf0] }
 0x78a   : > { %v8396_v27 = vpop.f32.mrf.mxu2  ;;  %v8485_v8 = vpop.f32.mrf.mxu3 }
 0x78b   : > { %v8397_v1 = vadd.f32 %v8396_v27, %v13819_v6  ;;  %v9662_v27 = vld [vmem:[#allocation4 + $0x310] sm:$0xf] }
 0x78c   : > { %v9663_v30 = vor.u32 %v11115_v39, %v9662_v27 }
 0x78d   : > { %v13927_v60 = vadd.f32 %v8485_v8, %v8397_v1  ;;  %v11106_v8 = vld [vmem:[#allocation4 + $0x314] sm:$0xf] }
 0x78e   : > { %v9667_v1 = vor.u32 %v11106_v8, %v9664_v24 }
 0x78f   : > { %8714 = vmatmul.bf16.gmra.mxu2 %v9519_v5  ;;  %8803 = vmatmul.bf16.gmra.mxu3 %v9523_v48 }
 0x792   : > { %v8399_v34 = vpop.f32.mrf.mxu2  ;;  %v8488_v21 = vpop.f32.mrf.mxu3 }
 0x793   : > { %v8400_v57 = vadd.f32 %v8399_v34, %v13822_v56 }
 0x795   : > { %v13930_v49 = vadd.f32 %v8488_v21, %v8400_v57  ;;  %v11133_v21 = vld [vmem:[#allocation4 + $0x3e4] sm:$0xf0]  ;;  %v9736_v57 = vld [vmem:[#allocation4 + $0x3e8] sm:$0xf0] }
 0x79a   : > { %v8401_v38 = vpop.f32.mrf.mxu2  ;;  %v8490_v42 = vpop.f32.mrf.mxu3 }
 0x79b   : > { %v8402_v6 = vadd.f32 %v8401_v38, %v13825_v41  ;;  %v9734_v38 = vld [vmem:[#allocation4 + $0x3a0] sm:$0xf] }
 0x79c   : > { %v9735_v52 = vor.u32 %v11133_v21, %v9734_v38 }
 0x79d   : > { %v13933_v2 = vadd.f32 %v8490_v42, %v8402_v6  ;;  %v11124_v42 = vld [vmem:[#allocation4 + $0x3a4] sm:$0xf] }
 0x79e   : > { %v9739_v6 = vor.u32 %v11124_v42, %v9736_v57 }
 0x79f   : > { %8719 = vmatmul.bf16.gmra.mxu2 %v9591_v13  ;;  %8808 = vmatmul.bf16.gmra.mxu3 %v9595_v19 }
 0x7a2   : > { %v8404_v40 = vpop.f32.mrf.mxu2  ;;  %v8493_v53 = vpop.f32.mrf.mxu3 }
 0x7a3   : > { %v8405_v56 = vadd.f32 %v8404_v40, %v13828_v12 }
 0x7a5   : > { %v13936_v46 = vadd.f32 %v8493_v53, %v8405_v56  ;;  %v11151_v53 = vld [vmem:[#allocation4 + $0x474] sm:$0xf0]  ;;  %v9808_v56 = vld [vmem:[#allocation4 + $0x478] sm:$0xf0] }
 0x7aa   : > { %v8406_v26 = vpop.f32.mrf.mxu2  ;;  %v8495_v51 = vpop.f32.mrf.mxu3 }
 0x7ab   : > { %v8407_v41 = vadd.f32 %v8406_v26, %v13831_v58  ;;  %v9806_v26 = vld [vmem:[#allocation4 + $0x430] sm:$0xf] }
 0x7ac   : > { %v9807_v24 = vor.u32 %v11151_v53, %v9806_v26  ;;  %v11178_v53 = vld [vmem:[#allocation4 + $0x554] sm:$0xf]  ;;  %v13970_v26 = vpop.f32.mrf.mxu1 }
 0x7ad   : > { %v13939_v25 = vadd.f32 %v8495_v51, %v8407_v41  ;;  %v11142_v51 = vld [vmem:[#allocation4 + $0x434] sm:$0xf] }
 0x7ae   : > { %v9811_v41 = vor.u32 %v11142_v51, %v9808_v56 }
 0x7af   : > { %8724 = vmatmul.bf16.gmra.mxu2 %v9663_v30  ;;  %8813 = vmatmul.bf16.gmra.mxu3 %v9667_v1 }
 0x7b2   : > { %v8409_v4 = vpop.f32.mrf.mxu2  ;;  %v8498_v62 = vpop.f32.mrf.mxu3 }
 0x7b3   : > { %v8410_v12 = vadd.f32 %v8409_v4, %v13834_v45 }
 0x7b5   : > { %v13942_v5 = vadd.f32 %v8498_v62, %v8410_v12  ;;  %v11169_v62 = vld [vmem:[#allocation4 + $0x504] sm:$0xf0] }
 0x7ba   : > { %v8411_v48 = vpop.f32.mrf.mxu2  ;;  %v8500_v34 = vpop.f32.mrf.mxu3 }
 0x7bb   : > { %v8412_v58 = vadd.f32 %v8411_v48, %v13837_v35  ;;  %v9878_v48 = vld [vmem:[#allocation4 + $0x4c0] sm:$0xf] }
 0x7bc   : > { %v9879_v57 = vor.u32 %v11169_v62, %v9878_v48  ;;  %v13976_v62 = vpop.f32.mrf.mxu1  ;;  %v11196_v48 = vld [vmem:[#allocation4 + $0x5e4] sm:$0xf] }
 0x7bd   : > { %v13945_v9 = vadd.f32 %v8500_v34, %v8412_v58  ;;  %v11160_v34 = vld [vmem:[#allocation4 + $0x4c4] sm:$0xf] }
 0x7bf   : > { %8729 = vmatmul.bf16.gmra.mxu2 %v9735_v52  ;;  %8818 = vmatmul.bf16.gmra.mxu3 %v9739_v6 }
 0x7c2   : > { %v8414_v36 = vpop.f32.mrf.mxu2  ;;  %v8503_v63 = vpop.f32.mrf.mxu3 }
 0x7c3   : > { %v8415_v45 = vadd.f32 %v8414_v36, %v13840_v32  ;;  %v11187_v36 = vld [vmem:[#allocation4 + $0x594] sm:$0xf0] }
 0x7c5   : > { %v13948_v13 = vadd.f32 %v8503_v63, %v8415_v45  ;;  %v9952_v63 = vld [vmem:[#allocation4 + $0x598] sm:$0xf0]  ;;  %v13966_v45 = vpop.f32.mrf.mxu0 }
 0x7ca   : > { %v8416_v19 = vpop.f32.mrf.mxu2  ;;  %v8505_v40 = vpop.f32.mrf.mxu3 }
 0x7cb   : > { %v8417_v35 = vadd.f32 %v8416_v19, %v13843_v22  ;;  %v9880_v22 = vld [vmem:[#allocation4 + $0x508] sm:$0xf0] }
 0x7cc   : > { %v9883_v58 = vor.u32 %v11160_v34, %v9880_v22 }
 0x7cd   : > { %v13951_v39 = vadd.f32 %v8505_v40, %v8417_v35  ;;  %v9950_v40 = vld [vmem:[#allocation4 + $0x550] sm:$0xf] }
 0x7ce   : > { %v9951_v35 = vor.u32 %v11187_v36, %v9950_v40 }
 0x7cf   : > { %8734 = vmatmul.bf16.gmra.mxu2 %v9807_v24  ;;  %8823 = vmatmul.bf16.gmra.mxu3 %v9811_v41 }
 0x7d2   : > { %v8419_v27 = vpop.f32.mrf.mxu2  ;;  %v8508_v8 = vpop.f32.mrf.mxu3 }
 0x7d3   : > { %v8420_v32 = vadd.f32 %v8419_v27, %v13846_v47  ;;  %v13973_v27 = vpop.f32.mrf.mxu0 }
 0x7d5   : > { %v13954_v30 = vadd.f32 %v8508_v8, %v8420_v32 }
 0x7da   : > { %v8421_v1 = vpop.f32.mrf.mxu2  ;;  %v8510_v4 = vpop.f32.mrf.mxu3 }
 0x7db   : > { %v8422_v12 = vadd.f32 %v8421_v1, %v13849_v20  ;;  %v11205_v1 = vld [vmem:[#allocation4 + $0x624] sm:$0xf0] }
 0x7dd   : > { %v13957_v21 = vadd.f32 %v8510_v4, %v8422_v12  ;;  %v10024_v4 = vld [vmem:[#allocation4 + $0x628] sm:$0xf0]  ;;  %v10022_v12 = vld [vmem:[#allocation4 + $0x5e0] sm:$0xf] }
 0x7df   : > { %8739 = vmatmul.bf16.gmra.mxu2 %v9879_v57  ;;  %8828 = vmatmul.bf16.gmra.mxu3 %v9883_v58  ;;  %v10023_v57 = vor.u32 %v11205_v1, %v10022_v12  ;;  %v10027_v58 = vor.u32 %v11196_v48, %v10024_v4  ;;  %v10168_v12 = vld [vmem:[#allocation4 + $0x748] sm:$0xf0] }
 0x7e2   : > { %v8700_v47 = vpop.f32.mrf.mxu2  ;;  %v8789_v38 = vpop.f32.mrf.mxu3 }
 0x7e3   : > { %v8701_v42 = vadd.f32 %v8700_v47, %v13852_v17  ;;  %v9955_v17 = vor.u32 %v11178_v53, %v9952_v63  ;;  %v11223_v63 = vld [vmem:[#allocation4 + $0x6b4] sm:$0xf0]  ;;  %v10094_v53 = vld [vmem:[#allocation4 + $0x670] sm:$0xf] }
 0x7e5   : > { %v8790_v52 = vadd.f32 %v8789_v38, %v8701_v42 }
 0x7e7   : > { %8869 = vst [vmem:[%s13963_s29] sm:$0xff] %v8790_v52  ;;  %v13983_v52 = vpop.f32.mrf.mxu1 }
 0x7ea   : > { %v8702_v20 = vpop.f32.mrf.mxu2  ;;  %v8791_v6 = vpop.f32.mrf.mxu3 }
 0x7eb   : > { %v8703_v19 = vadd.f32 %v8702_v20, %v13855_v44 }
 0x7ed   : > { %v8792_v56 = vadd.f32 %v8791_v6, %v8703_v19  ;;  %v10096_v19 = vld [vmem:[#allocation4 + $0x6b8] sm:$0xf0] }
 0x7ef   : > { %8870 = vst [vmem:[%s13963_s29 + $0x8] sm:$0xff] %v8792_v56  ;;  %8744 = vmatmul.bf16.gmra.mxu2 %v9951_v35  ;;  %8833 = vmatmul.bf16.gmra.mxu3 %v9955_v17  ;;  %v11214_v56 = vld [vmem:[#allocation4 + $0x674] sm:$0xf]  ;;  %v10095_v17 = vor.u32 %v11223_v63, %v10094_v53 }
 0x7f2   : > { %v8705_v51 = vpop.f32.mrf.mxu2  ;;  %v8794_v24 = vpop.f32.mrf.mxu3 }
 0x7f3   : > { %v8706_v41 = vadd.f32 %v8705_v51, %v13858_v10  ;;  %v13979_v10 = vpop.f32.mrf.mxu0  ;;  %v10099_v51 = vor.u32 %v11214_v56, %v10096_v19  ;;  %v8545_v19 = vadd.f32 %v13973_v27, %v13879_v43 }
 0x7f5   : > { %v8795_v8 = vadd.f32 %v8794_v24, %v8706_v41 }
 0x7f7   : > { %8871 = vst [vmem:[%s13963_s29 + $0x10] sm:$0xff] %v8795_v8 }
 0x7fa   : > { %v8707_v44 = vpop.f32.mrf.mxu2  ;;  %v8796_v32 = vpop.f32.mrf.mxu3 }
 0x7fb   : > { %v8708_v22 = vadd.f32 %v8707_v44, %v13861_v14  ;;  %v13986_v14 = vpop.f32.mrf.mxu0 }
 0x7fd   : > { %v8797_v34 = vadd.f32 %v8796_v32, %v8708_v22  ;;  %v11241_v22 = vld [vmem:[#allocation4 + $0x744] sm:$0xf0] }
 0x7ff   : > { %8872 = vst [vmem:[%s13963_s29 + $0x18] sm:$0xff] %v8797_v34  ;;  %8749 = vmatmul.bf16.gmra.mxu2 %v10023_v57  ;;  %8838 = vmatmul.bf16.gmra.mxu3 %v10027_v58  ;;  %v10166_v34 = vld [vmem:[#allocation4 + $0x700] sm:$0xf]  ;;  %v11232_v57 = vld [vmem:[#allocation4 + $0x704] sm:$0xf]  ;;  %v8543_v58 = vadd.f32 %v13966_v45, %v13876_v18 }
 0x802   : > { %v8710_v47 = vpop.f32.mrf.mxu2  ;;  %v8799_v38 = vpop.f32.mrf.mxu3 }
 0x803   : > { %v8711_v42 = vadd.f32 %v8710_v47, %v13864_v23  ;;  %v13989_v23 = vpop.f32.mrf.mxu1  ;;  %v13992_v8 = vpop.f32.mrf.mxu0 }
 0x805   : > { %v8800_v20 = vadd.f32 %v8799_v38, %v8711_v42  ;;  %v10167_v38 = vor.u32 %v11241_v22, %v10166_v34  ;;  %v10171_v42 = vor.u32 %v11232_v57, %v10168_v12 }
 0x807   : > { %8873 = vst [vmem:[%s13963_s29 + $0x20] sm:$0xff] %v8800_v20  ;;  %v8632_v20 = vadd.f32 %v13970_v26, %v8543_v58 }
 0x80a   : > { %v8712_v6 = vpop.f32.mrf.mxu2  ;;  %v8801_v36 = vpop.f32.mrf.mxu3 }
 0x80b   : > { %v8713_v40 = vadd.f32 %v8712_v6, %v13867_v3  ;;  %v13996_v3 = vpop.f32.mrf.mxu1  ;;  %v14001_v47 = vpop.f32.mrf.mxu0 }
 0x80d   : > { %v8802_v35 = vadd.f32 %v8801_v36, %v8713_v40  ;;  %v8634_v40 = vadd.f32 %v13976_v62, %v8545_v19  ;;  %v4158_v62 = vld [vmem:[#allocation3 + $0x190] sm:$0x11]  ;;  %v10312_v19 = vld [vmem:[#allocation4 + $0x868] sm:$0xf0] }
 0x80e   : > { %v4317_v12 = vrot.slane %v4158_v62, 5 }
 0x80f   : > { %8874 = vst [vmem:[%s13963_s29 + $0x28] sm:$0xff] %v8802_v35  ;;  %8754 = vmatmul.bf16.gmra.mxu2 %v10095_v17  ;;  %8843 = vmatmul.bf16.gmra.mxu3 %v10099_v51  ;;  %v11259_v35 = vld [vmem:[#allocation4 + $0x7d4] sm:$0xf0]  ;;  %v10240_v17 = vld [vmem:[#allocation4 + $0x7d8] sm:$0xf0] }
 0x810   : > { %v10238_v51 = vld [vmem:[#allocation4 + $0x790] sm:$0xf] }
 0x811   : > { %v10239_v27 = vor.u32 %v11259_v35, %v10238_v51 }
 0x812   : > { %v8715_v24 = vpop.f32.mrf.mxu2  ;;  %v8804_v41 = vpop.f32.mrf.mxu3 }
 0x813   : > { %v8716_v44 = vadd.f32 %v8715_v24, %v13870_v50  ;;  %v14005_v63 = vpop.f32.mrf.mxu1  ;;  %v14009_v45 = vpop.f32.mrf.mxu0  ;;  %v11250_v24 = vld [vmem:[#allocation4 + $0x794] sm:$0xf] }
 0x815   : > { %v8805_v32 = vadd.f32 %v8804_v41, %v8716_v44  ;;  %v8548_v41 = vadd.f32 %v13979_v10, %v13884_v59 }
 0x817   : > { %8875 = vst [vmem:[%s13963_s29 + $0x30] sm:$0xff] %v8805_v32  ;;  %v10243_v32 = vor.u32 %v11250_v24, %v10240_v17 }
 0x81a   : > { %v8717_v1 = vpop.f32.mrf.mxu2  ;;  %v8806_v4 = vpop.f32.mrf.mxu3 }
 0x81b   : > { %v8718_v48 = vadd.f32 %v8717_v1, %v13873_v28  ;;  %v14015_v44 = vpop.f32.mrf.mxu1  ;;  %v4156_v1 = vld [vmem:[#allocation3 + $0x60] sm:$0xee]  ;;  %v8559_v34 = vpop.f32.mrf.mxu0 }
 0x81c   : > { %v9235_v22 = vrot.slane %v4156_v1, 9 }
 0x81d   : > { %v8807_v50 = vadd.f32 %v8806_v4, %v8718_v48  ;;  %v4314_v4 = vrot.slane %v13886_v0, 5  ;;  %v8637_v48 = vadd.f32 %v13983_v52, %v8548_v41  ;;  %v8550_v0 = vadd.f32 %v13986_v14, %v13893_v31 }
 0x81e   : > { %v10315_v14 = vor.u32 %v11268_v37, %v10312_v19  ;;  %v8555_v41 = vadd.f32 %v14001_v47, %v13903_v29  ;;  %v8558_v29 = vadd.f32 %v14009_v45, %v13906_v55 }
 0x81f   : > { %8876 = vst [vmem:[%s13963_s29 + $0x38] sm:$0xff] %v8807_v50  ;;  %8759 = vmatmul.bf16.gmra.mxu2 %v10167_v38  ;;  %8848 = vmatmul.bf16.gmra.mxu3 %v10171_v42  ;;  %v4316_v57 = vrot.slane %v4314_v4, 4  ;;  %v4315_v58 = vsel %vm13040_vm4, %v9235_v22, %v4314_v4  ;;  %v8639_v52 = vadd.f32 %v13989_v23, %v8550_v0 }
 0x820   : > { %4381 = vst [vmem:[#allocation4 + $0x8b0] sm:$0xff] %v4315_v58  ;;  %v8644_v62 = vadd.f32 %v14005_v63, %v8555_v41 }
 0x821   : > { %v4318_v38 = vsel %vm13040_vm4, %v4316_v57, %v4317_v12 }
 0x822   : > { %v8720_v6 = vpop.f32.mrf.mxu2  ;;  %v8809_v36 = vpop.f32.mrf.mxu3  ;;  %4382 = vst [vmem:[#allocation4 + $0x8f8] sm:$0xff] %v4318_v38  ;;  %v8560_v38 = vadd.f32 %v8559_v34, %v13909_v33 }
 0x823   : > { %v8721_v28 = vadd.f32 %v8720_v6, %v8632_v20  ;;  %v8648_v20 = vpop.f32.mrf.mxu1 }
 0x825   : > { %v8810_v18 = vadd.f32 %v8809_v36, %v8721_v28  ;;  %v11277_v28 = vld [vmem:[#allocation4 + $0x864] sm:$0xf0] }
 0x827   : > { %8877 = vst [vmem:[%s13963_s29 + $0x40] sm:$0xff] %v8810_v18  ;;  %v8562_v18 = vpop.f32.mrf.mxu0 }
 0x829   : > { %v10384_v1 = vld [vmem:[#allocation4 + $0x8f8] sm:$0xf0] }
 0x82a   : > { %v8722_v53 = vpop.f32.mrf.mxu2  ;;  %v8811_v56 = vpop.f32.mrf.mxu3 }
 0x82b   : > { %v8723_v26 = vadd.f32 %v8722_v53, %v8634_v40  ;;  %v10310_v53 = vld [vmem:[#allocation4 + $0x820] sm:$0xf]  ;;  %v8651_v17 = vpop.f32.mrf.mxu1 }
 0x82c   : > { %v10311_v31 = vor.u32 %v11277_v28, %v10310_v53  ;;  %v8563_v28 = vadd.f32 %v8562_v18, %v13912_v54 }
 0x82d   : > { %v8812_v43 = vadd.f32 %v8811_v56, %v8723_v26  ;;  %v8553_v56 = vadd.f32 %v13992_v8, %v13898_v61  ;;  %v10382_v61 = vld [vmem:[#allocation4 + $0x8b0] sm:$0xf]  ;;  %v11295_v8 = vld [vmem:[#allocation4 + $0x8f4] sm:$0xf0] }
 0x82f   : > { %8878 = vst [vmem:[%s13963_s29 + $0x48] sm:$0xff] %v8812_v43  ;;  %8764 = vmatmul.bf16.gmra.mxu2 %v10239_v27  ;;  %8853 = vmatmul.bf16.gmra.mxu3 %v10243_v32  ;;  %v8642_v23 = vadd.f32 %v13996_v3, %v8553_v56  ;;  %v8564_v43 = vpop.f32.mrf.mxu0  ;;  %v11286_v32 = vld [vmem:[#allocation4 + $0x8b4] sm:$0xf] }
 0x830   : > { %v10387_v57 = vor.u32 %v11286_v32, %v10384_v1  ;;  %v8565_v34 = vadd.f32 %v8564_v43, %v13915_v15 }
 0x832   : > { %v8725_v59 = vpop.f32.mrf.mxu2  ;;  %v8814_v10 = vpop.f32.mrf.mxu3 }
 0x833   : > { %v8726_v50 = vadd.f32 %v8725_v59, %v8637_v48  ;;  %v8653_v3 = vpop.f32.mrf.mxu1  ;;  %v10383_v48 = vor.u32 %v11295_v8, %v10382_v61 }
 0x835   : > { %v8815_v42 = vadd.f32 %v8814_v10, %v8726_v50  ;;  %v8647_v10 = vadd.f32 %v14015_v44, %v8558_v29  ;;  %v8652_v44 = vadd.f32 %v8651_v17, %v8563_v28 }
 0x837   : > { %8879 = vst [vmem:[%s13963_s29 + $0x50] sm:$0xff] %v8815_v42  ;;  %v8567_v59 = vpop.f32.mrf.mxu0 }
 0x838   : > { %v8568_v54 = vadd.f32 %v8567_v59, %v13918_v11 }
 0x83a   : > { %v8727_v6 = vpop.f32.mrf.mxu2  ;;  %v8816_v36 = vpop.f32.mrf.mxu3 }
 0x83b   : > { %v8728_v40 = vadd.f32 %v8727_v6, %v8639_v52  ;;  %v8656_v0 = vpop.f32.mrf.mxu1  ;;  %v8649_v52 = vadd.f32 %v8648_v20, %v8560_v38  ;;  %v8654_v20 = vadd.f32 %v8653_v3, %v8565_v34 }
 0x83c   : > { %v8657_v17 = vadd.f32 %v8656_v0, %v8568_v54 }
 0x83d   : > { %v8817_v35 = vadd.f32 %v8816_v36, %v8728_v40 }
 0x83f   : > { %8880 = vst [vmem:[%s13963_s29 + $0x58] sm:$0xff] %v8817_v35  ;;  %8769 = vmatmul.bf16.gmra.mxu2 %v10311_v31  ;;  %8858 = vmatmul.bf16.gmra.mxu3 %v10315_v14  ;;  %v8569_v6 = vpop.f32.mrf.mxu0 }
 0x840   : > { %v8570_v15 = vadd.f32 %v8569_v6, %v13921_v16 }
 0x842   : > { %v8730_v26 = vpop.f32.mrf.mxu2  ;;  %v8819_v51 = vpop.f32.mrf.mxu3 }
 0x843   : > { %v8731_v24 = vadd.f32 %v8730_v26, %v8642_v23  ;;  %v8658_v40 = vpop.f32.mrf.mxu1 }
 0x844   : > { %v8659_v32 = vadd.f32 %v8658_v40, %v8570_v15 }
 0x845   : > { %v8820_v27 = vadd.f32 %v8819_v51, %v8731_v24 }
 0x847   : > { %8881 = vst [vmem:[%s13963_s29 + $0x60] sm:$0xff] %v8820_v27  ;;  %v8572_v56 = vpop.f32.mrf.mxu0 }
 0x848   : > { %v8573_v11 = vadd.f32 %v8572_v56, %v13924_v7 }
 0x84a   : > { %v8732_v4 = vpop.f32.mrf.mxu2  ;;  %v8821_v22 = vpop.f32.mrf.mxu3 }
 0x84b   : > { %v8733_v12 = vadd.f32 %v8732_v4, %v8644_v62  ;;  %v8661_v31 = vpop.f32.mrf.mxu1 }
 0x84d   : > { %v8822_v47 = vadd.f32 %v8821_v22, %v8733_v12  ;;  %v8662_v12 = vadd.f32 %v8661_v31, %v8573_v11 }
 0x84f   : > { %8882 = vst [vmem:[%s13963_s29 + $0x68] sm:$0xff] %v8822_v47  ;;  %8774 = vmatmul.bf16.gmra.mxu2 %v10383_v48  ;;  %8863 = vmatmul.bf16.gmra.mxu3 %v10387_v57  ;;  %v8574_v18 = vpop.f32.mrf.mxu0 }
 0x850   : > { %v8575_v16 = vadd.f32 %v8574_v18, %v13927_v60 }
 0x852   : > { %v8735_v58 = vpop.f32.mrf.mxu2  ;;  %v8824_v63 = vpop.f32.mrf.mxu3 }
 0x853   : > { %v8736_v50 = vadd.f32 %v8735_v58, %v8647_v10  ;;  %v8663_v27 = vpop.f32.mrf.mxu1 }
 0x854   : > { %v8664_v58 = vadd.f32 %v8663_v27, %v8575_v16 }
 0x855   : > { %v8825_v42 = vadd.f32 %v8824_v63, %v8736_v50 }
 0x857   : > { %8883 = vst [vmem:[%s13963_s29 + $0x70] sm:$0xff] %v8825_v42  ;;  %v8577_v8 = vpop.f32.mrf.mxu0 }
 0x858   : > { %v8578_v0 = vadd.f32 %v8577_v8, %v13930_v49 }
 0x85a   : > { %v8737_v55 = vpop.f32.mrf.mxu2  ;;  %v8826_v45 = vpop.f32.mrf.mxu3 }
 0x85b   : > { %v8738_v36 = vadd.f32 %v8737_v55, %v8649_v52  ;;  %v8666_v22 = vpop.f32.mrf.mxu1 }
 0x85c   : > { %v8667_v52 = vadd.f32 %v8666_v22, %v8578_v0 }
 0x85d   : > { %v8827_v19 = vadd.f32 %v8826_v45, %v8738_v36 }
 0x85f   : > { %8884 = vst [vmem:[%s13963_s29 + $0x78] sm:$0xff] %v8827_v19  ;;  %v8579_v48 = vpop.f32.mrf.mxu0 }
 0x860   : > { %v8580_v60 = vadd.f32 %v8579_v48, %v13933_v2 }
 0x862   : > { %v8740_v53 = vpop.f32.mrf.mxu2  ;;  %v8829_v37 = vpop.f32.mrf.mxu3 }
 0x863   : > { %v8741_v33 = vadd.f32 %v8740_v53, %v8652_v44  ;;  %v8668_v10 = vpop.f32.mrf.mxu1 }
 0x864   : > { %v8669_v40 = vadd.f32 %v8668_v10, %v8580_v60 }
 0x865   : > { %v8830_v35 = vadd.f32 %v8829_v37, %v8741_v33 }
 0x867   : > { %8885 = vst [vmem:[%s13963_s29 + $0x80] sm:$0xff] %v8830_v35  ;;  %v8582_v38 = vpop.f32.mrf.mxu0 }
 0x868   : > { %v8583_v49 = vadd.f32 %v8582_v38, %v13936_v46 }
 0x86a   : > { %v8742_v14 = vpop.f32.mrf.mxu2  ;;  %v8831_v23 = vpop.f32.mrf.mxu3 }
 0x86b   : > { %v8743_v26 = vadd.f32 %v8742_v14, %v8654_v20  ;;  %v8671_v6 = vpop.f32.mrf.mxu1 }
 0x86c   : > { %v8672_v35 = vadd.f32 %v8671_v6, %v8583_v49 }
 0x86d   : > { %v8832_v51 = vadd.f32 %v8831_v23, %v8743_v26 }
 0x86f   : > { %8886 = vst [vmem:[%s13963_s29 + $0x88] sm:$0xff] %v8832_v51  ;;  %v8584_v28 = vpop.f32.mrf.mxu0 }
 0x870   : > { %v8585_v2 = vadd.f32 %v8584_v28, %v13939_v25 }
 0x872   : > { %v8745_v24 = vpop.f32.mrf.mxu2  ;;  %v8834_v41 = vpop.f32.mrf.mxu3 }
 0x873   : > { %v8746_v61 = vadd.f32 %v8745_v24, %v8657_v17  ;;  %v8673_v37 = vpop.f32.mrf.mxu1 }
 0x874   : > { %v8674_v54 = vadd.f32 %v8673_v37, %v8585_v2 }
 0x875   : > { %v8835_v43 = vadd.f32 %v8834_v41, %v8746_v61 }
 0x877   : > { %8887 = vst [vmem:[%s13963_s29 + $0x90] sm:$0xff] %v8835_v43  ;;  %v8587_v34 = vpop.f32.mrf.mxu0 }
 0x878   : > { %v8588_v46 = vadd.f32 %v8587_v34, %v13942_v5 }
 0x87a   : > { %v8747_v1 = vpop.f32.mrf.mxu2  ;;  %v8836_v62 = vpop.f32.mrf.mxu3 }
 0x87b   : > { %v8748_v4 = vadd.f32 %v8747_v1, %v8659_v32  ;;  %v8676_v23 = vpop.f32.mrf.mxu1 }
 0x87c   : > { %v8677_v61 = vadd.f32 %v8676_v23, %v8588_v46 }
 0x87d   : > { %v8837_v3 = vadd.f32 %v8836_v62, %v8748_v4 }
 0x87f   : > { %8888 = vst [vmem:[%s13963_s29 + $0x98] sm:$0xff] %v8837_v3  ;;  %v8589_v18 = vpop.f32.mrf.mxu0 }
 0x880   : > { %v8590_v32 = vadd.f32 %v8589_v18, %v13945_v9 }
 0x882   : > { %v8750_v57 = vpop.f32.mrf.mxu2  ;;  %v8839_v29 = vpop.f32.mrf.mxu3 }
 0x883   : > { %v8751_v47 = vadd.f32 %v8750_v57, %v8662_v12  ;;  %v8678_v27 = vpop.f32.mrf.mxu1 }
 0x884   : > { %v8679_v62 = vadd.f32 %v8678_v27, %v8590_v32 }
 0x885   : > { %v8840_v59 = vadd.f32 %v8839_v29, %v8751_v47 }
 0x887   : > { %8889 = vst [vmem:[%s13963_s29 + $0xa0] sm:$0xff] %v8840_v59  ;;  %v8592_v8 = vpop.f32.mrf.mxu0 }
 0x888   : > { %v8593_v5 = vadd.f32 %v8592_v8, %v13948_v13 }
 0x88a   : > { %v8752_v63 = vpop.f32.mrf.mxu2  ;;  %v8841_v50 = vpop.f32.mrf.mxu3 }
 0x88b   : > { %v8753_v7 = vadd.f32 %v8752_v63, %v8664_v58  ;;  %v8681_v4 = vpop.f32.mrf.mxu1 }
 0x88c   : > { %v8682_v57 = vadd.f32 %v8681_v4, %v8593_v5 }
 0x88d   : > { %v8842_v42 = vadd.f32 %v8841_v50, %v8753_v7 }
 0x88f   : > { %8890 = vst [vmem:[%s13963_s29 + $0xa8] sm:$0xff] %v8842_v42  ;;  %v8594_v12 = vpop.f32.mrf.mxu0 }
 0x890   : > { %v8595_v9 = vadd.f32 %v8594_v12, %v13951_v39 }
 0x892   : > { %v8755_v55 = vpop.f32.mrf.mxu2  ;;  %v8844_v45 = vpop.f32.mrf.mxu3 }
 0x893   : > { %v8756_v36 = vadd.f32 %v8755_v55, %v8667_v52  ;;  %v8683_v59 = vpop.f32.mrf.mxu1 }
 0x894   : > { %v8684_v63 = vadd.f32 %v8683_v59, %v8595_v9 }
 0x895   : > { %v8845_v19 = vadd.f32 %v8844_v45, %v8756_v36 }
 0x897   : > { %8891 = vst [vmem:[%s13963_s29 + $0xb0] sm:$0xff] %v8845_v19  ;;  %v8597_v58 = vpop.f32.mrf.mxu0 }
 0x898   : > { %v8598_v0 = vadd.f32 %v8597_v58, %v13954_v30 }
 0x89a   : > { %v8757_v44 = vpop.f32.mrf.mxu2  ;;  %v8846_v53 = vpop.f32.mrf.mxu3 }
 0x89b   : > { %v8758_v56 = vadd.f32 %v8757_v44, %v8669_v40  ;;  %v8686_v7 = vpop.f32.mrf.mxu1 }
 0x89c   : > { %v8687_v52 = vadd.f32 %v8686_v7, %v8598_v0 }
 0x89d   : > { %v8847_v33 = vadd.f32 %v8846_v53, %v8758_v56 }
 0x89f   : > { %8892 = vst [vmem:[%s13963_s29 + $0xb8] sm:$0xff] %v8847_v33  ;;  %v8599_v6 = vpop.f32.mrf.mxu0 }
 0x8a0   : > { %v8600_v36 = vadd.f32 %v8599_v6, %v13957_v21 }
 0x8a2   : > { %v8760_v20 = vpop.f32.mrf.mxu2  ;;  %v8849_v31 = vpop.f32.mrf.mxu3 }
 0x8a3   : > { %v8761_v14 = vadd.f32 %v8760_v20, %v8672_v35  ;;  %v8688_v28 = vpop.f32.mrf.mxu1 }
 0x8a4   : > { %v8689_v30 = vadd.f32 %v8688_v28, %v8600_v36 }
 0x8a5   : > { %v8850_v26 = vadd.f32 %v8849_v31, %v8761_v14 }
 0x8a7   : > { %8893 = vst [vmem:[%s13963_s29 + $0xc0] sm:$0xff] %v8850_v26 }
 0x8aa   : > { %v8762_v51 = vpop.f32.mrf.mxu2  ;;  %v8851_v17 = vpop.f32.mrf.mxu3 }
 0x8ab   : > { %v8763_v24 = vadd.f32 %v8762_v51, %v8674_v54 }
 0x8ad   : > { %v8852_v41 = vadd.f32 %v8851_v17, %v8763_v24 }
 0x8af   : > { %8894 = vst [vmem:[%s13963_s29 + $0xc8] sm:$0xff] %v8852_v41 }
 0x8b2   : > { %v8765_v15 = vpop.f32.mrf.mxu2  ;;  %v8854_v43 = vpop.f32.mrf.mxu3 }
 0x8b3   : > { %v8766_v25 = vadd.f32 %v8765_v15, %v8677_v61 }
 0x8b5   : > { %v8855_v1 = vadd.f32 %v8854_v43, %v8766_v25 }
 0x8b7   : > { %8895 = vst [vmem:[%s13963_s29 + $0xd0] sm:$0xff] %v8855_v1 }
 0x8ba   : > { %v8767_v11 = vpop.f32.mrf.mxu2  ;;  %v8856_v22 = vpop.f32.mrf.mxu3 }
 0x8bb   : > { %v8768_v3 = vadd.f32 %v8767_v11, %v8679_v62 }
 0x8bd   : > { %v8857_v48 = vadd.f32 %v8856_v22, %v8768_v3 }
 0x8bf   : > { %8896 = vst [vmem:[%s13963_s29 + $0xd8] sm:$0xff] %v8857_v48 }
 0x8c2   : > { %v8770_v29 = vpop.f32.mrf.mxu2  ;;  %v8859_v47 = vpop.f32.mrf.mxu3 }
 0x8c3   : > { %v8771_v16 = vadd.f32 %v8770_v29, %v8682_v57 }
 0x8c5   : > { %v8860_v10 = vadd.f32 %v8859_v47, %v8771_v16 }
 0x8c7   : > { %8897 = vst [vmem:[%s13963_s29 + $0xe0] sm:$0xff] %v8860_v10 }
 0x8ca   : > { %v8772_v50 = vpop.f32.mrf.mxu2  ;;  %v8861_v38 = vpop.f32.mrf.mxu3 }
 0x8cb   : > { %v8773_v13 = vadd.f32 %v8772_v50, %v8684_v63 }
 0x8cd   : > { %v8862_v42 = vadd.f32 %v8861_v38, %v8773_v13 }
 0x8cf   : > { %8898 = vst [vmem:[%s13963_s29 + $0xe8] sm:$0xff] %v8862_v42 }
 0x8d2   : > { %v8775_v55 = vpop.f32.mrf.mxu2  ;;  %v8864_v45 = vpop.f32.mrf.mxu3 }
 0x8d3   : > { %v8776_v39 = vadd.f32 %v8775_v55, %v8687_v52 }
 0x8d5   : > { %v8865_v60 = vadd.f32 %v8864_v45, %v8776_v39 }
 0x8d7   : > { %8899 = vst [vmem:[%s13963_s29 + $0xf0] sm:$0xff] %v8865_v60 }
 0x8da   : > { %v8777_v19 = vpop.f32.mrf.mxu2  ;;  %v8866_v44 = vpop.f32.mrf.mxu3 }
 0x8db   : > { %v8778_v40 = vadd.f32 %v8777_v19, %v8689_v30 }
 0x8dd   : > { %v8867_v53 = vadd.f32 %v8866_v44, %v8778_v40 }
 0x8df   : > { %8900 = vst [vmem:[%s13963_s29 + $0xf8] sm:$0xff] %v8867_v53 }
 0x8e0   : > { %11568 = shalt.err (!%p11565_p8)
}
 0x8e1   : > { %s11613_s22 = smov 128   ;;  %s11614_s29 = smov 8  }
 0x8e2   : > { %11445 = dma.vmem_to_hbm [thread:$0]  (%p11693_p5), %s8915_s15, 4096, %s8917_s16, %s8902_s28, %s11613_s22, %s11613_s22, %s11614_s29  }
 0x8e3 PF: > { %p11457_p9 = scmp.ge.s32.totalorder %s11607_s27, 2  ;;  %s8931_s9 = sand.u32 1, %s11595_s24  }
 0x8e4   : > { %s8932_s13 = scalar_lea.sflag [#allocation7], %s8931_s9 }
 0x8e5   : > { %p11452_p10 = pnand %p11457_p9, %p11697_p6 }
 0x8e7   : > { %p11453_p11 = pneg %p11452_p10 }
 0x8e9   : > { %11590 = dma.done.wait (%p11453_p11), %s8932_s13, 4096  }
 0x8ea   : > { %11592 = vsyncadd (%p11453_p11), %s8932_s13, 4294963200  ;;  %p18_p12 = scmp.ge.s32.totalorder %s11680_s30, 4   ;;  %s14235_s24 = smov %s11599_s25 }
 0x8eb   : > { %s14236_s25 = smov %s11603_s26  ;;  %s14237_s26 = smov %s11691_s10 }
 0x8ec   : > { %s14238_s27 = smov %s11680_s30  ;;  %20 = sbr.rel (!%p18_p12) target bundleno = 4 (0x4), region = 91 }
 0x8f1   :  { %8938 = vsyncpa [#allocation6], 1 }
 0x8f2   :  { %8940 = vsyncpa [#allocation6 + $0x1], 1 }
 0x8f3   :  { %8941 = vsyncpa [#allocation7], 1 }
 0x8f4   :  { %8943 = vsyncpa [#allocation7 + $0x1], 1 }

</bundles_post_ra>
